<compile_context>
chip_gen: v7x
topology: tpu7x:2x2x1
jax: 0.10.0
libtpu: 0.0.40
codegen_flags: <defaults>
</compile_context>

<pallas_src>
import math

import jax
import jax.numpy as jnp
from jax.experimental import pallas as pl
from jax.experimental.pallas import tpu as pltpu

# ----------------------------- hyper-parameters -----------------------------
B = 2            # batch
L = 16           # passage length
J = 8            # question length
N = 8            # qa answer length
T = 8            # nlg answer length
D_VOCAB = 64     # fixed vocabulary
D_EMB = 32       # embedding dim (== d_model, so no input projection needed)
D_MODEL = 32
D_FF = 64
D_EXT_VOCAB = 80 # extended vocabulary (>= D_VOCAB)
MAX_SEQ_LEN = max(L, J, N, T)
LANE = 128       # lane-dense padding width for the extended-vocab output

PAD_IDX, UNK_IDX, BOS_IDX, EOS_IDX, CLS_IDX, QA_IDX = 0, 1, 2, 3, 4, 5
SPECIAL_MASK_IDX = [PAD_IDX, UNK_IDX, BOS_IDX, CLS_IDX, QA_IDX]


# ================================ fused kernel ================================
def _st_model_kernel(
    # per-batch (grid) inputs
    p_ids_ref, q_ids_ref, qa_ids_ref, nlg_ids_ref, src_ids_ref,
    mask_p_ref, mask_q_ref, mask_qa_ref, mask_nlg_ref,
    # embedding
    table_ref, pos_ref,
    # encoder stacks (layer 0 = shared, 1 = passage, 2 = question, 3 = qa)
    enc_wq_ref, enc_bq_ref, enc_wkv_ref, enc_bkv_ref, enc_wo_ref, enc_bo_ref,
    enc_wff1_ref, enc_bff1_ref, enc_wff2_ref, enc_bff2_ref, enc_ln_ref,
    # decoder layer (attn block 0 = self, 1..3 = cross p/q/qa)
    dec_wq_ref, dec_bq_ref, dec_wkv_ref, dec_bkv_ref, dec_wo_ref, dec_bo_ref,
    dec_wff1_ref, dec_bff1_ref, dec_wff2_ref, dec_bff2_ref, dec_ln_ref,
    # multi-source pointer generator
    ptr_wproj_ref, ptr_bproj_ref, gen1_w_ref, gen1_b_ref, gen2_w_ref, gen2_b_ref,
    lam_w_ref, lam_b_ref, special_mask_ref,
    # outputs
    scores_ref, lam_out_ref):
    f32 = jnp.float32
    V, Dm = table_ref.shape
    Lp = p_ids_ref.shape[1]
    Jq = q_ids_ref.shape[1]
    Nq = qa_ids_ref.shape[1]
    Tt = nlg_ids_ref.shape[1]
    Vpad = scores_ref.shape[2]
    scale = 1.0 / math.sqrt(Dm)
    emb_scale = math.sqrt(float(Dm))

    table = table_ref[...]
    pos = pos_ref[...]

    def dot(a, b):
        return jnp.dot(a, b, preferred_element_type=f32)

    def layer_norm(x, g, b):
        mu = jnp.mean(x, axis=-1, keepdims=True)
        var = jnp.mean(jnp.square(x - mu), axis=-1, keepdims=True)
        return (x - mu) * jax.lax.rsqrt(var + 1e-6) * g + b

    def softmax(logits):
        m = jnp.max(logits, axis=-1, keepdims=True)
        e = jnp.exp(logits - m)
        return e * pl.reciprocal(jnp.sum(e, axis=-1, keepdims=True), approx=True)

    def masked_softmax(logits, mask):
        return softmax(jnp.where(mask > 0.0, logits, -1e9))

    def embed(ids_ref, S):
        ids = ids_ref[0]                                        # [S, 1] int32
        col = jax.lax.broadcasted_iota(jnp.int32, (S, V), 1)
        onehot = (col == ids).astype(f32)                       # one-hot gather
        return dot(onehot, table) * emb_scale + pos[0:S]

    def sdpa(q, k, v, mask):
        s = jax.lax.dot_general(q, k, (((1,), (1,)), ((), ())),
                                preferred_element_type=f32) * scale
        p_attn = masked_softmax(s, mask)
        return dot(p_attn, v), p_attn

    def attn_block(x_q, x_kv, mask, wq, bq, wkv, bkv, wo, bo):
        q = dot(x_q, wq) + bq
        kv = dot(x_kv, wkv) + bkv                               # fused K/V proj
        k = kv[:, 0:Dm]
        v = kv[:, Dm:2 * Dm]
        o, _ = sdpa(q, k, v, mask)                              # probs discarded
        return dot(o, wo) + bo

    def enc_layer(l, x, mask):
        ln = enc_ln_ref[l]                                      # [4, Dm]
        a = attn_block(x, x, mask, enc_wq_ref[l], enc_bq_ref[l], enc_wkv_ref[l],
                       enc_bkv_ref[l], enc_wo_ref[l], enc_bo_ref[l])
        x = layer_norm(x + a, ln[0:1], ln[1:2])
        f = jnp.maximum(dot(x, enc_wff1_ref[l]) + enc_bff1_ref[l], 0.0)
        f = dot(f, enc_wff2_ref[l]) + enc_bff2_ref[l]
        return layer_norm(x + f, ln[2:3], ln[3:4])

    mask_p = mask_p_ref[0]                                      # [1, L]
    mask_q = mask_q_ref[0]                                      # [1, J]
    mask_qa = mask_qa_ref[0]                                    # [1, N]
    mask_nlg = mask_nlg_ref[0]                                  # [1, T]

    # ---- StReader: shared encoder block + sequence-specific block per source ----
    Mp = enc_layer(1, enc_layer(0, embed(p_ids_ref, Lp), mask_p), mask_p)
    Mq = enc_layer(2, enc_layer(0, embed(q_ids_ref, Jq), mask_q), mask_q)
    Mqa = enc_layer(3, enc_layer(0, embed(qa_ids_ref, Nq), mask_qa), mask_qa)
    # TODO(synk): StReader's dual-attention cross-sequence blending is undefined in the
    # provided source; sequences are encoded independently here.

    # ---- StTransformerDecoder (self + 3 cross attentions + FFN, post-LN residuals) ----
    x = embed(nlg_ids_ref, Tt)
    row = jax.lax.broadcasted_iota(jnp.int32, (Tt, Tt), 0)
    colc = jax.lax.broadcasted_iota(jnp.int32, (Tt, Tt), 1)
    # causal AND key-not-pad (same net semantics as torch create_masks + transpose-back)
    self_mask = (row >= colc).astype(f32) * mask_nlg

    def dec_attn(i, x_q, x_kv, mask):
        return attn_block(x_q, x_kv, mask, dec_wq_ref[i], dec_bq_ref[i],
                          dec_wkv_ref[i], dec_bkv_ref[i], dec_wo_ref[i], dec_bo_ref[i])

    def dec_norm(i, x):
        ln = dec_ln_ref[i]                                      # [2, Dm]
        return layer_norm(x, ln[0:1], ln[1:2])

    x = dec_norm(0, x + dec_attn(0, x, x, self_mask))
    x = dec_norm(1, x + dec_attn(1, x, Mp, mask_p))
    x = dec_norm(2, x + dec_attn(2, x, Mq, mask_q))
    x = dec_norm(3, x + dec_attn(3, x, Mqa, mask_qa))
    f = jnp.maximum(dot(x, dec_wff1_ref[...]) + dec_bff1_ref[...], 0.0)
    f = dot(f, dec_wff2_ref[...]) + dec_bff2_ref[...]
    Mnlg = dec_norm(4, x + f)

    # ---- Multi-source pointer generator ----
    def src_attn(i, M, mask):
        qx = dot(Mnlg, ptr_wproj_ref[i]) + ptr_bproj_ref[i]
        return sdpa(qx, M, M, mask)                             # probs needed here

    ctx_p, alpha_p = src_attn(0, Mp, mask_p)
    ctx_q, alpha_q = src_attn(1, Mq, mask_q)
    ctx_qa, alpha_qa = src_attn(2, Mqa, mask_qa)

    # vocab generator (d_model -> d_emb -> padded vocab width), special tokens masked;
    # gen2 weights are pre-padded to the lane-dense width Vpad, so p_vocab is already
    # zero on columns >= d_vocab (no identity-pad matmul, no concat needed).
    h = dot(Mnlg, gen1_w_ref[...]) + gen1_b_ref[...]
    p_vocab = masked_softmax(dot(h, gen2_w_ref[...]) + gen2_b_ref[...],
                             special_mask_ref[...])             # [T, Vpad]

    # mixture weights over {vocab, passage, question, qa}; lam_w is pre-split [4, D, 4]
    lam = softmax(dot(Mnlg, lam_w_ref[0]) + dot(ctx_p, lam_w_ref[1])
                  + dot(ctx_q, lam_w_ref[2]) + dot(ctx_qa, lam_w_ref[3])
                  + lam_b_ref[...])                             # [T, 4]

    # scatter-add of the copy distributions into the (padded) extended vocab via
    # one-hot matmuls, blended with the vocab distribution.
    src = src_ids_ref[0]                                        # [L+J+N, 1] int32
    Ssrc = src.shape[0]
    colv = jax.lax.broadcasted_iota(jnp.int32, (Ssrc, Vpad), 1)
    onehot_src = (colv == src).astype(f32)                      # [L+J+N, Vpad]
    scat_p = dot(alpha_p, onehot_src[0:Lp])
    scat_q = dot(alpha_q, onehot_src[Lp:Lp + Jq])
    scat_qa = dot(alpha_qa, onehot_src[Lp + Jq:Lp + Jq + Nq])

    scores_ref[0] = (lam[:, 0:1] * p_vocab + lam[:, 1:2] * scat_p
                     + lam[:, 2:3] * scat_q + lam[:, 3:4] * scat_qa)
    lam_out_ref[0] = lam


# ================================ packing / wrapper ================================
def _pack_attn_block(blk):
    wq = blk["q"]["w"]
    bq = blk["q"]["b"][None, :]
    wkv = jnp.concatenate([blk["k"]["w"], blk["v"]["w"]], axis=1)       # [D, 2D]
    bkv = jnp.concatenate([blk["k"]["b"], blk["v"]["b"]], axis=0)[None, :]
    wo = blk["o"]["w"]
    bo = blk["o"]["b"][None, :]
    return wq, bq, wkv, bkv, wo, bo


def _pack_params(params, vext_pad):
    table = params["embedding"]
    d_vocab, d_model = table.shape
    pos = params["pos"]

    enc_layers = [params["enc_shared"], params["enc_p"], params["enc_q"], params["enc_qa"]]
    enc_attn = list(zip(*[_pack_attn_block(l["attn"]) for l in enc_layers]))
    enc_wq, enc_bq, enc_wkv, enc_bkv, enc_wo, enc_bo = (jnp.stack(t) for t in enc_attn)
    enc_wff1 = jnp.stack([l["ff1"]["w"] for l in enc_layers])
    enc_bff1 = jnp.stack([l["ff1"]["b"][None, :] for l in enc_layers])
    enc_wff2 = jnp.stack([l["ff2"]["w"] for l in enc_layers])
    enc_bff2 = jnp.stack([l["ff2"]["b"][None, :] for l in enc_layers])
    enc_ln = jnp.stack([jnp.stack([l["ln1"]["g"], l["ln1"]["b"],
                                   l["ln2"]["g"], l["ln2"]["b"]]) for l in enc_layers])

    dec = params["dec"]
    dec_attn = list(zip(*[_pack_attn_block(dec[k])
                          for k in ("self", "cross_p", "cross_q", "cross_qa")]))
    dec_wq, dec_bq, dec_wkv, dec_bkv, dec_wo, dec_bo = (jnp.stack(t) for t in dec_attn)
    dec_wff1 = dec["ff1"]["w"]
    dec_bff1 = dec["ff1"]["b"][None, :]
    dec_wff2 = dec["ff2"]["w"]
    dec_bff2 = dec["ff2"]["b"][None, :]
    dec_ln = jnp.stack([jnp.stack([dec[f"ln{i}"]["g"], dec[f"ln{i}"]["b"]])
                        for i in range(1, 6)])

    ptr = params["ptr"]
    ptr_wproj = jnp.stack([ptr["proj_p"]["w"], ptr["proj_q"]["w"], ptr["proj_qa"]["w"]])
    ptr_bproj = jnp.stack([ptr["proj_p"]["b"][None, :], ptr["proj_q"]["b"][None, :],
                           ptr["proj_qa"]["b"][None, :]])
    gen1_w = ptr["gen1"]["w"]
    gen1_b = ptr["gen1"]["b"][None, :]
    # pad the vocab-generator output (and special-token mask) to the lane-dense width
    pad = vext_pad - d_vocab
    gen2_w = jnp.pad(ptr["gen2"]["w"], ((0, 0), (0, pad)))
    gen2_b = jnp.pad(ptr["gen2"]["b"], ((0, pad),))[None, :]
    special_mask = jnp.pad(params["special_mask"], ((0, pad),))[None, :]
    lam_w = ptr["lam"]["w"].reshape(4, d_model, 4)   # split per feature block (no concat in-kernel)
    lam_b = ptr["lam"]["b"][None, :]

    return [table, pos,
            enc_wq, enc_bq, enc_wkv, enc_bkv, enc_wo, enc_bo,
            enc_wff1, enc_bff1, enc_wff2, enc_bff2, enc_ln,
            dec_wq, dec_bq, dec_wkv, dec_bkv, dec_wo, dec_bo,
            dec_wff1, dec_bff1, dec_wff2, dec_bff2, dec_ln,
            ptr_wproj, ptr_bproj, gen1_w, gen1_b, gen2_w, gen2_b,
            lam_w, lam_b, special_mask]


def st_model_forward(params, p, q, qa, source_ext, d_ext_vocab, nlg):
    """Non-autoregressive forward: returns (dec_scores [B,T,Vext], lambdas [B,T,4])."""
    d_vocab = params["embedding"].shape[0]
    d_ext_vocab = max(int(d_ext_vocab), d_vocab)
    vext_pad = ((d_ext_vocab + LANE - 1) // LANE) * LANE
    Bb, Tt = nlg.shape

    def ids_col(x):
        return x.astype(jnp.int32)[..., None]                     # [B, S, 1]

    def key_mask(x):
        return (x != PAD_IDX).astype(jnp.float32)[:, None, :]     # [B, 1, S]

    batch_inputs = [ids_col(p), ids_col(q), ids_col(qa), ids_col(nlg), ids_col(source_ext),
                    key_mask(p), key_mask(q), key_mask(qa), key_mask(nlg)]
    weight_inputs = _pack_params(params, vext_pad)

    in_specs = ([pl.BlockSpec((1,) + x.shape[1:],
                              lambda b, nd=x.ndim: (b,) + (0,) * (nd - 1))
                 for x in batch_inputs]
                + [pl.BlockSpec(w.shape, lambda b, nd=w.ndim: (0,) * nd)
                   for w in weight_inputs])
    out_specs = (pl.BlockSpec((1, Tt, vext_pad), lambda b: (b, 0, 0)),
                 pl.BlockSpec((1, Tt, 4), lambda b: (b, 0, 0)))
    out_shape = (jax.ShapeDtypeStruct((Bb, Tt, vext_pad), jnp.float32),
                 jax.ShapeDtypeStruct((Bb, Tt, 4), jnp.float32))

    scores_pad, lambdas = pl.pallas_call(
        _st_model_kernel,
        grid=(Bb,),                                 # one batch element per grid step
        in_specs=in_specs,
        out_specs=out_specs,
        out_shape=out_shape,
        compiler_params=pltpu.CompilerParams(
            dimension_semantics=("parallel",),      # both v7x TensorCores engaged
            vmem_limit_bytes=8 * 1024 * 1024),      # whole model << 8 MiB
    )(*batch_inputs, *weight_inputs)

    return scores_pad[:, :, :d_ext_vocab], lambdas
    # TODO(synk): autoregressive greedy-decoding branch (host-side dynamic while-loop over
    # per-example completion flags) is not translated to a Pallas kernel.


# ================================ init ================================
def _init_linear(key, din, dout):
    return {"w": (jax.random.normal(key, (din, dout), jnp.float32) * 0.02),
            "b": jnp.zeros((dout,), jnp.float32)}


def _init_ln(d):
    return {"g": jnp.ones((d,), jnp.float32), "b": jnp.zeros((d,), jnp.float32)}


def _init_attn(key, d):
    ks = jax.random.split(key, 4)
    return {"q": _init_linear(ks[0], d, d), "k": _init_linear(ks[1], d, d),
            "v": _init_linear(ks[2], d, d), "o": _init_linear(ks[3], d, d)}


def _init_enc_layer(key, d, dff):
    ks = jax.random.split(key, 3)
    return {"attn": _init_attn(ks[0], d), "ln1": _init_ln(d),
            "ff1": _init_linear(ks[1], d, dff), "ff2": _init_linear(ks[2], dff, d),
            "ln2": _init_ln(d)}


def _init_dec_layer(key, d, dff):
    ks = jax.random.split(key, 6)
    return {"self": _init_attn(ks[0], d), "cross_p": _init_attn(ks[1], d),
            "cross_q": _init_attn(ks[2], d), "cross_qa": _init_attn(ks[3], d),
            "ff1": _init_linear(ks[4], d, dff), "ff2": _init_linear(ks[5], dff, d),
            "ln1": _init_ln(d), "ln2": _init_ln(d), "ln3": _init_ln(d),
            "ln4": _init_ln(d), "ln5": _init_ln(d)}


def _sinusoidal_pos(max_len, d):
    pos = jnp.arange(max_len, dtype=jnp.float32)[:, None]
    i = jnp.arange(d)[None, :]
    angle = pos / jnp.power(10000.0, (2 * (i // 2)).astype(jnp.float32) / d)
    return jnp.where(i % 2 == 0, jnp.sin(angle), jnp.cos(angle)).astype(jnp.float32)


def init_params(key):
    ks = jax.random.split(key, 12)
    emb = jax.random.normal(ks[0], (D_VOCAB, D_EMB), jnp.float32) * 0.1
    emb = emb.at[PAD_IDX].set(0.0)
    special_mask = jnp.ones((D_VOCAB,), jnp.float32).at[jnp.array(SPECIAL_MASK_IDX)].set(0.0)
    return {
        "embedding": emb,
        "pos": _sinusoidal_pos(MAX_SEQ_LEN, D_EMB),
        "enc_shared": _init_enc_layer(ks[1], D_MODEL, D_FF),
        "enc_p": _init_enc_layer(ks[2], D_MODEL, D_FF),
        "enc_q": _init_enc_layer(ks[3], D_MODEL, D_FF),
        "enc_qa": _init_enc_layer(ks[4], D_MODEL, D_FF),
        "dec": _init_dec_layer(ks[5], D_MODEL, D_FF),
        "ptr": {
            "proj_p": _init_linear(ks[6], D_MODEL, D_MODEL),
            "proj_q": _init_linear(ks[7], D_MODEL, D_MODEL),
            "proj_qa": _init_linear(ks[8], D_MODEL, D_MODEL),
            "gen1": _init_linear(ks[9], D_MODEL, D_EMB),
            # tied embeddings (args.tie_embeddings): output projection = embedding^T
            "gen2": {"w": emb.T, "b": jnp.zeros((D_VOCAB,), jnp.float32)},
            "lam": _init_linear(ks[10], 4 * D_MODEL, 4),
        },
        "special_mask": special_mask,
    }


# ================================ main ================================
if __name__ == "__main__":
    key = jax.random.PRNGKey(0)
    kp, kq, kqa, knlg, kparams = jax.random.split(key, 5)

    p = jax.random.randint(kp, (B, L), 6, D_VOCAB).at[:, -2:].set(PAD_IDX)
    q = jax.random.randint(kq, (B, J), 6, D_VOCAB).at[:, -1:].set(PAD_IDX)
    qa = jax.random.randint(kqa, (B, N), 6, D_VOCAB)
    nlg = jax.random.randint(knlg, (B, T), 6, D_VOCAB).at[:, 0].set(BOS_IDX)

    # concatenation of passage/question/qa ids in the extended vocab; add two OOV ids
    source_ext = jnp.concatenate([p, q, qa], axis=1)
    source_ext = source_ext.at[:, 1].set(D_VOCAB + 3).at[:, 2].set(D_VOCAB + 7)

    params = init_params(kparams)

    dec_scores, lambdas = st_model_forward(params, p, q, qa, source_ext, D_EXT_VOCAB, nlg)
    jax.block_until_ready((dec_scores, lambdas))

    assert dec_scores.shape == (B, T, D_EXT_VOCAB), dec_scores.shape
    assert lambdas.shape == (B, T, 4), lambdas.shape
    assert bool(jnp.all(jnp.isfinite(dec_scores))) and bool(jnp.all(jnp.isfinite(lambdas)))
    print("KERNEL_OK")
</pallas_src>

<mosaic_0001>
module attributes {stable_mosaic.version = 11 : i64} {
  func.func @_st_model_kernel(%arg0: i32, %arg1: memref<1x16x1xi32, #tpu.memory_space<vmem>>, %arg2: memref<1x8x1xi32, #tpu.memory_space<vmem>>, %arg3: memref<1x8x1xi32, #tpu.memory_space<vmem>>, %arg4: memref<1x8x1xi32, #tpu.memory_space<vmem>>, %arg5: memref<1x32x1xi32, #tpu.memory_space<vmem>>, %arg6: memref<1x1x16xf32, #tpu.memory_space<vmem>>, %arg7: memref<1x1x8xf32, #tpu.memory_space<vmem>>, %arg8: memref<1x1x8xf32, #tpu.memory_space<vmem>>, %arg9: memref<1x1x8xf32, #tpu.memory_space<vmem>>, %arg10: memref<64x32xf32, #tpu.memory_space<vmem>>, %arg11: memref<16x32xf32, #tpu.memory_space<vmem>>, %arg12: memref<4x32x32xf32, #tpu.memory_space<vmem>>, %arg13: memref<4x1x32xf32, #tpu.memory_space<vmem>>, %arg14: memref<4x32x64xf32, #tpu.memory_space<vmem>>, %arg15: memref<4x1x64xf32, #tpu.memory_space<vmem>>, %arg16: memref<4x32x32xf32, #tpu.memory_space<vmem>>, %arg17: memref<4x1x32xf32, #tpu.memory_space<vmem>>, %arg18: memref<4x32x64xf32, #tpu.memory_space<vmem>>, %arg19: memref<4x1x64xf32, #tpu.memory_space<vmem>>, %arg20: memref<4x64x32xf32, #tpu.memory_space<vmem>>, %arg21: memref<4x1x32xf32, #tpu.memory_space<vmem>>, %arg22: memref<4x4x32xf32, #tpu.memory_space<vmem>>, %arg23: memref<4x32x32xf32, #tpu.memory_space<vmem>>, %arg24: memref<4x1x32xf32, #tpu.memory_space<vmem>>, %arg25: memref<4x32x64xf32, #tpu.memory_space<vmem>>, %arg26: memref<4x1x64xf32, #tpu.memory_space<vmem>>, %arg27: memref<4x32x32xf32, #tpu.memory_space<vmem>>, %arg28: memref<4x1x32xf32, #tpu.memory_space<vmem>>, %arg29: memref<32x64xf32, #tpu.memory_space<vmem>>, %arg30: memref<1x64xf32, #tpu.memory_space<vmem>>, %arg31: memref<64x32xf32, #tpu.memory_space<vmem>>, %arg32: memref<1x32xf32, #tpu.memory_space<vmem>>, %arg33: memref<5x2x32xf32, #tpu.memory_space<vmem>>, %arg34: memref<3x32x32xf32, #tpu.memory_space<vmem>>, %arg35: memref<3x1x32xf32, #tpu.memory_space<vmem>>, %arg36: memref<32x32xf32, #tpu.memory_space<vmem>>, %arg37: memref<1x32xf32, #tpu.memory_space<vmem>>, %arg38: memref<32x128xf32, #tpu.memory_space<vmem>>, %arg39: memref<1x128xf32, #tpu.memory_space<vmem>>, %arg40: memref<4x32x4xf32, #tpu.memory_space<vmem>>, %arg41: memref<1x4xf32, #tpu.memory_space<vmem>>, %arg42: memref<1x128xf32, #tpu.memory_space<vmem>>, %arg43: memref<1x8x128xf32, #tpu.memory_space<vmem>>, %arg44: memref<1x8x4xf32, #tpu.memory_space<vmem>>) attributes {dimension_semantics = [#tpu.dimension_semantics<parallel>], iteration_bounds = array<i64: 2>, scalar_prefetch = 0 : i64, scratch_operands = 0 : i64, tpu.core_type = #tpu.core_type<tc>, window_params = [{transform_indices = @transform_0, window_bounds = array<i64: 1, 16, 1>}, {transform_indices = @transform_1, window_bounds = array<i64: 1, 8, 1>}, {transform_indices = @transform_2, window_bounds = array<i64: 1, 8, 1>}, {transform_indices = @transform_3, window_bounds = array<i64: 1, 8, 1>}, {transform_indices = @transform_4, window_bounds = array<i64: 1, 32, 1>}, {transform_indices = @transform_5, window_bounds = array<i64: 1, 1, 16>}, {transform_indices = @transform_6, window_bounds = array<i64: 1, 1, 8>}, {transform_indices = @transform_7, window_bounds = array<i64: 1, 1, 8>}, {transform_indices = @transform_8, window_bounds = array<i64: 1, 1, 8>}, {pipeline_mode = #tpu.pipeline_mode<synchronous>, transform_indices = @transform_9, window_bounds = array<i64: 64, 32>}, {pipeline_mode = #tpu.pipeline_mode<synchronous>, transform_indices = @transform_10, window_bounds = array<i64: 16, 32>}, {pipeline_mode = #tpu.pipeline_mode<synchronous>, transform_indices = @transform_11, window_bounds = array<i64: 4, 32, 32>}, {pipeline_mode = #tpu.pipeline_mode<synchronous>, transform_indices = @transform_12, window_bounds = array<i64: 4, 1, 32>}, {pipeline_mode = #tpu.pipeline_mode<synchronous>, transform_indices = @transform_13, window_bounds = array<i64: 4, 32, 64>}, {pipeline_mode = #tpu.pipeline_mode<synchronous>, transform_indices = @transform_14, window_bounds = array<i64: 4, 1, 64>}, {pipeline_mode = #tpu.pipeline_mode<synchronous>, transform_indices = @transform_15, window_bounds = array<i64: 4, 32, 32>}, {pipeline_mode = #tpu.pipeline_mode<synchronous>, transform_indices = @transform_16, window_bounds = array<i64: 4, 1, 32>}, {pipeline_mode = #tpu.pipeline_mode<synchronous>, transform_indices = @transform_17, window_bounds = array<i64: 4, 32, 64>}, {pipeline_mode = #tpu.pipeline_mode<synchronous>, transform_indices = @transform_18, window_bounds = array<i64: 4, 1, 64>}, {pipeline_mode = #tpu.pipeline_mode<synchronous>, transform_indices = @transform_19, window_bounds = array<i64: 4, 64, 32>}, {pipeline_mode = #tpu.pipeline_mode<synchronous>, transform_indices = @transform_20, window_bounds = array<i64: 4, 1, 32>}, {pipeline_mode = #tpu.pipeline_mode<synchronous>, transform_indices = @transform_21, window_bounds = array<i64: 4, 4, 32>}, {pipeline_mode = #tpu.pipeline_mode<synchronous>, transform_indices = @transform_22, window_bounds = array<i64: 4, 32, 32>}, {pipeline_mode = #tpu.pipeline_mode<synchronous>, transform_indices = @transform_23, window_bounds = array<i64: 4, 1, 32>}, {pipeline_mode = #tpu.pipeline_mode<synchronous>, transform_indices = @transform_24, window_bounds = array<i64: 4, 32, 64>}, {pipeline_mode = #tpu.pipeline_mode<synchronous>, transform_indices = @transform_25, window_bounds = array<i64: 4, 1, 64>}, {pipeline_mode = #tpu.pipeline_mode<synchronous>, transform_indices = @transform_26, window_bounds = array<i64: 4, 32, 32>}, {pipeline_mode = #tpu.pipeline_mode<synchronous>, transform_indices = @transform_27, window_bounds = array<i64: 4, 1, 32>}, {pipeline_mode = #tpu.pipeline_mode<synchronous>, transform_indices = @transform_28, window_bounds = array<i64: 32, 64>}, {pipeline_mode = #tpu.pipeline_mode<synchronous>, transform_indices = @transform_29, window_bounds = array<i64: 1, 64>}, {pipeline_mode = #tpu.pipeline_mode<synchronous>, transform_indices = @transform_30, window_bounds = array<i64: 64, 32>}, {pipeline_mode = #tpu.pipeline_mode<synchronous>, transform_indices = @transform_31, window_bounds = array<i64: 1, 32>}, {pipeline_mode = #tpu.pipeline_mode<synchronous>, transform_indices = @transform_32, window_bounds = array<i64: 5, 2, 32>}, {pipeline_mode = #tpu.pipeline_mode<synchronous>, transform_indices = @transform_33, window_bounds = array<i64: 3, 32, 32>}, {pipeline_mode = #tpu.pipeline_mode<synchronous>, transform_indices = @transform_34, window_bounds = array<i64: 3, 1, 32>}, {pipeline_mode = #tpu.pipeline_mode<synchronous>, transform_indices = @transform_35, window_bounds = array<i64: 32, 32>}, {pipeline_mode = #tpu.pipeline_mode<synchronous>, transform_indices = @transform_36, window_bounds = array<i64: 1, 32>}, {pipeline_mode = #tpu.pipeline_mode<synchronous>, transform_indices = @transform_37, window_bounds = array<i64: 32, 128>}, {pipeline_mode = #tpu.pipeline_mode<synchronous>, transform_indices = @transform_38, window_bounds = array<i64: 1, 128>}, {pipeline_mode = #tpu.pipeline_mode<synchronous>, transform_indices = @transform_39, window_bounds = array<i64: 4, 32, 4>}, {pipeline_mode = #tpu.pipeline_mode<synchronous>, transform_indices = @transform_40, window_bounds = array<i64: 1, 4>}, {pipeline_mode = #tpu.pipeline_mode<synchronous>, transform_indices = @transform_41, window_bounds = array<i64: 1, 128>}, {transform_indices = @transform_42, window_bounds = array<i64: 1, 8, 128>}, {transform_indices = @transform_43, window_bounds = array<i64: 1, 8, 4>}]} {
    %c0 = arith.constant 0 : index
    %c0_0 = arith.constant 0 : index
    %0 = vector.load %arg10[%c0, %c0_0] : memref<64x32xf32, #tpu.memory_space<vmem>>, vector<64x32xf32>
    %c0_1 = arith.constant 0 : index
    %c0_2 = arith.constant 0 : index
    %1 = vector.load %arg11[%c0_1, %c0_2] : memref<16x32xf32, #tpu.memory_space<vmem>>, vector<16x32xf32>
    %c0_3 = arith.constant 0 : index
    %c0_4 = arith.constant 0 : index
    %c0_5 = arith.constant 0 : index
    %2 = vector.load %arg6[%c0_3, %c0_4, %c0_5] : memref<1x1x16xf32, #tpu.memory_space<vmem>>, vector<1x1x16xf32>
    %3 = vector.shape_cast %2 : vector<1x1x16xf32> to vector<1x16xf32>
    %c0_6 = arith.constant 0 : index
    %c0_7 = arith.constant 0 : index
    %c0_8 = arith.constant 0 : index
    %4 = vector.load %arg7[%c0_6, %c0_7, %c0_8] : memref<1x1x8xf32, #tpu.memory_space<vmem>>, vector<1x1x8xf32>
    %5 = vector.shape_cast %4 : vector<1x1x8xf32> to vector<1x8xf32>
    %c0_9 = arith.constant 0 : index
    %c0_10 = arith.constant 0 : index
    %c0_11 = arith.constant 0 : index
    %6 = vector.load %arg8[%c0_9, %c0_10, %c0_11] : memref<1x1x8xf32, #tpu.memory_space<vmem>>, vector<1x1x8xf32>
    %7 = vector.shape_cast %6 : vector<1x1x8xf32> to vector<1x8xf32>
    %c0_12 = arith.constant 0 : index
    %c0_13 = arith.constant 0 : index
    %c0_14 = arith.constant 0 : index
    %8 = vector.load %arg9[%c0_12, %c0_13, %c0_14] : memref<1x1x8xf32, #tpu.memory_space<vmem>>, vector<1x1x8xf32>
    %9 = vector.shape_cast %8 : vector<1x1x8xf32> to vector<1x8xf32>
    %c0_15 = arith.constant 0 : index
    %c0_16 = arith.constant 0 : index
    %c0_17 = arith.constant 0 : index
    %10 = vector.load %arg1[%c0_15, %c0_16, %c0_17] : memref<1x16x1xi32, #tpu.memory_space<vmem>>, vector<1x16x1xi32>
    %11 = vector.shape_cast %10 : vector<1x16x1xi32> to vector<16x1xi32>
    %12 = tpu.iota {dimensions = array<i32: 1>} : vector<16x64xi32>
    %13 = vector.broadcast %11 : vector<16x1xi32> to vector<16x64xi32>
    %14 = arith.cmpi eq, %12, %13 : vector<16x64xi32>
    %15 = arith.extui %14 : vector<16x64xi1> to vector<16x64xi32>
    %16 = arith.sitofp %15 : vector<16x64xi32> to vector<16x64xf32>
    %cst = arith.constant dense<0.000000e+00> : vector<16x32xf32>
    %17 = tpu.matmul %16, %0, %cst {dimension_numbers = #tpu.dot_dimension_numbers<[1], [0], [0], [1], [0, 0, 1, 1], [], []>} : vector<16x64xf32>, vector<64x32xf32>, vector<16x32xf32> -> vector<16x32xf32>
    %cst_18 = arith.constant 5.65685415 : f32
    %18 = vector.broadcast %cst_18 : f32 to vector<16x32xf32>
    %19 = arith.mulf %17, %18 : vector<16x32xf32>
    %20 = arith.addf %19, %1 : vector<16x32xf32>
    %c0_19 = arith.constant 0 : index
    %c0_20 = arith.constant 0 : index
    %c0_21 = arith.constant 0 : index
    %21 = vector.load %arg22[%c0_19, %c0_20, %c0_21] : memref<4x4x32xf32, #tpu.memory_space<vmem>>, vector<1x4x32xf32>
    %22 = vector.shape_cast %21 : vector<1x4x32xf32> to vector<4x32xf32>
    %c0_22 = arith.constant 0 : index
    %c0_23 = arith.constant 0 : index
    %c0_24 = arith.constant 0 : index
    %23 = vector.load %arg12[%c0_22, %c0_23, %c0_24] : memref<4x32x32xf32, #tpu.memory_space<vmem>>, vector<1x32x32xf32>
    %24 = vector.shape_cast %23 : vector<1x32x32xf32> to vector<32x32xf32>
    %c0_25 = arith.constant 0 : index
    %c0_26 = arith.constant 0 : index
    %c0_27 = arith.constant 0 : index
    %25 = vector.load %arg13[%c0_25, %c0_26, %c0_27] : memref<4x1x32xf32, #tpu.memory_space<vmem>>, vector<1x1x32xf32>
    %26 = vector.shape_cast %25 : vector<1x1x32xf32> to vector<1x32xf32>
    %c0_28 = arith.constant 0 : index
    %c0_29 = arith.constant 0 : index
    %c0_30 = arith.constant 0 : index
    %27 = vector.load %arg14[%c0_28, %c0_29, %c0_30] : memref<4x32x64xf32, #tpu.memory_space<vmem>>, vector<1x32x64xf32>
    %28 = vector.shape_cast %27 : vector<1x32x64xf32> to vector<32x64xf32>
    %c0_31 = arith.constant 0 : index
    %c0_32 = arith.constant 0 : index
    %c0_33 = arith.constant 0 : index
    %29 = vector.load %arg15[%c0_31, %c0_32, %c0_33] : memref<4x1x64xf32, #tpu.memory_space<vmem>>, vector<1x1x64xf32>
    %30 = vector.shape_cast %29 : vector<1x1x64xf32> to vector<1x64xf32>
    %c0_34 = arith.constant 0 : index
    %c0_35 = arith.constant 0 : index
    %c0_36 = arith.constant 0 : index
    %31 = vector.load %arg16[%c0_34, %c0_35, %c0_36] : memref<4x32x32xf32, #tpu.memory_space<vmem>>, vector<1x32x32xf32>
    %32 = vector.shape_cast %31 : vector<1x32x32xf32> to vector<32x32xf32>
    %c0_37 = arith.constant 0 : index
    %c0_38 = arith.constant 0 : index
    %c0_39 = arith.constant 0 : index
    %33 = vector.load %arg17[%c0_37, %c0_38, %c0_39] : memref<4x1x32xf32, #tpu.memory_space<vmem>>, vector<1x1x32xf32>
    %34 = vector.shape_cast %33 : vector<1x1x32xf32> to vector<1x32xf32>
    %cst_40 = arith.constant dense<0.000000e+00> : vector<16x32xf32>
    %35 = tpu.matmul %20, %24, %cst_40 {dimension_numbers = #tpu.dot_dimension_numbers<[1], [0], [0], [1], [0, 0, 1, 1], [], []>} : vector<16x32xf32>, vector<32x32xf32>, vector<16x32xf32> -> vector<16x32xf32>
    %36 = vector.broadcast %26 : vector<1x32xf32> to vector<16x32xf32>
    %37 = arith.addf %35, %36 : vector<16x32xf32>
    %cst_41 = arith.constant dense<0.000000e+00> : vector<16x64xf32>
    %38 = tpu.matmul %20, %28, %cst_41 {dimension_numbers = #tpu.dot_dimension_numbers<[1], [0], [0], [1], [0, 0, 1, 1], [], []>} : vector<16x32xf32>, vector<32x64xf32>, vector<16x64xf32> -> vector<16x64xf32>
    %39 = vector.broadcast %30 : vector<1x64xf32> to vector<16x64xf32>
    %40 = arith.addf %38, %39 : vector<16x64xf32>
    %41 = vector.extract_strided_slice %40 {offsets = [0, 0], sizes = [16, 32], strides = [1, 1]} : vector<16x64xf32> to vector<16x32xf32>
    %42 = vector.extract_strided_slice %40 {offsets = [0, 32], sizes = [16, 32], strides = [1, 1]} : vector<16x64xf32> to vector<16x32xf32>
    %cst_42 = arith.constant dense<0.000000e+00> : vector<16x16xf32>
    %43 = tpu.matmul %37, %41, %cst_42 {dimension_numbers = #tpu.dot_dimension_numbers<[1], [1], [0], [0], [0, 0, 1, 0], [], []>} : vector<16x32xf32>, vector<16x32xf32>, vector<16x16xf32> -> vector<16x16xf32>
    %cst_43 = arith.constant 0.176776692 : f32
    %44 = vector.broadcast %cst_43 : f32 to vector<16x16xf32>
    %45 = arith.mulf %43, %44 : vector<16x16xf32>
    %cst_44 = arith.constant 0.000000e+00 : f32
    %46 = vector.broadcast %cst_44 : f32 to vector<1x16xf32>
    %47 = arith.cmpf ogt, %3, %46 : vector<1x16xf32>
    %cst_45 = arith.constant -1.000000e+09 : f32
    %48 = vector.shape_cast %47 : vector<1x16xi1> to vector<1x16xi1>
    %49 = vector.broadcast %48 : vector<1x16xi1> to vector<16x16xi1>
    %50 = vector.broadcast %cst_45 : f32 to vector<16x16xf32>
    %51 = arith.select %49, %45, %50 : vector<16x16xi1>, vector<16x16xf32>
    %cst_46 = arith.constant dense<0xFF800000> : vector<16xf32>
    %52 = vector.multi_reduction <maximumf>, %51, %cst_46 [1] : vector<16x16xf32> to vector<16xf32>
    %53 = vector.shape_cast %52 : vector<16xf32> to vector<16x1xf32>
    %54 = vector.broadcast %53 : vector<16x1xf32> to vector<16x16xf32>
    %55 = arith.subf %51, %54 : vector<16x16xf32>
    %56 = math.exp %55 : vector<16x16xf32>
    %cst_47 = arith.constant dense<0.000000e+00> : vector<16xf32>
    %57 = vector.multi_reduction <add>, %56, %cst_47 [1] : vector<16x16xf32> to vector<16xf32>
    %58 = vector.shape_cast %57 : vector<16xf32> to vector<16x1xf32>
    %59 = tpu.reciprocal %58 {approx = true} : vector<16x1xf32> -> vector<16x1xf32>
    %60 = vector.broadcast %59 : vector<16x1xf32> to vector<16x16xf32>
    %61 = arith.mulf %56, %60 : vector<16x16xf32>
    %cst_48 = arith.constant dense<0.000000e+00> : vector<16x32xf32>
    %62 = tpu.matmul %61, %42, %cst_48 {dimension_numbers = #tpu.dot_dimension_numbers<[1], [0], [0], [1], [0, 0, 1, 1], [], []>} : vector<16x16xf32>, vector<16x32xf32>, vector<16x32xf32> -> vector<16x32xf32>
    %cst_49 = arith.constant dense<0.000000e+00> : vector<16x32xf32>
    %63 = tpu.matmul %62, %32, %cst_49 {dimension_numbers = #tpu.dot_dimension_numbers<[1], [0], [0], [1], [0, 0, 1, 1], [], []>} : vector<16x32xf32>, vector<32x32xf32>, vector<16x32xf32> -> vector<16x32xf32>
    %64 = vector.broadcast %34 : vector<1x32xf32> to vector<16x32xf32>
    %65 = arith.addf %63, %64 : vector<16x32xf32>
    %66 = arith.addf %20, %65 : vector<16x32xf32>
    %67 = vector.extract_strided_slice %22 {offsets = [0, 0], sizes = [1, 32], strides = [1, 1]} : vector<4x32xf32> to vector<1x32xf32>
    %68 = vector.extract_strided_slice %22 {offsets = [1, 0], sizes = [1, 32], strides = [1, 1]} : vector<4x32xf32> to vector<1x32xf32>
    %cst_50 = arith.constant dense<0.000000e+00> : vector<16xf32>
    %69 = vector.multi_reduction <add>, %66, %cst_50 [1] : vector<16x32xf32> to vector<16xf32>
    %70 = vector.shape_cast %69 : vector<16xf32> to vector<16x1xf32>
    %cst_51 = arith.constant 3.200000e+01 : f32
    %71 = vector.broadcast %cst_51 : f32 to vector<16x1xf32>
    %72 = arith.divf %70, %71 : vector<16x1xf32>
    %73 = vector.broadcast %72 : vector<16x1xf32> to vector<16x32xf32>
    %74 = arith.subf %66, %73 : vector<16x32xf32>
    %75 = arith.mulf %74, %74 : vector<16x32xf32>
    %cst_52 = arith.constant dense<0.000000e+00> : vector<16xf32>
    %76 = vector.multi_reduction <add>, %75, %cst_52 [1] : vector<16x32xf32> to vector<16xf32>
    %77 = vector.shape_cast %76 : vector<16xf32> to vector<16x1xf32>
    %cst_53 = arith.constant 3.200000e+01 : f32
    %78 = vector.broadcast %cst_53 : f32 to vector<16x1xf32>
    %79 = arith.divf %77, %78 : vector<16x1xf32>
    %80 = vector.broadcast %72 : vector<16x1xf32> to vector<16x32xf32>
    %81 = arith.subf %66, %80 : vector<16x32xf32>
    %cst_54 = arith.constant 9.99999997E-7 : f32
    %82 = vector.broadcast %cst_54 : f32 to vector<16x1xf32>
    %83 = arith.addf %79, %82 : vector<16x1xf32>
    %84 = math.rsqrt %83 : vector<16x1xf32>
    %85 = vector.broadcast %84 : vector<16x1xf32> to vector<16x32xf32>
    %86 = arith.mulf %81, %85 : vector<16x32xf32>
    %87 = vector.broadcast %67 : vector<1x32xf32> to vector<16x32xf32>
    %88 = arith.mulf %86, %87 : vector<16x32xf32>
    %89 = vector.broadcast %68 : vector<1x32xf32> to vector<16x32xf32>
    %90 = arith.addf %88, %89 : vector<16x32xf32>
    %c0_55 = arith.constant 0 : index
    %c0_56 = arith.constant 0 : index
    %c0_57 = arith.constant 0 : index
    %91 = vector.load %arg18[%c0_55, %c0_56, %c0_57] : memref<4x32x64xf32, #tpu.memory_space<vmem>>, vector<1x32x64xf32>
    %92 = vector.shape_cast %91 : vector<1x32x64xf32> to vector<32x64xf32>
    %cst_58 = arith.constant dense<0.000000e+00> : vector<16x64xf32>
    %93 = tpu.matmul %90, %92, %cst_58 {dimension_numbers = #tpu.dot_dimension_numbers<[1], [0], [0], [1], [0, 0, 1, 1], [], []>} : vector<16x32xf32>, vector<32x64xf32>, vector<16x64xf32> -> vector<16x64xf32>
    %c0_59 = arith.constant 0 : index
    %c0_60 = arith.constant 0 : index
    %c0_61 = arith.constant 0 : index
    %94 = vector.load %arg19[%c0_59, %c0_60, %c0_61] : memref<4x1x64xf32, #tpu.memory_space<vmem>>, vector<1x1x64xf32>
    %95 = vector.shape_cast %94 : vector<1x1x64xf32> to vector<1x64xf32>
    %96 = vector.broadcast %95 : vector<1x64xf32> to vector<16x64xf32>
    %97 = arith.addf %93, %96 : vector<16x64xf32>
    %cst_62 = arith.constant 0.000000e+00 : f32
    %98 = vector.broadcast %cst_62 : f32 to vector<16x64xf32>
    %99 = arith.maximumf %97, %98 : vector<16x64xf32>
    %c0_63 = arith.constant 0 : index
    %c0_64 = arith.constant 0 : index
    %c0_65 = arith.constant 0 : index
    %100 = vector.load %arg20[%c0_63, %c0_64, %c0_65] : memref<4x64x32xf32, #tpu.memory_space<vmem>>, vector<1x64x32xf32>
    %101 = vector.shape_cast %100 : vector<1x64x32xf32> to vector<64x32xf32>
    %cst_66 = arith.constant dense<0.000000e+00> : vector<16x32xf32>
    %102 = tpu.matmul %99, %101, %cst_66 {dimension_numbers = #tpu.dot_dimension_numbers<[1], [0], [0], [1], [0, 0, 1, 1], [], []>} : vector<16x64xf32>, vector<64x32xf32>, vector<16x32xf32> -> vector<16x32xf32>
    %c0_67 = arith.constant 0 : index
    %c0_68 = arith.constant 0 : index
    %c0_69 = arith.constant 0 : index
    %103 = vector.load %arg21[%c0_67, %c0_68, %c0_69] : memref<4x1x32xf32, #tpu.memory_space<vmem>>, vector<1x1x32xf32>
    %104 = vector.shape_cast %103 : vector<1x1x32xf32> to vector<1x32xf32>
    %105 = vector.broadcast %104 : vector<1x32xf32> to vector<16x32xf32>
    %106 = arith.addf %102, %105 : vector<16x32xf32>
    %107 = arith.addf %90, %106 : vector<16x32xf32>
    %108 = vector.extract_strided_slice %22 {offsets = [2, 0], sizes = [1, 32], strides = [1, 1]} : vector<4x32xf32> to vector<1x32xf32>
    %109 = vector.extract_strided_slice %22 {offsets = [3, 0], sizes = [1, 32], strides = [1, 1]} : vector<4x32xf32> to vector<1x32xf32>
    %cst_70 = arith.constant dense<0.000000e+00> : vector<16xf32>
    %110 = vector.multi_reduction <add>, %107, %cst_70 [1] : vector<16x32xf32> to vector<16xf32>
    %111 = vector.shape_cast %110 : vector<16xf32> to vector<16x1xf32>
    %cst_71 = arith.constant 3.200000e+01 : f32
    %112 = vector.broadcast %cst_71 : f32 to vector<16x1xf32>
    %113 = arith.divf %111, %112 : vector<16x1xf32>
    %114 = vector.broadcast %113 : vector<16x1xf32> to vector<16x32xf32>
    %115 = arith.subf %107, %114 : vector<16x32xf32>
    %116 = arith.mulf %115, %115 : vector<16x32xf32>
    %cst_72 = arith.constant dense<0.000000e+00> : vector<16xf32>
    %117 = vector.multi_reduction <add>, %116, %cst_72 [1] : vector<16x32xf32> to vector<16xf32>
    %118 = vector.shape_cast %117 : vector<16xf32> to vector<16x1xf32>
    %cst_73 = arith.constant 3.200000e+01 : f32
    %119 = vector.broadcast %cst_73 : f32 to vector<16x1xf32>
    %120 = arith.divf %118, %119 : vector<16x1xf32>
    %121 = vector.broadcast %113 : vector<16x1xf32> to vector<16x32xf32>
    %122 = arith.subf %107, %121 : vector<16x32xf32>
    %cst_74 = arith.constant 9.99999997E-7 : f32
    %123 = vector.broadcast %cst_74 : f32 to vector<16x1xf32>
    %124 = arith.addf %120, %123 : vector<16x1xf32>
    %125 = math.rsqrt %124 : vector<16x1xf32>
    %126 = vector.broadcast %125 : vector<16x1xf32> to vector<16x32xf32>
    %127 = arith.mulf %122, %126 : vector<16x32xf32>
    %128 = vector.broadcast %108 : vector<1x32xf32> to vector<16x32xf32>
    %129 = arith.mulf %127, %128 : vector<16x32xf32>
    %130 = vector.broadcast %109 : vector<1x32xf32> to vector<16x32xf32>
    %131 = arith.addf %129, %130 : vector<16x32xf32>
    %c1 = arith.constant 1 : index
    %c0_75 = arith.constant 0 : index
    %c0_76 = arith.constant 0 : index
    %132 = vector.load %arg22[%c1, %c0_75, %c0_76] : memref<4x4x32xf32, #tpu.memory_space<vmem>>, vector<1x4x32xf32>
    %133 = vector.shape_cast %132 : vector<1x4x32xf32> to vector<4x32xf32>
    %c1_77 = arith.constant 1 : index
    %c0_78 = arith.constant 0 : index
    %c0_79 = arith.constant 0 : index
    %134 = vector.load %arg12[%c1_77, %c0_78, %c0_79] : memref<4x32x32xf32, #tpu.memory_space<vmem>>, vector<1x32x32xf32>
    %135 = vector.shape_cast %134 : vector<1x32x32xf32> to vector<32x32xf32>
    %c1_80 = arith.constant 1 : index
    %c0_81 = arith.constant 0 : index
    %c0_82 = arith.constant 0 : index
    %136 = vector.load %arg13[%c1_80, %c0_81, %c0_82] : memref<4x1x32xf32, #tpu.memory_space<vmem>>, vector<1x1x32xf32>
    %137 = vector.shape_cast %136 : vector<1x1x32xf32> to vector<1x32xf32>
    %c1_83 = arith.constant 1 : index
    %c0_84 = arith.constant 0 : index
    %c0_85 = arith.constant 0 : index
    %138 = vector.load %arg14[%c1_83, %c0_84, %c0_85] : memref<4x32x64xf32, #tpu.memory_space<vmem>>, vector<1x32x64xf32>
    %139 = vector.shape_cast %138 : vector<1x32x64xf32> to vector<32x64xf32>
    %c1_86 = arith.constant 1 : index
    %c0_87 = arith.constant 0 : index
    %c0_88 = arith.constant 0 : index
    %140 = vector.load %arg15[%c1_86, %c0_87, %c0_88] : memref<4x1x64xf32, #tpu.memory_space<vmem>>, vector<1x1x64xf32>
    %141 = vector.shape_cast %140 : vector<1x1x64xf32> to vector<1x64xf32>
    %c1_89 = arith.constant 1 : index
    %c0_90 = arith.constant 0 : index
    %c0_91 = arith.constant 0 : index
    %142 = vector.load %arg16[%c1_89, %c0_90, %c0_91] : memref<4x32x32xf32, #tpu.memory_space<vmem>>, vector<1x32x32xf32>
    %143 = vector.shape_cast %142 : vector<1x32x32xf32> to vector<32x32xf32>
    %c1_92 = arith.constant 1 : index
    %c0_93 = arith.constant 0 : index
    %c0_94 = arith.constant 0 : index
    %144 = vector.load %arg17[%c1_92, %c0_93, %c0_94] : memref<4x1x32xf32, #tpu.memory_space<vmem>>, vector<1x1x32xf32>
    %145 = vector.shape_cast %144 : vector<1x1x32xf32> to vector<1x32xf32>
    %cst_95 = arith.constant dense<0.000000e+00> : vector<16x32xf32>
    %146 = tpu.matmul %131, %135, %cst_95 {dimension_numbers = #tpu.dot_dimension_numbers<[1], [0], [0], [1], [0, 0, 1, 1], [], []>} : vector<16x32xf32>, vector<32x32xf32>, vector<16x32xf32> -> vector<16x32xf32>
    %147 = vector.broadcast %137 : vector<1x32xf32> to vector<16x32xf32>
    %148 = arith.addf %146, %147 : vector<16x32xf32>
    %cst_96 = arith.constant dense<0.000000e+00> : vector<16x64xf32>
    %149 = tpu.matmul %131, %139, %cst_96 {dimension_numbers = #tpu.dot_dimension_numbers<[1], [0], [0], [1], [0, 0, 1, 1], [], []>} : vector<16x32xf32>, vector<32x64xf32>, vector<16x64xf32> -> vector<16x64xf32>
    %150 = vector.broadcast %141 : vector<1x64xf32> to vector<16x64xf32>
    %151 = arith.addf %149, %150 : vector<16x64xf32>
    %152 = vector.extract_strided_slice %151 {offsets = [0, 0], sizes = [16, 32], strides = [1, 1]} : vector<16x64xf32> to vector<16x32xf32>
    %153 = vector.extract_strided_slice %151 {offsets = [0, 32], sizes = [16, 32], strides = [1, 1]} : vector<16x64xf32> to vector<16x32xf32>
    %cst_97 = arith.constant dense<0.000000e+00> : vector<16x16xf32>
    %154 = tpu.matmul %148, %152, %cst_97 {dimension_numbers = #tpu.dot_dimension_numbers<[1], [1], [0], [0], [0, 0, 1, 0], [], []>} : vector<16x32xf32>, vector<16x32xf32>, vector<16x16xf32> -> vector<16x16xf32>
    %cst_98 = arith.constant 0.176776692 : f32
    %155 = vector.broadcast %cst_98 : f32 to vector<16x16xf32>
    %156 = arith.mulf %154, %155 : vector<16x16xf32>
    %cst_99 = arith.constant 0.000000e+00 : f32
    %157 = vector.broadcast %cst_99 : f32 to vector<1x16xf32>
    %158 = arith.cmpf ogt, %3, %157 : vector<1x16xf32>
    %cst_100 = arith.constant -1.000000e+09 : f32
    %159 = vector.shape_cast %158 : vector<1x16xi1> to vector<1x16xi1>
    %160 = vector.broadcast %159 : vector<1x16xi1> to vector<16x16xi1>
    %161 = vector.broadcast %cst_100 : f32 to vector<16x16xf32>
    %162 = arith.select %160, %156, %161 : vector<16x16xi1>, vector<16x16xf32>
    %cst_101 = arith.constant dense<0xFF800000> : vector<16xf32>
    %163 = vector.multi_reduction <maximumf>, %162, %cst_101 [1] : vector<16x16xf32> to vector<16xf32>
    %164 = vector.shape_cast %163 : vector<16xf32> to vector<16x1xf32>
    %165 = vector.broadcast %164 : vector<16x1xf32> to vector<16x16xf32>
    %166 = arith.subf %162, %165 : vector<16x16xf32>
    %167 = math.exp %166 : vector<16x16xf32>
    %cst_102 = arith.constant dense<0.000000e+00> : vector<16xf32>
    %168 = vector.multi_reduction <add>, %167, %cst_102 [1] : vector<16x16xf32> to vector<16xf32>
    %169 = vector.shape_cast %168 : vector<16xf32> to vector<16x1xf32>
    %170 = tpu.reciprocal %169 {approx = true} : vector<16x1xf32> -> vector<16x1xf32>
    %171 = vector.broadcast %170 : vector<16x1xf32> to vector<16x16xf32>
    %172 = arith.mulf %167, %171 : vector<16x16xf32>
    %cst_103 = arith.constant dense<0.000000e+00> : vector<16x32xf32>
    %173 = tpu.matmul %172, %153, %cst_103 {dimension_numbers = #tpu.dot_dimension_numbers<[1], [0], [0], [1], [0, 0, 1, 1], [], []>} : vector<16x16xf32>, vector<16x32xf32>, vector<16x32xf32> -> vector<16x32xf32>
    %cst_104 = arith.constant dense<0.000000e+00> : vector<16x32xf32>
    %174 = tpu.matmul %173, %143, %cst_104 {dimension_numbers = #tpu.dot_dimension_numbers<[1], [0], [0], [1], [0, 0, 1, 1], [], []>} : vector<16x32xf32>, vector<32x32xf32>, vector<16x32xf32> -> vector<16x32xf32>
    %175 = vector.broadcast %145 : vector<1x32xf32> to vector<16x32xf32>
    %176 = arith.addf %174, %175 : vector<16x32xf32>
    %177 = arith.addf %131, %176 : vector<16x32xf32>
    %178 = vector.extract_strided_slice %133 {offsets = [0, 0], sizes = [1, 32], strides = [1, 1]} : vector<4x32xf32> to vector<1x32xf32>
    %179 = vector.extract_strided_slice %133 {offsets = [1, 0], sizes = [1, 32], strides = [1, 1]} : vector<4x32xf32> to vector<1x32xf32>
    %cst_105 = arith.constant dense<0.000000e+00> : vector<16xf32>
    %180 = vector.multi_reduction <add>, %177, %cst_105 [1] : vector<16x32xf32> to vector<16xf32>
    %181 = vector.shape_cast %180 : vector<16xf32> to vector<16x1xf32>
    %cst_106 = arith.constant 3.200000e+01 : f32
    %182 = vector.broadcast %cst_106 : f32 to vector<16x1xf32>
    %183 = arith.divf %181, %182 : vector<16x1xf32>
    %184 = vector.broadcast %183 : vector<16x1xf32> to vector<16x32xf32>
    %185 = arith.subf %177, %184 : vector<16x32xf32>
    %186 = arith.mulf %185, %185 : vector<16x32xf32>
    %cst_107 = arith.constant dense<0.000000e+00> : vector<16xf32>
    %187 = vector.multi_reduction <add>, %186, %cst_107 [1] : vector<16x32xf32> to vector<16xf32>
    %188 = vector.shape_cast %187 : vector<16xf32> to vector<16x1xf32>
    %cst_108 = arith.constant 3.200000e+01 : f32
    %189 = vector.broadcast %cst_108 : f32 to vector<16x1xf32>
    %190 = arith.divf %188, %189 : vector<16x1xf32>
    %191 = vector.broadcast %183 : vector<16x1xf32> to vector<16x32xf32>
    %192 = arith.subf %177, %191 : vector<16x32xf32>
    %cst_109 = arith.constant 9.99999997E-7 : f32
    %193 = vector.broadcast %cst_109 : f32 to vector<16x1xf32>
    %194 = arith.addf %190, %193 : vector<16x1xf32>
    %195 = math.rsqrt %194 : vector<16x1xf32>
    %196 = vector.broadcast %195 : vector<16x1xf32> to vector<16x32xf32>
    %197 = arith.mulf %192, %196 : vector<16x32xf32>
    %198 = vector.broadcast %178 : vector<1x32xf32> to vector<16x32xf32>
    %199 = arith.mulf %197, %198 : vector<16x32xf32>
    %200 = vector.broadcast %179 : vector<1x32xf32> to vector<16x32xf32>
    %201 = arith.addf %199, %200 : vector<16x32xf32>
    %c1_110 = arith.constant 1 : index
    %c0_111 = arith.constant 0 : index
    %c0_112 = arith.constant 0 : index
    %202 = vector.load %arg18[%c1_110, %c0_111, %c0_112] : memref<4x32x64xf32, #tpu.memory_space<vmem>>, vector<1x32x64xf32>
    %203 = vector.shape_cast %202 : vector<1x32x64xf32> to vector<32x64xf32>
    %cst_113 = arith.constant dense<0.000000e+00> : vector<16x64xf32>
    %204 = tpu.matmul %201, %203, %cst_113 {dimension_numbers = #tpu.dot_dimension_numbers<[1], [0], [0], [1], [0, 0, 1, 1], [], []>} : vector<16x32xf32>, vector<32x64xf32>, vector<16x64xf32> -> vector<16x64xf32>
    %c1_114 = arith.constant 1 : index
    %c0_115 = arith.constant 0 : index
    %c0_116 = arith.constant 0 : index
    %205 = vector.load %arg19[%c1_114, %c0_115, %c0_116] : memref<4x1x64xf32, #tpu.memory_space<vmem>>, vector<1x1x64xf32>
    %206 = vector.shape_cast %205 : vector<1x1x64xf32> to vector<1x64xf32>
    %207 = vector.broadcast %206 : vector<1x64xf32> to vector<16x64xf32>
    %208 = arith.addf %204, %207 : vector<16x64xf32>
    %cst_117 = arith.constant 0.000000e+00 : f32
    %209 = vector.broadcast %cst_117 : f32 to vector<16x64xf32>
    %210 = arith.maximumf %208, %209 : vector<16x64xf32>
    %c1_118 = arith.constant 1 : index
    %c0_119 = arith.constant 0 : index
    %c0_120 = arith.constant 0 : index
    %211 = vector.load %arg20[%c1_118, %c0_119, %c0_120] : memref<4x64x32xf32, #tpu.memory_space<vmem>>, vector<1x64x32xf32>
    %212 = vector.shape_cast %211 : vector<1x64x32xf32> to vector<64x32xf32>
    %cst_121 = arith.constant dense<0.000000e+00> : vector<16x32xf32>
    %213 = tpu.matmul %210, %212, %cst_121 {dimension_numbers = #tpu.dot_dimension_numbers<[1], [0], [0], [1], [0, 0, 1, 1], [], []>} : vector<16x64xf32>, vector<64x32xf32>, vector<16x32xf32> -> vector<16x32xf32>
    %c1_122 = arith.constant 1 : index
    %c0_123 = arith.constant 0 : index
    %c0_124 = arith.constant 0 : index
    %214 = vector.load %arg21[%c1_122, %c0_123, %c0_124] : memref<4x1x32xf32, #tpu.memory_space<vmem>>, vector<1x1x32xf32>
    %215 = vector.shape_cast %214 : vector<1x1x32xf32> to vector<1x32xf32>
    %216 = vector.broadcast %215 : vector<1x32xf32> to vector<16x32xf32>
    %217 = arith.addf %213, %216 : vector<16x32xf32>
    %218 = arith.addf %201, %217 : vector<16x32xf32>
    %219 = vector.extract_strided_slice %133 {offsets = [2, 0], sizes = [1, 32], strides = [1, 1]} : vector<4x32xf32> to vector<1x32xf32>
    %220 = vector.extract_strided_slice %133 {offsets = [3, 0], sizes = [1, 32], strides = [1, 1]} : vector<4x32xf32> to vector<1x32xf32>
    %cst_125 = arith.constant dense<0.000000e+00> : vector<16xf32>
    %221 = vector.multi_reduction <add>, %218, %cst_125 [1] : vector<16x32xf32> to vector<16xf32>
    %222 = vector.shape_cast %221 : vector<16xf32> to vector<16x1xf32>
    %cst_126 = arith.constant 3.200000e+01 : f32
    %223 = vector.broadcast %cst_126 : f32 to vector<16x1xf32>
    %224 = arith.divf %222, %223 : vector<16x1xf32>
    %225 = vector.broadcast %224 : vector<16x1xf32> to vector<16x32xf32>
    %226 = arith.subf %218, %225 : vector<16x32xf32>
    %227 = arith.mulf %226, %226 : vector<16x32xf32>
    %cst_127 = arith.constant dense<0.000000e+00> : vector<16xf32>
    %228 = vector.multi_reduction <add>, %227, %cst_127 [1] : vector<16x32xf32> to vector<16xf32>
    %229 = vector.shape_cast %228 : vector<16xf32> to vector<16x1xf32>
    %cst_128 = arith.constant 3.200000e+01 : f32
    %230 = vector.broadcast %cst_128 : f32 to vector<16x1xf32>
    %231 = arith.divf %229, %230 : vector<16x1xf32>
    %232 = vector.broadcast %224 : vector<16x1xf32> to vector<16x32xf32>
    %233 = arith.subf %218, %232 : vector<16x32xf32>
    %cst_129 = arith.constant 9.99999997E-7 : f32
    %234 = vector.broadcast %cst_129 : f32 to vector<16x1xf32>
    %235 = arith.addf %231, %234 : vector<16x1xf32>
    %236 = math.rsqrt %235 : vector<16x1xf32>
    %237 = vector.broadcast %236 : vector<16x1xf32> to vector<16x32xf32>
    %238 = arith.mulf %233, %237 : vector<16x32xf32>
    %239 = vector.broadcast %219 : vector<1x32xf32> to vector<16x32xf32>
    %240 = arith.mulf %238, %239 : vector<16x32xf32>
    %241 = vector.broadcast %220 : vector<1x32xf32> to vector<16x32xf32>
    %242 = arith.addf %240, %241 : vector<16x32xf32>
    %c0_130 = arith.constant 0 : index
    %c0_131 = arith.constant 0 : index
    %c0_132 = arith.constant 0 : index
    %243 = vector.load %arg2[%c0_130, %c0_131, %c0_132] : memref<1x8x1xi32, #tpu.memory_space<vmem>>, vector<1x8x1xi32>
    %244 = vector.shape_cast %243 : vector<1x8x1xi32> to vector<8x1xi32>
    %245 = tpu.iota {dimensions = array<i32: 1>} : vector<8x64xi32>
    %246 = vector.broadcast %244 : vector<8x1xi32> to vector<8x64xi32>
    %247 = arith.cmpi eq, %245, %246 : vector<8x64xi32>
    %248 = arith.extui %247 : vector<8x64xi1> to vector<8x64xi32>
    %249 = arith.sitofp %248 : vector<8x64xi32> to vector<8x64xf32>
    %cst_133 = arith.constant dense<0.000000e+00> : vector<8x32xf32>
    %250 = tpu.matmul %249, %0, %cst_133 {dimension_numbers = #tpu.dot_dimension_numbers<[1], [0], [0], [1], [0, 0, 1, 1], [], []>} : vector<8x64xf32>, vector<64x32xf32>, vector<8x32xf32> -> vector<8x32xf32>
    %cst_134 = arith.constant 5.65685415 : f32
    %251 = vector.broadcast %cst_134 : f32 to vector<8x32xf32>
    %252 = arith.mulf %250, %251 : vector<8x32xf32>
    %253 = vector.extract_strided_slice %1 {offsets = [0, 0], sizes = [8, 32], strides = [1, 1]} : vector<16x32xf32> to vector<8x32xf32>
    %254 = arith.addf %252, %253 : vector<8x32xf32>
    %c0_135 = arith.constant 0 : index
    %c0_136 = arith.constant 0 : index
    %c0_137 = arith.constant 0 : index
    %255 = vector.load %arg22[%c0_135, %c0_136, %c0_137] : memref<4x4x32xf32, #tpu.memory_space<vmem>>, vector<1x4x32xf32>
    %256 = vector.shape_cast %255 : vector<1x4x32xf32> to vector<4x32xf32>
    %c0_138 = arith.constant 0 : index
    %c0_139 = arith.constant 0 : index
    %c0_140 = arith.constant 0 : index
    %257 = vector.load %arg12[%c0_138, %c0_139, %c0_140] : memref<4x32x32xf32, #tpu.memory_space<vmem>>, vector<1x32x32xf32>
    %258 = vector.shape_cast %257 : vector<1x32x32xf32> to vector<32x32xf32>
    %c0_141 = arith.constant 0 : index
    %c0_142 = arith.constant 0 : index
    %c0_143 = arith.constant 0 : index
    %259 = vector.load %arg13[%c0_141, %c0_142, %c0_143] : memref<4x1x32xf32, #tpu.memory_space<vmem>>, vector<1x1x32xf32>
    %260 = vector.shape_cast %259 : vector<1x1x32xf32> to vector<1x32xf32>
    %c0_144 = arith.constant 0 : index
    %c0_145 = arith.constant 0 : index
    %c0_146 = arith.constant 0 : index
    %261 = vector.load %arg14[%c0_144, %c0_145, %c0_146] : memref<4x32x64xf32, #tpu.memory_space<vmem>>, vector<1x32x64xf32>
    %262 = vector.shape_cast %261 : vector<1x32x64xf32> to vector<32x64xf32>
    %c0_147 = arith.constant 0 : index
    %c0_148 = arith.constant 0 : index
    %c0_149 = arith.constant 0 : index
    %263 = vector.load %arg15[%c0_147, %c0_148, %c0_149] : memref<4x1x64xf32, #tpu.memory_space<vmem>>, vector<1x1x64xf32>
    %264 = vector.shape_cast %263 : vector<1x1x64xf32> to vector<1x64xf32>
    %c0_150 = arith.constant 0 : index
    %c0_151 = arith.constant 0 : index
    %c0_152 = arith.constant 0 : index
    %265 = vector.load %arg16[%c0_150, %c0_151, %c0_152] : memref<4x32x32xf32, #tpu.memory_space<vmem>>, vector<1x32x32xf32>
    %266 = vector.shape_cast %265 : vector<1x32x32xf32> to vector<32x32xf32>
    %c0_153 = arith.constant 0 : index
    %c0_154 = arith.constant 0 : index
    %c0_155 = arith.constant 0 : index
    %267 = vector.load %arg17[%c0_153, %c0_154, %c0_155] : memref<4x1x32xf32, #tpu.memory_space<vmem>>, vector<1x1x32xf32>
    %268 = vector.shape_cast %267 : vector<1x1x32xf32> to vector<1x32xf32>
    %cst_156 = arith.constant dense<0.000000e+00> : vector<8x32xf32>
    %269 = tpu.matmul %254, %258, %cst_156 {dimension_numbers = #tpu.dot_dimension_numbers<[1], [0], [0], [1], [0, 0, 1, 1], [], []>} : vector<8x32xf32>, vector<32x32xf32>, vector<8x32xf32> -> vector<8x32xf32>
    %270 = vector.broadcast %260 : vector<1x32xf32> to vector<8x32xf32>
    %271 = arith.addf %269, %270 : vector<8x32xf32>
    %cst_157 = arith.constant dense<0.000000e+00> : vector<8x64xf32>
    %272 = tpu.matmul %254, %262, %cst_157 {dimension_numbers = #tpu.dot_dimension_numbers<[1], [0], [0], [1], [0, 0, 1, 1], [], []>} : vector<8x32xf32>, vector<32x64xf32>, vector<8x64xf32> -> vector<8x64xf32>
    %273 = vector.broadcast %264 : vector<1x64xf32> to vector<8x64xf32>
    %274 = arith.addf %272, %273 : vector<8x64xf32>
    %275 = vector.extract_strided_slice %274 {offsets = [0, 0], sizes = [8, 32], strides = [1, 1]} : vector<8x64xf32> to vector<8x32xf32>
    %276 = vector.extract_strided_slice %274 {offsets = [0, 32], sizes = [8, 32], strides = [1, 1]} : vector<8x64xf32> to vector<8x32xf32>
    %cst_158 = arith.constant dense<0.000000e+00> : vector<8x8xf32>
    %277 = tpu.matmul %271, %275, %cst_158 {dimension_numbers = #tpu.dot_dimension_numbers<[1], [1], [0], [0], [0, 0, 1, 0], [], []>} : vector<8x32xf32>, vector<8x32xf32>, vector<8x8xf32> -> vector<8x8xf32>
    %cst_159 = arith.constant 0.176776692 : f32
    %278 = vector.broadcast %cst_159 : f32 to vector<8x8xf32>
    %279 = arith.mulf %277, %278 : vector<8x8xf32>
    %cst_160 = arith.constant 0.000000e+00 : f32
    %280 = vector.broadcast %cst_160 : f32 to vector<1x8xf32>
    %281 = arith.cmpf ogt, %5, %280 : vector<1x8xf32>
    %cst_161 = arith.constant -1.000000e+09 : f32
    %282 = vector.shape_cast %281 : vector<1x8xi1> to vector<1x8xi1>
    %283 = vector.broadcast %282 : vector<1x8xi1> to vector<8x8xi1>
    %284 = vector.broadcast %cst_161 : f32 to vector<8x8xf32>
    %285 = arith.select %283, %279, %284 : vector<8x8xi1>, vector<8x8xf32>
    %cst_162 = arith.constant dense<0xFF800000> : vector<8xf32>
    %286 = vector.multi_reduction <maximumf>, %285, %cst_162 [1] : vector<8x8xf32> to vector<8xf32>
    %287 = vector.shape_cast %286 : vector<8xf32> to vector<8x1xf32>
    %288 = vector.broadcast %287 : vector<8x1xf32> to vector<8x8xf32>
    %289 = arith.subf %285, %288 : vector<8x8xf32>
    %290 = math.exp %289 : vector<8x8xf32>
    %cst_163 = arith.constant dense<0.000000e+00> : vector<8xf32>
    %291 = vector.multi_reduction <add>, %290, %cst_163 [1] : vector<8x8xf32> to vector<8xf32>
    %292 = vector.shape_cast %291 : vector<8xf32> to vector<8x1xf32>
    %293 = tpu.reciprocal %292 {approx = true} : vector<8x1xf32> -> vector<8x1xf32>
    %294 = vector.broadcast %293 : vector<8x1xf32> to vector<8x8xf32>
    %295 = arith.mulf %290, %294 : vector<8x8xf32>
    %cst_164 = arith.constant dense<0.000000e+00> : vector<8x32xf32>
    %296 = tpu.matmul %295, %276, %cst_164 {dimension_numbers = #tpu.dot_dimension_numbers<[1], [0], [0], [1], [0, 0, 1, 1], [], []>} : vector<8x8xf32>, vector<8x32xf32>, vector<8x32xf32> -> vector<8x32xf32>
    %cst_165 = arith.constant dense<0.000000e+00> : vector<8x32xf32>
    %297 = tpu.matmul %296, %266, %cst_165 {dimension_numbers = #tpu.dot_dimension_numbers<[1], [0], [0], [1], [0, 0, 1, 1], [], []>} : vector<8x32xf32>, vector<32x32xf32>, vector<8x32xf32> -> vector<8x32xf32>
    %298 = vector.broadcast %268 : vector<1x32xf32> to vector<8x32xf32>
    %299 = arith.addf %297, %298 : vector<8x32xf32>
    %300 = arith.addf %254, %299 : vector<8x32xf32>
    %301 = vector.extract_strided_slice %256 {offsets = [0, 0], sizes = [1, 32], strides = [1, 1]} : vector<4x32xf32> to vector<1x32xf32>
    %302 = vector.extract_strided_slice %256 {offsets = [1, 0], sizes = [1, 32], strides = [1, 1]} : vector<4x32xf32> to vector<1x32xf32>
    %cst_166 = arith.constant dense<0.000000e+00> : vector<8xf32>
    %303 = vector.multi_reduction <add>, %300, %cst_166 [1] : vector<8x32xf32> to vector<8xf32>
    %304 = vector.shape_cast %303 : vector<8xf32> to vector<8x1xf32>
    %cst_167 = arith.constant 3.200000e+01 : f32
    %305 = vector.broadcast %cst_167 : f32 to vector<8x1xf32>
    %306 = arith.divf %304, %305 : vector<8x1xf32>
    %307 = vector.broadcast %306 : vector<8x1xf32> to vector<8x32xf32>
    %308 = arith.subf %300, %307 : vector<8x32xf32>
    %309 = arith.mulf %308, %308 : vector<8x32xf32>
    %cst_168 = arith.constant dense<0.000000e+00> : vector<8xf32>
    %310 = vector.multi_reduction <add>, %309, %cst_168 [1] : vector<8x32xf32> to vector<8xf32>
    %311 = vector.shape_cast %310 : vector<8xf32> to vector<8x1xf32>
    %cst_169 = arith.constant 3.200000e+01 : f32
    %312 = vector.broadcast %cst_169 : f32 to vector<8x1xf32>
    %313 = arith.divf %311, %312 : vector<8x1xf32>
    %314 = vector.broadcast %306 : vector<8x1xf32> to vector<8x32xf32>
    %315 = arith.subf %300, %314 : vector<8x32xf32>
    %cst_170 = arith.constant 9.99999997E-7 : f32
    %316 = vector.broadcast %cst_170 : f32 to vector<8x1xf32>
    %317 = arith.addf %313, %316 : vector<8x1xf32>
    %318 = math.rsqrt %317 : vector<8x1xf32>
    %319 = vector.broadcast %318 : vector<8x1xf32> to vector<8x32xf32>
    %320 = arith.mulf %315, %319 : vector<8x32xf32>
    %321 = vector.broadcast %301 : vector<1x32xf32> to vector<8x32xf32>
    %322 = arith.mulf %320, %321 : vector<8x32xf32>
    %323 = vector.broadcast %302 : vector<1x32xf32> to vector<8x32xf32>
    %324 = arith.addf %322, %323 : vector<8x32xf32>
    %c0_171 = arith.constant 0 : index
    %c0_172 = arith.constant 0 : index
    %c0_173 = arith.constant 0 : index
    %325 = vector.load %arg18[%c0_171, %c0_172, %c0_173] : memref<4x32x64xf32, #tpu.memory_space<vmem>>, vector<1x32x64xf32>
    %326 = vector.shape_cast %325 : vector<1x32x64xf32> to vector<32x64xf32>
    %cst_174 = arith.constant dense<0.000000e+00> : vector<8x64xf32>
    %327 = tpu.matmul %324, %326, %cst_174 {dimension_numbers = #tpu.dot_dimension_numbers<[1], [0], [0], [1], [0, 0, 1, 1], [], []>} : vector<8x32xf32>, vector<32x64xf32>, vector<8x64xf32> -> vector<8x64xf32>
    %c0_175 = arith.constant 0 : index
    %c0_176 = arith.constant 0 : index
    %c0_177 = arith.constant 0 : index
    %328 = vector.load %arg19[%c0_175, %c0_176, %c0_177] : memref<4x1x64xf32, #tpu.memory_space<vmem>>, vector<1x1x64xf32>
    %329 = vector.shape_cast %328 : vector<1x1x64xf32> to vector<1x64xf32>
    %330 = vector.broadcast %329 : vector<1x64xf32> to vector<8x64xf32>
    %331 = arith.addf %327, %330 : vector<8x64xf32>
    %cst_178 = arith.constant 0.000000e+00 : f32
    %332 = vector.broadcast %cst_178 : f32 to vector<8x64xf32>
    %333 = arith.maximumf %331, %332 : vector<8x64xf32>
    %c0_179 = arith.constant 0 : index
    %c0_180 = arith.constant 0 : index
    %c0_181 = arith.constant 0 : index
    %334 = vector.load %arg20[%c0_179, %c0_180, %c0_181] : memref<4x64x32xf32, #tpu.memory_space<vmem>>, vector<1x64x32xf32>
    %335 = vector.shape_cast %334 : vector<1x64x32xf32> to vector<64x32xf32>
    %cst_182 = arith.constant dense<0.000000e+00> : vector<8x32xf32>
    %336 = tpu.matmul %333, %335, %cst_182 {dimension_numbers = #tpu.dot_dimension_numbers<[1], [0], [0], [1], [0, 0, 1, 1], [], []>} : vector<8x64xf32>, vector<64x32xf32>, vector<8x32xf32> -> vector<8x32xf32>
    %c0_183 = arith.constant 0 : index
    %c0_184 = arith.constant 0 : index
    %c0_185 = arith.constant 0 : index
    %337 = vector.load %arg21[%c0_183, %c0_184, %c0_185] : memref<4x1x32xf32, #tpu.memory_space<vmem>>, vector<1x1x32xf32>
    %338 = vector.shape_cast %337 : vector<1x1x32xf32> to vector<1x32xf32>
    %339 = vector.broadcast %338 : vector<1x32xf32> to vector<8x32xf32>
    %340 = arith.addf %336, %339 : vector<8x32xf32>
    %341 = arith.addf %324, %340 : vector<8x32xf32>
    %342 = vector.extract_strided_slice %256 {offsets = [2, 0], sizes = [1, 32], strides = [1, 1]} : vector<4x32xf32> to vector<1x32xf32>
    %343 = vector.extract_strided_slice %256 {offsets = [3, 0], sizes = [1, 32], strides = [1, 1]} : vector<4x32xf32> to vector<1x32xf32>
    %cst_186 = arith.constant dense<0.000000e+00> : vector<8xf32>
    %344 = vector.multi_reduction <add>, %341, %cst_186 [1] : vector<8x32xf32> to vector<8xf32>
    %345 = vector.shape_cast %344 : vector<8xf32> to vector<8x1xf32>
    %cst_187 = arith.constant 3.200000e+01 : f32
    %346 = vector.broadcast %cst_187 : f32 to vector<8x1xf32>
    %347 = arith.divf %345, %346 : vector<8x1xf32>
    %348 = vector.broadcast %347 : vector<8x1xf32> to vector<8x32xf32>
    %349 = arith.subf %341, %348 : vector<8x32xf32>
    %350 = arith.mulf %349, %349 : vector<8x32xf32>
    %cst_188 = arith.constant dense<0.000000e+00> : vector<8xf32>
    %351 = vector.multi_reduction <add>, %350, %cst_188 [1] : vector<8x32xf32> to vector<8xf32>
    %352 = vector.shape_cast %351 : vector<8xf32> to vector<8x1xf32>
    %cst_189 = arith.constant 3.200000e+01 : f32
    %353 = vector.broadcast %cst_189 : f32 to vector<8x1xf32>
    %354 = arith.divf %352, %353 : vector<8x1xf32>
    %355 = vector.broadcast %347 : vector<8x1xf32> to vector<8x32xf32>
    %356 = arith.subf %341, %355 : vector<8x32xf32>
    %cst_190 = arith.constant 9.99999997E-7 : f32
    %357 = vector.broadcast %cst_190 : f32 to vector<8x1xf32>
    %358 = arith.addf %354, %357 : vector<8x1xf32>
    %359 = math.rsqrt %358 : vector<8x1xf32>
    %360 = vector.broadcast %359 : vector<8x1xf32> to vector<8x32xf32>
    %361 = arith.mulf %356, %360 : vector<8x32xf32>
    %362 = vector.broadcast %342 : vector<1x32xf32> to vector<8x32xf32>
    %363 = arith.mulf %361, %362 : vector<8x32xf32>
    %364 = vector.broadcast %343 : vector<1x32xf32> to vector<8x32xf32>
    %365 = arith.addf %363, %364 : vector<8x32xf32>
    %c2 = arith.constant 2 : index
    %c0_191 = arith.constant 0 : index
    %c0_192 = arith.constant 0 : index
    %366 = vector.load %arg22[%c2, %c0_191, %c0_192] : memref<4x4x32xf32, #tpu.memory_space<vmem>>, vector<1x4x32xf32>
    %367 = vector.shape_cast %366 : vector<1x4x32xf32> to vector<4x32xf32>
    %c2_193 = arith.constant 2 : index
    %c0_194 = arith.constant 0 : index
    %c0_195 = arith.constant 0 : index
    %368 = vector.load %arg12[%c2_193, %c0_194, %c0_195] : memref<4x32x32xf32, #tpu.memory_space<vmem>>, vector<1x32x32xf32>
    %369 = vector.shape_cast %368 : vector<1x32x32xf32> to vector<32x32xf32>
    %c2_196 = arith.constant 2 : index
    %c0_197 = arith.constant 0 : index
    %c0_198 = arith.constant 0 : index
    %370 = vector.load %arg13[%c2_196, %c0_197, %c0_198] : memref<4x1x32xf32, #tpu.memory_space<vmem>>, vector<1x1x32xf32>
    %371 = vector.shape_cast %370 : vector<1x1x32xf32> to vector<1x32xf32>
    %c2_199 = arith.constant 2 : index
    %c0_200 = arith.constant 0 : index
    %c0_201 = arith.constant 0 : index
    %372 = vector.load %arg14[%c2_199, %c0_200, %c0_201] : memref<4x32x64xf32, #tpu.memory_space<vmem>>, vector<1x32x64xf32>
    %373 = vector.shape_cast %372 : vector<1x32x64xf32> to vector<32x64xf32>
    %c2_202 = arith.constant 2 : index
    %c0_203 = arith.constant 0 : index
    %c0_204 = arith.constant 0 : index
    %374 = vector.load %arg15[%c2_202, %c0_203, %c0_204] : memref<4x1x64xf32, #tpu.memory_space<vmem>>, vector<1x1x64xf32>
    %375 = vector.shape_cast %374 : vector<1x1x64xf32> to vector<1x64xf32>
    %c2_205 = arith.constant 2 : index
    %c0_206 = arith.constant 0 : index
    %c0_207 = arith.constant 0 : index
    %376 = vector.load %arg16[%c2_205, %c0_206, %c0_207] : memref<4x32x32xf32, #tpu.memory_space<vmem>>, vector<1x32x32xf32>
    %377 = vector.shape_cast %376 : vector<1x32x32xf32> to vector<32x32xf32>
    %c2_208 = arith.constant 2 : index
    %c0_209 = arith.constant 0 : index
    %c0_210 = arith.constant 0 : index
    %378 = vector.load %arg17[%c2_208, %c0_209, %c0_210] : memref<4x1x32xf32, #tpu.memory_space<vmem>>, vector<1x1x32xf32>
    %379 = vector.shape_cast %378 : vector<1x1x32xf32> to vector<1x32xf32>
    %cst_211 = arith.constant dense<0.000000e+00> : vector<8x32xf32>
    %380 = tpu.matmul %365, %369, %cst_211 {dimension_numbers = #tpu.dot_dimension_numbers<[1], [0], [0], [1], [0, 0, 1, 1], [], []>} : vector<8x32xf32>, vector<32x32xf32>, vector<8x32xf32> -> vector<8x32xf32>
    %381 = vector.broadcast %371 : vector<1x32xf32> to vector<8x32xf32>
    %382 = arith.addf %380, %381 : vector<8x32xf32>
    %cst_212 = arith.constant dense<0.000000e+00> : vector<8x64xf32>
    %383 = tpu.matmul %365, %373, %cst_212 {dimension_numbers = #tpu.dot_dimension_numbers<[1], [0], [0], [1], [0, 0, 1, 1], [], []>} : vector<8x32xf32>, vector<32x64xf32>, vector<8x64xf32> -> vector<8x64xf32>
    %384 = vector.broadcast %375 : vector<1x64xf32> to vector<8x64xf32>
    %385 = arith.addf %383, %384 : vector<8x64xf32>
    %386 = vector.extract_strided_slice %385 {offsets = [0, 0], sizes = [8, 32], strides = [1, 1]} : vector<8x64xf32> to vector<8x32xf32>
    %387 = vector.extract_strided_slice %385 {offsets = [0, 32], sizes = [8, 32], strides = [1, 1]} : vector<8x64xf32> to vector<8x32xf32>
    %cst_213 = arith.constant dense<0.000000e+00> : vector<8x8xf32>
    %388 = tpu.matmul %382, %386, %cst_213 {dimension_numbers = #tpu.dot_dimension_numbers<[1], [1], [0], [0], [0, 0, 1, 0], [], []>} : vector<8x32xf32>, vector<8x32xf32>, vector<8x8xf32> -> vector<8x8xf32>
    %cst_214 = arith.constant 0.176776692 : f32
    %389 = vector.broadcast %cst_214 : f32 to vector<8x8xf32>
    %390 = arith.mulf %388, %389 : vector<8x8xf32>
    %cst_215 = arith.constant 0.000000e+00 : f32
    %391 = vector.broadcast %cst_215 : f32 to vector<1x8xf32>
    %392 = arith.cmpf ogt, %5, %391 : vector<1x8xf32>
    %cst_216 = arith.constant -1.000000e+09 : f32
    %393 = vector.shape_cast %392 : vector<1x8xi1> to vector<1x8xi1>
    %394 = vector.broadcast %393 : vector<1x8xi1> to vector<8x8xi1>
    %395 = vector.broadcast %cst_216 : f32 to vector<8x8xf32>
    %396 = arith.select %394, %390, %395 : vector<8x8xi1>, vector<8x8xf32>
    %cst_217 = arith.constant dense<0xFF800000> : vector<8xf32>
    %397 = vector.multi_reduction <maximumf>, %396, %cst_217 [1] : vector<8x8xf32> to vector<8xf32>
    %398 = vector.shape_cast %397 : vector<8xf32> to vector<8x1xf32>
    %399 = vector.broadcast %398 : vector<8x1xf32> to vector<8x8xf32>
    %400 = arith.subf %396, %399 : vector<8x8xf32>
    %401 = math.exp %400 : vector<8x8xf32>
    %cst_218 = arith.constant dense<0.000000e+00> : vector<8xf32>
    %402 = vector.multi_reduction <add>, %401, %cst_218 [1] : vector<8x8xf32> to vector<8xf32>
    %403 = vector.shape_cast %402 : vector<8xf32> to vector<8x1xf32>
    %404 = tpu.reciprocal %403 {approx = true} : vector<8x1xf32> -> vector<8x1xf32>
    %405 = vector.broadcast %404 : vector<8x1xf32> to vector<8x8xf32>
    %406 = arith.mulf %401, %405 : vector<8x8xf32>
    %cst_219 = arith.constant dense<0.000000e+00> : vector<8x32xf32>
    %407 = tpu.matmul %406, %387, %cst_219 {dimension_numbers = #tpu.dot_dimension_numbers<[1], [0], [0], [1], [0, 0, 1, 1], [], []>} : vector<8x8xf32>, vector<8x32xf32>, vector<8x32xf32> -> vector<8x32xf32>
    %cst_220 = arith.constant dense<0.000000e+00> : vector<8x32xf32>
    %408 = tpu.matmul %407, %377, %cst_220 {dimension_numbers = #tpu.dot_dimension_numbers<[1], [0], [0], [1], [0, 0, 1, 1], [], []>} : vector<8x32xf32>, vector<32x32xf32>, vector<8x32xf32> -> vector<8x32xf32>
    %409 = vector.broadcast %379 : vector<1x32xf32> to vector<8x32xf32>
    %410 = arith.addf %408, %409 : vector<8x32xf32>
    %411 = arith.addf %365, %410 : vector<8x32xf32>
    %412 = vector.extract_strided_slice %367 {offsets = [0, 0], sizes = [1, 32], strides = [1, 1]} : vector<4x32xf32> to vector<1x32xf32>
    %413 = vector.extract_strided_slice %367 {offsets = [1, 0], sizes = [1, 32], strides = [1, 1]} : vector<4x32xf32> to vector<1x32xf32>
    %cst_221 = arith.constant dense<0.000000e+00> : vector<8xf32>
    %414 = vector.multi_reduction <add>, %411, %cst_221 [1] : vector<8x32xf32> to vector<8xf32>
    %415 = vector.shape_cast %414 : vector<8xf32> to vector<8x1xf32>
    %cst_222 = arith.constant 3.200000e+01 : f32
    %416 = vector.broadcast %cst_222 : f32 to vector<8x1xf32>
    %417 = arith.divf %415, %416 : vector<8x1xf32>
    %418 = vector.broadcast %417 : vector<8x1xf32> to vector<8x32xf32>
    %419 = arith.subf %411, %418 : vector<8x32xf32>
    %420 = arith.mulf %419, %419 : vector<8x32xf32>
    %cst_223 = arith.constant dense<0.000000e+00> : vector<8xf32>
    %421 = vector.multi_reduction <add>, %420, %cst_223 [1] : vector<8x32xf32> to vector<8xf32>
    %422 = vector.shape_cast %421 : vector<8xf32> to vector<8x1xf32>
    %cst_224 = arith.constant 3.200000e+01 : f32
    %423 = vector.broadcast %cst_224 : f32 to vector<8x1xf32>
    %424 = arith.divf %422, %423 : vector<8x1xf32>
    %425 = vector.broadcast %417 : vector<8x1xf32> to vector<8x32xf32>
    %426 = arith.subf %411, %425 : vector<8x32xf32>
    %cst_225 = arith.constant 9.99999997E-7 : f32
    %427 = vector.broadcast %cst_225 : f32 to vector<8x1xf32>
    %428 = arith.addf %424, %427 : vector<8x1xf32>
    %429 = math.rsqrt %428 : vector<8x1xf32>
    %430 = vector.broadcast %429 : vector<8x1xf32> to vector<8x32xf32>
    %431 = arith.mulf %426, %430 : vector<8x32xf32>
    %432 = vector.broadcast %412 : vector<1x32xf32> to vector<8x32xf32>
    %433 = arith.mulf %431, %432 : vector<8x32xf32>
    %434 = vector.broadcast %413 : vector<1x32xf32> to vector<8x32xf32>
    %435 = arith.addf %433, %434 : vector<8x32xf32>
    %c2_226 = arith.constant 2 : index
    %c0_227 = arith.constant 0 : index
    %c0_228 = arith.constant 0 : index
    %436 = vector.load %arg18[%c2_226, %c0_227, %c0_228] : memref<4x32x64xf32, #tpu.memory_space<vmem>>, vector<1x32x64xf32>
    %437 = vector.shape_cast %436 : vector<1x32x64xf32> to vector<32x64xf32>
    %cst_229 = arith.constant dense<0.000000e+00> : vector<8x64xf32>
    %438 = tpu.matmul %435, %437, %cst_229 {dimension_numbers = #tpu.dot_dimension_numbers<[1], [0], [0], [1], [0, 0, 1, 1], [], []>} : vector<8x32xf32>, vector<32x64xf32>, vector<8x64xf32> -> vector<8x64xf32>
    %c2_230 = arith.constant 2 : index
    %c0_231 = arith.constant 0 : index
    %c0_232 = arith.constant 0 : index
    %439 = vector.load %arg19[%c2_230, %c0_231, %c0_232] : memref<4x1x64xf32, #tpu.memory_space<vmem>>, vector<1x1x64xf32>
    %440 = vector.shape_cast %439 : vector<1x1x64xf32> to vector<1x64xf32>
    %441 = vector.broadcast %440 : vector<1x64xf32> to vector<8x64xf32>
    %442 = arith.addf %438, %441 : vector<8x64xf32>
    %cst_233 = arith.constant 0.000000e+00 : f32
    %443 = vector.broadcast %cst_233 : f32 to vector<8x64xf32>
    %444 = arith.maximumf %442, %443 : vector<8x64xf32>
    %c2_234 = arith.constant 2 : index
    %c0_235 = arith.constant 0 : index
    %c0_236 = arith.constant 0 : index
    %445 = vector.load %arg20[%c2_234, %c0_235, %c0_236] : memref<4x64x32xf32, #tpu.memory_space<vmem>>, vector<1x64x32xf32>
    %446 = vector.shape_cast %445 : vector<1x64x32xf32> to vector<64x32xf32>
    %cst_237 = arith.constant dense<0.000000e+00> : vector<8x32xf32>
    %447 = tpu.matmul %444, %446, %cst_237 {dimension_numbers = #tpu.dot_dimension_numbers<[1], [0], [0], [1], [0, 0, 1, 1], [], []>} : vector<8x64xf32>, vector<64x32xf32>, vector<8x32xf32> -> vector<8x32xf32>
    %c2_238 = arith.constant 2 : index
    %c0_239 = arith.constant 0 : index
    %c0_240 = arith.constant 0 : index
    %448 = vector.load %arg21[%c2_238, %c0_239, %c0_240] : memref<4x1x32xf32, #tpu.memory_space<vmem>>, vector<1x1x32xf32>
    %449 = vector.shape_cast %448 : vector<1x1x32xf32> to vector<1x32xf32>
    %450 = vector.broadcast %449 : vector<1x32xf32> to vector<8x32xf32>
    %451 = arith.addf %447, %450 : vector<8x32xf32>
    %452 = arith.addf %435, %451 : vector<8x32xf32>
    %453 = vector.extract_strided_slice %367 {offsets = [2, 0], sizes = [1, 32], strides = [1, 1]} : vector<4x32xf32> to vector<1x32xf32>
    %454 = vector.extract_strided_slice %367 {offsets = [3, 0], sizes = [1, 32], strides = [1, 1]} : vector<4x32xf32> to vector<1x32xf32>
    %cst_241 = arith.constant dense<0.000000e+00> : vector<8xf32>
    %455 = vector.multi_reduction <add>, %452, %cst_241 [1] : vector<8x32xf32> to vector<8xf32>
    %456 = vector.shape_cast %455 : vector<8xf32> to vector<8x1xf32>
    %cst_242 = arith.constant 3.200000e+01 : f32
    %457 = vector.broadcast %cst_242 : f32 to vector<8x1xf32>
    %458 = arith.divf %456, %457 : vector<8x1xf32>
    %459 = vector.broadcast %458 : vector<8x1xf32> to vector<8x32xf32>
    %460 = arith.subf %452, %459 : vector<8x32xf32>
    %461 = arith.mulf %460, %460 : vector<8x32xf32>
    %cst_243 = arith.constant dense<0.000000e+00> : vector<8xf32>
    %462 = vector.multi_reduction <add>, %461, %cst_243 [1] : vector<8x32xf32> to vector<8xf32>
    %463 = vector.shape_cast %462 : vector<8xf32> to vector<8x1xf32>
    %cst_244 = arith.constant 3.200000e+01 : f32
    %464 = vector.broadcast %cst_244 : f32 to vector<8x1xf32>
    %465 = arith.divf %463, %464 : vector<8x1xf32>
    %466 = vector.broadcast %458 : vector<8x1xf32> to vector<8x32xf32>
    %467 = arith.subf %452, %466 : vector<8x32xf32>
    %cst_245 = arith.constant 9.99999997E-7 : f32
    %468 = vector.broadcast %cst_245 : f32 to vector<8x1xf32>
    %469 = arith.addf %465, %468 : vector<8x1xf32>
    %470 = math.rsqrt %469 : vector<8x1xf32>
    %471 = vector.broadcast %470 : vector<8x1xf32> to vector<8x32xf32>
    %472 = arith.mulf %467, %471 : vector<8x32xf32>
    %473 = vector.broadcast %453 : vector<1x32xf32> to vector<8x32xf32>
    %474 = arith.mulf %472, %473 : vector<8x32xf32>
    %475 = vector.broadcast %454 : vector<1x32xf32> to vector<8x32xf32>
    %476 = arith.addf %474, %475 : vector<8x32xf32>
    %c0_246 = arith.constant 0 : index
    %c0_247 = arith.constant 0 : index
    %c0_248 = arith.constant 0 : index
    %477 = vector.load %arg3[%c0_246, %c0_247, %c0_248] : memref<1x8x1xi32, #tpu.memory_space<vmem>>, vector<1x8x1xi32>
    %478 = vector.shape_cast %477 : vector<1x8x1xi32> to vector<8x1xi32>
    %479 = tpu.iota {dimensions = array<i32: 1>} : vector<8x64xi32>
    %480 = vector.broadcast %478 : vector<8x1xi32> to vector<8x64xi32>
    %481 = arith.cmpi eq, %479, %480 : vector<8x64xi32>
    %482 = arith.extui %481 : vector<8x64xi1> to vector<8x64xi32>
    %483 = arith.sitofp %482 : vector<8x64xi32> to vector<8x64xf32>
    %cst_249 = arith.constant dense<0.000000e+00> : vector<8x32xf32>
    %484 = tpu.matmul %483, %0, %cst_249 {dimension_numbers = #tpu.dot_dimension_numbers<[1], [0], [0], [1], [0, 0, 1, 1], [], []>} : vector<8x64xf32>, vector<64x32xf32>, vector<8x32xf32> -> vector<8x32xf32>
    %cst_250 = arith.constant 5.65685415 : f32
    %485 = vector.broadcast %cst_250 : f32 to vector<8x32xf32>
    %486 = arith.mulf %484, %485 : vector<8x32xf32>
    %487 = vector.extract_strided_slice %1 {offsets = [0, 0], sizes = [8, 32], strides = [1, 1]} : vector<16x32xf32> to vector<8x32xf32>
    %488 = arith.addf %486, %487 : vector<8x32xf32>
    %c0_251 = arith.constant 0 : index
    %c0_252 = arith.constant 0 : index
    %c0_253 = arith.constant 0 : index
    %489 = vector.load %arg22[%c0_251, %c0_252, %c0_253] : memref<4x4x32xf32, #tpu.memory_space<vmem>>, vector<1x4x32xf32>
    %490 = vector.shape_cast %489 : vector<1x4x32xf32> to vector<4x32xf32>
    %c0_254 = arith.constant 0 : index
    %c0_255 = arith.constant 0 : index
    %c0_256 = arith.constant 0 : index
    %491 = vector.load %arg12[%c0_254, %c0_255, %c0_256] : memref<4x32x32xf32, #tpu.memory_space<vmem>>, vector<1x32x32xf32>
    %492 = vector.shape_cast %491 : vector<1x32x32xf32> to vector<32x32xf32>
    %c0_257 = arith.constant 0 : index
    %c0_258 = arith.constant 0 : index
    %c0_259 = arith.constant 0 : index
    %493 = vector.load %arg13[%c0_257, %c0_258, %c0_259] : memref<4x1x32xf32, #tpu.memory_space<vmem>>, vector<1x1x32xf32>
    %494 = vector.shape_cast %493 : vector<1x1x32xf32> to vector<1x32xf32>
    %c0_260 = arith.constant 0 : index
    %c0_261 = arith.constant 0 : index
    %c0_262 = arith.constant 0 : index
    %495 = vector.load %arg14[%c0_260, %c0_261, %c0_262] : memref<4x32x64xf32, #tpu.memory_space<vmem>>, vector<1x32x64xf32>
    %496 = vector.shape_cast %495 : vector<1x32x64xf32> to vector<32x64xf32>
    %c0_263 = arith.constant 0 : index
    %c0_264 = arith.constant 0 : index
    %c0_265 = arith.constant 0 : index
    %497 = vector.load %arg15[%c0_263, %c0_264, %c0_265] : memref<4x1x64xf32, #tpu.memory_space<vmem>>, vector<1x1x64xf32>
    %498 = vector.shape_cast %497 : vector<1x1x64xf32> to vector<1x64xf32>
    %c0_266 = arith.constant 0 : index
    %c0_267 = arith.constant 0 : index
    %c0_268 = arith.constant 0 : index
    %499 = vector.load %arg16[%c0_266, %c0_267, %c0_268] : memref<4x32x32xf32, #tpu.memory_space<vmem>>, vector<1x32x32xf32>
    %500 = vector.shape_cast %499 : vector<1x32x32xf32> to vector<32x32xf32>
    %c0_269 = arith.constant 0 : index
    %c0_270 = arith.constant 0 : index
    %c0_271 = arith.constant 0 : index
    %501 = vector.load %arg17[%c0_269, %c0_270, %c0_271] : memref<4x1x32xf32, #tpu.memory_space<vmem>>, vector<1x1x32xf32>
    %502 = vector.shape_cast %501 : vector<1x1x32xf32> to vector<1x32xf32>
    %cst_272 = arith.constant dense<0.000000e+00> : vector<8x32xf32>
    %503 = tpu.matmul %488, %492, %cst_272 {dimension_numbers = #tpu.dot_dimension_numbers<[1], [0], [0], [1], [0, 0, 1, 1], [], []>} : vector<8x32xf32>, vector<32x32xf32>, vector<8x32xf32> -> vector<8x32xf32>
    %504 = vector.broadcast %494 : vector<1x32xf32> to vector<8x32xf32>
    %505 = arith.addf %503, %504 : vector<8x32xf32>
    %cst_273 = arith.constant dense<0.000000e+00> : vector<8x64xf32>
    %506 = tpu.matmul %488, %496, %cst_273 {dimension_numbers = #tpu.dot_dimension_numbers<[1], [0], [0], [1], [0, 0, 1, 1], [], []>} : vector<8x32xf32>, vector<32x64xf32>, vector<8x64xf32> -> vector<8x64xf32>
    %507 = vector.broadcast %498 : vector<1x64xf32> to vector<8x64xf32>
    %508 = arith.addf %506, %507 : vector<8x64xf32>
    %509 = vector.extract_strided_slice %508 {offsets = [0, 0], sizes = [8, 32], strides = [1, 1]} : vector<8x64xf32> to vector<8x32xf32>
    %510 = vector.extract_strided_slice %508 {offsets = [0, 32], sizes = [8, 32], strides = [1, 1]} : vector<8x64xf32> to vector<8x32xf32>
    %cst_274 = arith.constant dense<0.000000e+00> : vector<8x8xf32>
    %511 = tpu.matmul %505, %509, %cst_274 {dimension_numbers = #tpu.dot_dimension_numbers<[1], [1], [0], [0], [0, 0, 1, 0], [], []>} : vector<8x32xf32>, vector<8x32xf32>, vector<8x8xf32> -> vector<8x8xf32>
    %cst_275 = arith.constant 0.176776692 : f32
    %512 = vector.broadcast %cst_275 : f32 to vector<8x8xf32>
    %513 = arith.mulf %511, %512 : vector<8x8xf32>
    %cst_276 = arith.constant 0.000000e+00 : f32
    %514 = vector.broadcast %cst_276 : f32 to vector<1x8xf32>
    %515 = arith.cmpf ogt, %7, %514 : vector<1x8xf32>
    %cst_277 = arith.constant -1.000000e+09 : f32
    %516 = vector.shape_cast %515 : vector<1x8xi1> to vector<1x8xi1>
    %517 = vector.broadcast %516 : vector<1x8xi1> to vector<8x8xi1>
    %518 = vector.broadcast %cst_277 : f32 to vector<8x8xf32>
    %519 = arith.select %517, %513, %518 : vector<8x8xi1>, vector<8x8xf32>
    %cst_278 = arith.constant dense<0xFF800000> : vector<8xf32>
    %520 = vector.multi_reduction <maximumf>, %519, %cst_278 [1] : vector<8x8xf32> to vector<8xf32>
    %521 = vector.shape_cast %520 : vector<8xf32> to vector<8x1xf32>
    %522 = vector.broadcast %521 : vector<8x1xf32> to vector<8x8xf32>
    %523 = arith.subf %519, %522 : vector<8x8xf32>
    %524 = math.exp %523 : vector<8x8xf32>
    %cst_279 = arith.constant dense<0.000000e+00> : vector<8xf32>
    %525 = vector.multi_reduction <add>, %524, %cst_279 [1] : vector<8x8xf32> to vector<8xf32>
    %526 = vector.shape_cast %525 : vector<8xf32> to vector<8x1xf32>
    %527 = tpu.reciprocal %526 {approx = true} : vector<8x1xf32> -> vector<8x1xf32>
    %528 = vector.broadcast %527 : vector<8x1xf32> to vector<8x8xf32>
    %529 = arith.mulf %524, %528 : vector<8x8xf32>
    %cst_280 = arith.constant dense<0.000000e+00> : vector<8x32xf32>
    %530 = tpu.matmul %529, %510, %cst_280 {dimension_numbers = #tpu.dot_dimension_numbers<[1], [0], [0], [1], [0, 0, 1, 1], [], []>} : vector<8x8xf32>, vector<8x32xf32>, vector<8x32xf32> -> vector<8x32xf32>
    %cst_281 = arith.constant dense<0.000000e+00> : vector<8x32xf32>
    %531 = tpu.matmul %530, %500, %cst_281 {dimension_numbers = #tpu.dot_dimension_numbers<[1], [0], [0], [1], [0, 0, 1, 1], [], []>} : vector<8x32xf32>, vector<32x32xf32>, vector<8x32xf32> -> vector<8x32xf32>
    %532 = vector.broadcast %502 : vector<1x32xf32> to vector<8x32xf32>
    %533 = arith.addf %531, %532 : vector<8x32xf32>
    %534 = arith.addf %488, %533 : vector<8x32xf32>
    %535 = vector.extract_strided_slice %490 {offsets = [0, 0], sizes = [1, 32], strides = [1, 1]} : vector<4x32xf32> to vector<1x32xf32>
    %536 = vector.extract_strided_slice %490 {offsets = [1, 0], sizes = [1, 32], strides = [1, 1]} : vector<4x32xf32> to vector<1x32xf32>
    %cst_282 = arith.constant dense<0.000000e+00> : vector<8xf32>
    %537 = vector.multi_reduction <add>, %534, %cst_282 [1] : vector<8x32xf32> to vector<8xf32>
    %538 = vector.shape_cast %537 : vector<8xf32> to vector<8x1xf32>
    %cst_283 = arith.constant 3.200000e+01 : f32
    %539 = vector.broadcast %cst_283 : f32 to vector<8x1xf32>
    %540 = arith.divf %538, %539 : vector<8x1xf32>
    %541 = vector.broadcast %540 : vector<8x1xf32> to vector<8x32xf32>
    %542 = arith.subf %534, %541 : vector<8x32xf32>
    %543 = arith.mulf %542, %542 : vector<8x32xf32>
    %cst_284 = arith.constant dense<0.000000e+00> : vector<8xf32>
    %544 = vector.multi_reduction <add>, %543, %cst_284 [1] : vector<8x32xf32> to vector<8xf32>
    %545 = vector.shape_cast %544 : vector<8xf32> to vector<8x1xf32>
    %cst_285 = arith.constant 3.200000e+01 : f32
    %546 = vector.broadcast %cst_285 : f32 to vector<8x1xf32>
    %547 = arith.divf %545, %546 : vector<8x1xf32>
    %548 = vector.broadcast %540 : vector<8x1xf32> to vector<8x32xf32>
    %549 = arith.subf %534, %548 : vector<8x32xf32>
    %cst_286 = arith.constant 9.99999997E-7 : f32
    %550 = vector.broadcast %cst_286 : f32 to vector<8x1xf32>
    %551 = arith.addf %547, %550 : vector<8x1xf32>
    %552 = math.rsqrt %551 : vector<8x1xf32>
    %553 = vector.broadcast %552 : vector<8x1xf32> to vector<8x32xf32>
    %554 = arith.mulf %549, %553 : vector<8x32xf32>
    %555 = vector.broadcast %535 : vector<1x32xf32> to vector<8x32xf32>
    %556 = arith.mulf %554, %555 : vector<8x32xf32>
    %557 = vector.broadcast %536 : vector<1x32xf32> to vector<8x32xf32>
    %558 = arith.addf %556, %557 : vector<8x32xf32>
    %c0_287 = arith.constant 0 : index
    %c0_288 = arith.constant 0 : index
    %c0_289 = arith.constant 0 : index
    %559 = vector.load %arg18[%c0_287, %c0_288, %c0_289] : memref<4x32x64xf32, #tpu.memory_space<vmem>>, vector<1x32x64xf32>
    %560 = vector.shape_cast %559 : vector<1x32x64xf32> to vector<32x64xf32>
    %cst_290 = arith.constant dense<0.000000e+00> : vector<8x64xf32>
    %561 = tpu.matmul %558, %560, %cst_290 {dimension_numbers = #tpu.dot_dimension_numbers<[1], [0], [0], [1], [0, 0, 1, 1], [], []>} : vector<8x32xf32>, vector<32x64xf32>, vector<8x64xf32> -> vector<8x64xf32>
    %c0_291 = arith.constant 0 : index
    %c0_292 = arith.constant 0 : index
    %c0_293 = arith.constant 0 : index
    %562 = vector.load %arg19[%c0_291, %c0_292, %c0_293] : memref<4x1x64xf32, #tpu.memory_space<vmem>>, vector<1x1x64xf32>
    %563 = vector.shape_cast %562 : vector<1x1x64xf32> to vector<1x64xf32>
    %564 = vector.broadcast %563 : vector<1x64xf32> to vector<8x64xf32>
    %565 = arith.addf %561, %564 : vector<8x64xf32>
    %cst_294 = arith.constant 0.000000e+00 : f32
    %566 = vector.broadcast %cst_294 : f32 to vector<8x64xf32>
    %567 = arith.maximumf %565, %566 : vector<8x64xf32>
    %c0_295 = arith.constant 0 : index
    %c0_296 = arith.constant 0 : index
    %c0_297 = arith.constant 0 : index
    %568 = vector.load %arg20[%c0_295, %c0_296, %c0_297] : memref<4x64x32xf32, #tpu.memory_space<vmem>>, vector<1x64x32xf32>
    %569 = vector.shape_cast %568 : vector<1x64x32xf32> to vector<64x32xf32>
    %cst_298 = arith.constant dense<0.000000e+00> : vector<8x32xf32>
    %570 = tpu.matmul %567, %569, %cst_298 {dimension_numbers = #tpu.dot_dimension_numbers<[1], [0], [0], [1], [0, 0, 1, 1], [], []>} : vector<8x64xf32>, vector<64x32xf32>, vector<8x32xf32> -> vector<8x32xf32>
    %c0_299 = arith.constant 0 : index
    %c0_300 = arith.constant 0 : index
    %c0_301 = arith.constant 0 : index
    %571 = vector.load %arg21[%c0_299, %c0_300, %c0_301] : memref<4x1x32xf32, #tpu.memory_space<vmem>>, vector<1x1x32xf32>
    %572 = vector.shape_cast %571 : vector<1x1x32xf32> to vector<1x32xf32>
    %573 = vector.broadcast %572 : vector<1x32xf32> to vector<8x32xf32>
    %574 = arith.addf %570, %573 : vector<8x32xf32>
    %575 = arith.addf %558, %574 : vector<8x32xf32>
    %576 = vector.extract_strided_slice %490 {offsets = [2, 0], sizes = [1, 32], strides = [1, 1]} : vector<4x32xf32> to vector<1x32xf32>
    %577 = vector.extract_strided_slice %490 {offsets = [3, 0], sizes = [1, 32], strides = [1, 1]} : vector<4x32xf32> to vector<1x32xf32>
    %cst_302 = arith.constant dense<0.000000e+00> : vector<8xf32>
    %578 = vector.multi_reduction <add>, %575, %cst_302 [1] : vector<8x32xf32> to vector<8xf32>
    %579 = vector.shape_cast %578 : vector<8xf32> to vector<8x1xf32>
    %cst_303 = arith.constant 3.200000e+01 : f32
    %580 = vector.broadcast %cst_303 : f32 to vector<8x1xf32>
    %581 = arith.divf %579, %580 : vector<8x1xf32>
    %582 = vector.broadcast %581 : vector<8x1xf32> to vector<8x32xf32>
    %583 = arith.subf %575, %582 : vector<8x32xf32>
    %584 = arith.mulf %583, %583 : vector<8x32xf32>
    %cst_304 = arith.constant dense<0.000000e+00> : vector<8xf32>
    %585 = vector.multi_reduction <add>, %584, %cst_304 [1] : vector<8x32xf32> to vector<8xf32>
    %586 = vector.shape_cast %585 : vector<8xf32> to vector<8x1xf32>
    %cst_305 = arith.constant 3.200000e+01 : f32
    %587 = vector.broadcast %cst_305 : f32 to vector<8x1xf32>
    %588 = arith.divf %586, %587 : vector<8x1xf32>
    %589 = vector.broadcast %581 : vector<8x1xf32> to vector<8x32xf32>
    %590 = arith.subf %575, %589 : vector<8x32xf32>
    %cst_306 = arith.constant 9.99999997E-7 : f32
    %591 = vector.broadcast %cst_306 : f32 to vector<8x1xf32>
    %592 = arith.addf %588, %591 : vector<8x1xf32>
    %593 = math.rsqrt %592 : vector<8x1xf32>
    %594 = vector.broadcast %593 : vector<8x1xf32> to vector<8x32xf32>
    %595 = arith.mulf %590, %594 : vector<8x32xf32>
    %596 = vector.broadcast %576 : vector<1x32xf32> to vector<8x32xf32>
    %597 = arith.mulf %595, %596 : vector<8x32xf32>
    %598 = vector.broadcast %577 : vector<1x32xf32> to vector<8x32xf32>
    %599 = arith.addf %597, %598 : vector<8x32xf32>
    %c3 = arith.constant 3 : index
    %c0_307 = arith.constant 0 : index
    %c0_308 = arith.constant 0 : index
    %600 = vector.load %arg22[%c3, %c0_307, %c0_308] : memref<4x4x32xf32, #tpu.memory_space<vmem>>, vector<1x4x32xf32>
    %601 = vector.shape_cast %600 : vector<1x4x32xf32> to vector<4x32xf32>
    %c3_309 = arith.constant 3 : index
    %c0_310 = arith.constant 0 : index
    %c0_311 = arith.constant 0 : index
    %602 = vector.load %arg12[%c3_309, %c0_310, %c0_311] : memref<4x32x32xf32, #tpu.memory_space<vmem>>, vector<1x32x32xf32>
    %603 = vector.shape_cast %602 : vector<1x32x32xf32> to vector<32x32xf32>
    %c3_312 = arith.constant 3 : index
    %c0_313 = arith.constant 0 : index
    %c0_314 = arith.constant 0 : index
    %604 = vector.load %arg13[%c3_312, %c0_313, %c0_314] : memref<4x1x32xf32, #tpu.memory_space<vmem>>, vector<1x1x32xf32>
    %605 = vector.shape_cast %604 : vector<1x1x32xf32> to vector<1x32xf32>
    %c3_315 = arith.constant 3 : index
    %c0_316 = arith.constant 0 : index
    %c0_317 = arith.constant 0 : index
    %606 = vector.load %arg14[%c3_315, %c0_316, %c0_317] : memref<4x32x64xf32, #tpu.memory_space<vmem>>, vector<1x32x64xf32>
    %607 = vector.shape_cast %606 : vector<1x32x64xf32> to vector<32x64xf32>
    %c3_318 = arith.constant 3 : index
    %c0_319 = arith.constant 0 : index
    %c0_320 = arith.constant 0 : index
    %608 = vector.load %arg15[%c3_318, %c0_319, %c0_320] : memref<4x1x64xf32, #tpu.memory_space<vmem>>, vector<1x1x64xf32>
    %609 = vector.shape_cast %608 : vector<1x1x64xf32> to vector<1x64xf32>
    %c3_321 = arith.constant 3 : index
    %c0_322 = arith.constant 0 : index
    %c0_323 = arith.constant 0 : index
    %610 = vector.load %arg16[%c3_321, %c0_322, %c0_323] : memref<4x32x32xf32, #tpu.memory_space<vmem>>, vector<1x32x32xf32>
    %611 = vector.shape_cast %610 : vector<1x32x32xf32> to vector<32x32xf32>
    %c3_324 = arith.constant 3 : index
    %c0_325 = arith.constant 0 : index
    %c0_326 = arith.constant 0 : index
    %612 = vector.load %arg17[%c3_324, %c0_325, %c0_326] : memref<4x1x32xf32, #tpu.memory_space<vmem>>, vector<1x1x32xf32>
    %613 = vector.shape_cast %612 : vector<1x1x32xf32> to vector<1x32xf32>
    %cst_327 = arith.constant dense<0.000000e+00> : vector<8x32xf32>
    %614 = tpu.matmul %599, %603, %cst_327 {dimension_numbers = #tpu.dot_dimension_numbers<[1], [0], [0], [1], [0, 0, 1, 1], [], []>} : vector<8x32xf32>, vector<32x32xf32>, vector<8x32xf32> -> vector<8x32xf32>
    %615 = vector.broadcast %605 : vector<1x32xf32> to vector<8x32xf32>
    %616 = arith.addf %614, %615 : vector<8x32xf32>
    %cst_328 = arith.constant dense<0.000000e+00> : vector<8x64xf32>
    %617 = tpu.matmul %599, %607, %cst_328 {dimension_numbers = #tpu.dot_dimension_numbers<[1], [0], [0], [1], [0, 0, 1, 1], [], []>} : vector<8x32xf32>, vector<32x64xf32>, vector<8x64xf32> -> vector<8x64xf32>
    %618 = vector.broadcast %609 : vector<1x64xf32> to vector<8x64xf32>
    %619 = arith.addf %617, %618 : vector<8x64xf32>
    %620 = vector.extract_strided_slice %619 {offsets = [0, 0], sizes = [8, 32], strides = [1, 1]} : vector<8x64xf32> to vector<8x32xf32>
    %621 = vector.extract_strided_slice %619 {offsets = [0, 32], sizes = [8, 32], strides = [1, 1]} : vector<8x64xf32> to vector<8x32xf32>
    %cst_329 = arith.constant dense<0.000000e+00> : vector<8x8xf32>
    %622 = tpu.matmul %616, %620, %cst_329 {dimension_numbers = #tpu.dot_dimension_numbers<[1], [1], [0], [0], [0, 0, 1, 0], [], []>} : vector<8x32xf32>, vector<8x32xf32>, vector<8x8xf32> -> vector<8x8xf32>
    %cst_330 = arith.constant 0.176776692 : f32
    %623 = vector.broadcast %cst_330 : f32 to vector<8x8xf32>
    %624 = arith.mulf %622, %623 : vector<8x8xf32>
    %cst_331 = arith.constant 0.000000e+00 : f32
    %625 = vector.broadcast %cst_331 : f32 to vector<1x8xf32>
    %626 = arith.cmpf ogt, %7, %625 : vector<1x8xf32>
    %cst_332 = arith.constant -1.000000e+09 : f32
    %627 = vector.shape_cast %626 : vector<1x8xi1> to vector<1x8xi1>
    %628 = vector.broadcast %627 : vector<1x8xi1> to vector<8x8xi1>
    %629 = vector.broadcast %cst_332 : f32 to vector<8x8xf32>
    %630 = arith.select %628, %624, %629 : vector<8x8xi1>, vector<8x8xf32>
    %cst_333 = arith.constant dense<0xFF800000> : vector<8xf32>
    %631 = vector.multi_reduction <maximumf>, %630, %cst_333 [1] : vector<8x8xf32> to vector<8xf32>
    %632 = vector.shape_cast %631 : vector<8xf32> to vector<8x1xf32>
    %633 = vector.broadcast %632 : vector<8x1xf32> to vector<8x8xf32>
    %634 = arith.subf %630, %633 : vector<8x8xf32>
    %635 = math.exp %634 : vector<8x8xf32>
    %cst_334 = arith.constant dense<0.000000e+00> : vector<8xf32>
    %636 = vector.multi_reduction <add>, %635, %cst_334 [1] : vector<8x8xf32> to vector<8xf32>
    %637 = vector.shape_cast %636 : vector<8xf32> to vector<8x1xf32>
    %638 = tpu.reciprocal %637 {approx = true} : vector<8x1xf32> -> vector<8x1xf32>
    %639 = vector.broadcast %638 : vector<8x1xf32> to vector<8x8xf32>
    %640 = arith.mulf %635, %639 : vector<8x8xf32>
    %cst_335 = arith.constant dense<0.000000e+00> : vector<8x32xf32>
    %641 = tpu.matmul %640, %621, %cst_335 {dimension_numbers = #tpu.dot_dimension_numbers<[1], [0], [0], [1], [0, 0, 1, 1], [], []>} : vector<8x8xf32>, vector<8x32xf32>, vector<8x32xf32> -> vector<8x32xf32>
    %cst_336 = arith.constant dense<0.000000e+00> : vector<8x32xf32>
    %642 = tpu.matmul %641, %611, %cst_336 {dimension_numbers = #tpu.dot_dimension_numbers<[1], [0], [0], [1], [0, 0, 1, 1], [], []>} : vector<8x32xf32>, vector<32x32xf32>, vector<8x32xf32> -> vector<8x32xf32>
    %643 = vector.broadcast %613 : vector<1x32xf32> to vector<8x32xf32>
    %644 = arith.addf %642, %643 : vector<8x32xf32>
    %645 = arith.addf %599, %644 : vector<8x32xf32>
    %646 = vector.extract_strided_slice %601 {offsets = [0, 0], sizes = [1, 32], strides = [1, 1]} : vector<4x32xf32> to vector<1x32xf32>
    %647 = vector.extract_strided_slice %601 {offsets = [1, 0], sizes = [1, 32], strides = [1, 1]} : vector<4x32xf32> to vector<1x32xf32>
    %cst_337 = arith.constant dense<0.000000e+00> : vector<8xf32>
    %648 = vector.multi_reduction <add>, %645, %cst_337 [1] : vector<8x32xf32> to vector<8xf32>
    %649 = vector.shape_cast %648 : vector<8xf32> to vector<8x1xf32>
    %cst_338 = arith.constant 3.200000e+01 : f32
    %650 = vector.broadcast %cst_338 : f32 to vector<8x1xf32>
    %651 = arith.divf %649, %650 : vector<8x1xf32>
    %652 = vector.broadcast %651 : vector<8x1xf32> to vector<8x32xf32>
    %653 = arith.subf %645, %652 : vector<8x32xf32>
    %654 = arith.mulf %653, %653 : vector<8x32xf32>
    %cst_339 = arith.constant dense<0.000000e+00> : vector<8xf32>
    %655 = vector.multi_reduction <add>, %654, %cst_339 [1] : vector<8x32xf32> to vector<8xf32>
    %656 = vector.shape_cast %655 : vector<8xf32> to vector<8x1xf32>
    %cst_340 = arith.constant 3.200000e+01 : f32
    %657 = vector.broadcast %cst_340 : f32 to vector<8x1xf32>
    %658 = arith.divf %656, %657 : vector<8x1xf32>
    %659 = vector.broadcast %651 : vector<8x1xf32> to vector<8x32xf32>
    %660 = arith.subf %645, %659 : vector<8x32xf32>
    %cst_341 = arith.constant 9.99999997E-7 : f32
    %661 = vector.broadcast %cst_341 : f32 to vector<8x1xf32>
    %662 = arith.addf %658, %661 : vector<8x1xf32>
    %663 = math.rsqrt %662 : vector<8x1xf32>
    %664 = vector.broadcast %663 : vector<8x1xf32> to vector<8x32xf32>
    %665 = arith.mulf %660, %664 : vector<8x32xf32>
    %666 = vector.broadcast %646 : vector<1x32xf32> to vector<8x32xf32>
    %667 = arith.mulf %665, %666 : vector<8x32xf32>
    %668 = vector.broadcast %647 : vector<1x32xf32> to vector<8x32xf32>
    %669 = arith.addf %667, %668 : vector<8x32xf32>
    %c3_342 = arith.constant 3 : index
    %c0_343 = arith.constant 0 : index
    %c0_344 = arith.constant 0 : index
    %670 = vector.load %arg18[%c3_342, %c0_343, %c0_344] : memref<4x32x64xf32, #tpu.memory_space<vmem>>, vector<1x32x64xf32>
    %671 = vector.shape_cast %670 : vector<1x32x64xf32> to vector<32x64xf32>
    %cst_345 = arith.constant dense<0.000000e+00> : vector<8x64xf32>
    %672 = tpu.matmul %669, %671, %cst_345 {dimension_numbers = #tpu.dot_dimension_numbers<[1], [0], [0], [1], [0, 0, 1, 1], [], []>} : vector<8x32xf32>, vector<32x64xf32>, vector<8x64xf32> -> vector<8x64xf32>
    %c3_346 = arith.constant 3 : index
    %c0_347 = arith.constant 0 : index
    %c0_348 = arith.constant 0 : index
    %673 = vector.load %arg19[%c3_346, %c0_347, %c0_348] : memref<4x1x64xf32, #tpu.memory_space<vmem>>, vector<1x1x64xf32>
    %674 = vector.shape_cast %673 : vector<1x1x64xf32> to vector<1x64xf32>
    %675 = vector.broadcast %674 : vector<1x64xf32> to vector<8x64xf32>
    %676 = arith.addf %672, %675 : vector<8x64xf32>
    %cst_349 = arith.constant 0.000000e+00 : f32
    %677 = vector.broadcast %cst_349 : f32 to vector<8x64xf32>
    %678 = arith.maximumf %676, %677 : vector<8x64xf32>
    %c3_350 = arith.constant 3 : index
    %c0_351 = arith.constant 0 : index
    %c0_352 = arith.constant 0 : index
    %679 = vector.load %arg20[%c3_350, %c0_351, %c0_352] : memref<4x64x32xf32, #tpu.memory_space<vmem>>, vector<1x64x32xf32>
    %680 = vector.shape_cast %679 : vector<1x64x32xf32> to vector<64x32xf32>
    %cst_353 = arith.constant dense<0.000000e+00> : vector<8x32xf32>
    %681 = tpu.matmul %678, %680, %cst_353 {dimension_numbers = #tpu.dot_dimension_numbers<[1], [0], [0], [1], [0, 0, 1, 1], [], []>} : vector<8x64xf32>, vector<64x32xf32>, vector<8x32xf32> -> vector<8x32xf32>
    %c3_354 = arith.constant 3 : index
    %c0_355 = arith.constant 0 : index
    %c0_356 = arith.constant 0 : index
    %682 = vector.load %arg21[%c3_354, %c0_355, %c0_356] : memref<4x1x32xf32, #tpu.memory_space<vmem>>, vector<1x1x32xf32>
    %683 = vector.shape_cast %682 : vector<1x1x32xf32> to vector<1x32xf32>
    %684 = vector.broadcast %683 : vector<1x32xf32> to vector<8x32xf32>
    %685 = arith.addf %681, %684 : vector<8x32xf32>
    %686 = arith.addf %669, %685 : vector<8x32xf32>
    %687 = vector.extract_strided_slice %601 {offsets = [2, 0], sizes = [1, 32], strides = [1, 1]} : vector<4x32xf32> to vector<1x32xf32>
    %688 = vector.extract_strided_slice %601 {offsets = [3, 0], sizes = [1, 32], strides = [1, 1]} : vector<4x32xf32> to vector<1x32xf32>
    %cst_357 = arith.constant dense<0.000000e+00> : vector<8xf32>
    %689 = vector.multi_reduction <add>, %686, %cst_357 [1] : vector<8x32xf32> to vector<8xf32>
    %690 = vector.shape_cast %689 : vector<8xf32> to vector<8x1xf32>
    %cst_358 = arith.constant 3.200000e+01 : f32
    %691 = vector.broadcast %cst_358 : f32 to vector<8x1xf32>
    %692 = arith.divf %690, %691 : vector<8x1xf32>
    %693 = vector.broadcast %692 : vector<8x1xf32> to vector<8x32xf32>
    %694 = arith.subf %686, %693 : vector<8x32xf32>
    %695 = arith.mulf %694, %694 : vector<8x32xf32>
    %cst_359 = arith.constant dense<0.000000e+00> : vector<8xf32>
    %696 = vector.multi_reduction <add>, %695, %cst_359 [1] : vector<8x32xf32> to vector<8xf32>
    %697 = vector.shape_cast %696 : vector<8xf32> to vector<8x1xf32>
    %cst_360 = arith.constant 3.200000e+01 : f32
    %698 = vector.broadcast %cst_360 : f32 to vector<8x1xf32>
    %699 = arith.divf %697, %698 : vector<8x1xf32>
    %700 = vector.broadcast %692 : vector<8x1xf32> to vector<8x32xf32>
    %701 = arith.subf %686, %700 : vector<8x32xf32>
    %cst_361 = arith.constant 9.99999997E-7 : f32
    %702 = vector.broadcast %cst_361 : f32 to vector<8x1xf32>
    %703 = arith.addf %699, %702 : vector<8x1xf32>
    %704 = math.rsqrt %703 : vector<8x1xf32>
    %705 = vector.broadcast %704 : vector<8x1xf32> to vector<8x32xf32>
    %706 = arith.mulf %701, %705 : vector<8x32xf32>
    %707 = vector.broadcast %687 : vector<1x32xf32> to vector<8x32xf32>
    %708 = arith.mulf %706, %707 : vector<8x32xf32>
    %709 = vector.broadcast %688 : vector<1x32xf32> to vector<8x32xf32>
    %710 = arith.addf %708, %709 : vector<8x32xf32>
    %c0_362 = arith.constant 0 : index
    %c0_363 = arith.constant 0 : index
    %c0_364 = arith.constant 0 : index
    %711 = vector.load %arg4[%c0_362, %c0_363, %c0_364] : memref<1x8x1xi32, #tpu.memory_space<vmem>>, vector<1x8x1xi32>
    %712 = vector.shape_cast %711 : vector<1x8x1xi32> to vector<8x1xi32>
    %713 = tpu.iota {dimensions = array<i32: 1>} : vector<8x64xi32>
    %714 = vector.broadcast %712 : vector<8x1xi32> to vector<8x64xi32>
    %715 = arith.cmpi eq, %713, %714 : vector<8x64xi32>
    %716 = arith.extui %715 : vector<8x64xi1> to vector<8x64xi32>
    %717 = arith.sitofp %716 : vector<8x64xi32> to vector<8x64xf32>
    %cst_365 = arith.constant dense<0.000000e+00> : vector<8x32xf32>
    %718 = tpu.matmul %717, %0, %cst_365 {dimension_numbers = #tpu.dot_dimension_numbers<[1], [0], [0], [1], [0, 0, 1, 1], [], []>} : vector<8x64xf32>, vector<64x32xf32>, vector<8x32xf32> -> vector<8x32xf32>
    %cst_366 = arith.constant 5.65685415 : f32
    %719 = vector.broadcast %cst_366 : f32 to vector<8x32xf32>
    %720 = arith.mulf %718, %719 : vector<8x32xf32>
    %721 = vector.extract_strided_slice %1 {offsets = [0, 0], sizes = [8, 32], strides = [1, 1]} : vector<16x32xf32> to vector<8x32xf32>
    %722 = arith.addf %720, %721 : vector<8x32xf32>
    %723 = tpu.iota {dimensions = array<i32: 0>} : vector<8x8xi32>
    %724 = tpu.iota {dimensions = array<i32: 1>} : vector<8x8xi32>
    %725 = arith.cmpi sge, %723, %724 : vector<8x8xi32>
    %726 = arith.extui %725 : vector<8x8xi1> to vector<8x8xi32>
    %727 = arith.sitofp %726 : vector<8x8xi32> to vector<8x8xf32>
    %728 = vector.broadcast %9 : vector<1x8xf32> to vector<8x8xf32>
    %729 = arith.mulf %727, %728 : vector<8x8xf32>
    %c0_367 = arith.constant 0 : index
    %c0_368 = arith.constant 0 : index
    %c0_369 = arith.constant 0 : index
    %730 = vector.load %arg23[%c0_367, %c0_368, %c0_369] : memref<4x32x32xf32, #tpu.memory_space<vmem>>, vector<1x32x32xf32>
    %731 = vector.shape_cast %730 : vector<1x32x32xf32> to vector<32x32xf32>
    %c0_370 = arith.constant 0 : index
    %c0_371 = arith.constant 0 : index
    %c0_372 = arith.constant 0 : index
    %732 = vector.load %arg24[%c0_370, %c0_371, %c0_372] : memref<4x1x32xf32, #tpu.memory_space<vmem>>, vector<1x1x32xf32>
    %733 = vector.shape_cast %732 : vector<1x1x32xf32> to vector<1x32xf32>
    %c0_373 = arith.constant 0 : index
    %c0_374 = arith.constant 0 : index
    %c0_375 = arith.constant 0 : index
    %734 = vector.load %arg25[%c0_373, %c0_374, %c0_375] : memref<4x32x64xf32, #tpu.memory_space<vmem>>, vector<1x32x64xf32>
    %735 = vector.shape_cast %734 : vector<1x32x64xf32> to vector<32x64xf32>
    %c0_376 = arith.constant 0 : index
    %c0_377 = arith.constant 0 : index
    %c0_378 = arith.constant 0 : index
    %736 = vector.load %arg26[%c0_376, %c0_377, %c0_378] : memref<4x1x64xf32, #tpu.memory_space<vmem>>, vector<1x1x64xf32>
    %737 = vector.shape_cast %736 : vector<1x1x64xf32> to vector<1x64xf32>
    %c0_379 = arith.constant 0 : index
    %c0_380 = arith.constant 0 : index
    %c0_381 = arith.constant 0 : index
    %738 = vector.load %arg27[%c0_379, %c0_380, %c0_381] : memref<4x32x32xf32, #tpu.memory_space<vmem>>, vector<1x32x32xf32>
    %739 = vector.shape_cast %738 : vector<1x32x32xf32> to vector<32x32xf32>
    %c0_382 = arith.constant 0 : index
    %c0_383 = arith.constant 0 : index
    %c0_384 = arith.constant 0 : index
    %740 = vector.load %arg28[%c0_382, %c0_383, %c0_384] : memref<4x1x32xf32, #tpu.memory_space<vmem>>, vector<1x1x32xf32>
    %741 = vector.shape_cast %740 : vector<1x1x32xf32> to vector<1x32xf32>
    %cst_385 = arith.constant dense<0.000000e+00> : vector<8x32xf32>
    %742 = tpu.matmul %722, %731, %cst_385 {dimension_numbers = #tpu.dot_dimension_numbers<[1], [0], [0], [1], [0, 0, 1, 1], [], []>} : vector<8x32xf32>, vector<32x32xf32>, vector<8x32xf32> -> vector<8x32xf32>
    %743 = vector.broadcast %733 : vector<1x32xf32> to vector<8x32xf32>
    %744 = arith.addf %742, %743 : vector<8x32xf32>
    %cst_386 = arith.constant dense<0.000000e+00> : vector<8x64xf32>
    %745 = tpu.matmul %722, %735, %cst_386 {dimension_numbers = #tpu.dot_dimension_numbers<[1], [0], [0], [1], [0, 0, 1, 1], [], []>} : vector<8x32xf32>, vector<32x64xf32>, vector<8x64xf32> -> vector<8x64xf32>
    %746 = vector.broadcast %737 : vector<1x64xf32> to vector<8x64xf32>
    %747 = arith.addf %745, %746 : vector<8x64xf32>
    %748 = vector.extract_strided_slice %747 {offsets = [0, 0], sizes = [8, 32], strides = [1, 1]} : vector<8x64xf32> to vector<8x32xf32>
    %749 = vector.extract_strided_slice %747 {offsets = [0, 32], sizes = [8, 32], strides = [1, 1]} : vector<8x64xf32> to vector<8x32xf32>
    %cst_387 = arith.constant dense<0.000000e+00> : vector<8x8xf32>
    %750 = tpu.matmul %744, %748, %cst_387 {dimension_numbers = #tpu.dot_dimension_numbers<[1], [1], [0], [0], [0, 0, 1, 0], [], []>} : vector<8x32xf32>, vector<8x32xf32>, vector<8x8xf32> -> vector<8x8xf32>
    %cst_388 = arith.constant 0.176776692 : f32
    %751 = vector.broadcast %cst_388 : f32 to vector<8x8xf32>
    %752 = arith.mulf %750, %751 : vector<8x8xf32>
    %cst_389 = arith.constant 0.000000e+00 : f32
    %753 = vector.broadcast %cst_389 : f32 to vector<8x8xf32>
    %754 = arith.cmpf ogt, %729, %753 : vector<8x8xf32>
    %cst_390 = arith.constant -1.000000e+09 : f32
    %755 = vector.broadcast %cst_390 : f32 to vector<8x8xf32>
    %756 = arith.select %754, %752, %755 : vector<8x8xi1>, vector<8x8xf32>
    %cst_391 = arith.constant dense<0xFF800000> : vector<8xf32>
    %757 = vector.multi_reduction <maximumf>, %756, %cst_391 [1] : vector<8x8xf32> to vector<8xf32>
    %758 = vector.shape_cast %757 : vector<8xf32> to vector<8x1xf32>
    %759 = vector.broadcast %758 : vector<8x1xf32> to vector<8x8xf32>
    %760 = arith.subf %756, %759 : vector<8x8xf32>
    %761 = math.exp %760 : vector<8x8xf32>
    %cst_392 = arith.constant dense<0.000000e+00> : vector<8xf32>
    %762 = vector.multi_reduction <add>, %761, %cst_392 [1] : vector<8x8xf32> to vector<8xf32>
    %763 = vector.shape_cast %762 : vector<8xf32> to vector<8x1xf32>
    %764 = tpu.reciprocal %763 {approx = true} : vector<8x1xf32> -> vector<8x1xf32>
    %765 = vector.broadcast %764 : vector<8x1xf32> to vector<8x8xf32>
    %766 = arith.mulf %761, %765 : vector<8x8xf32>
    %cst_393 = arith.constant dense<0.000000e+00> : vector<8x32xf32>
    %767 = tpu.matmul %766, %749, %cst_393 {dimension_numbers = #tpu.dot_dimension_numbers<[1], [0], [0], [1], [0, 0, 1, 1], [], []>} : vector<8x8xf32>, vector<8x32xf32>, vector<8x32xf32> -> vector<8x32xf32>
    %cst_394 = arith.constant dense<0.000000e+00> : vector<8x32xf32>
    %768 = tpu.matmul %767, %739, %cst_394 {dimension_numbers = #tpu.dot_dimension_numbers<[1], [0], [0], [1], [0, 0, 1, 1], [], []>} : vector<8x32xf32>, vector<32x32xf32>, vector<8x32xf32> -> vector<8x32xf32>
    %769 = vector.broadcast %741 : vector<1x32xf32> to vector<8x32xf32>
    %770 = arith.addf %768, %769 : vector<8x32xf32>
    %771 = arith.addf %722, %770 : vector<8x32xf32>
    %c0_395 = arith.constant 0 : index
    %c0_396 = arith.constant 0 : index
    %c0_397 = arith.constant 0 : index
    %772 = vector.load %arg33[%c0_395, %c0_396, %c0_397] : memref<5x2x32xf32, #tpu.memory_space<vmem>>, vector<1x2x32xf32>
    %773 = vector.shape_cast %772 : vector<1x2x32xf32> to vector<2x32xf32>
    %774 = vector.extract_strided_slice %773 {offsets = [0, 0], sizes = [1, 32], strides = [1, 1]} : vector<2x32xf32> to vector<1x32xf32>
    %775 = vector.extract_strided_slice %773 {offsets = [1, 0], sizes = [1, 32], strides = [1, 1]} : vector<2x32xf32> to vector<1x32xf32>
    %cst_398 = arith.constant dense<0.000000e+00> : vector<8xf32>
    %776 = vector.multi_reduction <add>, %771, %cst_398 [1] : vector<8x32xf32> to vector<8xf32>
    %777 = vector.shape_cast %776 : vector<8xf32> to vector<8x1xf32>
    %cst_399 = arith.constant 3.200000e+01 : f32
    %778 = vector.broadcast %cst_399 : f32 to vector<8x1xf32>
    %779 = arith.divf %777, %778 : vector<8x1xf32>
    %780 = vector.broadcast %779 : vector<8x1xf32> to vector<8x32xf32>
    %781 = arith.subf %771, %780 : vector<8x32xf32>
    %782 = arith.mulf %781, %781 : vector<8x32xf32>
    %cst_400 = arith.constant dense<0.000000e+00> : vector<8xf32>
    %783 = vector.multi_reduction <add>, %782, %cst_400 [1] : vector<8x32xf32> to vector<8xf32>
    %784 = vector.shape_cast %783 : vector<8xf32> to vector<8x1xf32>
    %cst_401 = arith.constant 3.200000e+01 : f32
    %785 = vector.broadcast %cst_401 : f32 to vector<8x1xf32>
    %786 = arith.divf %784, %785 : vector<8x1xf32>
    %787 = vector.broadcast %779 : vector<8x1xf32> to vector<8x32xf32>
    %788 = arith.subf %771, %787 : vector<8x32xf32>
    %cst_402 = arith.constant 9.99999997E-7 : f32
    %789 = vector.broadcast %cst_402 : f32 to vector<8x1xf32>
    %790 = arith.addf %786, %789 : vector<8x1xf32>
    %791 = math.rsqrt %790 : vector<8x1xf32>
    %792 = vector.broadcast %791 : vector<8x1xf32> to vector<8x32xf32>
    %793 = arith.mulf %788, %792 : vector<8x32xf32>
    %794 = vector.broadcast %774 : vector<1x32xf32> to vector<8x32xf32>
    %795 = arith.mulf %793, %794 : vector<8x32xf32>
    %796 = vector.broadcast %775 : vector<1x32xf32> to vector<8x32xf32>
    %797 = arith.addf %795, %796 : vector<8x32xf32>
    %c1_403 = arith.constant 1 : index
    %c0_404 = arith.constant 0 : index
    %c0_405 = arith.constant 0 : index
    %798 = vector.load %arg23[%c1_403, %c0_404, %c0_405] : memref<4x32x32xf32, #tpu.memory_space<vmem>>, vector<1x32x32xf32>
    %799 = vector.shape_cast %798 : vector<1x32x32xf32> to vector<32x32xf32>
    %c1_406 = arith.constant 1 : index
    %c0_407 = arith.constant 0 : index
    %c0_408 = arith.constant 0 : index
    %800 = vector.load %arg24[%c1_406, %c0_407, %c0_408] : memref<4x1x32xf32, #tpu.memory_space<vmem>>, vector<1x1x32xf32>
    %801 = vector.shape_cast %800 : vector<1x1x32xf32> to vector<1x32xf32>
    %c1_409 = arith.constant 1 : index
    %c0_410 = arith.constant 0 : index
    %c0_411 = arith.constant 0 : index
    %802 = vector.load %arg25[%c1_409, %c0_410, %c0_411] : memref<4x32x64xf32, #tpu.memory_space<vmem>>, vector<1x32x64xf32>
    %803 = vector.shape_cast %802 : vector<1x32x64xf32> to vector<32x64xf32>
    %c1_412 = arith.constant 1 : index
    %c0_413 = arith.constant 0 : index
    %c0_414 = arith.constant 0 : index
    %804 = vector.load %arg26[%c1_412, %c0_413, %c0_414] : memref<4x1x64xf32, #tpu.memory_space<vmem>>, vector<1x1x64xf32>
    %805 = vector.shape_cast %804 : vector<1x1x64xf32> to vector<1x64xf32>
    %c1_415 = arith.constant 1 : index
    %c0_416 = arith.constant 0 : index
    %c0_417 = arith.constant 0 : index
    %806 = vector.load %arg27[%c1_415, %c0_416, %c0_417] : memref<4x32x32xf32, #tpu.memory_space<vmem>>, vector<1x32x32xf32>
    %807 = vector.shape_cast %806 : vector<1x32x32xf32> to vector<32x32xf32>
    %c1_418 = arith.constant 1 : index
    %c0_419 = arith.constant 0 : index
    %c0_420 = arith.constant 0 : index
    %808 = vector.load %arg28[%c1_418, %c0_419, %c0_420] : memref<4x1x32xf32, #tpu.memory_space<vmem>>, vector<1x1x32xf32>
    %809 = vector.shape_cast %808 : vector<1x1x32xf32> to vector<1x32xf32>
    %cst_421 = arith.constant dense<0.000000e+00> : vector<8x32xf32>
    %810 = tpu.matmul %797, %799, %cst_421 {dimension_numbers = #tpu.dot_dimension_numbers<[1], [0], [0], [1], [0, 0, 1, 1], [], []>} : vector<8x32xf32>, vector<32x32xf32>, vector<8x32xf32> -> vector<8x32xf32>
    %811 = vector.broadcast %801 : vector<1x32xf32> to vector<8x32xf32>
    %812 = arith.addf %810, %811 : vector<8x32xf32>
    %cst_422 = arith.constant dense<0.000000e+00> : vector<16x64xf32>
    %813 = tpu.matmul %242, %803, %cst_422 {dimension_numbers = #tpu.dot_dimension_numbers<[1], [0], [0], [1], [0, 0, 1, 1], [], []>} : vector<16x32xf32>, vector<32x64xf32>, vector<16x64xf32> -> vector<16x64xf32>
    %814 = vector.broadcast %805 : vector<1x64xf32> to vector<16x64xf32>
    %815 = arith.addf %813, %814 : vector<16x64xf32>
    %816 = vector.extract_strided_slice %815 {offsets = [0, 0], sizes = [16, 32], strides = [1, 1]} : vector<16x64xf32> to vector<16x32xf32>
    %817 = vector.extract_strided_slice %815 {offsets = [0, 32], sizes = [16, 32], strides = [1, 1]} : vector<16x64xf32> to vector<16x32xf32>
    %cst_423 = arith.constant dense<0.000000e+00> : vector<8x16xf32>
    %818 = tpu.matmul %812, %816, %cst_423 {dimension_numbers = #tpu.dot_dimension_numbers<[1], [1], [0], [0], [0, 0, 1, 0], [], []>} : vector<8x32xf32>, vector<16x32xf32>, vector<8x16xf32> -> vector<8x16xf32>
    %cst_424 = arith.constant 0.176776692 : f32
    %819 = vector.broadcast %cst_424 : f32 to vector<8x16xf32>
    %820 = arith.mulf %818, %819 : vector<8x16xf32>
    %cst_425 = arith.constant 0.000000e+00 : f32
    %821 = vector.broadcast %cst_425 : f32 to vector<1x16xf32>
    %822 = arith.cmpf ogt, %3, %821 : vector<1x16xf32>
    %cst_426 = arith.constant -1.000000e+09 : f32
    %823 = vector.shape_cast %822 : vector<1x16xi1> to vector<1x16xi1>
    %824 = vector.broadcast %823 : vector<1x16xi1> to vector<8x16xi1>
    %825 = vector.broadcast %cst_426 : f32 to vector<8x16xf32>
    %826 = arith.select %824, %820, %825 : vector<8x16xi1>, vector<8x16xf32>
    %cst_427 = arith.constant dense<0xFF800000> : vector<8xf32>
    %827 = vector.multi_reduction <maximumf>, %826, %cst_427 [1] : vector<8x16xf32> to vector<8xf32>
    %828 = vector.shape_cast %827 : vector<8xf32> to vector<8x1xf32>
    %829 = vector.broadcast %828 : vector<8x1xf32> to vector<8x16xf32>
    %830 = arith.subf %826, %829 : vector<8x16xf32>
    %831 = math.exp %830 : vector<8x16xf32>
    %cst_428 = arith.constant dense<0.000000e+00> : vector<8xf32>
    %832 = vector.multi_reduction <add>, %831, %cst_428 [1] : vector<8x16xf32> to vector<8xf32>
    %833 = vector.shape_cast %832 : vector<8xf32> to vector<8x1xf32>
    %834 = tpu.reciprocal %833 {approx = true} : vector<8x1xf32> -> vector<8x1xf32>
    %835 = vector.broadcast %834 : vector<8x1xf32> to vector<8x16xf32>
    %836 = arith.mulf %831, %835 : vector<8x16xf32>
    %cst_429 = arith.constant dense<0.000000e+00> : vector<8x32xf32>
    %837 = tpu.matmul %836, %817, %cst_429 {dimension_numbers = #tpu.dot_dimension_numbers<[1], [0], [0], [1], [0, 0, 1, 1], [], []>} : vector<8x16xf32>, vector<16x32xf32>, vector<8x32xf32> -> vector<8x32xf32>
    %cst_430 = arith.constant dense<0.000000e+00> : vector<8x32xf32>
    %838 = tpu.matmul %837, %807, %cst_430 {dimension_numbers = #tpu.dot_dimension_numbers<[1], [0], [0], [1], [0, 0, 1, 1], [], []>} : vector<8x32xf32>, vector<32x32xf32>, vector<8x32xf32> -> vector<8x32xf32>
    %839 = vector.broadcast %809 : vector<1x32xf32> to vector<8x32xf32>
    %840 = arith.addf %838, %839 : vector<8x32xf32>
    %841 = arith.addf %797, %840 : vector<8x32xf32>
    %c1_431 = arith.constant 1 : index
    %c0_432 = arith.constant 0 : index
    %c0_433 = arith.constant 0 : index
    %842 = vector.load %arg33[%c1_431, %c0_432, %c0_433] : memref<5x2x32xf32, #tpu.memory_space<vmem>>, vector<1x2x32xf32>
    %843 = vector.shape_cast %842 : vector<1x2x32xf32> to vector<2x32xf32>
    %844 = vector.extract_strided_slice %843 {offsets = [0, 0], sizes = [1, 32], strides = [1, 1]} : vector<2x32xf32> to vector<1x32xf32>
    %845 = vector.extract_strided_slice %843 {offsets = [1, 0], sizes = [1, 32], strides = [1, 1]} : vector<2x32xf32> to vector<1x32xf32>
    %cst_434 = arith.constant dense<0.000000e+00> : vector<8xf32>
    %846 = vector.multi_reduction <add>, %841, %cst_434 [1] : vector<8x32xf32> to vector<8xf32>
    %847 = vector.shape_cast %846 : vector<8xf32> to vector<8x1xf32>
    %cst_435 = arith.constant 3.200000e+01 : f32
    %848 = vector.broadcast %cst_435 : f32 to vector<8x1xf32>
    %849 = arith.divf %847, %848 : vector<8x1xf32>
    %850 = vector.broadcast %849 : vector<8x1xf32> to vector<8x32xf32>
    %851 = arith.subf %841, %850 : vector<8x32xf32>
    %852 = arith.mulf %851, %851 : vector<8x32xf32>
    %cst_436 = arith.constant dense<0.000000e+00> : vector<8xf32>
    %853 = vector.multi_reduction <add>, %852, %cst_436 [1] : vector<8x32xf32> to vector<8xf32>
    %854 = vector.shape_cast %853 : vector<8xf32> to vector<8x1xf32>
    %cst_437 = arith.constant 3.200000e+01 : f32
    %855 = vector.broadcast %cst_437 : f32 to vector<8x1xf32>
    %856 = arith.divf %854, %855 : vector<8x1xf32>
    %857 = vector.broadcast %849 : vector<8x1xf32> to vector<8x32xf32>
    %858 = arith.subf %841, %857 : vector<8x32xf32>
    %cst_438 = arith.constant 9.99999997E-7 : f32
    %859 = vector.broadcast %cst_438 : f32 to vector<8x1xf32>
    %860 = arith.addf %856, %859 : vector<8x1xf32>
    %861 = math.rsqrt %860 : vector<8x1xf32>
    %862 = vector.broadcast %861 : vector<8x1xf32> to vector<8x32xf32>
    %863 = arith.mulf %858, %862 : vector<8x32xf32>
    %864 = vector.broadcast %844 : vector<1x32xf32> to vector<8x32xf32>
    %865 = arith.mulf %863, %864 : vector<8x32xf32>
    %866 = vector.broadcast %845 : vector<1x32xf32> to vector<8x32xf32>
    %867 = arith.addf %865, %866 : vector<8x32xf32>
    %c2_439 = arith.constant 2 : index
    %c0_440 = arith.constant 0 : index
    %c0_441 = arith.constant 0 : index
    %868 = vector.load %arg23[%c2_439, %c0_440, %c0_441] : memref<4x32x32xf32, #tpu.memory_space<vmem>>, vector<1x32x32xf32>
    %869 = vector.shape_cast %868 : vector<1x32x32xf32> to vector<32x32xf32>
    %c2_442 = arith.constant 2 : index
    %c0_443 = arith.constant 0 : index
    %c0_444 = arith.constant 0 : index
    %870 = vector.load %arg24[%c2_442, %c0_443, %c0_444] : memref<4x1x32xf32, #tpu.memory_space<vmem>>, vector<1x1x32xf32>
    %871 = vector.shape_cast %870 : vector<1x1x32xf32> to vector<1x32xf32>
    %c2_445 = arith.constant 2 : index
    %c0_446 = arith.constant 0 : index
    %c0_447 = arith.constant 0 : index
    %872 = vector.load %arg25[%c2_445, %c0_446, %c0_447] : memref<4x32x64xf32, #tpu.memory_space<vmem>>, vector<1x32x64xf32>
    %873 = vector.shape_cast %872 : vector<1x32x64xf32> to vector<32x64xf32>
    %c2_448 = arith.constant 2 : index
    %c0_449 = arith.constant 0 : index
    %c0_450 = arith.constant 0 : index
    %874 = vector.load %arg26[%c2_448, %c0_449, %c0_450] : memref<4x1x64xf32, #tpu.memory_space<vmem>>, vector<1x1x64xf32>
    %875 = vector.shape_cast %874 : vector<1x1x64xf32> to vector<1x64xf32>
    %c2_451 = arith.constant 2 : index
    %c0_452 = arith.constant 0 : index
    %c0_453 = arith.constant 0 : index
    %876 = vector.load %arg27[%c2_451, %c0_452, %c0_453] : memref<4x32x32xf32, #tpu.memory_space<vmem>>, vector<1x32x32xf32>
    %877 = vector.shape_cast %876 : vector<1x32x32xf32> to vector<32x32xf32>
    %c2_454 = arith.constant 2 : index
    %c0_455 = arith.constant 0 : index
    %c0_456 = arith.constant 0 : index
    %878 = vector.load %arg28[%c2_454, %c0_455, %c0_456] : memref<4x1x32xf32, #tpu.memory_space<vmem>>, vector<1x1x32xf32>
    %879 = vector.shape_cast %878 : vector<1x1x32xf32> to vector<1x32xf32>
    %cst_457 = arith.constant dense<0.000000e+00> : vector<8x32xf32>
    %880 = tpu.matmul %867, %869, %cst_457 {dimension_numbers = #tpu.dot_dimension_numbers<[1], [0], [0], [1], [0, 0, 1, 1], [], []>} : vector<8x32xf32>, vector<32x32xf32>, vector<8x32xf32> -> vector<8x32xf32>
    %881 = vector.broadcast %871 : vector<1x32xf32> to vector<8x32xf32>
    %882 = arith.addf %880, %881 : vector<8x32xf32>
    %cst_458 = arith.constant dense<0.000000e+00> : vector<8x64xf32>
    %883 = tpu.matmul %476, %873, %cst_458 {dimension_numbers = #tpu.dot_dimension_numbers<[1], [0], [0], [1], [0, 0, 1, 1], [], []>} : vector<8x32xf32>, vector<32x64xf32>, vector<8x64xf32> -> vector<8x64xf32>
    %884 = vector.broadcast %875 : vector<1x64xf32> to vector<8x64xf32>
    %885 = arith.addf %883, %884 : vector<8x64xf32>
    %886 = vector.extract_strided_slice %885 {offsets = [0, 0], sizes = [8, 32], strides = [1, 1]} : vector<8x64xf32> to vector<8x32xf32>
    %887 = vector.extract_strided_slice %885 {offsets = [0, 32], sizes = [8, 32], strides = [1, 1]} : vector<8x64xf32> to vector<8x32xf32>
    %cst_459 = arith.constant dense<0.000000e+00> : vector<8x8xf32>
    %888 = tpu.matmul %882, %886, %cst_459 {dimension_numbers = #tpu.dot_dimension_numbers<[1], [1], [0], [0], [0, 0, 1, 0], [], []>} : vector<8x32xf32>, vector<8x32xf32>, vector<8x8xf32> -> vector<8x8xf32>
    %cst_460 = arith.constant 0.176776692 : f32
    %889 = vector.broadcast %cst_460 : f32 to vector<8x8xf32>
    %890 = arith.mulf %888, %889 : vector<8x8xf32>
    %cst_461 = arith.constant 0.000000e+00 : f32
    %891 = vector.broadcast %cst_461 : f32 to vector<1x8xf32>
    %892 = arith.cmpf ogt, %5, %891 : vector<1x8xf32>
    %cst_462 = arith.constant -1.000000e+09 : f32
    %893 = vector.shape_cast %892 : vector<1x8xi1> to vector<1x8xi1>
    %894 = vector.broadcast %893 : vector<1x8xi1> to vector<8x8xi1>
    %895 = vector.broadcast %cst_462 : f32 to vector<8x8xf32>
    %896 = arith.select %894, %890, %895 : vector<8x8xi1>, vector<8x8xf32>
    %cst_463 = arith.constant dense<0xFF800000> : vector<8xf32>
    %897 = vector.multi_reduction <maximumf>, %896, %cst_463 [1] : vector<8x8xf32> to vector<8xf32>
    %898 = vector.shape_cast %897 : vector<8xf32> to vector<8x1xf32>
    %899 = vector.broadcast %898 : vector<8x1xf32> to vector<8x8xf32>
    %900 = arith.subf %896, %899 : vector<8x8xf32>
    %901 = math.exp %900 : vector<8x8xf32>
    %cst_464 = arith.constant dense<0.000000e+00> : vector<8xf32>
    %902 = vector.multi_reduction <add>, %901, %cst_464 [1] : vector<8x8xf32> to vector<8xf32>
    %903 = vector.shape_cast %902 : vector<8xf32> to vector<8x1xf32>
    %904 = tpu.reciprocal %903 {approx = true} : vector<8x1xf32> -> vector<8x1xf32>
    %905 = vector.broadcast %904 : vector<8x1xf32> to vector<8x8xf32>
    %906 = arith.mulf %901, %905 : vector<8x8xf32>
    %cst_465 = arith.constant dense<0.000000e+00> : vector<8x32xf32>
    %907 = tpu.matmul %906, %887, %cst_465 {dimension_numbers = #tpu.dot_dimension_numbers<[1], [0], [0], [1], [0, 0, 1, 1], [], []>} : vector<8x8xf32>, vector<8x32xf32>, vector<8x32xf32> -> vector<8x32xf32>
    %cst_466 = arith.constant dense<0.000000e+00> : vector<8x32xf32>
    %908 = tpu.matmul %907, %877, %cst_466 {dimension_numbers = #tpu.dot_dimension_numbers<[1], [0], [0], [1], [0, 0, 1, 1], [], []>} : vector<8x32xf32>, vector<32x32xf32>, vector<8x32xf32> -> vector<8x32xf32>
    %909 = vector.broadcast %879 : vector<1x32xf32> to vector<8x32xf32>
    %910 = arith.addf %908, %909 : vector<8x32xf32>
    %911 = arith.addf %867, %910 : vector<8x32xf32>
    %c2_467 = arith.constant 2 : index
    %c0_468 = arith.constant 0 : index
    %c0_469 = arith.constant 0 : index
    %912 = vector.load %arg33[%c2_467, %c0_468, %c0_469] : memref<5x2x32xf32, #tpu.memory_space<vmem>>, vector<1x2x32xf32>
    %913 = vector.shape_cast %912 : vector<1x2x32xf32> to vector<2x32xf32>
    %914 = vector.extract_strided_slice %913 {offsets = [0, 0], sizes = [1, 32], strides = [1, 1]} : vector<2x32xf32> to vector<1x32xf32>
    %915 = vector.extract_strided_slice %913 {offsets = [1, 0], sizes = [1, 32], strides = [1, 1]} : vector<2x32xf32> to vector<1x32xf32>
    %cst_470 = arith.constant dense<0.000000e+00> : vector<8xf32>
    %916 = vector.multi_reduction <add>, %911, %cst_470 [1] : vector<8x32xf32> to vector<8xf32>
    %917 = vector.shape_cast %916 : vector<8xf32> to vector<8x1xf32>
    %cst_471 = arith.constant 3.200000e+01 : f32
    %918 = vector.broadcast %cst_471 : f32 to vector<8x1xf32>
    %919 = arith.divf %917, %918 : vector<8x1xf32>
    %920 = vector.broadcast %919 : vector<8x1xf32> to vector<8x32xf32>
    %921 = arith.subf %911, %920 : vector<8x32xf32>
    %922 = arith.mulf %921, %921 : vector<8x32xf32>
    %cst_472 = arith.constant dense<0.000000e+00> : vector<8xf32>
    %923 = vector.multi_reduction <add>, %922, %cst_472 [1] : vector<8x32xf32> to vector<8xf32>
    %924 = vector.shape_cast %923 : vector<8xf32> to vector<8x1xf32>
    %cst_473 = arith.constant 3.200000e+01 : f32
    %925 = vector.broadcast %cst_473 : f32 to vector<8x1xf32>
    %926 = arith.divf %924, %925 : vector<8x1xf32>
    %927 = vector.broadcast %919 : vector<8x1xf32> to vector<8x32xf32>
    %928 = arith.subf %911, %927 : vector<8x32xf32>
    %cst_474 = arith.constant 9.99999997E-7 : f32
    %929 = vector.broadcast %cst_474 : f32 to vector<8x1xf32>
    %930 = arith.addf %926, %929 : vector<8x1xf32>
    %931 = math.rsqrt %930 : vector<8x1xf32>
    %932 = vector.broadcast %931 : vector<8x1xf32> to vector<8x32xf32>
    %933 = arith.mulf %928, %932 : vector<8x32xf32>
    %934 = vector.broadcast %914 : vector<1x32xf32> to vector<8x32xf32>
    %935 = arith.mulf %933, %934 : vector<8x32xf32>
    %936 = vector.broadcast %915 : vector<1x32xf32> to vector<8x32xf32>
    %937 = arith.addf %935, %936 : vector<8x32xf32>
    %c3_475 = arith.constant 3 : index
    %c0_476 = arith.constant 0 : index
    %c0_477 = arith.constant 0 : index
    %938 = vector.load %arg23[%c3_475, %c0_476, %c0_477] : memref<4x32x32xf32, #tpu.memory_space<vmem>>, vector<1x32x32xf32>
    %939 = vector.shape_cast %938 : vector<1x32x32xf32> to vector<32x32xf32>
    %c3_478 = arith.constant 3 : index
    %c0_479 = arith.constant 0 : index
    %c0_480 = arith.constant 0 : index
    %940 = vector.load %arg24[%c3_478, %c0_479, %c0_480] : memref<4x1x32xf32, #tpu.memory_space<vmem>>, vector<1x1x32xf32>
    %941 = vector.shape_cast %940 : vector<1x1x32xf32> to vector<1x32xf32>
    %c3_481 = arith.constant 3 : index
    %c0_482 = arith.constant 0 : index
    %c0_483 = arith.constant 0 : index
    %942 = vector.load %arg25[%c3_481, %c0_482, %c0_483] : memref<4x32x64xf32, #tpu.memory_space<vmem>>, vector<1x32x64xf32>
    %943 = vector.shape_cast %942 : vector<1x32x64xf32> to vector<32x64xf32>
    %c3_484 = arith.constant 3 : index
    %c0_485 = arith.constant 0 : index
    %c0_486 = arith.constant 0 : index
    %944 = vector.load %arg26[%c3_484, %c0_485, %c0_486] : memref<4x1x64xf32, #tpu.memory_space<vmem>>, vector<1x1x64xf32>
    %945 = vector.shape_cast %944 : vector<1x1x64xf32> to vector<1x64xf32>
    %c3_487 = arith.constant 3 : index
    %c0_488 = arith.constant 0 : index
    %c0_489 = arith.constant 0 : index
    %946 = vector.load %arg27[%c3_487, %c0_488, %c0_489] : memref<4x32x32xf32, #tpu.memory_space<vmem>>, vector<1x32x32xf32>
    %947 = vector.shape_cast %946 : vector<1x32x32xf32> to vector<32x32xf32>
    %c3_490 = arith.constant 3 : index
    %c0_491 = arith.constant 0 : index
    %c0_492 = arith.constant 0 : index
    %948 = vector.load %arg28[%c3_490, %c0_491, %c0_492] : memref<4x1x32xf32, #tpu.memory_space<vmem>>, vector<1x1x32xf32>
    %949 = vector.shape_cast %948 : vector<1x1x32xf32> to vector<1x32xf32>
    %cst_493 = arith.constant dense<0.000000e+00> : vector<8x32xf32>
    %950 = tpu.matmul %937, %939, %cst_493 {dimension_numbers = #tpu.dot_dimension_numbers<[1], [0], [0], [1], [0, 0, 1, 1], [], []>} : vector<8x32xf32>, vector<32x32xf32>, vector<8x32xf32> -> vector<8x32xf32>
    %951 = vector.broadcast %941 : vector<1x32xf32> to vector<8x32xf32>
    %952 = arith.addf %950, %951 : vector<8x32xf32>
    %cst_494 = arith.constant dense<0.000000e+00> : vector<8x64xf32>
    %953 = tpu.matmul %710, %943, %cst_494 {dimension_numbers = #tpu.dot_dimension_numbers<[1], [0], [0], [1], [0, 0, 1, 1], [], []>} : vector<8x32xf32>, vector<32x64xf32>, vector<8x64xf32> -> vector<8x64xf32>
    %954 = vector.broadcast %945 : vector<1x64xf32> to vector<8x64xf32>
    %955 = arith.addf %953, %954 : vector<8x64xf32>
    %956 = vector.extract_strided_slice %955 {offsets = [0, 0], sizes = [8, 32], strides = [1, 1]} : vector<8x64xf32> to vector<8x32xf32>
    %957 = vector.extract_strided_slice %955 {offsets = [0, 32], sizes = [8, 32], strides = [1, 1]} : vector<8x64xf32> to vector<8x32xf32>
    %cst_495 = arith.constant dense<0.000000e+00> : vector<8x8xf32>
    %958 = tpu.matmul %952, %956, %cst_495 {dimension_numbers = #tpu.dot_dimension_numbers<[1], [1], [0], [0], [0, 0, 1, 0], [], []>} : vector<8x32xf32>, vector<8x32xf32>, vector<8x8xf32> -> vector<8x8xf32>
    %cst_496 = arith.constant 0.176776692 : f32
    %959 = vector.broadcast %cst_496 : f32 to vector<8x8xf32>
    %960 = arith.mulf %958, %959 : vector<8x8xf32>
    %cst_497 = arith.constant 0.000000e+00 : f32
    %961 = vector.broadcast %cst_497 : f32 to vector<1x8xf32>
    %962 = arith.cmpf ogt, %7, %961 : vector<1x8xf32>
    %cst_498 = arith.constant -1.000000e+09 : f32
    %963 = vector.shape_cast %962 : vector<1x8xi1> to vector<1x8xi1>
    %964 = vector.broadcast %963 : vector<1x8xi1> to vector<8x8xi1>
    %965 = vector.broadcast %cst_498 : f32 to vector<8x8xf32>
    %966 = arith.select %964, %960, %965 : vector<8x8xi1>, vector<8x8xf32>
    %cst_499 = arith.constant dense<0xFF800000> : vector<8xf32>
    %967 = vector.multi_reduction <maximumf>, %966, %cst_499 [1] : vector<8x8xf32> to vector<8xf32>
    %968 = vector.shape_cast %967 : vector<8xf32> to vector<8x1xf32>
    %969 = vector.broadcast %968 : vector<8x1xf32> to vector<8x8xf32>
    %970 = arith.subf %966, %969 : vector<8x8xf32>
    %971 = math.exp %970 : vector<8x8xf32>
    %cst_500 = arith.constant dense<0.000000e+00> : vector<8xf32>
    %972 = vector.multi_reduction <add>, %971, %cst_500 [1] : vector<8x8xf32> to vector<8xf32>
    %973 = vector.shape_cast %972 : vector<8xf32> to vector<8x1xf32>
    %974 = tpu.reciprocal %973 {approx = true} : vector<8x1xf32> -> vector<8x1xf32>
    %975 = vector.broadcast %974 : vector<8x1xf32> to vector<8x8xf32>
    %976 = arith.mulf %971, %975 : vector<8x8xf32>
    %cst_501 = arith.constant dense<0.000000e+00> : vector<8x32xf32>
    %977 = tpu.matmul %976, %957, %cst_501 {dimension_numbers = #tpu.dot_dimension_numbers<[1], [0], [0], [1], [0, 0, 1, 1], [], []>} : vector<8x8xf32>, vector<8x32xf32>, vector<8x32xf32> -> vector<8x32xf32>
    %cst_502 = arith.constant dense<0.000000e+00> : vector<8x32xf32>
    %978 = tpu.matmul %977, %947, %cst_502 {dimension_numbers = #tpu.dot_dimension_numbers<[1], [0], [0], [1], [0, 0, 1, 1], [], []>} : vector<8x32xf32>, vector<32x32xf32>, vector<8x32xf32> -> vector<8x32xf32>
    %979 = vector.broadcast %949 : vector<1x32xf32> to vector<8x32xf32>
    %980 = arith.addf %978, %979 : vector<8x32xf32>
    %981 = arith.addf %937, %980 : vector<8x32xf32>
    %c3_503 = arith.constant 3 : index
    %c0_504 = arith.constant 0 : index
    %c0_505 = arith.constant 0 : index
    %982 = vector.load %arg33[%c3_503, %c0_504, %c0_505] : memref<5x2x32xf32, #tpu.memory_space<vmem>>, vector<1x2x32xf32>
    %983 = vector.shape_cast %982 : vector<1x2x32xf32> to vector<2x32xf32>
    %984 = vector.extract_strided_slice %983 {offsets = [0, 0], sizes = [1, 32], strides = [1, 1]} : vector<2x32xf32> to vector<1x32xf32>
    %985 = vector.extract_strided_slice %983 {offsets = [1, 0], sizes = [1, 32], strides = [1, 1]} : vector<2x32xf32> to vector<1x32xf32>
    %cst_506 = arith.constant dense<0.000000e+00> : vector<8xf32>
    %986 = vector.multi_reduction <add>, %981, %cst_506 [1] : vector<8x32xf32> to vector<8xf32>
    %987 = vector.shape_cast %986 : vector<8xf32> to vector<8x1xf32>
    %cst_507 = arith.constant 3.200000e+01 : f32
    %988 = vector.broadcast %cst_507 : f32 to vector<8x1xf32>
    %989 = arith.divf %987, %988 : vector<8x1xf32>
    %990 = vector.broadcast %989 : vector<8x1xf32> to vector<8x32xf32>
    %991 = arith.subf %981, %990 : vector<8x32xf32>
    %992 = arith.mulf %991, %991 : vector<8x32xf32>
    %cst_508 = arith.constant dense<0.000000e+00> : vector<8xf32>
    %993 = vector.multi_reduction <add>, %992, %cst_508 [1] : vector<8x32xf32> to vector<8xf32>
    %994 = vector.shape_cast %993 : vector<8xf32> to vector<8x1xf32>
    %cst_509 = arith.constant 3.200000e+01 : f32
    %995 = vector.broadcast %cst_509 : f32 to vector<8x1xf32>
    %996 = arith.divf %994, %995 : vector<8x1xf32>
    %997 = vector.broadcast %989 : vector<8x1xf32> to vector<8x32xf32>
    %998 = arith.subf %981, %997 : vector<8x32xf32>
    %cst_510 = arith.constant 9.99999997E-7 : f32
    %999 = vector.broadcast %cst_510 : f32 to vector<8x1xf32>
    %1000 = arith.addf %996, %999 : vector<8x1xf32>
    %1001 = math.rsqrt %1000 : vector<8x1xf32>
    %1002 = vector.broadcast %1001 : vector<8x1xf32> to vector<8x32xf32>
    %1003 = arith.mulf %998, %1002 : vector<8x32xf32>
    %1004 = vector.broadcast %984 : vector<1x32xf32> to vector<8x32xf32>
    %1005 = arith.mulf %1003, %1004 : vector<8x32xf32>
    %1006 = vector.broadcast %985 : vector<1x32xf32> to vector<8x32xf32>
    %1007 = arith.addf %1005, %1006 : vector<8x32xf32>
    %c0_511 = arith.constant 0 : index
    %c0_512 = arith.constant 0 : index
    %1008 = vector.load %arg29[%c0_511, %c0_512] : memref<32x64xf32, #tpu.memory_space<vmem>>, vector<32x64xf32>
    %cst_513 = arith.constant dense<0.000000e+00> : vector<8x64xf32>
    %1009 = tpu.matmul %1007, %1008, %cst_513 {dimension_numbers = #tpu.dot_dimension_numbers<[1], [0], [0], [1], [0, 0, 1, 1], [], []>} : vector<8x32xf32>, vector<32x64xf32>, vector<8x64xf32> -> vector<8x64xf32>
    %c0_514 = arith.constant 0 : index
    %c0_515 = arith.constant 0 : index
    %1010 = vector.load %arg30[%c0_514, %c0_515] : memref<1x64xf32, #tpu.memory_space<vmem>>, vector<1x64xf32>
    %1011 = vector.broadcast %1010 : vector<1x64xf32> to vector<8x64xf32>
    %1012 = arith.addf %1009, %1011 : vector<8x64xf32>
    %cst_516 = arith.constant 0.000000e+00 : f32
    %1013 = vector.broadcast %cst_516 : f32 to vector<8x64xf32>
    %1014 = arith.maximumf %1012, %1013 : vector<8x64xf32>
    %c0_517 = arith.constant 0 : index
    %c0_518 = arith.constant 0 : index
    %1015 = vector.load %arg31[%c0_517, %c0_518] : memref<64x32xf32, #tpu.memory_space<vmem>>, vector<64x32xf32>
    %cst_519 = arith.constant dense<0.000000e+00> : vector<8x32xf32>
    %1016 = tpu.matmul %1014, %1015, %cst_519 {dimension_numbers = #tpu.dot_dimension_numbers<[1], [0], [0], [1], [0, 0, 1, 1], [], []>} : vector<8x64xf32>, vector<64x32xf32>, vector<8x32xf32> -> vector<8x32xf32>
    %c0_520 = arith.constant 0 : index
    %c0_521 = arith.constant 0 : index
    %1017 = vector.load %arg32[%c0_520, %c0_521] : memref<1x32xf32, #tpu.memory_space<vmem>>, vector<1x32xf32>
    %1018 = vector.broadcast %1017 : vector<1x32xf32> to vector<8x32xf32>
    %1019 = arith.addf %1016, %1018 : vector<8x32xf32>
    %1020 = arith.addf %1007, %1019 : vector<8x32xf32>
    %c4 = arith.constant 4 : index
    %c0_522 = arith.constant 0 : index
    %c0_523 = arith.constant 0 : index
    %1021 = vector.load %arg33[%c4, %c0_522, %c0_523] : memref<5x2x32xf32, #tpu.memory_space<vmem>>, vector<1x2x32xf32>
    %1022 = vector.shape_cast %1021 : vector<1x2x32xf32> to vector<2x32xf32>
    %1023 = vector.extract_strided_slice %1022 {offsets = [0, 0], sizes = [1, 32], strides = [1, 1]} : vector<2x32xf32> to vector<1x32xf32>
    %1024 = vector.extract_strided_slice %1022 {offsets = [1, 0], sizes = [1, 32], strides = [1, 1]} : vector<2x32xf32> to vector<1x32xf32>
    %cst_524 = arith.constant dense<0.000000e+00> : vector<8xf32>
    %1025 = vector.multi_reduction <add>, %1020, %cst_524 [1] : vector<8x32xf32> to vector<8xf32>
    %1026 = vector.shape_cast %1025 : vector<8xf32> to vector<8x1xf32>
    %cst_525 = arith.constant 3.200000e+01 : f32
    %1027 = vector.broadcast %cst_525 : f32 to vector<8x1xf32>
    %1028 = arith.divf %1026, %1027 : vector<8x1xf32>
    %1029 = vector.broadcast %1028 : vector<8x1xf32> to vector<8x32xf32>
    %1030 = arith.subf %1020, %1029 : vector<8x32xf32>
    %1031 = arith.mulf %1030, %1030 : vector<8x32xf32>
    %cst_526 = arith.constant dense<0.000000e+00> : vector<8xf32>
    %1032 = vector.multi_reduction <add>, %1031, %cst_526 [1] : vector<8x32xf32> to vector<8xf32>
    %1033 = vector.shape_cast %1032 : vector<8xf32> to vector<8x1xf32>
    %cst_527 = arith.constant 3.200000e+01 : f32
    %1034 = vector.broadcast %cst_527 : f32 to vector<8x1xf32>
    %1035 = arith.divf %1033, %1034 : vector<8x1xf32>
    %1036 = vector.broadcast %1028 : vector<8x1xf32> to vector<8x32xf32>
    %1037 = arith.subf %1020, %1036 : vector<8x32xf32>
    %cst_528 = arith.constant 9.99999997E-7 : f32
    %1038 = vector.broadcast %cst_528 : f32 to vector<8x1xf32>
    %1039 = arith.addf %1035, %1038 : vector<8x1xf32>
    %1040 = math.rsqrt %1039 : vector<8x1xf32>
    %1041 = vector.broadcast %1040 : vector<8x1xf32> to vector<8x32xf32>
    %1042 = arith.mulf %1037, %1041 : vector<8x32xf32>
    %1043 = vector.broadcast %1023 : vector<1x32xf32> to vector<8x32xf32>
    %1044 = arith.mulf %1042, %1043 : vector<8x32xf32>
    %1045 = vector.broadcast %1024 : vector<1x32xf32> to vector<8x32xf32>
    %1046 = arith.addf %1044, %1045 : vector<8x32xf32>
    %c0_529 = arith.constant 0 : index
    %c0_530 = arith.constant 0 : index
    %c0_531 = arith.constant 0 : index
    %1047 = vector.load %arg34[%c0_529, %c0_530, %c0_531] : memref<3x32x32xf32, #tpu.memory_space<vmem>>, vector<1x32x32xf32>
    %1048 = vector.shape_cast %1047 : vector<1x32x32xf32> to vector<32x32xf32>
    %cst_532 = arith.constant dense<0.000000e+00> : vector<8x32xf32>
    %1049 = tpu.matmul %1046, %1048, %cst_532 {dimension_numbers = #tpu.dot_dimension_numbers<[1], [0], [0], [1], [0, 0, 1, 1], [], []>} : vector<8x32xf32>, vector<32x32xf32>, vector<8x32xf32> -> vector<8x32xf32>
    %c0_533 = arith.constant 0 : index
    %c0_534 = arith.constant 0 : index
    %c0_535 = arith.constant 0 : index
    %1050 = vector.load %arg35[%c0_533, %c0_534, %c0_535] : memref<3x1x32xf32, #tpu.memory_space<vmem>>, vector<1x1x32xf32>
    %1051 = vector.shape_cast %1050 : vector<1x1x32xf32> to vector<1x32xf32>
    %1052 = vector.broadcast %1051 : vector<1x32xf32> to vector<8x32xf32>
    %1053 = arith.addf %1049, %1052 : vector<8x32xf32>
    %cst_536 = arith.constant dense<0.000000e+00> : vector<8x16xf32>
    %1054 = tpu.matmul %1053, %242, %cst_536 {dimension_numbers = #tpu.dot_dimension_numbers<[1], [1], [0], [0], [0, 0, 1, 0], [], []>} : vector<8x32xf32>, vector<16x32xf32>, vector<8x16xf32> -> vector<8x16xf32>
    %cst_537 = arith.constant 0.176776692 : f32
    %1055 = vector.broadcast %cst_537 : f32 to vector<8x16xf32>
    %1056 = arith.mulf %1054, %1055 : vector<8x16xf32>
    %cst_538 = arith.constant 0.000000e+00 : f32
    %1057 = vector.broadcast %cst_538 : f32 to vector<1x16xf32>
    %1058 = arith.cmpf ogt, %3, %1057 : vector<1x16xf32>
    %cst_539 = arith.constant -1.000000e+09 : f32
    %1059 = vector.shape_cast %1058 : vector<1x16xi1> to vector<1x16xi1>
    %1060 = vector.broadcast %1059 : vector<1x16xi1> to vector<8x16xi1>
    %1061 = vector.broadcast %cst_539 : f32 to vector<8x16xf32>
    %1062 = arith.select %1060, %1056, %1061 : vector<8x16xi1>, vector<8x16xf32>
    %cst_540 = arith.constant dense<0xFF800000> : vector<8xf32>
    %1063 = vector.multi_reduction <maximumf>, %1062, %cst_540 [1] : vector<8x16xf32> to vector<8xf32>
    %1064 = vector.shape_cast %1063 : vector<8xf32> to vector<8x1xf32>
    %1065 = vector.broadcast %1064 : vector<8x1xf32> to vector<8x16xf32>
    %1066 = arith.subf %1062, %1065 : vector<8x16xf32>
    %1067 = math.exp %1066 : vector<8x16xf32>
    %cst_541 = arith.constant dense<0.000000e+00> : vector<8xf32>
    %1068 = vector.multi_reduction <add>, %1067, %cst_541 [1] : vector<8x16xf32> to vector<8xf32>
    %1069 = vector.shape_cast %1068 : vector<8xf32> to vector<8x1xf32>
    %1070 = tpu.reciprocal %1069 {approx = true} : vector<8x1xf32> -> vector<8x1xf32>
    %1071 = vector.broadcast %1070 : vector<8x1xf32> to vector<8x16xf32>
    %1072 = arith.mulf %1067, %1071 : vector<8x16xf32>
    %cst_542 = arith.constant dense<0.000000e+00> : vector<8x32xf32>
    %1073 = tpu.matmul %1072, %242, %cst_542 {dimension_numbers = #tpu.dot_dimension_numbers<[1], [0], [0], [1], [0, 0, 1, 1], [], []>} : vector<8x16xf32>, vector<16x32xf32>, vector<8x32xf32> -> vector<8x32xf32>
    %c1_543 = arith.constant 1 : index
    %c0_544 = arith.constant 0 : index
    %c0_545 = arith.constant 0 : index
    %1074 = vector.load %arg34[%c1_543, %c0_544, %c0_545] : memref<3x32x32xf32, #tpu.memory_space<vmem>>, vector<1x32x32xf32>
    %1075 = vector.shape_cast %1074 : vector<1x32x32xf32> to vector<32x32xf32>
    %cst_546 = arith.constant dense<0.000000e+00> : vector<8x32xf32>
    %1076 = tpu.matmul %1046, %1075, %cst_546 {dimension_numbers = #tpu.dot_dimension_numbers<[1], [0], [0], [1], [0, 0, 1, 1], [], []>} : vector<8x32xf32>, vector<32x32xf32>, vector<8x32xf32> -> vector<8x32xf32>
    %c1_547 = arith.constant 1 : index
    %c0_548 = arith.constant 0 : index
    %c0_549 = arith.constant 0 : index
    %1077 = vector.load %arg35[%c1_547, %c0_548, %c0_549] : memref<3x1x32xf32, #tpu.memory_space<vmem>>, vector<1x1x32xf32>
    %1078 = vector.shape_cast %1077 : vector<1x1x32xf32> to vector<1x32xf32>
    %1079 = vector.broadcast %1078 : vector<1x32xf32> to vector<8x32xf32>
    %1080 = arith.addf %1076, %1079 : vector<8x32xf32>
    %cst_550 = arith.constant dense<0.000000e+00> : vector<8x8xf32>
    %1081 = tpu.matmul %1080, %476, %cst_550 {dimension_numbers = #tpu.dot_dimension_numbers<[1], [1], [0], [0], [0, 0, 1, 0], [], []>} : vector<8x32xf32>, vector<8x32xf32>, vector<8x8xf32> -> vector<8x8xf32>
    %cst_551 = arith.constant 0.176776692 : f32
    %1082 = vector.broadcast %cst_551 : f32 to vector<8x8xf32>
    %1083 = arith.mulf %1081, %1082 : vector<8x8xf32>
    %cst_552 = arith.constant 0.000000e+00 : f32
    %1084 = vector.broadcast %cst_552 : f32 to vector<1x8xf32>
    %1085 = arith.cmpf ogt, %5, %1084 : vector<1x8xf32>
    %cst_553 = arith.constant -1.000000e+09 : f32
    %1086 = vector.shape_cast %1085 : vector<1x8xi1> to vector<1x8xi1>
    %1087 = vector.broadcast %1086 : vector<1x8xi1> to vector<8x8xi1>
    %1088 = vector.broadcast %cst_553 : f32 to vector<8x8xf32>
    %1089 = arith.select %1087, %1083, %1088 : vector<8x8xi1>, vector<8x8xf32>
    %cst_554 = arith.constant dense<0xFF800000> : vector<8xf32>
    %1090 = vector.multi_reduction <maximumf>, %1089, %cst_554 [1] : vector<8x8xf32> to vector<8xf32>
    %1091 = vector.shape_cast %1090 : vector<8xf32> to vector<8x1xf32>
    %1092 = vector.broadcast %1091 : vector<8x1xf32> to vector<8x8xf32>
    %1093 = arith.subf %1089, %1092 : vector<8x8xf32>
    %1094 = math.exp %1093 : vector<8x8xf32>
    %cst_555 = arith.constant dense<0.000000e+00> : vector<8xf32>
    %1095 = vector.multi_reduction <add>, %1094, %cst_555 [1] : vector<8x8xf32> to vector<8xf32>
    %1096 = vector.shape_cast %1095 : vector<8xf32> to vector<8x1xf32>
    %1097 = tpu.reciprocal %1096 {approx = true} : vector<8x1xf32> -> vector<8x1xf32>
    %1098 = vector.broadcast %1097 : vector<8x1xf32> to vector<8x8xf32>
    %1099 = arith.mulf %1094, %1098 : vector<8x8xf32>
    %cst_556 = arith.constant dense<0.000000e+00> : vector<8x32xf32>
    %1100 = tpu.matmul %1099, %476, %cst_556 {dimension_numbers = #tpu.dot_dimension_numbers<[1], [0], [0], [1], [0, 0, 1, 1], [], []>} : vector<8x8xf32>, vector<8x32xf32>, vector<8x32xf32> -> vector<8x32xf32>
    %c2_557 = arith.constant 2 : index
    %c0_558 = arith.constant 0 : index
    %c0_559 = arith.constant 0 : index
    %1101 = vector.load %arg34[%c2_557, %c0_558, %c0_559] : memref<3x32x32xf32, #tpu.memory_space<vmem>>, vector<1x32x32xf32>
    %1102 = vector.shape_cast %1101 : vector<1x32x32xf32> to vector<32x32xf32>
    %cst_560 = arith.constant dense<0.000000e+00> : vector<8x32xf32>
    %1103 = tpu.matmul %1046, %1102, %cst_560 {dimension_numbers = #tpu.dot_dimension_numbers<[1], [0], [0], [1], [0, 0, 1, 1], [], []>} : vector<8x32xf32>, vector<32x32xf32>, vector<8x32xf32> -> vector<8x32xf32>
    %c2_561 = arith.constant 2 : index
    %c0_562 = arith.constant 0 : index
    %c0_563 = arith.constant 0 : index
    %1104 = vector.load %arg35[%c2_561, %c0_562, %c0_563] : memref<3x1x32xf32, #tpu.memory_space<vmem>>, vector<1x1x32xf32>
    %1105 = vector.shape_cast %1104 : vector<1x1x32xf32> to vector<1x32xf32>
    %1106 = vector.broadcast %1105 : vector<1x32xf32> to vector<8x32xf32>
    %1107 = arith.addf %1103, %1106 : vector<8x32xf32>
    %cst_564 = arith.constant dense<0.000000e+00> : vector<8x8xf32>
    %1108 = tpu.matmul %1107, %710, %cst_564 {dimension_numbers = #tpu.dot_dimension_numbers<[1], [1], [0], [0], [0, 0, 1, 0], [], []>} : vector<8x32xf32>, vector<8x32xf32>, vector<8x8xf32> -> vector<8x8xf32>
    %cst_565 = arith.constant 0.176776692 : f32
    %1109 = vector.broadcast %cst_565 : f32 to vector<8x8xf32>
    %1110 = arith.mulf %1108, %1109 : vector<8x8xf32>
    %cst_566 = arith.constant 0.000000e+00 : f32
    %1111 = vector.broadcast %cst_566 : f32 to vector<1x8xf32>
    %1112 = arith.cmpf ogt, %7, %1111 : vector<1x8xf32>
    %cst_567 = arith.constant -1.000000e+09 : f32
    %1113 = vector.shape_cast %1112 : vector<1x8xi1> to vector<1x8xi1>
    %1114 = vector.broadcast %1113 : vector<1x8xi1> to vector<8x8xi1>
    %1115 = vector.broadcast %cst_567 : f32 to vector<8x8xf32>
    %1116 = arith.select %1114, %1110, %1115 : vector<8x8xi1>, vector<8x8xf32>
    %cst_568 = arith.constant dense<0xFF800000> : vector<8xf32>
    %1117 = vector.multi_reduction <maximumf>, %1116, %cst_568 [1] : vector<8x8xf32> to vector<8xf32>
    %1118 = vector.shape_cast %1117 : vector<8xf32> to vector<8x1xf32>
    %1119 = vector.broadcast %1118 : vector<8x1xf32> to vector<8x8xf32>
    %1120 = arith.subf %1116, %1119 : vector<8x8xf32>
    %1121 = math.exp %1120 : vector<8x8xf32>
    %cst_569 = arith.constant dense<0.000000e+00> : vector<8xf32>
    %1122 = vector.multi_reduction <add>, %1121, %cst_569 [1] : vector<8x8xf32> to vector<8xf32>
    %1123 = vector.shape_cast %1122 : vector<8xf32> to vector<8x1xf32>
    %1124 = tpu.reciprocal %1123 {approx = true} : vector<8x1xf32> -> vector<8x1xf32>
    %1125 = vector.broadcast %1124 : vector<8x1xf32> to vector<8x8xf32>
    %1126 = arith.mulf %1121, %1125 : vector<8x8xf32>
    %cst_570 = arith.constant dense<0.000000e+00> : vector<8x32xf32>
    %1127 = tpu.matmul %1126, %710, %cst_570 {dimension_numbers = #tpu.dot_dimension_numbers<[1], [0], [0], [1], [0, 0, 1, 1], [], []>} : vector<8x8xf32>, vector<8x32xf32>, vector<8x32xf32> -> vector<8x32xf32>
    %c0_571 = arith.constant 0 : index
    %c0_572 = arith.constant 0 : index
    %1128 = vector.load %arg36[%c0_571, %c0_572] : memref<32x32xf32, #tpu.memory_space<vmem>>, vector<32x32xf32>
    %cst_573 = arith.constant dense<0.000000e+00> : vector<8x32xf32>
    %1129 = tpu.matmul %1046, %1128, %cst_573 {dimension_numbers = #tpu.dot_dimension_numbers<[1], [0], [0], [1], [0, 0, 1, 1], [], []>} : vector<8x32xf32>, vector<32x32xf32>, vector<8x32xf32> -> vector<8x32xf32>
    %c0_574 = arith.constant 0 : index
    %c0_575 = arith.constant 0 : index
    %1130 = vector.load %arg37[%c0_574, %c0_575] : memref<1x32xf32, #tpu.memory_space<vmem>>, vector<1x32xf32>
    %1131 = vector.broadcast %1130 : vector<1x32xf32> to vector<8x32xf32>
    %1132 = arith.addf %1129, %1131 : vector<8x32xf32>
    %c0_576 = arith.constant 0 : index
    %c0_577 = arith.constant 0 : index
    %1133 = vector.load %arg38[%c0_576, %c0_577] : memref<32x128xf32, #tpu.memory_space<vmem>>, vector<32x128xf32>
    %cst_578 = arith.constant dense<0.000000e+00> : vector<8x128xf32>
    %1134 = tpu.matmul %1132, %1133, %cst_578 {dimension_numbers = #tpu.dot_dimension_numbers<[1], [0], [0], [1], [0, 0, 1, 1], [], []>} : vector<8x32xf32>, vector<32x128xf32>, vector<8x128xf32> -> vector<8x128xf32>
    %c0_579 = arith.constant 0 : index
    %c0_580 = arith.constant 0 : index
    %1135 = vector.load %arg39[%c0_579, %c0_580] : memref<1x128xf32, #tpu.memory_space<vmem>>, vector<1x128xf32>
    %1136 = vector.broadcast %1135 : vector<1x128xf32> to vector<8x128xf32>
    %1137 = arith.addf %1134, %1136 : vector<8x128xf32>
    %c0_581 = arith.constant 0 : index
    %c0_582 = arith.constant 0 : index
    %1138 = vector.load %arg42[%c0_581, %c0_582] : memref<1x128xf32, #tpu.memory_space<vmem>>, vector<1x128xf32>
    %cst_583 = arith.constant 0.000000e+00 : f32
    %1139 = vector.broadcast %cst_583 : f32 to vector<1x128xf32>
    %1140 = arith.cmpf ogt, %1138, %1139 : vector<1x128xf32>
    %cst_584 = arith.constant -1.000000e+09 : f32
    %1141 = vector.shape_cast %1140 : vector<1x128xi1> to vector<1x128xi1>
    %1142 = vector.broadcast %1141 : vector<1x128xi1> to vector<8x128xi1>
    %1143 = vector.broadcast %cst_584 : f32 to vector<8x128xf32>
    %1144 = arith.select %1142, %1137, %1143 : vector<8x128xi1>, vector<8x128xf32>
    %cst_585 = arith.constant dense<0xFF800000> : vector<8xf32>
    %1145 = vector.multi_reduction <maximumf>, %1144, %cst_585 [1] : vector<8x128xf32> to vector<8xf32>
    %1146 = vector.shape_cast %1145 : vector<8xf32> to vector<8x1xf32>
    %1147 = vector.broadcast %1146 : vector<8x1xf32> to vector<8x128xf32>
    %1148 = arith.subf %1144, %1147 : vector<8x128xf32>
    %1149 = math.exp %1148 : vector<8x128xf32>
    %cst_586 = arith.constant dense<0.000000e+00> : vector<8xf32>
    %1150 = vector.multi_reduction <add>, %1149, %cst_586 [1] : vector<8x128xf32> to vector<8xf32>
    %1151 = vector.shape_cast %1150 : vector<8xf32> to vector<8x1xf32>
    %1152 = tpu.reciprocal %1151 {approx = true} : vector<8x1xf32> -> vector<8x1xf32>
    %1153 = vector.broadcast %1152 : vector<8x1xf32> to vector<8x128xf32>
    %1154 = arith.mulf %1149, %1153 : vector<8x128xf32>
    %c0_587 = arith.constant 0 : index
    %c0_588 = arith.constant 0 : index
    %c0_589 = arith.constant 0 : index
    %1155 = vector.load %arg40[%c0_587, %c0_588, %c0_589] : memref<4x32x4xf32, #tpu.memory_space<vmem>>, vector<1x32x4xf32>
    %1156 = vector.shape_cast %1155 : vector<1x32x4xf32> to vector<32x4xf32>
    %cst_590 = arith.constant dense<0.000000e+00> : vector<8x4xf32>
    %1157 = tpu.matmul %1046, %1156, %cst_590 {dimension_numbers = #tpu.dot_dimension_numbers<[1], [0], [0], [1], [0, 0, 1, 1], [], []>} : vector<8x32xf32>, vector<32x4xf32>, vector<8x4xf32> -> vector<8x4xf32>
    %c1_591 = arith.constant 1 : index
    %c0_592 = arith.constant 0 : index
    %c0_593 = arith.constant 0 : index
    %1158 = vector.load %arg40[%c1_591, %c0_592, %c0_593] : memref<4x32x4xf32, #tpu.memory_space<vmem>>, vector<1x32x4xf32>
    %1159 = vector.shape_cast %1158 : vector<1x32x4xf32> to vector<32x4xf32>
    %cst_594 = arith.constant dense<0.000000e+00> : vector<8x4xf32>
    %1160 = tpu.matmul %1073, %1159, %cst_594 {dimension_numbers = #tpu.dot_dimension_numbers<[1], [0], [0], [1], [0, 0, 1, 1], [], []>} : vector<8x32xf32>, vector<32x4xf32>, vector<8x4xf32> -> vector<8x4xf32>
    %1161 = arith.addf %1157, %1160 : vector<8x4xf32>
    %c2_595 = arith.constant 2 : index
    %c0_596 = arith.constant 0 : index
    %c0_597 = arith.constant 0 : index
    %1162 = vector.load %arg40[%c2_595, %c0_596, %c0_597] : memref<4x32x4xf32, #tpu.memory_space<vmem>>, vector<1x32x4xf32>
    %1163 = vector.shape_cast %1162 : vector<1x32x4xf32> to vector<32x4xf32>
    %cst_598 = arith.constant dense<0.000000e+00> : vector<8x4xf32>
    %1164 = tpu.matmul %1100, %1163, %cst_598 {dimension_numbers = #tpu.dot_dimension_numbers<[1], [0], [0], [1], [0, 0, 1, 1], [], []>} : vector<8x32xf32>, vector<32x4xf32>, vector<8x4xf32> -> vector<8x4xf32>
    %1165 = arith.addf %1161, %1164 : vector<8x4xf32>
    %c3_599 = arith.constant 3 : index
    %c0_600 = arith.constant 0 : index
    %c0_601 = arith.constant 0 : index
    %1166 = vector.load %arg40[%c3_599, %c0_600, %c0_601] : memref<4x32x4xf32, #tpu.memory_space<vmem>>, vector<1x32x4xf32>
    %1167 = vector.shape_cast %1166 : vector<1x32x4xf32> to vector<32x4xf32>
    %cst_602 = arith.constant dense<0.000000e+00> : vector<8x4xf32>
    %1168 = tpu.matmul %1127, %1167, %cst_602 {dimension_numbers = #tpu.dot_dimension_numbers<[1], [0], [0], [1], [0, 0, 1, 1], [], []>} : vector<8x32xf32>, vector<32x4xf32>, vector<8x4xf32> -> vector<8x4xf32>
    %1169 = arith.addf %1165, %1168 : vector<8x4xf32>
    %c0_603 = arith.constant 0 : index
    %c0_604 = arith.constant 0 : index
    %1170 = vector.load %arg41[%c0_603, %c0_604] : memref<1x4xf32, #tpu.memory_space<vmem>>, vector<1x4xf32>
    %1171 = vector.broadcast %1170 : vector<1x4xf32> to vector<8x4xf32>
    %1172 = arith.addf %1169, %1171 : vector<8x4xf32>
    %cst_605 = arith.constant dense<0xFF800000> : vector<8xf32>
    %1173 = vector.multi_reduction <maximumf>, %1172, %cst_605 [1] : vector<8x4xf32> to vector<8xf32>
    %1174 = vector.shape_cast %1173 : vector<8xf32> to vector<8x1xf32>
    %1175 = vector.broadcast %1174 : vector<8x1xf32> to vector<8x4xf32>
    %1176 = arith.subf %1172, %1175 : vector<8x4xf32>
    %1177 = math.exp %1176 : vector<8x4xf32>
    %cst_606 = arith.constant dense<0.000000e+00> : vector<8xf32>
    %1178 = vector.multi_reduction <add>, %1177, %cst_606 [1] : vector<8x4xf32> to vector<8xf32>
    %1179 = vector.shape_cast %1178 : vector<8xf32> to vector<8x1xf32>
    %1180 = tpu.reciprocal %1179 {approx = true} : vector<8x1xf32> -> vector<8x1xf32>
    %1181 = vector.broadcast %1180 : vector<8x1xf32> to vector<8x4xf32>
    %1182 = arith.mulf %1177, %1181 : vector<8x4xf32>
    %c0_607 = arith.constant 0 : index
    %c0_608 = arith.constant 0 : index
    %c0_609 = arith.constant 0 : index
    %1183 = vector.load %arg5[%c0_607, %c0_608, %c0_609] : memref<1x32x1xi32, #tpu.memory_space<vmem>>, vector<1x32x1xi32>
    %1184 = vector.shape_cast %1183 : vector<1x32x1xi32> to vector<32x1xi32>
    %1185 = tpu.iota {dimensions = array<i32: 1>} : vector<32x128xi32>
    %1186 = vector.broadcast %1184 : vector<32x1xi32> to vector<32x128xi32>
    %1187 = arith.cmpi eq, %1185, %1186 : vector<32x128xi32>
    %1188 = arith.extui %1187 : vector<32x128xi1> to vector<32x128xi32>
    %1189 = arith.sitofp %1188 : vector<32x128xi32> to vector<32x128xf32>
    %1190 = vector.extract_strided_slice %1189 {offsets = [0, 0], sizes = [16, 128], strides = [1, 1]} : vector<32x128xf32> to vector<16x128xf32>
    %cst_610 = arith.constant dense<0.000000e+00> : vector<8x128xf32>
    %1191 = tpu.matmul %1072, %1190, %cst_610 {dimension_numbers = #tpu.dot_dimension_numbers<[1], [0], [0], [1], [0, 0, 1, 1], [], []>} : vector<8x16xf32>, vector<16x128xf32>, vector<8x128xf32> -> vector<8x128xf32>
    %1192 = vector.extract_strided_slice %1189 {offsets = [16, 0], sizes = [8, 128], strides = [1, 1]} : vector<32x128xf32> to vector<8x128xf32>
    %cst_611 = arith.constant dense<0.000000e+00> : vector<8x128xf32>
    %1193 = tpu.matmul %1099, %1192, %cst_611 {dimension_numbers = #tpu.dot_dimension_numbers<[1], [0], [0], [1], [0, 0, 1, 1], [], []>} : vector<8x8xf32>, vector<8x128xf32>, vector<8x128xf32> -> vector<8x128xf32>
    %1194 = vector.extract_strided_slice %1189 {offsets = [24, 0], sizes = [8, 128], strides = [1, 1]} : vector<32x128xf32> to vector<8x128xf32>
    %cst_612 = arith.constant dense<0.000000e+00> : vector<8x128xf32>
    %1195 = tpu.matmul %1126, %1194, %cst_612 {dimension_numbers = #tpu.dot_dimension_numbers<[1], [0], [0], [1], [0, 0, 1, 1], [], []>} : vector<8x8xf32>, vector<8x128xf32>, vector<8x128xf32> -> vector<8x128xf32>
    %1196 = vector.extract_strided_slice %1182 {offsets = [0, 0], sizes = [8, 1], strides = [1, 1]} : vector<8x4xf32> to vector<8x1xf32>
    %1197 = vector.broadcast %1196 : vector<8x1xf32> to vector<8x128xf32>
    %1198 = arith.mulf %1197, %1154 : vector<8x128xf32>
    %1199 = vector.extract_strided_slice %1182 {offsets = [0, 1], sizes = [8, 1], strides = [1, 1]} : vector<8x4xf32> to vector<8x1xf32>
    %1200 = vector.broadcast %1199 : vector<8x1xf32> to vector<8x128xf32>
    %1201 = arith.mulf %1200, %1191 : vector<8x128xf32>
    %1202 = arith.addf %1198, %1201 : vector<8x128xf32>
    %1203 = vector.extract_strided_slice %1182 {offsets = [0, 2], sizes = [8, 1], strides = [1, 1]} : vector<8x4xf32> to vector<8x1xf32>
    %1204 = vector.broadcast %1203 : vector<8x1xf32> to vector<8x128xf32>
    %1205 = arith.mulf %1204, %1193 : vector<8x128xf32>
    %1206 = arith.addf %1202, %1205 : vector<8x128xf32>
    %1207 = vector.extract_strided_slice %1182 {offsets = [0, 3], sizes = [8, 1], strides = [1, 1]} : vector<8x4xf32> to vector<8x1xf32>
    %1208 = vector.broadcast %1207 : vector<8x1xf32> to vector<8x128xf32>
    %1209 = arith.mulf %1208, %1195 : vector<8x128xf32>
    %1210 = arith.addf %1206, %1209 : vector<8x128xf32>
    %c0_613 = arith.constant 0 : index
    %c0_614 = arith.constant 0 : index
    %c0_615 = arith.constant 0 : index
    %1211 = vector.load %arg43[%c0_613, %c0_614, %c0_615] : memref<1x8x128xf32, #tpu.memory_space<vmem>>, vector<1x8x128xf32>
    %1212 = vector.shape_cast %1211 : vector<1x8x128xf32> to vector<8x128xf32>
    %1213 = vector.shape_cast %1210 : vector<8x128xf32> to vector<1x8x128xf32>
    tpu.vector_store %arg43[%c0_613, %c0_614, %c0_615], %1213 {strides = array<i32>} : memref<1x8x128xf32, #tpu.memory_space<vmem>>, vector<1x8x128xf32>,
    %c0_616 = arith.constant 0 : index
    %c0_617 = arith.constant 0 : index
    %c0_618 = arith.constant 0 : index
    %1214 = vector.load %arg44[%c0_616, %c0_617, %c0_618] : memref<1x8x4xf32, #tpu.memory_space<vmem>>, vector<1x8x4xf32>
    %1215 = vector.shape_cast %1214 : vector<1x8x4xf32> to vector<8x4xf32>
    %1216 = vector.shape_cast %1182 : vector<8x4xf32> to vector<1x8x4xf32>
    tpu.vector_store %arg44[%c0_616, %c0_617, %c0_618], %1216 {strides = array<i32>} : memref<1x8x4xf32, #tpu.memory_space<vmem>>, vector<1x8x4xf32>,
    return
  }
  func.func @transform_0(%arg0: i32) -> (i32, i32, i32) {
    %c0_i32 = arith.constant 0 : i32
    %c0_i32_0 = arith.constant 0 : i32
    %c0_i32_1 = arith.constant 0 : i32
    return %arg0, %c0_i32, %c0_i32_0 : i32, i32, i32
  }
  func.func @transform_1(%arg0: i32) -> (i32, i32, i32) {
    %c0_i32 = arith.constant 0 : i32
    %c0_i32_0 = arith.constant 0 : i32
    %c0_i32_1 = arith.constant 0 : i32
    return %arg0, %c0_i32, %c0_i32_0 : i32, i32, i32
  }
  func.func @transform_2(%arg0: i32) -> (i32, i32, i32) {
    %c0_i32 = arith.constant 0 : i32
    %c0_i32_0 = arith.constant 0 : i32
    %c0_i32_1 = arith.constant 0 : i32
    return %arg0, %c0_i32, %c0_i32_0 : i32, i32, i32
  }
  func.func @transform_3(%arg0: i32) -> (i32, i32, i32) {
    %c0_i32 = arith.constant 0 : i32
    %c0_i32_0 = arith.constant 0 : i32
    %c0_i32_1 = arith.constant 0 : i32
    return %arg0, %c0_i32, %c0_i32_0 : i32, i32, i32
  }
  func.func @transform_4(%arg0: i32) -> (i32, i32, i32) {
    %c0_i32 = arith.constant 0 : i32
    %c0_i32_0 = arith.constant 0 : i32
    %c0_i32_1 = arith.constant 0 : i32
    return %arg0, %c0_i32, %c0_i32_0 : i32, i32, i32
  }
  func.func @transform_5(%arg0: i32) -> (i32, i32, i32) {
    %c0_i32 = arith.constant 0 : i32
    %c0_i32_0 = arith.constant 0 : i32
    %c0_i32_1 = arith.constant 0 : i32
    return %arg0, %c0_i32, %c0_i32_0 : i32, i32, i32
  }
  func.func @transform_6(%arg0: i32) -> (i32, i32, i32) {
    %c0_i32 = arith.constant 0 : i32
    %c0_i32_0 = arith.constant 0 : i32
    %c0_i32_1 = arith.constant 0 : i32
    return %arg0, %c0_i32, %c0_i32_0 : i32, i32, i32
  }
  func.func @transform_7(%arg0: i32) -> (i32, i32, i32) {
    %c0_i32 = arith.constant 0 : i32
    %c0_i32_0 = arith.constant 0 : i32
    %c0_i32_1 = arith.constant 0 : i32
    return %arg0, %c0_i32, %c0_i32_0 : i32, i32, i32
  }
  func.func @transform_8(%arg0: i32) -> (i32, i32, i32) {
    %c0_i32 = arith.constant 0 : i32
    %c0_i32_0 = arith.constant 0 : i32
    %c0_i32_1 = arith.constant 0 : i32
    return %arg0, %c0_i32, %c0_i32_0 : i32, i32, i32
  }
  func.func @transform_9(%arg0: i32) -> (i32, i32) {
    %c0_i32 = arith.constant 0 : i32
    %c0_i32_0 = arith.constant 0 : i32
    %c0_i32_1 = arith.constant 0 : i32
    return %c0_i32, %c0_i32_0 : i32, i32
  }
  func.func @transform_10(%arg0: i32) -> (i32, i32) {
    %c0_i32 = arith.constant 0 : i32
    %c0_i32_0 = arith.constant 0 : i32
    %c0_i32_1 = arith.constant 0 : i32
    return %c0_i32, %c0_i32_0 : i32, i32
  }
  func.func @transform_11(%arg0: i32) -> (i32, i32, i32) {
    %c0_i32 = arith.constant 0 : i32
    %c0_i32_0 = arith.constant 0 : i32
    %c0_i32_1 = arith.constant 0 : i32
    %c0_i32_2 = arith.constant 0 : i32
    return %c0_i32, %c0_i32_0, %c0_i32_1 : i32, i32, i32
  }
  func.func @transform_12(%arg0: i32) -> (i32, i32, i32) {
    %c0_i32 = arith.constant 0 : i32
    %c0_i32_0 = arith.constant 0 : i32
    %c0_i32_1 = arith.constant 0 : i32
    %c0_i32_2 = arith.constant 0 : i32
    return %c0_i32, %c0_i32_0, %c0_i32_1 : i32, i32, i32
  }
  func.func @transform_13(%arg0: i32) -> (i32, i32, i32) {
    %c0_i32 = arith.constant 0 : i32
    %c0_i32_0 = arith.constant 0 : i32
    %c0_i32_1 = arith.constant 0 : i32
    %c0_i32_2 = arith.constant 0 : i32
    return %c0_i32, %c0_i32_0, %c0_i32_1 : i32, i32, i32
  }
  func.func @transform_14(%arg0: i32) -> (i32, i32, i32) {
    %c0_i32 = arith.constant 0 : i32
    %c0_i32_0 = arith.constant 0 : i32
    %c0_i32_1 = arith.constant 0 : i32
    %c0_i32_2 = arith.constant 0 : i32
    return %c0_i32, %c0_i32_0, %c0_i32_1 : i32, i32, i32
  }
  func.func @transform_15(%arg0: i32) -> (i32, i32, i32) {
    %c0_i32 = arith.constant 0 : i32
    %c0_i32_0 = arith.constant 0 : i32
    %c0_i32_1 = arith.constant 0 : i32
    %c0_i32_2 = arith.constant 0 : i32
    return %c0_i32, %c0_i32_0, %c0_i32_1 : i32, i32, i32
  }
  func.func @transform_16(%arg0: i32) -> (i32, i32, i32) {
    %c0_i32 = arith.constant 0 : i32
    %c0_i32_0 = arith.constant 0 : i32
    %c0_i32_1 = arith.constant 0 : i32
    %c0_i32_2 = arith.constant 0 : i32
    return %c0_i32, %c0_i32_0, %c0_i32_1 : i32, i32, i32
  }
  func.func @transform_17(%arg0: i32) -> (i32, i32, i32) {
    %c0_i32 = arith.constant 0 : i32
    %c0_i32_0 = arith.constant 0 : i32
    %c0_i32_1 = arith.constant 0 : i32
    %c0_i32_2 = arith.constant 0 : i32
    return %c0_i32, %c0_i32_0, %c0_i32_1 : i32, i32, i32
  }
  func.func @transform_18(%arg0: i32) -> (i32, i32, i32) {
    %c0_i32 = arith.constant 0 : i32
    %c0_i32_0 = arith.constant 0 : i32
    %c0_i32_1 = arith.constant 0 : i32
    %c0_i32_2 = arith.constant 0 : i32
    return %c0_i32, %c0_i32_0, %c0_i32_1 : i32, i32, i32
  }
  func.func @transform_19(%arg0: i32) -> (i32, i32, i32) {
    %c0_i32 = arith.constant 0 : i32
    %c0_i32_0 = arith.constant 0 : i32
    %c0_i32_1 = arith.constant 0 : i32
    %c0_i32_2 = arith.constant 0 : i32
    return %c0_i32, %c0_i32_0, %c0_i32_1 : i32, i32, i32
  }
  func.func @transform_20(%arg0: i32) -> (i32, i32, i32) {
    %c0_i32 = arith.constant 0 : i32
    %c0_i32_0 = arith.constant 0 : i32
    %c0_i32_1 = arith.constant 0 : i32
    %c0_i32_2 = arith.constant 0 : i32
    return %c0_i32, %c0_i32_0, %c0_i32_1 : i32, i32, i32
  }
  func.func @transform_21(%arg0: i32) -> (i32, i32, i32) {
    %c0_i32 = arith.constant 0 : i32
    %c0_i32_0 = arith.constant 0 : i32
    %c0_i32_1 = arith.constant 0 : i32
    %c0_i32_2 = arith.constant 0 : i32
    return %c0_i32, %c0_i32_0, %c0_i32_1 : i32, i32, i32
  }
  func.func @transform_22(%arg0: i32) -> (i32, i32, i32) {
    %c0_i32 = arith.constant 0 : i32
    %c0_i32_0 = arith.constant 0 : i32
    %c0_i32_1 = arith.constant 0 : i32
    %c0_i32_2 = arith.constant 0 : i32
    return %c0_i32, %c0_i32_0, %c0_i32_1 : i32, i32, i32
  }
  func.func @transform_23(%arg0: i32) -> (i32, i32, i32) {
    %c0_i32 = arith.constant 0 : i32
    %c0_i32_0 = arith.constant 0 : i32
    %c0_i32_1 = arith.constant 0 : i32
    %c0_i32_2 = arith.constant 0 : i32
    return %c0_i32, %c0_i32_0, %c0_i32_1 : i32, i32, i32
  }
  func.func @transform_24(%arg0: i32) -> (i32, i32, i32) {
    %c0_i32 = arith.constant 0 : i32
    %c0_i32_0 = arith.constant 0 : i32
    %c0_i32_1 = arith.constant 0 : i32
    %c0_i32_2 = arith.constant 0 : i32
    return %c0_i32, %c0_i32_0, %c0_i32_1 : i32, i32, i32
  }
  func.func @transform_25(%arg0: i32) -> (i32, i32, i32) {
    %c0_i32 = arith.constant 0 : i32
    %c0_i32_0 = arith.constant 0 : i32
    %c0_i32_1 = arith.constant 0 : i32
    %c0_i32_2 = arith.constant 0 : i32
    return %c0_i32, %c0_i32_0, %c0_i32_1 : i32, i32, i32
  }
  func.func @transform_26(%arg0: i32) -> (i32, i32, i32) {
    %c0_i32 = arith.constant 0 : i32
    %c0_i32_0 = arith.constant 0 : i32
    %c0_i32_1 = arith.constant 0 : i32
    %c0_i32_2 = arith.constant 0 : i32
    return %c0_i32, %c0_i32_0, %c0_i32_1 : i32, i32, i32
  }
  func.func @transform_27(%arg0: i32) -> (i32, i32, i32) {
    %c0_i32 = arith.constant 0 : i32
    %c0_i32_0 = arith.constant 0 : i32
    %c0_i32_1 = arith.constant 0 : i32
    %c0_i32_2 = arith.constant 0 : i32
    return %c0_i32, %c0_i32_0, %c0_i32_1 : i32, i32, i32
  }
  func.func @transform_28(%arg0: i32) -> (i32, i32) {
    %c0_i32 = arith.constant 0 : i32
    %c0_i32_0 = arith.constant 0 : i32
    %c0_i32_1 = arith.constant 0 : i32
    return %c0_i32, %c0_i32_0 : i32, i32
  }
  func.func @transform_29(%arg0: i32) -> (i32, i32) {
    %c0_i32 = arith.constant 0 : i32
    %c0_i32_0 = arith.constant 0 : i32
    %c0_i32_1 = arith.constant 0 : i32
    return %c0_i32, %c0_i32_0 : i32, i32
  }
  func.func @transform_30(%arg0: i32) -> (i32, i32) {
    %c0_i32 = arith.constant 0 : i32
    %c0_i32_0 = arith.constant 0 : i32
    %c0_i32_1 = arith.constant 0 : i32
    return %c0_i32, %c0_i32_0 : i32, i32
  }
  func.func @transform_31(%arg0: i32) -> (i32, i32) {
    %c0_i32 = arith.constant 0 : i32
    %c0_i32_0 = arith.constant 0 : i32
    %c0_i32_1 = arith.constant 0 : i32
    return %c0_i32, %c0_i32_0 : i32, i32
  }
  func.func @transform_32(%arg0: i32) -> (i32, i32, i32) {
    %c0_i32 = arith.constant 0 : i32
    %c0_i32_0 = arith.constant 0 : i32
    %c0_i32_1 = arith.constant 0 : i32
    %c0_i32_2 = arith.constant 0 : i32
    return %c0_i32, %c0_i32_0, %c0_i32_1 : i32, i32, i32
  }
  func.func @transform_33(%arg0: i32) -> (i32, i32, i32) {
    %c0_i32 = arith.constant 0 : i32
    %c0_i32_0 = arith.constant 0 : i32
    %c0_i32_1 = arith.constant 0 : i32
    %c0_i32_2 = arith.constant 0 : i32
    return %c0_i32, %c0_i32_0, %c0_i32_1 : i32, i32, i32
  }
  func.func @transform_34(%arg0: i32) -> (i32, i32, i32) {
    %c0_i32 = arith.constant 0 : i32
    %c0_i32_0 = arith.constant 0 : i32
    %c0_i32_1 = arith.constant 0 : i32
    %c0_i32_2 = arith.constant 0 : i32
    return %c0_i32, %c0_i32_0, %c0_i32_1 : i32, i32, i32
  }
  func.func @transform_35(%arg0: i32) -> (i32, i32) {
    %c0_i32 = arith.constant 0 : i32
    %c0_i32_0 = arith.constant 0 : i32
    %c0_i32_1 = arith.constant 0 : i32
    return %c0_i32, %c0_i32_0 : i32, i32
  }
  func.func @transform_36(%arg0: i32) -> (i32, i32) {
    %c0_i32 = arith.constant 0 : i32
    %c0_i32_0 = arith.constant 0 : i32
    %c0_i32_1 = arith.constant 0 : i32
    return %c0_i32, %c0_i32_0 : i32, i32
  }
  func.func @transform_37(%arg0: i32) -> (i32, i32) {
    %c0_i32 = arith.constant 0 : i32
    %c0_i32_0 = arith.constant 0 : i32
    %c0_i32_1 = arith.constant 0 : i32
    return %c0_i32, %c0_i32_0 : i32, i32
  }
  func.func @transform_38(%arg0: i32) -> (i32, i32) {
    %c0_i32 = arith.constant 0 : i32
    %c0_i32_0 = arith.constant 0 : i32
    %c0_i32_1 = arith.constant 0 : i32
    return %c0_i32, %c0_i32_0 : i32, i32
  }
  func.func @transform_39(%arg0: i32) -> (i32, i32, i32) {
    %c0_i32 = arith.constant 0 : i32
    %c0_i32_0 = arith.constant 0 : i32
    %c0_i32_1 = arith.constant 0 : i32
    %c0_i32_2 = arith.constant 0 : i32
    return %c0_i32, %c0_i32_0, %c0_i32_1 : i32, i32, i32
  }
  func.func @transform_40(%arg0: i32) -> (i32, i32) {
    %c0_i32 = arith.constant 0 : i32
    %c0_i32_0 = arith.constant 0 : i32
    %c0_i32_1 = arith.constant 0 : i32
    return %c0_i32, %c0_i32_0 : i32, i32
  }
  func.func @transform_41(%arg0: i32) -> (i32, i32) {
    %c0_i32 = arith.constant 0 : i32
    %c0_i32_0 = arith.constant 0 : i32
    %c0_i32_1 = arith.constant 0 : i32
    return %c0_i32, %c0_i32_0 : i32, i32
  }
  func.func @transform_42(%arg0: i32) -> (i32, i32, i32) {
    %c0_i32 = arith.constant 0 : i32
    %c0_i32_0 = arith.constant 0 : i32
    %c0_i32_1 = arith.constant 0 : i32
    return %arg0, %c0_i32, %c0_i32_0 : i32, i32, i32
  }
  func.func @transform_43(%arg0: i32) -> (i32, i32, i32) {
    %c0_i32 = arith.constant 0 : i32
    %c0_i32_0 = arith.constant 0 : i32
    %c0_i32_1 = arith.constant 0 : i32
    return %arg0, %c0_i32, %c0_i32_0 : i32, i32, i32
  }
}

</mosaic_0001>

<bundles_post_ra>
// kernel: tpu_custom_call.1
= control target key start
LH: loop header
LB: loop body
LE: loop exit
PB: predicated region body
PF: predicated region fallthrough
CT: control target
= control target key end

     0   :  { %s13314_s6 = smov 1   ;;  %s13315_s10 = smov 2   ;;  %s15259_s0 = inlined_call_operand.smem [shape: u32[44], index: -1, kind: input, shape index: {}] }
   0x1   :  { %s13406_s5 = sld [smem:[%s15259_s0]]   ;;  %s13316_s14 = smov 3  }
   0x2   :  { %s13411_s9 = sld [smem:[%s15259_s0 + %s13314_s6]]   ;;  %s13317_s18 = smov 4  }
   0x3   :  { %s13416_s13 = sld [smem:[%s15259_s0 + %s13315_s10]]   ;;  %s13318_s22 = smov 5  }
   0x4   :  { %s13421_s17 = sld [smem:[%s15259_s0 + %s13316_s14]]   ;;  %s13319_s26 = smov 6  }
   0x5   :  { %s13426_s21 = sld [smem:[%s15259_s0 + %s13317_s18]]   ;;  %s13320_s30 = smov 7  }
   0x6   :  { %s13431_s25 = sld [smem:[%s15259_s0 + %s13318_s22]]   ;;  %s13321_s4 = smov 8  }
   0x7   :  { %15326 = sst [smem:[#allocation52_spill]] %s13406_s5  ;;  %s13322_s10 = smov 9  }
   0x8   :  { %15327 = sst [smem:[#allocation53_spill]] %s13411_s9  ;;  %s13323_s15 = smov 10  }
   0x9   :  { %15328 = sst [smem:[#allocation54_spill]] %s13416_s13  ;;  %s13324_s20 = smov 11  }
   0xa   :  { %15329 = sst [smem:[#allocation55_spill]] %s13421_s17  ;;  %s13326_s1 = smov 13  }
   0xb   :  { %15330 = sst [smem:[#allocation56_spill]] %s13426_s21  ;;  %s13327_s7 = smov 14  }
   0xc   :  { %15331 = sst [smem:[#allocation57_spill]] %s13431_s25  ;;  %s13329_s22 = smov 16  }
   0xd   :  { %s13436_s29 = sld [smem:[%s15259_s0 + %s13319_s26]]   ;;  %s13325_s26 = smov 12  }
   0xe   :  { %s13441_s3 = sld [smem:[%s15259_s0 + %s13320_s30]]   ;;  %s13330_s28 = smov 17  }
   0xf   :  { %s13446_s8 = sld [smem:[%s15259_s0 + %s13321_s4]]  }
  0x10   :  { %s13451_s14 = sld [smem:[%s15259_s0 + %s13322_s10]]  }
  0x11   :  { %s13456_s19 = sld [smem:[%s15259_s0 + %s13323_s15]]   ;;  %s13328_s15 = smov 15  }
  0x12   :  { %s13461_s24 = sld [smem:[%s15259_s0 + %s13324_s20]]  }
  0x13   :  { %15332 = sst [smem:[#allocation58_spill]] %s13436_s29 }
  0x14   :  { %15333 = sst [smem:[#allocation59_spill]] %s13441_s3 }
  0x15   :  { %15334 = sst [smem:[#allocation60_spill]] %s13446_s8 }
  0x16   :  { %15335 = sst [smem:[#allocation61_spill]] %s13451_s14 }
  0x17   :  { %15336 = sst [smem:[#allocation62_spill]] %s13456_s19 }
  0x18   :  { %15337 = sst [smem:[#allocation63_spill]] %s13461_s24 }
  0x19   :  { %s13466_s30 = sld [smem:[%s15259_s0 + %s13325_s26]]  }
  0x1a   :  { %s13471_s6 = sld [smem:[%s15259_s0 + %s13326_s1]]  }
  0x1b   :  { %s13476_s12 = sld [smem:[%s15259_s0 + %s13327_s7]]   ;;  %s13331_s7 = smov 18  }
  0x1c   :  { %s13481_s20 = sld [smem:[%s15259_s0 + %s13328_s15]]   ;;  %s13332_s15 = smov 19  }
  0x1d   :  { %s13486_s27 = sld [smem:[%s15259_s0 + %s13329_s22]]   ;;  %s13333_s22 = smov 20  }
  0x1e   :  { %s13491_s4 = sld [smem:[%s15259_s0 + %s13330_s28]]   ;;  %s13334_s28 = smov 21  }
  0x1f   :  { %15338 = sst [smem:[#allocation64_spill]] %s13466_s30 }
  0x20   :  { %15339 = sst [smem:[#allocation65_spill]] %s13471_s6 }
  0x21   :  { %s13496_s21 = sld [smem:[%s15259_s0 + %s13331_s7]]   ;;  %s13335_s7 = smov 22  }
  0x22   :  { %15340 = sst [smem:[#allocation66_spill]] %s13481_s20 }
  0x23   :  { %15341 = sst [smem:[#allocation67_spill]] %s13486_s27 }
  0x24   :  { %15342 = sst [smem:[#allocation68_spill]] %s13491_s4 }
  0x25   :  { %s13501_s17 = sld [smem:[%s15259_s0 + %s13332_s15]]   ;;  %s13336_s15 = smov 23  }
  0x26   :  { %s13506_s13 = sld [smem:[%s15259_s0 + %s13333_s22]]   ;;  %s13337_s22 = smov 24  }
  0x27   :  { %s13511_s9 = sld [smem:[%s15259_s0 + %s13334_s28]]   ;;  %s13338_s28 = smov 25  }
  0x28   :  { %s13516_s4 = sld [smem:[%s15259_s0 + %s13335_s7]]   ;;  %s13339_s7 = smov 26  }
  0x29   :  { %s13526_s20 = sld [smem:[%s15259_s0 + %s13337_s22]]   ;;  %s13341_s22 = smov 28  }
  0x2a   :  { %s13531_s6 = sld [smem:[%s15259_s0 + %s13338_s28]]   ;;  %s13342_s28 = smov 29  }
  0x2b   :  { %15343 = sst [smem:[#allocation69_spill]] %s13501_s17 }
  0x2c   :  { %15344 = sst [smem:[#allocation70_spill]] %s13506_s13 }
  0x2d   :  { %15345 = sst [smem:[#allocation71_spill]] %s13511_s9 }
  0x2e   :  { %15346 = sst [smem:[#allocation72_spill]] %s13516_s4 }
  0x2f   :  { %s13521_s17 = sld [smem:[%s15259_s0 + %s13336_s15]]   ;;  %s13340_s15 = smov 27  }
  0x30   :  { %15348 = sst [smem:[#allocation74_spill]] %s13526_s20 }
  0x31   :  { %15349 = sst [smem:[#allocation75_spill]] %s13531_s6 }
  0x32   :  { %s13536_s4 = sld [smem:[%s15259_s0 + %s13339_s7]]   ;;  %s13343_s7 = smov 30  }
  0x33   :  { %s13541_s24 = sld [smem:[%s15259_s0 + %s13340_s15]]   ;;  %s13344_s15 = smov 31  }
  0x34   :  { %s13546_s20 = sld [smem:[%s15259_s0 + %s13341_s22]]   ;;  %s13345_s22 = smov 32  }
  0x35   :  { %15347 = sst [smem:[#allocation73_spill]] %s13521_s17 }
  0x36   :  { %s13551_s14 = sld [smem:[%s15259_s0 + %s13342_s28]]   ;;  %s13346_s28 = smov 33  }
  0x37   :  { %s13556_s5 = sld [smem:[%s15259_s0 + %s13343_s7]]   ;;  %s13347_s7 = smov 34  }
  0x38   :  { %15350 = sst [smem:[#allocation76_spill]] %s13536_s4 }
  0x39   :  { %15351 = sst [smem:[#allocation77_spill]] %s13541_s24 }
  0x3a   :  { %15352 = sst [smem:[#allocation78_spill]] %s13546_s20 }
  0x3b   :  { %s13561_s8 = sld [smem:[%s15259_s0 + %s13344_s15]]   ;;  %s13348_s15 = smov 35  }
  0x3c   :  { %15353 = sst [smem:[#allocation79_spill]] %s13551_s14 }
  0x3d   :  { %15354 = sst [smem:[#allocation80_spill]] %s13556_s5 }
  0x3e   :  { %s13566_s3 = sld [smem:[%s15259_s0 + %s13345_s22]]   ;;  %s13349_s22 = smov 36  }
  0x3f   :  { %s13571_s14 = sld [smem:[%s15259_s0 + %s13346_s28]]   ;;  %s13350_s28 = smov 37  }
  0x40   :  { %s13576_s5 = sld [smem:[%s15259_s0 + %s13347_s7]]   ;;  %s13351_s7 = smov 38  }
  0x41   :  { %15355 = sst [smem:[#allocation81_spill]] %s13561_s8 }
  0x42   :  { %s13581_s8 = sld [smem:[%s15259_s0 + %s13348_s15]]   ;;  %s13352_s15 = smov 39  }
  0x43   :  { %s13586_s25 = sld [smem:[%s15259_s0 + %s13349_s22]]   ;;  %s13353_s22 = smov 40  }
  0x44   :  { %15356 = sst [smem:[#allocation82_spill]] %s13566_s3 }
  0x45   :  { %15357 = sst [smem:[#allocation83_spill]] %s13571_s14 }
  0x46   :  { %15358 = sst [smem:[#allocation84_spill]] %s13576_s5 }
  0x47   :  { %s13591_s14 = sld [smem:[%s15259_s0 + %s13350_s28]]   ;;  %s13354_s28 = smov 41  }
  0x48   :  { %15359 = sst [smem:[#allocation85_spill]] %s13581_s8 }
  0x49   :  { %15360 = sst [smem:[#allocation86_spill]] %s13586_s25 }
  0x4a   :  { %s13596_s3 = sld [smem:[%s15259_s0 + %s13351_s7]]   ;;  %s13355_s7 = smov 42  }
  0x4b   :  { %s13601_s8 = sld [smem:[%s15259_s0 + %s13352_s15]]   ;;  %s13356_s15 = smov 43  }
  0x4c   :  { %s13606_s24 = sld [smem:[%s15259_s0 + %s13353_s22]]  }
  0x4d   :  { %15361 = sst [smem:[#allocation87_spill]] %s13591_s14 }
  0x4e   :  { %s13611_s14 = sld [smem:[%s15259_s0 + %s13354_s28]]  }
  0x50   :  { %15362 = sst [smem:[#allocation88_spill]] %s13596_s3 }
  0x51   :  { %15363 = sst [smem:[#allocation89_spill]] %s13601_s8 }
  0x52   :  { %s13616_s3 = sld [smem:[%s15259_s0 + %s13355_s7]]  }
  0x53   :  { %s13621_s8 = sld [smem:[%s15259_s0 + %s13356_s15]]  }
  0x58   :  { %15364 = sst [smem:[#allocation90_spill]] %s13616_s3 }
  0x59   :  { %15365 = sst [smem:[#allocation91_spill]] %s13621_s8 }
  0x5a   :  { %93 = vsyncpa [#allocation3], 0 }
  0x5b   :  { %95 = vsyncpa [#allocation3 + $0x1], 0 }
  0x5c   :  { %96 = vsyncpa [#allocation6], 0 }
  0x5d   :  { %98 = vsyncpa [#allocation6 + $0x1], 0 }
  0x5e   :  { %99 = vsyncpa [#allocation9], 0 }
  0x5f   :  { %101 = vsyncpa [#allocation9 + $0x1], 0 }
  0x60   :  { %102 = vsyncpa [#allocation12], 0 }
  0x61   :  { %103 = vsyncpa [#allocation15], 0 }
  0x62   :  { %104 = vsyncpa [#allocation18], 0 }
  0x63   :  { %105 = vsyncpa [#allocation21], 0 }
  0x64   :  { %106 = vsyncpa [#allocation24], 0 }
  0x65   :  { %107 = vsyncpa [#allocation27], 0 }
  0x66   :  { %108 = vsyncpa [#allocation30], 0 }
  0x67   :  { %109 = vsyncpa [#allocation33], 0 }
  0x68   :  { %110 = vsyncpa [#allocation36], 0 }
  0x69   :  { %111 = vsyncpa [#allocation4], 0 }
  0x6a   :  { %113 = vsyncpa [#allocation4 + $0x1], 0  ;;  %s13623_s22 = smov 0   ;;  %s13625_s0 = smov 0  }
  0x6b   :  { %s13627_s23 = smov 0   ;;  %s13629_s26 = smov 0  }
  0x6c LB: > { %s15366_s9 = sld [smem:[#allocation71_spill]]  ;;  %s15367_s6 = sld [smem:[#allocation75_spill]]  ;;  %s13312_s26 = sphi %s13629_s26, %s15470_s26   ;;  %s13308_s23 = sphi %s13627_s23, %s15475_s23   ;;  %s13304_s0 = sphi %s13625_s0, %s15474_s0   ;;  %s13300_s22 = sphi %s13623_s22, %s15473_s22  }
  0x6d   : > { %s15368_s29 = sld [smem:[#allocation58_spill]]  ;;  %s15369_s27 = sld [smem:[#allocation67_spill]] }
  0x6e   : > { %s15370_s25 = sld [smem:[#allocation86_spill]]  ;;  %s15372_s17 = sld [smem:[#allocation73_spill]] }
  0x6f   : > { %s15371_s20 = sld [smem:[#allocation78_spill]]  ;;  %s15374_s5 = sld [smem:[#allocation84_spill]] }
  0x70   : > { %s15373_s13 = sld [smem:[#allocation70_spill]]  ;;  %s15375_s4 = sld [smem:[#allocation76_spill]] }
  0x71   : > { %s15376_s30 = sld [smem:[#allocation64_spill]]  ;;  %s15377_s19 = sld [smem:[#allocation62_spill]] }
  0x72   : > { %15378 = sst [smem:[#allocation92_spill]] %s13300_s22  ;;  %s13357_s28 = smov [#allocation10]  }
  0x73   : > { %15379 = sst [smem:[#allocation93_spill]] %s13308_s23  ;;  %s1118_s1 = sshll.u32 %s13357_s28, 4  ;;  %s13649_s1 = int_to_ptr.vmem [resolvable:$true] %s1118_s1 }
  0x74   : > { %s13644_s2 = sadd.s32 4294967295, %s13312_s26   ;;  %p10019_p0 = scmp.ge.s32.totalorder %s13312_s26, 1 }
  0x75   : > { %p15280_p1 = scmp.eq.s32.totalorder %s13644_s2, 0  ;;  %p1103_p2 = scmp.lt.s32.totalorder %s13312_s26, 3 }
  0x76   : > { %s13358_s10 = smov [#allocation11]   ;;  %s13359_s16 = smov [#allocation14]  }
  0x77   : > { %p13651_p3 = pnand %p10019_p0, %p1103_p2  ;;  %s1134_s11 = sshll.u32 %s13358_s10, 4  ;;  %s13664_s11 = int_to_ptr.vmem [resolvable:$true] %s1134_s11 }
  0x78   : > { %s13666_s18 = sshll.u32 %s13359_s16, 4  ;;  %s12574_s28 = scalar_lea.hbm %s15377_s19, 256  ;;  %s1167_s18 = int_to_ptr.vmem [resolvable:$true] %s13666_s18 }
  0x79   : > { %s15380_s7 = scalar_select %p13651_p3, 1, 0 }
  0x7a   : > { %p12214_p5 = pneg %p13651_p3  ;;  %p12575_p7 = scmp.ne.s32.totalorder %s15377_s19, %s12574_s28 }
  0x7b   : > { %p12581_p11 = scmp.lt.u32.totalorder %s12574_s28, %s15377_s19 }
  0x7c   : > { %p13660_p6 = pnand %p12214_p5, %p15280_p1 }
  0x7e   : > { %s15381_s15 = scalar_select %p13660_p6, 1, 0 }
  0x7f   : > { %p13672_p8 = pneg %p13660_p6 }
  0x81   : > { %s15382_s3 = scalar_select %p13672_p8, 1, 0 }
  0x82   : > { %p12577_p9 = pnand %p13672_p8, %p12575_p7 }
  0x84   : > { %p12578_p10 = pneg %p12577_p9 }
  0x86   : > { %p12583_p12 = pnand %p12581_p11, %p12578_p10 }
  0x88   : > { %12586 = shalt.err (!%p12583_p12)
}
  0x89   : > { %s12587_s10 = scalar_lea.vmem %s13649_s1, 256  ;;  %p12595_p5 = scmp.lt.s32.totalorder %s13649_s1, %s13649_s1 }
  0x8a   : > { %p12588_p13 = scmp.ne.s32.totalorder %s13649_s1, %s12587_s10  ;;  %p12596_p4 = scmp.lt.s32.totalorder %s12587_s10, %s12587_s10 }
  0x8c   : > { %p12590_p0 = pnand %p12588_p13, %p13672_p8  ;;  %p12597_p1 = por %p12596_p4, %p12595_p5 }
  0x8e   : > { %p12591_p2 = pneg %p12590_p0 }
  0x90   : > { %p12598_p3 = pnand %p12597_p1, %p12591_p2 }
  0x92   : > { %12601 = shalt.err (!%p12598_p3)
}
  0x93   : > { %s15282_s16 = smov 128   ;;  %s15284_s28 = smov 8  }
  0x94   : > { %12217 = dma.hbm_to_vmem [thread:$0]  (!%p13660_p6), %s15377_s19, 256, %s13649_s1, [#allocation9], %s15282_s16, %s15282_s16, %s15284_s28  }
  0x95   : > { %s12602_s8 = scalar_lea.hbm %s15376_s30, 64 }
  0x96   : > { %p12603_p7 = scmp.ne.s32.totalorder %s15376_s30, %s12602_s8  ;;  %p12609_p3 = scmp.lt.u32.totalorder %s12602_s8, %s15376_s30 }
  0x98   : > { %p12605_p4 = pnand %p12603_p7, %p13672_p8 }
  0x9a   : > { %p12606_p1 = pneg %p12605_p4 }
  0x9c   : > { %p12611_p9 = pnand %p12609_p3, %p12606_p1 }
  0x9e   : > { %12614 = shalt.err (!%p12611_p9)
}
  0x9f   : > { %s12615_s10 = scalar_lea.vmem %s13664_s11, 64  ;;  %p12623_p13 = scmp.lt.s32.totalorder %s13664_s11, %s13664_s11 }
  0xa0   : > { %p12616_p10 = scmp.ne.s32.totalorder %s13664_s11, %s12615_s10  ;;  %p12624_p0 = scmp.lt.s32.totalorder %s12615_s10, %s12615_s10 }
  0xa2   : > { %p12618_p11 = pnand %p12616_p10, %p13672_p8  ;;  %p12625_p2 = por %p12624_p0, %p12623_p13 }
  0xa4   : > { %p12619_p12 = pneg %p12618_p11 }
  0xa6   : > { %p12626_p5 = pnand %p12625_p2, %p12619_p12 }
  0xa8   : > { %12629 = shalt.err (!%p12626_p5)
}
  0xa9   : > { %s15288_s1 = smov 16   ;;  %s15290_s8 = smov 1  }
  0xaa   : > { %12220 = dma.hbm_to_vmem [thread:$0]  (!%p13660_p6), %s15376_s30, 64, %s13664_s11, [#allocation12], %s15288_s1, %s15288_s1, %s15290_s8  }
  0xab   : > { %s12630_s10 = scalar_lea.hbm %s15369_s27, 64 }
  0xac   : > { %p12631_p7 = scmp.ne.s32.totalorder %s15369_s27, %s12630_s10  ;;  %p12637_p3 = scmp.lt.u32.totalorder %s12630_s10, %s15369_s27 }
  0xae   : > { %p12633_p4 = pnand %p12631_p7, %p13672_p8 }
  0xb0   : > { %p12634_p1 = pneg %p12633_p4 }
  0xb2   : > { %p12639_p9 = pnand %p12637_p3, %p12634_p1 }
  0xb4   : > { %12642 = shalt.err (!%p12639_p9)
}
  0xb5   : > { %s12643_s16 = scalar_lea.vmem %s1167_s18, 64  ;;  %p12651_p13 = scmp.lt.s32.totalorder %s1167_s18, %s1167_s18 }
  0xb6   : > { %p12644_p10 = scmp.ne.s32.totalorder %s1167_s18, %s12643_s16  ;;  %p12652_p0 = scmp.lt.s32.totalorder %s12643_s16, %s12643_s16 }
  0xb8   : > { %p12646_p11 = pnand %p12644_p10, %p13672_p8  ;;  %p12653_p2 = por %p12652_p0, %p12651_p13 }
  0xba   : > { %p12647_p12 = pneg %p12646_p11 }
  0xbc   : > { %p12654_p5 = pnand %p12653_p2, %p12647_p12 }
  0xbe   : > { %12657 = shalt.err (!%p12654_p5)
}
  0xbf   : > { %12226 = dma.hbm_to_vmem [thread:$0]  (!%p13660_p6), %s15369_s27, 64, %s1167_s18, [#allocation15], %s15288_s1, %s15288_s1, %s15290_s8  }
  0xc0   : > { %s13364_s11 = smov [#allocation17]   ;;  %s13365_s28 = smov [#allocation20]  }
  0xc1   : > { %s1198_s10 = sshll.u32 %s13364_s11, 4  ;;  %s1227_s19 = sshll.u32 %s13365_s28, 4  ;;  %s1199_s10 = int_to_ptr.vmem [resolvable:$true] %s1198_s10  ;;  %s1228_s19 = int_to_ptr.vmem [resolvable:$true] %s1227_s19 }
  0xc2   : > { %s12658_s16 = scalar_lea.hbm %s15373_s13, 64 }
  0xc3   : > { %p12659_p7 = scmp.ne.s32.totalorder %s15373_s13, %s12658_s16  ;;  %p12665_p3 = scmp.lt.u32.totalorder %s12658_s16, %s15373_s13 }
  0xc5   : > { %p12661_p4 = pnand %p12659_p7, %p13672_p8 }
  0xc7   : > { %p12662_p1 = pneg %p12661_p4 }
  0xc9   : > { %p12667_p9 = pnand %p12665_p3, %p12662_p1 }
  0xcb   : > { %12670 = shalt.err (!%p12667_p9)
}
  0xcc   : > { %s12671_s30 = scalar_lea.vmem %s1199_s10, 64  ;;  %p12679_p13 = scmp.lt.s32.totalorder %s1199_s10, %s1199_s10 }
  0xcd   : > { %p12672_p10 = scmp.ne.s32.totalorder %s1199_s10, %s12671_s30  ;;  %p12680_p0 = scmp.lt.s32.totalorder %s12671_s30, %s12671_s30 }
  0xcf   : > { %p12674_p11 = pnand %p12672_p10, %p13672_p8  ;;  %p12681_p2 = por %p12680_p0, %p12679_p13 }
  0xd1   : > { %p12675_p12 = pneg %p12674_p11 }
  0xd3   : > { %p12682_p5 = pnand %p12681_p2, %p12675_p12 }
  0xd5   : > { %12685 = shalt.err (!%p12682_p5)
}
  0xd6   : > { %12232 = dma.hbm_to_vmem [thread:$0]  (!%p13660_p6), %s15373_s13, 64, %s1199_s10, [#allocation18], %s15288_s1, %s15288_s1, %s15290_s8  }
  0xd7   : > { %s12686_s18 = scalar_lea.hbm %s15372_s17, 64 }
  0xd8   : > { %p12687_p7 = scmp.ne.s32.totalorder %s15372_s17, %s12686_s18  ;;  %p12693_p3 = scmp.lt.u32.totalorder %s12686_s18, %s15372_s17 }
  0xda   : > { %p12689_p4 = pnand %p12687_p7, %p13672_p8 }
  0xdc   : > { %p12690_p1 = pneg %p12689_p4 }
  0xde   : > { %p12695_p9 = pnand %p12693_p3, %p12690_p1 }
  0xe0   : > { %12698 = shalt.err (!%p12695_p9)
}
  0xe1   : > { %s12699_s30 = scalar_lea.vmem %s1228_s19, 64  ;;  %p12707_p13 = scmp.lt.s32.totalorder %s1228_s19, %s1228_s19 }
  0xe2   : > { %p12700_p10 = scmp.ne.s32.totalorder %s1228_s19, %s12699_s30  ;;  %p12708_p0 = scmp.lt.s32.totalorder %s12699_s30, %s12699_s30 }
  0xe4   : > { %p12702_p11 = pnand %p12700_p10, %p13672_p8  ;;  %p12709_p2 = por %p12708_p0, %p12707_p13 }
  0xe6   : > { %p12703_p12 = pneg %p12702_p11 }
  0xe8   : > { %p12710_p5 = pnand %p12709_p2, %p12703_p12 }
  0xea   : > { %12713 = shalt.err (!%p12710_p5)
}
  0xeb   : > { %12238 = dma.hbm_to_vmem [thread:$0]  (!%p13660_p6), %s15372_s17, 64, %s1228_s19, [#allocation21], %s15288_s1, %s15288_s1, %s15290_s8  }
  0xec   : > { %s13366_s28 = smov [#allocation23]   ;;  %s13367_s10 = smov [#allocation26]  }
  0xed   : > { %s1256_s11 = sshll.u32 %s13366_s28, 4  ;;  %s1282_s16 = sshll.u32 %s13367_s10, 4  ;;  %s1257_s11 = int_to_ptr.vmem [resolvable:$true] %s1256_s11  ;;  %s1283_s16 = int_to_ptr.vmem [resolvable:$true] %s1282_s16 }
  0xee   : > { %s12714_s18 = scalar_lea.hbm %s15375_s4, 2048 }
  0xef   : > { %p12715_p7 = scmp.ne.s32.totalorder %s15375_s4, %s12714_s18  ;;  %p12721_p3 = scmp.lt.u32.totalorder %s12714_s18, %s15375_s4 }
  0xf1   : > { %p12717_p4 = pnand %p12715_p7, %p13672_p8 }
  0xf3   : > { %p12718_p1 = pneg %p12717_p4 }
  0xf5   : > { %p12723_p9 = pnand %p12721_p3, %p12718_p1 }
  0xf7   : > { %12726 = shalt.err (!%p12723_p9)
}
  0xf8   : > { %s12727_s30 = scalar_lea.vmem %s1257_s11, 2048  ;;  %p12735_p13 = scmp.lt.s32.totalorder %s1257_s11, %s1257_s11 }
  0xf9   : > { %p12728_p10 = scmp.ne.s32.totalorder %s1257_s11, %s12727_s30  ;;  %p12736_p0 = scmp.lt.s32.totalorder %s12727_s30, %s12727_s30 }
  0xfb   : > { %p12730_p11 = pnand %p12728_p10, %p13672_p8  ;;  %p12737_p2 = por %p12736_p0, %p12735_p13 }
  0xfd   : > { %p12731_p12 = pneg %p12730_p11 }
  0xff   : > { %p12738_p5 = pnand %p12737_p2, %p12731_p12 }
 0x101   : > { %12741 = shalt.err (!%p12738_p5)
}
 0x102   : > { %s15383_s19 = smov 8   ;;  %s15384_s28 = smov 128  }
 0x103   : > { %12244 = dma.hbm_to_vmem [thread:$0]  (!%p13660_p6), %s15375_s4, 2048, %s1257_s11, [#allocation24], %s15384_s28, %s15384_s28, %s15383_s19  }
 0x104   : > { %s12742_s10 = scalar_lea.hbm %s15371_s20, 512 }
 0x105   : > { %p12743_p7 = scmp.ne.s32.totalorder %s15371_s20, %s12742_s10  ;;  %p12749_p3 = scmp.lt.u32.totalorder %s12742_s10, %s15371_s20 }
 0x107   : > { %p12745_p4 = pnand %p12743_p7, %p13672_p8 }
 0x109   : > { %p12746_p1 = pneg %p12745_p4 }
 0x10b   : > { %p12751_p9 = pnand %p12749_p3, %p12746_p1 }
 0x10d   : > { %12754 = shalt.err (!%p12751_p9)
}
 0x10e   : > { %s12755_s18 = scalar_lea.vmem %s1283_s16, 512  ;;  %p12763_p13 = scmp.lt.s32.totalorder %s1283_s16, %s1283_s16 }
 0x10f   : > { %p12756_p10 = scmp.ne.s32.totalorder %s1283_s16, %s12755_s18  ;;  %p12764_p0 = scmp.lt.s32.totalorder %s12755_s18, %s12755_s18 }
 0x111   : > { %p12758_p11 = pnand %p12756_p10, %p13672_p8  ;;  %p12765_p2 = por %p12764_p0, %p12763_p13 }
 0x113   : > { %p12759_p12 = pneg %p12758_p11 }
 0x115   : > { %p12766_p5 = pnand %p12765_p2, %p12759_p12 }
 0x117   : > { %12769 = shalt.err (!%p12766_p5)
}
 0x118   : > { %12250 = dma.hbm_to_vmem [thread:$0]  (!%p13660_p6), %s15371_s20, 512, %s1283_s16, [#allocation27], %s15384_s28, %s15384_s28, %s15383_s19  }
 0x119   : > { %s13368_s11 = smov [#allocation29]   ;;  %s13369_s10 = smov [#allocation32]  }
 0x11a   : > { %s1320_s30 = sshll.u32 %s13368_s11, 4  ;;  %s1347_s1 = sshll.u32 %s13369_s10, 4  ;;  %s1321_s30 = int_to_ptr.vmem [resolvable:$true] %s1320_s30  ;;  %s1348_s1 = int_to_ptr.vmem [resolvable:$true] %s1347_s1 }
 0x11b   : > { %s12770_s18 = scalar_lea.hbm %s15374_s5, 48 }
 0x11c   : > { %p12771_p7 = scmp.ne.s32.totalorder %s15374_s5, %s12770_s18  ;;  %p12777_p3 = scmp.lt.u32.totalorder %s12770_s18, %s15374_s5 }
 0x11e   : > { %p12773_p4 = pnand %p12771_p7, %p13672_p8 }
 0x120   : > { %p12774_p1 = pneg %p12773_p4 }
 0x122   : > { %p12779_p9 = pnand %p12777_p3, %p12774_p1 }
 0x124   : > { %12782 = shalt.err (!%p12779_p9)
}
 0x125   : > { %s12783_s8 = scalar_lea.vmem %s1321_s30, 48  ;;  %s12790_s16 = scalar_lea.vmem %s1321_s30, 64 }
 0x126   : > { %p12784_p10 = scmp.ne.s32.totalorder %s1321_s30, %s12783_s8  ;;  %p12791_p13 = scmp.lt.s32.totalorder %s1321_s30, %s1321_s30 }
 0x127   : > { %p12792_p0 = scmp.lt.s32.totalorder %s12790_s16, %s12783_s8 }
 0x128   : > { %p12786_p11 = pnand %p12784_p10, %p13672_p8 }
 0x129   : > { %p12793_p2 = por %p12792_p0, %p12791_p13 }
 0x12a   : > { %p12787_p12 = pneg %p12786_p11 }
 0x12c   : > { %p12794_p5 = pnand %p12793_p2, %p12787_p12 }
 0x12e   : > { %12797 = shalt.err (!%p12794_p5)
}
 0x12f   : > { %s15385_s11 = smov 1   ;;  %s15386_s10 = smov 16  }
 0x130   : > { %12256 = dma.hbm_to_vmem [thread:$0]  (!%p13660_p6), %s15374_s5, 48, %s1321_s30, [#allocation30], %s15386_s10, %s15386_s10, %s15385_s11  }
 0x131   : > { %s12798_s18 = scalar_lea.hbm %s15370_s25, 16 }
 0x132   : > { %p12799_p7 = scmp.ne.s32.totalorder %s15370_s25, %s12798_s18  ;;  %p12805_p3 = scmp.lt.u32.totalorder %s12798_s18, %s15370_s25 }
 0x134   : > { %p12801_p4 = pnand %p12799_p7, %p13672_p8 }
 0x136   : > { %p12802_p1 = pneg %p12801_p4 }
 0x138   : > { %p12807_p9 = pnand %p12805_p3, %p12802_p1 }
 0x13a   : > { %12810 = shalt.err (!%p12807_p9)
}
 0x13b   : > { %s12811_s8 = scalar_lea.vmem %s1348_s1, 16  ;;  %s12818_s16 = scalar_lea.vmem %s1348_s1, 32 }
 0x13c   : > { %p12812_p10 = scmp.ne.s32.totalorder %s1348_s1, %s12811_s8  ;;  %p12819_p13 = scmp.lt.s32.totalorder %s1348_s1, %s1348_s1 }
 0x13d   : > { %p12820_p0 = scmp.lt.s32.totalorder %s12818_s16, %s12811_s8 }
 0x13e   : > { %p12814_p11 = pnand %p12812_p10, %p13672_p8 }
 0x13f   : > { %p12821_p2 = por %p12820_p0, %p12819_p13 }
 0x140   : > { %p12815_p12 = pneg %p12814_p11 }
 0x142   : > { %p12822_p5 = pnand %p12821_p2, %p12815_p12 }
 0x144   : > { %12825 = shalt.err (!%p12822_p5)
}
 0x145   : > { %12262 = dma.hbm_to_vmem [thread:$0]  (!%p13660_p6), %s15370_s25, 16, %s1348_s1, [#allocation33]  }
 0x146   : > { %s10018_s30 = sadd.s32 4294967294, %s13312_s26   ;;  %s13801_s18 = sadd.s32 1, %s13312_s26  }
 0x147   : > { %15387 = sst [smem:[#allocation94_spill]] %s13801_s18  ;;  %s256_s8 = sadd.s32 1, %s13308_s23 }
 0x148   : > { %s253_s16 = ssub.s32 %s13312_s26, %s13801_s18  ;;  %p263_p7 = scmp.ne.s32.totalorder %s13308_s23, %s13304_s0 }
 0x149   : > { %p254_p4 = scmp.eq.s32.totalorder %s253_s16, 0  ;;  %p264_p1 = scmp.eq.s32.totalorder %s13312_s26, 0 }
 0x14a   : > { %p269_p3 = scmp.ne.s32.totalorder %s13304_s0, %s13300_s22  ;;  %p1064_p9 = scmp.eq.s32.totalorder %s13644_s2, 1 }
 0x14b   : > { %s13813_s4 = scalar_select %p254_p4, %s13308_s23, %s256_s8  }
 0x14c   : > { %p265_p10 = por %p264_p1, %p263_p7  ;;  %p15389_p11 = scmp.eq.s32.totalorder %s13644_s2, 0 }
 0x14d   : > { %15388 = sst [smem:[#allocation95_spill]] %s13813_s4  ;;  %p13821_p13 = por %p1064_p9, %p263_p7 }
 0x14e   : > { %p13817_p12 = por %p15389_p11, %p269_p3  ;;  %p1070_p0 = scmp.eq.s32.totalorder %s10018_s30, 1 }
 0x14f   : > { %s15391_s5 = scalar_select %p13821_p13, 1, 0 }
 0x150   : > { %s15390_s1 = scalar_select %p13817_p12, 1, 0 }
 0x151   : > { %15392 = sst [smem:[#allocation96_spill]] %s15391_s5  ;;  %p12304_p2 = scmp.lt.s32.totalorder %s13312_s26, 2 }
 0x152   : > { %s13827_s16 = sand.u32 1, %s13308_s23   ;;  %p13829_p5 = por %p1070_p0, %p269_p3 }
 0x153   : > { %s13834_s13 = sshll.u32 %s13312_s26, 4  ;;  %p13836_p4 = pnand %p12304_p2, %p265_p10 }
 0x154   : > { %s15393_s8 = scalar_select %p13829_p5, 1, 0 }
 0x155   : > { %s15395_s17 = scalar_select %p13836_p4, 1, 0 }
 0x156   : > { %15394 = sst [smem:[#allocation97_spill]] %s15393_s8  ;;  %s15309_s20 = sand.u32 1, %s13312_s26  }
 0x157   : > { %s13843_s30 = scalar_lea.hbm %s15368_s29, %s13834_s13  ;;  %s1448_s25 = scalar_lea.vmem [#allocation5], %s13827_s16 }
 0x158   : > { %s1455_s27 = sshll.u32 %s1448_s25, 4  ;;  %s13850_s4 = scalar_lea.sflag [#allocation6], %s15309_s20  ;;  %s13846_s27 = int_to_ptr.vmem [resolvable:$true] %s1455_s27 }
 0x159   : > { %s12826_s23 = scalar_lea.hbm %s13843_s30, 16  ;;  %p13856_p1 = pneg %p13836_p4 }
 0x15a   : > { %p12827_p7 = scmp.ne.s32.totalorder %s13843_s30, %s12826_s23  ;;  %s12831_s8 = scalar_lea.hbm %s15368_s29, 32 }
 0x15b   : > { %s15396_s18 = scalar_select %p13856_p1, 1, 0 }
 0x15c   : > { %p12829_p3 = pnand %p13856_p1, %p12827_p7  ;;  %p12832_p10 = scmp.lt.u32.totalorder %s13843_s30, %s15368_s29 }
 0x15d   : > { %p12833_p11 = scmp.lt.u32.totalorder %s12831_s8, %s12826_s23  ;;  %p12835_p2 = scmp.lt.u32.totalorder %s12826_s23, %s13843_s30 }
 0x15e   : > { %p12830_p9 = pneg %p12829_p3 }
 0x15f   : > { %p12834_p0 = por %p12833_p11, %p12832_p10 }
 0x161   : > { %p12836_p5 = por %p12835_p2, %p12834_p0 }
 0x163   : > { %p12837_p13 = pnand %p12836_p5, %p12830_p9 }
 0x165   : > { %12840 = shalt.err (!%p12837_p13)
}
 0x166   : > { %s12841_s25 = scalar_lea.vmem %s13846_s27, 16  ;;  %s13370_s20 = smov [#allocation5]  }
 0x167   : > { %p12842_p12 = scmp.ne.s32.totalorder %s13846_s27, %s12841_s25  ;;  %s12846_s22 = sshll.u32 %s13370_s20, 4  ;;  %s12847_s22 = int_to_ptr.vmem [resolvable:$false] %s12846_s22 }
 0x168   : > { %s12848_s5 = scalar_lea.vmem %s12847_s22, 32  ;;  %p12849_p7 = scmp.lt.s32.totalorder %s13846_s27, %s12847_s22 }
 0x169   : > { %p12844_p6 = pnand %p12842_p12, %p13856_p1  ;;  %p12850_p3 = scmp.lt.s32.totalorder %s12848_s5, %s12841_s25 }
 0x16b   : > { %p12845_p8 = pneg %p12844_p6  ;;  %p12851_p10 = por %p12850_p3, %p12849_p7 }
 0x16d   : > { %p12852_p11 = pnand %p12851_p10, %p12845_p8 }
 0x16f   : > { %12855 = shalt.err (!%p12852_p11)
}
 0x170   : > { %12275 = dma.hbm_to_vmem [thread:$0]  (!%p13836_p4), %s13843_s30, 16, %s13846_s27, %s13850_s4  }
 0x171   : > { %s13371_s23 = smov [#allocation13]   ;;  %s13372_s20 = smov [#allocation16]  }
 0x172   : > { %s1150_s8 = sshll.u32 %s13371_s23, 4  ;;  %s1182_s29 = sshll.u32 %s13372_s20, 4  ;;  %s1151_s8 = int_to_ptr.vmem [resolvable:$true] %s1150_s8  ;;  %s1183_s29 = int_to_ptr.vmem [resolvable:$true] %s1182_s29 }
 0x173   : > { %s12856_s22 = scalar_lea.hbm %s13476_s12, 64  ;;  %p15397_p12 = scmp.ne.s32.totalorder %s15382_s3, 0 }
 0x174   : > { %p12857_p6 = scmp.ne.s32.totalorder %s13476_s12, %s12856_s22  ;;  %p12863_p5 = scmp.lt.u32.totalorder %s12856_s22, %s13476_s12 }
 0x176   : > { %p12859_p8 = pnand %p12857_p6, %p15397_p12 }
 0x178   : > { %p12860_p13 = pneg %p12859_p8 }
 0x17a   : > { %p12865_p9 = pnand %p12863_p5, %p12860_p13 }
 0x17c   : > { %12868 = shalt.err (!%p12865_p9)
}
 0x17d   : > { %s12869_s5 = scalar_lea.vmem %s1151_s8, 64  ;;  %p12877_p3 = scmp.lt.s32.totalorder %s1151_s8, %s1151_s8 }
 0x17e   : > { %p12870_p0 = scmp.ne.s32.totalorder %s1151_s8, %s12869_s5  ;;  %p12878_p10 = scmp.lt.s32.totalorder %s12869_s5, %s12869_s5 }
 0x180   : > { %p12872_p2 = pnand %p12870_p0, %p15397_p12  ;;  %p12879_p11 = por %p12878_p10, %p12877_p3 }
 0x182   : > { %p12873_p7 = pneg %p12872_p2 }
 0x184   : > { %p12880_p4 = pnand %p12879_p11, %p12873_p7 }
 0x186   : > { %12883 = shalt.err (!%p12880_p4)
}
 0x187   : > { %p15398_p1 = scmp.ne.s32.totalorder %s15381_s15, 0  ;;  %s12884_s27 = scalar_lea.hbm %s13496_s21, 64 }
 0x188   : > { %p12885_p6 = scmp.ne.s32.totalorder %s13496_s21, %s12884_s27  ;;  %p12891_p5 = scmp.lt.u32.totalorder %s12884_s27, %s13496_s21 }
 0x189   : > { %12223 = dma.hbm_to_vmem [thread:$0]  (!%p15398_p1), %s13476_s12, 64, %s1151_s8, [#allocation12], %s15386_s10, %s15386_s10, %s15385_s11  }
 0x18a   : > { %p12887_p8 = pnand %p12885_p6, %p15397_p12 }
 0x18c   : > { %p12888_p13 = pneg %p12887_p8 }
 0x18e   : > { %p12893_p9 = pnand %p12891_p5, %p12888_p13 }
 0x190   : > { %12896 = shalt.err (!%p12893_p9)
}
 0x191   : > { %s12897_s30 = scalar_lea.vmem %s1183_s29, 64  ;;  %p12905_p7 = scmp.lt.s32.totalorder %s1183_s29, %s1183_s29 }
 0x192   : > { %p12898_p4 = scmp.ne.s32.totalorder %s1183_s29, %s12897_s30  ;;  %p12906_p3 = scmp.lt.s32.totalorder %s12897_s30, %s12897_s30 }
 0x194   : > { %p12900_p0 = pnand %p12898_p4, %p15397_p12  ;;  %p12907_p10 = por %p12906_p3, %p12905_p7 }
 0x196   : > { %p12901_p2 = pneg %p12900_p0 }
 0x198   : > { %p12908_p11 = pnand %p12907_p10, %p12901_p2 }
 0x19a   : > { %12911 = shalt.err (!%p12908_p11)
}
 0x19b   : > { %12229 = dma.hbm_to_vmem [thread:$0]  (!%p15398_p1), %s13496_s21, 64, %s1183_s29, [#allocation15], %s15386_s10, %s15386_s10, %s15385_s11  }
 0x19c   : > { %s13373_s25 = smov [#allocation19]   ;;  %s12912_s8 = scalar_lea.hbm %s15366_s9, 256 }
 0x19d   : > { %s1211_s23 = sshll.u32 %s13373_s25, 4  ;;  %p12913_p6 = scmp.ne.s32.totalorder %s15366_s9, %s12912_s8  ;;  %s1212_s23 = int_to_ptr.vmem [resolvable:$true] %s1211_s23 }
 0x19e   : > { %p12919_p5 = scmp.lt.u32.totalorder %s12912_s8, %s15366_s9 }
 0x19f   : > { %p12915_p8 = pnand %p12913_p6, %p15397_p12 }
 0x1a1   : > { %p12916_p13 = pneg %p12915_p8 }
 0x1a3   : > { %p12921_p9 = pnand %p12919_p5, %p12916_p13 }
 0x1a5   : > { %12924 = shalt.err (!%p12921_p9)
}
 0x1a6   : > { %s12925_s20 = scalar_lea.vmem %s1212_s23, 256  ;;  %p12933_p7 = scmp.lt.s32.totalorder %s1212_s23, %s1212_s23 }
 0x1a7   : > { %p12926_p4 = scmp.ne.s32.totalorder %s1212_s23, %s12925_s20  ;;  %p12934_p3 = scmp.lt.s32.totalorder %s12925_s20, %s12925_s20 }
 0x1a9   : > { %p12928_p0 = pnand %p12926_p4, %p15397_p12  ;;  %p12935_p10 = por %p12934_p3, %p12933_p7 }
 0x1ab   : > { %p12929_p2 = pneg %p12928_p0 }
 0x1ad   : > { %p12936_p11 = pnand %p12935_p10, %p12929_p2 }
 0x1af   : > { %12939 = shalt.err (!%p12936_p11)
}
 0x1b0   : > { %s13374_s29 = smov 64   ;;  %s13375_s22 = smov 4  }
 0x1b1   : > { %12235 = dma.hbm_to_vmem [thread:$0]  (!%p15398_p1), %s15366_s9, 256, %s1212_s23, [#allocation18], %s13374_s29, %s13374_s29, %s13375_s22  }
 0x1b2   : > { %s13376_s5 = smov [#allocation22]   ;;  %s13377_s30 = smov [#allocation25]  }
 0x1b3   : > { %s1243_s27 = sshll.u32 %s13376_s5, 4  ;;  %s1269_s25 = sshll.u32 %s13377_s30, 4  ;;  %s1244_s27 = int_to_ptr.vmem [resolvable:$true] %s1243_s27  ;;  %s13912_s25 = int_to_ptr.vmem [resolvable:$true] %s1269_s25 }
 0x1b4   : > { %s12940_s8 = scalar_lea.hbm %s15367_s6, 64 }
 0x1b5   : > { %p12941_p6 = scmp.ne.s32.totalorder %s15367_s6, %s12940_s8  ;;  %p12947_p5 = scmp.lt.u32.totalorder %s12940_s8, %s15367_s6 }
 0x1b7   : > { %p12943_p8 = pnand %p12941_p6, %p15397_p12 }
 0x1b9   : > { %p12944_p13 = pneg %p12943_p8 }
 0x1bb   : > { %p12949_p9 = pnand %p12947_p5, %p12944_p13 }
 0x1bd   : > { %12952 = shalt.err (!%p12949_p9)
}
 0x1be   : > { %s12953_s20 = scalar_lea.vmem %s1244_s27, 64  ;;  %p12961_p7 = scmp.lt.s32.totalorder %s1244_s27, %s1244_s27 }
 0x1bf   : > { %p12954_p4 = scmp.ne.s32.totalorder %s1244_s27, %s12953_s20  ;;  %p12962_p3 = scmp.lt.s32.totalorder %s12953_s20, %s12953_s20 }
 0x1c1   : > { %p12956_p0 = pnand %p12954_p4, %p15397_p12  ;;  %p12963_p10 = por %p12962_p3, %p12961_p7 }
 0x1c3   : > { %p12957_p2 = pneg %p12956_p0 }
 0x1c5   : > { %p12964_p11 = pnand %p12963_p10, %p12957_p2 }
 0x1c7   : > { %12967 = shalt.err (!%p12964_p11)
}
 0x1c8   : > { %s15399_s23 = sld [smem:[#allocation77_spill]] }
 0x1c9   : > { %12241 = dma.hbm_to_vmem [thread:$0]  (!%p15398_p1), %s15367_s6, 64, %s1244_s27, [#allocation21], %s15386_s10, %s15386_s10, %s15385_s11  }
 0x1ce   : > { %s15400_s29 = smov %s15399_s23  ;;  %s12968_s22 = scalar_lea.hbm %s15399_s23, 64 }
 0x1cf   : > { %p12969_p6 = scmp.ne.s32.totalorder %s15400_s29, %s12968_s22  ;;  %p12975_p5 = scmp.lt.u32.totalorder %s12968_s22, %s15400_s29 }
 0x1d1   : > { %p12971_p8 = pnand %p12969_p6, %p15397_p12 }
 0x1d3   : > { %p12972_p13 = pneg %p12971_p8 }
 0x1d5   : > { %p12977_p9 = pnand %p12975_p5, %p12972_p13 }
 0x1d7   : > { %12980 = shalt.err (!%p12977_p9)
}
 0x1d8   : > { %s12981_s5 = scalar_lea.vmem %s13912_s25, 64  ;;  %p12989_p7 = scmp.lt.s32.totalorder %s13912_s25, %s13912_s25 }
 0x1d9   : > { %p12982_p4 = scmp.ne.s32.totalorder %s13912_s25, %s12981_s5  ;;  %p12990_p3 = scmp.lt.s32.totalorder %s12981_s5, %s12981_s5 }
 0x1db   : > { %p12984_p0 = pnand %p12982_p4, %p15397_p12  ;;  %p12991_p10 = por %p12990_p3, %p12989_p7 }
 0x1dd   : > { %p12985_p2 = pneg %p12984_p0 }
 0x1df   : > { %p12992_p11 = pnand %p12991_p10, %p12985_p2 }
 0x1e1   : > { %12995 = shalt.err (!%p12992_p11)
}
 0x1e2   : > { %s15401_s27 = sld [smem:[#allocation82_spill]]  ;;  %s13378_s30 = smov [#allocation28]  }
 0x1e3   : > { %12247 = dma.hbm_to_vmem [thread:$0]  (!%p15398_p1), %s15400_s29, 64, %s13912_s25, [#allocation24], %s15386_s10, %s15386_s10, %s15385_s11  }
 0x1e4   : > { %s1304_s8 = sshll.u32 %s13378_s30, 4  ;;  %s1305_s8 = int_to_ptr.vmem [resolvable:$true] %s1304_s8 }
 0x1e8   : > { %s12996_s20 = scalar_lea.hbm %s15401_s27, 160 }
 0x1e9   : > { %p12997_p6 = scmp.ne.s32.totalorder %s15401_s27, %s12996_s20  ;;  %p13003_p5 = scmp.lt.u32.totalorder %s12996_s20, %s15401_s27 }
 0x1eb   : > { %p12999_p8 = pnand %p12997_p6, %p15397_p12 }
 0x1ed   : > { %p13000_p13 = pneg %p12999_p8 }
 0x1ef   : > { %p13005_p9 = pnand %p13003_p5, %p13000_p13 }
 0x1f1   : > { %13008 = shalt.err (!%p13005_p9)
}
 0x1f2   : > { %s13009_s23 = scalar_lea.vmem %s1305_s8, 160  ;;  %p13017_p7 = scmp.lt.s32.totalorder %s1305_s8, %s1305_s8 }
 0x1f3   : > { %p13010_p4 = scmp.ne.s32.totalorder %s1305_s8, %s13009_s23  ;;  %p13018_p3 = scmp.lt.s32.totalorder %s13009_s23, %s13009_s23 }
 0x1f5   : > { %p13012_p0 = pnand %p13010_p4, %p15397_p12  ;;  %p13019_p10 = por %p13018_p3, %p13017_p7 }
 0x1f7   : > { %p13013_p2 = pneg %p13012_p0 }
 0x1f9   : > { %p13020_p11 = pnand %p13019_p10, %p13013_p2 }
 0x1fb   : > { %13023 = shalt.err (!%p13020_p11)
}
 0x1fc   : > { %s13379_s11 = smov 32   ;;  %s15402_s10 = sld [smem:[#allocation85_spill]] }
 0x1fd   : > { %s13380_s25 = smov 2   ;;  %s13381_s22 = smov [#allocation31]  }
 0x1fe   : > { %12253 = dma.hbm_to_vmem [thread:$0]  (!%p15398_p1), %s15401_s27, 160, %s1305_s8, [#allocation27], %s13379_s11, %s13379_s11, %s13380_s25  }
 0x1ff   : > { %s1333_s5 = sshll.u32 %s13381_s22, 4  ;;  %s13382_s30 = smov [#allocation34]   ;;  %s1334_s5 = int_to_ptr.vmem [resolvable:$true] %s1333_s5 }
 0x200   : > { %s1357_s20 = sshll.u32 %s13382_s30, 4  ;;  %s1358_s20 = int_to_ptr.vmem [resolvable:$true] %s1357_s20 }
 0x202   : > { %s13024_s6 = scalar_lea.hbm %s15402_s10, 512 }
 0x203   : > { %p13025_p6 = scmp.ne.s32.totalorder %s15402_s10, %s13024_s6  ;;  %p13031_p5 = scmp.lt.u32.totalorder %s13024_s6, %s15402_s10 }
 0x205   : > { %p13027_p8 = pnand %p13025_p6, %p15397_p12 }
 0x207   : > { %p13028_p13 = pneg %p13027_p8 }
 0x209   : > { %p13033_p9 = pnand %p13031_p5, %p13028_p13 }
 0x20b   : > { %13036 = shalt.err (!%p13033_p9)
}
 0x20c   : > { %s13037_s23 = scalar_lea.vmem %s1334_s5, 512  ;;  %p13045_p7 = scmp.lt.s32.totalorder %s1334_s5, %s1334_s5 }
 0x20d   : > { %p13038_p4 = scmp.ne.s32.totalorder %s1334_s5, %s13037_s23  ;;  %p13046_p3 = scmp.lt.s32.totalorder %s13037_s23, %s13037_s23 }
 0x20f   : > { %p13040_p0 = pnand %p13038_p4, %p15397_p12  ;;  %p13047_p10 = por %p13046_p3, %p13045_p7 }
 0x211   : > { %p13041_p2 = pneg %p13040_p0 }
 0x213   : > { %p13048_p11 = pnand %p13047_p10, %p13041_p2 }
 0x215   : > { %13051 = shalt.err (!%p13048_p11)
}
 0x216   : > { %s15403_s6 = sld [smem:[#allocation87_spill]] }
 0x217   : > { %12259 = dma.hbm_to_vmem [thread:$0]  (!%p15398_p1), %s15402_s10, 512, %s1334_s5, [#allocation30], %s15384_s28, %s15384_s28, %s15383_s19  }
 0x21c   : > { %s13052_s8 = scalar_lea.hbm %s15403_s6, 512 }
 0x21d   : > { %p13053_p6 = scmp.ne.s32.totalorder %s15403_s6, %s13052_s8  ;;  %p13059_p5 = scmp.lt.u32.totalorder %s13052_s8, %s15403_s6 }
 0x21f   : > { %p13055_p8 = pnand %p13053_p6, %p15397_p12 }
 0x221   : > { %p13056_p13 = pneg %p13055_p8 }
 0x223   : > { %p13061_p9 = pnand %p13059_p5, %p13056_p13 }
 0x225   : > { %13064 = shalt.err (!%p13061_p9)
}
 0x226   : > { %s13065_s11 = scalar_lea.vmem %s1358_s20, 512  ;;  %p13073_p7 = scmp.lt.s32.totalorder %s1358_s20, %s1358_s20 }
 0x227   : > { %p13066_p4 = scmp.ne.s32.totalorder %s1358_s20, %s13065_s11  ;;  %p13074_p3 = scmp.lt.s32.totalorder %s13065_s11, %s13065_s11 }
 0x229   : > { %p13068_p0 = pnand %p13066_p4, %p15397_p12  ;;  %p13075_p10 = por %p13074_p3, %p13073_p7 }
 0x22b   : > { %p13069_p2 = pneg %p13068_p0 }
 0x22d   : > { %p13076_p11 = pnand %p13075_p10, %p13069_p2 }
 0x22f   : > { %13079 = shalt.err (!%p13076_p11)
}
 0x230   : > { %s15404_s25 = sld [smem:[#allocation88_spill]]  ;;  %s13383_s22 = smov [#allocation35]  }
 0x231   : > { %12265 = dma.hbm_to_vmem [thread:$0]  (!%p15398_p1), %s15403_s6, 512, %s1358_s20, [#allocation33], %s15384_s28, %s15384_s28, %s15383_s19  }
 0x232   : > { %s1371_s5 = sshll.u32 %s13383_s22, 4  ;;  %s1372_s5 = int_to_ptr.vmem [resolvable:$true] %s1371_s5 }
 0x236   : > { %s13080_s30 = scalar_lea.hbm %s15404_s25, 16 }
 0x237   : > { %p13081_p6 = scmp.ne.s32.totalorder %s15404_s25, %s13080_s30  ;;  %p13087_p5 = scmp.lt.u32.totalorder %s13080_s30, %s15404_s25 }
 0x239   : > { %p13083_p8 = pnand %p13081_p6, %p15397_p12 }
 0x23b   : > { %p13084_p13 = pneg %p13083_p8 }
 0x23d   : > { %p13089_p9 = pnand %p13087_p5, %p13084_p13 }
 0x23f   : > { %13092 = shalt.err (!%p13089_p9)
}
 0x240   : > { %s13093_s23 = scalar_lea.vmem %s1372_s5, 16  ;;  %s13100_s8 = scalar_lea.vmem %s1372_s5, 32 }
 0x241   : > { %p13094_p4 = scmp.ne.s32.totalorder %s1372_s5, %s13093_s23  ;;  %p13101_p7 = scmp.lt.s32.totalorder %s1372_s5, %s1372_s5 }
 0x242   : > { %p13102_p3 = scmp.lt.s32.totalorder %s13100_s8, %s13093_s23 }
 0x243   : > { %p13096_p0 = pnand %p13094_p4, %p15397_p12 }
 0x244   : > { %p13103_p10 = por %p13102_p3, %p13101_p7 }
 0x245   : > { %p13097_p2 = pneg %p13096_p0 }
 0x247   : > { %p13104_p11 = pnand %p13103_p10, %p13097_p2 }
 0x249   : > { %13107 = shalt.err (!%p13104_p11)
}
 0x24a   : > { %s15405_s19 = sld [smem:[#allocation57_spill]]  ;;  %s1431_s28 = scalar_lea.vmem [#allocation2], %s13827_s16 }
 0x24b   : > { %12268 = dma.hbm_to_vmem [thread:$0]  (!%p15398_p1), %s15404_s25, 16, %s1372_s5, [#allocation36]  }
 0x24c   : > { %s1438_s20 = sshll.u32 %s1431_s28, 4  ;;  %s1429_s11 = scalar_lea.sflag [#allocation3], %s13827_s16  ;;  %s1439_s20 = int_to_ptr.vmem [resolvable:$true] %s1438_s20 }
 0x24d   : > { %p15406_p6 = scmp.ne.s32.totalorder %s15396_s18, 0 }
 0x250   : > { %s13993_s3 = scalar_lea.hbm %s15405_s19, %s13834_s13  ;;  %s13113_s22 = scalar_lea.hbm %s15405_s19, 32 }
 0x251   : > { %s13108_s15 = scalar_lea.hbm %s13993_s3, 16  ;;  %p13114_p5 = scmp.lt.u32.totalorder %s13993_s3, %s15405_s19 }
 0x252   : > { %p13109_p12 = scmp.ne.s32.totalorder %s13993_s3, %s13108_s15  ;;  %p13115_p9 = scmp.lt.u32.totalorder %s13113_s22, %s13108_s15 }
 0x253   : > { %p13117_p1 = scmp.lt.u32.totalorder %s13108_s15, %s13993_s3 }
 0x254   : > { %p13111_p8 = pnand %p13109_p12, %p15406_p6  ;;  %p13116_p4 = por %p13115_p9, %p13114_p5 }
 0x256   : > { %p13112_p13 = pneg %p13111_p8  ;;  %p13118_p0 = por %p13117_p1, %p13116_p4 }
 0x258   : > { %p13119_p2 = pnand %p13118_p0, %p13112_p13 }
 0x25a   : > { %13122 = shalt.err (!%p13119_p2)
}
 0x25b   : > { %s13123_s5 = scalar_lea.vmem %s1439_s20, 16  ;;  %s13384_s30 = smov [#allocation2]  }
 0x25c   : > { %p13124_p7 = scmp.ne.s32.totalorder %s1439_s20, %s13123_s5  ;;  %s13128_s23 = sshll.u32 %s13384_s30, 4  ;;  %s13129_s23 = int_to_ptr.vmem [resolvable:$false] %s13128_s23 }
 0x25d   : > { %s13130_s8 = scalar_lea.vmem %s13129_s23, 32  ;;  %p13131_p11 = scmp.lt.s32.totalorder %s1439_s20, %s13129_s23 }
 0x25e   : > { %p13126_p3 = pnand %p13124_p7, %p15406_p6  ;;  %p13132_p12 = scmp.lt.s32.totalorder %s13130_s8, %s13123_s5 }
 0x260   : > { %p13127_p10 = pneg %p13126_p3  ;;  %p13133_p8 = por %p13132_p12, %p13131_p11 }
 0x262   : > { %p13134_p5 = pnand %p13133_p8, %p13127_p10 }
 0x264   : > { %13137 = shalt.err (!%p13134_p5)
}
 0x265   : > { %p15407_p9 = scmp.ne.s32.totalorder %s15395_s17, 0  ;;  %s15408_s28 = sld [smem:[#allocation59_spill]] }
 0x266   : > { %s1465_s22 = scalar_lea.vmem [#allocation7], %s13827_s16 }
 0x267   : > { %12272 = dma.hbm_to_vmem [thread:$0]  (!%p15407_p9), %s13993_s3, 16, %s1439_s20, %s1429_s11  }
 0x268   : > { %s1472_s5 = sshll.u32 %s1465_s22, 4  ;;  %s1473_s5 = int_to_ptr.vmem [resolvable:$true] %s1472_s5 }
 0x26b   : > { %s14012_s15 = scalar_lea.hbm %s15408_s28, %s13834_s13  ;;  %s13143_s23 = scalar_lea.hbm %s15408_s28, 32 }
 0x26c   : > { %s13138_s30 = scalar_lea.hbm %s14012_s15, 16  ;;  %p13144_p0 = scmp.lt.u32.totalorder %s14012_s15, %s15408_s28 }
 0x26d   : > { %p13139_p13 = scmp.ne.s32.totalorder %s14012_s15, %s13138_s30  ;;  %p13145_p2 = scmp.lt.u32.totalorder %s13143_s23, %s13138_s30 }
 0x26e   : > { %p13147_p3 = scmp.lt.u32.totalorder %s13138_s30, %s14012_s15 }
 0x26f   : > { %p13141_p4 = pnand %p13139_p13, %p15406_p6  ;;  %p13146_p7 = por %p13145_p2, %p13144_p0 }
 0x271   : > { %p13142_p1 = pneg %p13141_p4  ;;  %p13148_p10 = por %p13147_p3, %p13146_p7 }
 0x273   : > { %p13149_p11 = pnand %p13148_p10, %p13142_p1 }
 0x275   : > { %13152 = shalt.err (!%p13149_p11)
}
 0x276   : > { %s13153_s3 = scalar_lea.vmem %s1473_s5, 16  ;;  %s13385_s20 = smov [#allocation7]  }
 0x277   : > { %p13154_p12 = scmp.ne.s32.totalorder %s1473_s5, %s13153_s3  ;;  %s13158_s11 = sshll.u32 %s13385_s20, 4  ;;  %s13159_s11 = int_to_ptr.vmem [resolvable:$false] %s13158_s11 }
 0x278   : > { %s13160_s8 = scalar_lea.vmem %s13159_s11, 32  ;;  %p13161_p13 = scmp.lt.s32.totalorder %s1473_s5, %s13159_s11 }
 0x279   : > { %p13156_p8 = pnand %p13154_p12, %p15406_p6  ;;  %p13162_p4 = scmp.lt.s32.totalorder %s13160_s8, %s13153_s3 }
 0x27b   : > { %p13157_p5 = pneg %p13156_p8  ;;  %p13163_p9 = por %p13162_p4, %p13161_p13 }
 0x27d   : > { %p13164_p0 = pnand %p13163_p9, %p13157_p5 }
 0x27f   : > { %13167 = shalt.err (!%p13164_p0)
}
 0x280   : > { %p15409_p2 = scmp.ne.s32.totalorder %s15395_s17, 0  ;;  %s15410_s22 = sld [smem:[#allocation60_spill]] }
 0x281   : > { %s1482_s3 = scalar_lea.vmem [#allocation8], %s13827_s16  ;;  %s15412_s11 = sand.u32 1, %s13312_s26  }
 0x282   : > { %12278 = dma.hbm_to_vmem [thread:$0]  (!%p15409_p2), %s14012_s15, 16, %s1473_s5, %s13850_s4  }
 0x283   : > { %s1489_s20 = sshll.u32 %s1482_s3, 4  ;;  %s1480_s8 = scalar_lea.sflag [#allocation9], %s15412_s11  ;;  %s1490_s20 = int_to_ptr.vmem [resolvable:$true] %s1489_s20 }
 0x286   : > { %s15411_s30 = smov %s15410_s22  ;;  %s14031_s23 = scalar_lea.hbm %s15410_s22, %s13834_s13 }
 0x287   : > { %s13168_s6 = scalar_lea.hbm %s14031_s23, 16  ;;  %s13173_s9 = scalar_lea.hbm %s15411_s30, 32 }
 0x288   : > { %p13169_p9 = scmp.ne.s32.totalorder %s14031_s23, %s13168_s6  ;;  %p13174_p3 = scmp.lt.u32.totalorder %s14031_s23, %s15411_s30 }
 0x289   : > { %p13175_p10 = scmp.lt.u32.totalorder %s13173_s9, %s13168_s6  ;;  %p13177_p12 = scmp.lt.u32.totalorder %s13168_s6, %s14031_s23 }
 0x28a   : > { %p13171_p1 = pnand %p13169_p9, %p15406_p6 }
 0x28b   : > { %p13176_p11 = por %p13175_p10, %p13174_p3 }
 0x28c   : > { %p13172_p7 = pneg %p13171_p1 }
 0x28d   : > { %p13178_p8 = por %p13177_p12, %p13176_p11 }
 0x28f   : > { %p13179_p5 = pnand %p13178_p8, %p13172_p7 }
 0x291   : > { %13182 = shalt.err (!%p13179_p5)
}
 0x292   : > { %s13183_s13 = scalar_lea.vmem %s1490_s20, 16  ;;  %s13386_s4 = smov [#allocation8]  }
 0x293   : > { %p13184_p13 = scmp.ne.s32.totalorder %s1490_s20, %s13183_s13  ;;  %s13188_s16 = sshll.u32 %s13386_s4, 4  ;;  %s13189_s16 = int_to_ptr.vmem [resolvable:$false] %s13188_s16 }
 0x294   : > { %s13190_s15 = scalar_lea.vmem %s13189_s16, 32  ;;  %p13191_p9 = scmp.lt.s32.totalorder %s1490_s20, %s13189_s16 }
 0x295   : > { %p13186_p4 = pnand %p13184_p13, %p15406_p6  ;;  %p13192_p1 = scmp.lt.s32.totalorder %s13190_s15, %s13183_s13 }
 0x297   : > { %p13187_p0 = pneg %p13186_p4  ;;  %p13193_p2 = por %p13192_p1, %p13191_p9 }
 0x299   : > { %p13194_p3 = pnand %p13193_p2, %p13187_p0 }
 0x29b   : > { %13197 = shalt.err (!%p13194_p3)
}
 0x29c   : > { %p15413_p10 = scmp.ne.s32.totalorder %s15395_s17, 0  ;;  %p15414_p7 = scmp.ne.s32.totalorder %s15380_s7, 0 }
 0x29d   : > { %s14052_s9 = sand.u32 (!%p15414_p7), 1, %s13304_s0   ;;  %p15415_p6 = scmp.ne.s32.totalorder (!%p15414_p7), %s15390_s1, 0 }
 0x29e   : > { %12281 = dma.hbm_to_vmem [thread:$0]  (!%p15413_p10), %s14031_s23, 16, %s1490_s20, %s1480_s8  }
 0x29f   : > { %1498 = sbr.rel (%p15414_p7) target bundleno = 22393 (0x5779), region = 188  ;;  %s1501_s18 = scalar_lea.sflag (!%p15414_p7), [#allocation3], %s14052_s9 }
 0x2a0   : > { %s1503_s6 = scalar_lea.vmem (!%p15414_p7), [#allocation2], %s14052_s9 }
 0x2a6   : > { %13243 = dma.done.wait (%p15415_p6), %s1501_s18, 16  }
 0x2a7   : > { %13245 = vsyncadd (%p15415_p6), %s1501_s18, 4294967280  ;;  %s1508_s17 = sand.u32 1, %s13644_s2   ;;  %s1511_s7 = scalar_lea.vmem [#allocation5], %s14052_s9 }
 0x2a8   : > { %s1509_s5 = scalar_lea.sflag [#allocation6], %s1508_s17 }
 0x2a9   : > { %13247 = dma.done.wait (%p15415_p6), %s1509_s5, 32  }
 0x2aa   : > { %13249 = vsyncadd (%p15415_p6), %s1509_s5, 4294967264  ;;  %s1519_s22 = scalar_lea.vmem [#allocation7], %s14052_s9  ;;  %s1525_s23 = scalar_lea.sflag [#allocation9], %s1508_s17 }
 0x2ab   : > { %s1527_s3 = scalar_lea.vmem [#allocation8], %s14052_s9 }
 0x2ac   : > { %13251 = dma.done.wait (%p15415_p6), %s1525_s23, 16  }
 0x2ad   : > { %13253 = vsyncadd (%p15415_p6), %s1525_s23, 4294967280  ;;  %p15416_p2 = scmp.eq.s32.totalorder %s13644_s2, 0 }
 0x2af   : > { %13255 = dma.done.wait (%p15416_p2), [#allocation9], 256   ;;  %p15417_p11 = pmov %p15416_p2 }
 0x2b0   : > { %p15418_p12 = pmov %p15416_p2 }
 0x2b1   : > { %13257 = vsyncadd (%p15417_p11), [#allocation9], 4294967040 }
 0x2b2   : > { %13259 = dma.done.wait (%p15418_p12), [#allocation12], 128   ;;  %p15419_p8 = pmov %p15416_p2 }
 0x2b3   : > { %p15420_p5 = pmov %p15416_p2 }
 0x2b4   : > { %13261 = vsyncadd (%p15419_p8), [#allocation12], 4294967168 }
 0x2b5   : > { %13263 = dma.done.wait (%p15420_p5), [#allocation15], 128   ;;  %p15421_p13 = pmov %p15416_p2 }
 0x2b6   : > { %p15422_p4 = pmov %p15416_p2 }
 0x2b7   : > { %13265 = vsyncadd (%p15421_p13), [#allocation15], 4294967168 }
 0x2b8   : > { %13267 = dma.done.wait (%p15422_p4), [#allocation18], 320   ;;  %p15423_p0 = pmov %p15416_p2 }
 0x2ba   : > { %13269 = vsyncadd (%p15423_p0), [#allocation18], 4294966976  ;;  %p15424_p9 = pmov %p15423_p0 }
 0x2bb   : > { %p15425_p1 = pmov %p15423_p0 }
 0x2bc   : > { %13271 = dma.done.wait (%p15424_p9), [#allocation21], 128  }
 0x2bd   : > { %13273 = vsyncadd (%p15425_p1), [#allocation21], 4294967168  ;;  %p15426_p3 = pmov %p15423_p0 }
 0x2be   : > { %p15427_p10 = pmov %p15423_p0 }
 0x2bf   : > { %13275 = dma.done.wait (%p15426_p3), [#allocation24], 2112  }
 0x2c0   : > { %13277 = vsyncadd (%p15427_p10), [#allocation24], 4294965184  ;;  %p15428_p7 = pmov %p15423_p0 }
 0x2c1   : > { %p15429_p6 = pmov %p15423_p0 }
 0x2c2   : > { %13279 = dma.done.wait (%p15428_p7), [#allocation27], 672  }
 0x2c3   : > { %13281 = vsyncadd (%p15429_p6), [#allocation27], 4294966624  ;;  %p15430_p2 = pmov %p15423_p0 }
 0x2c4   : > { %p15431_p11 = pmov %p15423_p0 }
 0x2c5   : > { %13283 = dma.done.wait (%p15430_p2), [#allocation30], 560  }
 0x2c6   : > { %13285 = vsyncadd (%p15431_p11), [#allocation30], 4294966736  ;;  %p15432_p12 = pmov %p15423_p0 }
 0x2c7   : > { %p15433_p8 = pmov %p15423_p0 }
 0x2c8   : > { %13287 = dma.done.wait (%p15432_p12), [#allocation33], 528  }
 0x2c9   : > { %13289 = vsyncadd (%p15433_p8), [#allocation33], 4294966768  ;;  %p15434_p5 = pmov %p15423_p0 }
 0x2ca   : > { %p15435_p13 = pmov %p15423_p0 }
 0x2cb   : > { %13291 = dma.done.wait (%p15434_p5), [#allocation36], 16  }
 0x2cc   : > { %13293 = vsyncadd (%p15435_p13), [#allocation36], 4294967280  ;;  %s15436_s1 = sld [smem:[#allocation52_spill]]  ;;  %s15437_s20 = sld [smem:[#allocation61_spill]]  ;;  %v13387_v0 = vmov 0   ;;  %v1781_v18 = vlaneseq  ;;  %vm1795_vm0 = vcmask 523264  }
 0x2cd   : > { %p1739_p4 = scmp.lt.s32.totalorder %s13644_s2, 1  ;;  %12435 = vset.pattern.permute.xlu0 %v13387_v0  ;;  %12446 = vset.pattern.permute.xlu1 %v13387_v0  ;;  %s15438_s4 = sld [smem:[#allocation63_spill]]  ;;  %v13388_v21 = vmov 0.0   ;;  %v14169_v33 = vld [vmem:[#allocation10] sm:$0xff]  ;;  %v1774_v35 = vld [vmem:[#allocation10 + $0x8] sm:$0xff]  ;;  %vm1903_vm3 = vcmask 261120  }
 0x2ce   : > { %v14150_v19 = vand.u32 127, %v1781_v18  ;;  %s15439_s16 = sld [smem:[#allocation65_spill]]  ;;  %v14191_v42 = vld [vmem:[#allocation11] ss:$0 sm:$0xff]  ;;  %v14195_v46 = vld [vmem:[#allocation13] ss:$0 sm:$0xff]  ;;  %vm14201_vm4 = vmpackc.low %vm1903_vm3, %vm1903_vm3 }
 0x2cf   : > { %s14116_s11 = scalar_select %p1739_p4, %s13644_s2, 1  ;;  %v1775_v55 = vld [vmem:[%s1503_s6] sm:$0x1]  ;;  %v14213_v56 = vshrl.u32 %v1781_v18, 7  ;;  %vm2164_vm7 = vcmask 130048   ;;  %vm13391_vm8 = vmmov 0  }
 0x2d0   : > { %vm2155_vm5 = vcmp.gt.f32.partialorder %v1775_v55, 0.0  ;;  %s15444_s15 = sld [smem:[#allocation66_spill]]  ;;  %s13389_s18 = smov 96   ;;  %vm3694_vm12 = vcmask 64512  }
 0x2d1   : > { %s10365_s8 = sshll.u32 %s14116_s11, 4  ;;  %v14216_v57 = vsub.s32 0, %v14213_v56  ;;  %v2156_v58 = vsel %vm2155_vm5, 1, %v13387_v0  ;;  %s15445_s6 = sld [smem:[#allocation68_spill]] }
 0x2d2   : > { %s1743_s13 = scalar_lea.vmem %s15436_s1, %s10365_s8  ;;  %v1765_v2 = vld [vmem:[%s15437_s20] sm:$0xff]  ;;  %v1766_v3 = vld [vmem:[%s15437_s20 + $0x8] sm:$0xff]  ;;  %v1767_v4 = vld [vmem:[%s15437_s20 + $0x10] sm:$0xff]  ;;  %s15446_s17 = sld [smem:[#allocation69_spill]] }
 0x2d3   : > { %v1779_v1 = vld [vmem:[%s1743_s13] sm:$0xff]  ;;  %v1768_v5 = vld [vmem:[%s15437_s20 + $0x18] sm:$0xff]  ;;  %v1780_v6 = vld [vmem:[%s1743_s13 + $0x8] sm:$0xff]  ;;  %v14124_v7 = vpack.c.bf16 %v1766_v3, %v1765_v2  ;;  %v2160_v59 = vrot.slane %v2156_v58, %v14216_v57  ;;  %s15447_s5 = sld [smem:[#allocation53_spill]]  ;;  %s14394_s23 = sshll.u32 %s14116_s11, 3 }
 0x2d4   : > { %1784 = vperm.xlu0 %12435, %v1779_v1   ;;  %v14126_v8 = vpack.c.bf16 %v1768_v5, %v1767_v4  ;;  %v1769_v9 = vld [vmem:[%s15437_s20 + $0x20] sm:$0xff]  ;;  %v1770_v10 = vld [vmem:[%s15437_s20 + $0x28] sm:$0xff]  ;;  %v1771_v12 = vld [vmem:[%s15437_s20 + $0x30] sm:$0xff] }
 0x2d5   : > { %11658 = vmatprep.subr.bf16.mxu0 %v14124_v7  ;;  %v14133_v11 = vpack.c.bf16 %v1770_v10, %v1769_v9  ;;  %v1772_v13 = vld [vmem:[%s15437_s20 + $0x38] sm:$0xff]  ;;  %v1882_v14 = vld [vmem:[%s15438_s4] sm:$0xff]  ;;  %v1883_v15 = vld [vmem:[%s15438_s4 + $0x8] sm:$0xff]  ;;  %vm14220_vm6 = vcmp.eq.s32.totalorder %v2160_v59, 1 }
 0x2d6   : > { %11660 = vmatpush3.bf16.msra.mxu0 %v14124_v7  ;;  %v14139_v16 = vpack.c.bf16 %v1883_v15, %v1882_v14  ;;  %v14143_v17 = vpack.c.bf16 %v1772_v13, %v1771_v12  ;;  %v1884_v25 = vld [vmem:[%s15438_s4 + $0x10] sm:$0xff]  ;;  %v1885_v26 = vld [vmem:[%s15438_s4 + $0x18] sm:$0xff]  ;;  %v1887_v28 = vld [vmem:[%s15439_s16] sm:$0xff] }
 0x2d7   : > { %11662 = vmatprep.subr.bf16.mxu0 %v14126_v8  ;;  %v14160_v27 = vpack.c.bf16 %v1885_v26, %v1884_v25  ;;  %v1888_v29 = vld [vmem:[%s15439_s16 + $0x8] sm:$0xff]  ;;  %v1889_v37 = vld [vmem:[%s15439_s16 + $0x10] sm:$0xff]  ;;  %v1890_v38 = vld [vmem:[%s15439_s16 + $0x18] sm:$0xff] }
 0x2d8   : > { %1787 = vperm.xlu0 %12435, %v1780_v6   ;;  %11674 = vmatprep.subr.bf16.mxu1 %v14139_v16  ;;  %v14166_v30 = vpack.c.bf16 %v1888_v29, %v1887_v28  ;;  %v14178_v41 = vpack.c.bf16 %v1890_v38, %v1889_v37  ;;  %v1892_v26 = vld [vmem:[%s15444_s15] sm:$0xff]  ;;  %v1893_v28 = vld [vmem:[%s15444_s15 + $0x8] sm:$0xff]  ;;  %v1894_v37 = vld [vmem:[%s15444_s15 + $0x10] sm:$0xff] }
 0x2d9   : > { %11676 = vmatpush3.bf16.msra.mxu1 %v14139_v16  ;;  %v1895_v38 = vld [vmem:[%s15444_s15 + $0x18] sm:$0xff]  ;;  %s1747_s1 = scalar_lea.vmem %s15447_s5, %s14394_s23  ;;  %s15454_s5 = sld [smem:[#allocation74_spill]] }
 0x2da   : > { %11664 = vmatpush3.bf16.msra.mxu0 %v14126_v8  ;;  %11678 = vmatprep.subr.bf16.mxu1 %v14160_v27 }
 0x2db   : > { %11666 = vmatprep.subr.bf16.mxu0 %v14133_v11 }
 0x2dd   : > { %11680 = vmatpush3.bf16.msra.mxu1 %v14160_v27 }
 0x2de   : > { %11668 = vmatpush3.bf16.msra.mxu0 %v14133_v11  ;;  %11682 = vmatprep.subr.bf16.mxu1 %v14166_v30 }
 0x2df   : > { %11670 = vmatprep.subr.bf16.mxu0 %v14143_v17 }
 0x2e2   : > { %11672 = vmatpush3.bf16.msra.mxu0 %v14143_v17 }
 0x353   : > { %v1785_v20 = vpop.permute.xlu0 %1784 }
 0x354   : > { %vm1789_vm1 = vcmp.eq.s32.totalorder %v14150_v19, %v1785_v20 }
 0x355   : > { %v10071_v22 = vsel %vm1789_vm1, 1.0, %v13388_v21 }
 0x356   : > { %10795 = vmatprep.mubr.msk.f32.mxu0 %vm1795_vm0, %v10071_v22 }
 0x357   : > { %v1788_v23 = vpop.permute.xlu0 %1787 }
 0x358   : > { %vm1790_vm2 = vcmp.eq.s32.totalorder %v14150_v19, %v1788_v23 }
 0x359   : > { %v10072_v24 = vsel %vm1790_vm2, 1.0, %v13388_v21  ;;  %vm6061_vm2 = vcmp.ge.s32.totalorder %v14213_v56, %v14150_v19 }
 0x35a   : > { %10796 = vmatmul.mubr.msk.f32.vlgmr.msra.gmra.mrb[0].mxu0 %vm1795_vm0, %v10072_v24 }
 0x42d   : > { %v10797_v31 = vpop.f32.mrb[0].mxu0 }
 0x42e   : > { %v1878_v32 = vmul.f32 5.656854, %v10797_v31  ;;  %v1868_v34 = vpop.f32.mrb[1].mxu0 }
 0x42f   : > { %v1877_v36 = vmul.f32 5.656854, %v1868_v34 }
 0x430   : > { %v14176_v40 = vadd.f32 %v1878_v32, %v1774_v35  ;;  %v14235_v35 = vpack.c.bf16 %v1893_v28, %v1892_v26  ;;  %v2500_v26 = vld [vmem:[%s15446_s17 + $0x20] sm:$0xff]  ;;  %v2501_v28 = vld [vmem:[%s15446_s17 + $0x28] sm:$0xff] }
 0x431   : > { %v14174_v39 = vadd.f32 %v1877_v36, %v14169_v33 }
 0x433   : > { %10806 = vmatprep.mubr.msk.f32.mxu1 %vm1903_vm3, %v14174_v39 }
 0x434   : > { %10807 = vmatmul.mubr.msk.f32.vlgmr.msra.gmra.mrb[0].mxu1 %vm1903_vm3, %v14176_v40 }
 0x435   : > { %11684 = vmatpush3.bf16.msra.mxu1 %v14166_v30  ;;  %10817 = vmatprep.mubr.msk.f32.mxu1 %vm1903_vm3, %v14174_v39 }
 0x436   : > { %11686 = vmatprep.subr.bf16.mxu1 %v14178_v41 }
 0x439   : > { %11688 = vmatpush3.bf16.msra.mxu1 %v14178_v41 }
 0x43c   : > { %10818 = vmatmul.mubr.msk.f32.vlgmr.msra.gmra.mrb[2].mxu1 %vm1903_vm3, %v14176_v40 }
 0x507   : > { %v10808_v43 = vpop.f32.mrb[0].mxu1 }
 0x508   : > { %v1976_v44 = vpop.f32.mrb[1].mxu1  ;;  %v1982_v54 = vadd.f32 %v10808_v43, %v14191_v42 }
 0x509   : > { %v1977_v45 = vadd.f32 %v14191_v42, %v1976_v44 }
 0x50b   : > { %10824 = vmatprep.mubr.msk.f32.mxu0 %vm1903_vm3, %v1977_v45  ;;  %v14241_v45 = vpack.c.bf16 %v1895_v38, %v1894_v37 }
 0x50f   : > { %v10819_v47 = vpop.f32.mrb[2].mxu1 }
 0x510   : > { %v2063_v48 = vadd.f32 %v10819_v47, %v14195_v46  ;;  %v2057_v49 = vpop.f32.mrb[3].mxu1 }
 0x511   : > { %v2058_v50 = vadd.f32 %v14195_v46, %v2057_v49  ;;  %v14249_v49 = vld [vmem:[#allocation14] ss:$0 sm:$0xff] }
 0x513   : > { %v12436_v52 = vpack.i.bf16 %v2063_v48, %v2058_v50  ;;  %v11689_v53 = vpack.c.bf16 %v2063_v48, %v2058_v50 }
 0x515   : > { %11691 = vmatprep.subr.msk.bf16.mxu0 %vm14201_vm4, %v11689_v53 }
 0x516   : > { %11694 = vmatpush3.bf16.xpose.msk.msra.mxu0 %vm14201_vm4, %v11689_v53 }
 0x51d   : > { %10825 = vmatmul.mubr.msk.f32.vlgmr.msra.gmra.mrb[2].mxu0 %vm1903_vm3, %v1982_v54 }
 0x5f0   : > { %v10826_v60 = vpop.f32.mrb[2].mxu0 }
 0x5f1   : > { %v2144_v61 = vpop.f32.mrb[3].mxu0  ;;  %v2154_v63 = vmul.f32 0.17677669, %v10826_v60 }
 0x5f2   : > { %v2153_v1 = vmul.f32 0.17677669, %v2144_v61 }
 0x5f3   : > { %v2163_v4 = vsel %vm14220_vm6, %v2154_v63, -1e+09 }
 0x5f4   : > { %v2162_v2 = vsel %vm14220_vm6, %v2153_v1, -1e+09  ;;  %v2168_v5 = vsel %vm2164_vm7, %v2163_v4, -inf }
 0x5f5   : > { %v2165_v3 = vsel %vm2164_vm7, %v2162_v2, -inf }
 0x5f6   : > { %2166 = vmax.xlane.f32.xlu1 %v2165_v3 }
 0x5fa   : > { %2169 = vmax.xlane.f32.xlu1 %v2168_v5 }
 0x683   : > { %v2167_v6 = vpop.xlane.xlu1 %2166 }
 0x684   : > { %v2171_v9 = vsub.f32 %v2162_v2, %v2167_v6 }
 0x686   : > { %v2173_v10 = vmul.f32 1.442695, %v2171_v9  ;;  %v2402_v9 = vld [vmem:[%s15445_s6] sm:$0xff] }
 0x687   : > { %v2170_v12 = vpop.xlane.xlu1 %2169 }
 0x688   : > { %12455 = vpow2.f32 %v2173_v10  ;;  %v2172_v13 = vsub.f32 %v2163_v4, %v2170_v12  ;;  %v2403_v10 = vld [vmem:[%s15445_s6 + $0x8] sm:$0xff] }
 0x689   : > { %v14261_v12 = vpack.c.bf16 %v2403_v10, %v2402_v9  ;;  %v14320_v9 = vld [vmem:[#allocation17] ss:$0 sm:$0xff] }
 0x68a   : > { %v2175_v14 = vmul.f32 1.442695, %v2172_v13  ;;  %v2404_v13 = vld [vmem:[%s15445_s6 + $0x10] sm:$0xff] }
 0x68b   : > { %11708 = vmatprep.subr.bf16.mxu0 %v14261_v12 }
 0x68c   : > { %12457 = vpow2.f32 %v2175_v14  ;;  %11710 = vmatpush3.bf16.msra.mxu0 %v14261_v12  ;;  %v2405_v14 = vld [vmem:[%s15445_s6 + $0x18] sm:$0xff] }
 0x692   : > { %v12456_v15 = vpop.eup %12455 }
 0x693   : > { %v2177_v18 = vsel %vm2164_vm7, %v12456_v15, 0.0 }
 0x694   : > { %2178 = vadd.xlane.f32.xlu0 %v2177_v18  ;;  %v2496_v18 = vld [vmem:[%s15446_s17] sm:$0xff] }
 0x696   : > { %v12458_v20 = vpop.eup %12457 }
 0x697   : > { %v2180_v22 = vsel %vm2164_vm7, %v12458_v20, 0.0 }
 0x698   : > { %2181 = vadd.xlane.f32.xlu1 %v2180_v22  ;;  %v2498_v22 = vld [vmem:[%s15446_s17 + $0x10] sm:$0xff] }
 0x6a9   : > { %12437 = vrot.lane.b32.xlu1 %v12436_v52, %s13389_s18 }
 0x721   : > { %v2179_v23 = vpop.xlane.xlu0 %2178 }
 0x722   : > { %12459 = vrcp.f32 %v2179_v23 }
 0x725   : > { %v2182_v24 = vpop.xlane.xlu1 %2181 }
 0x726   : > { %12461 = vrcp.f32 %v2182_v24  ;;  %v2499_v24 = vld [vmem:[%s15446_s17 + $0x18] sm:$0xff] }
 0x729   : > { %v12438_v25 = vpop.permute.xlu1 %12437 }
 0x72a   : > { %v12440_v29 = vunpack.i.h.bf16 %v12438_v25  ;;  %v12439_v31 = vunpack.i.l.bf16 %v12438_v25  ;;  %v14277_v25 = vpack.c.bf16 %v2499_v24, %v2498_v22 }
 0x72c   : > { %v12460_v32 = vpop.eup %12459  ;;  %v11695_v34 = vpack.c.bf16 %v12440_v29, %v12439_v31  ;;  %v14284_v29 = vpack.c.bf16 %v2501_v28, %v2500_v26 }
 0x72d   : > { %v2185_v36 = vmul.f32 %v12460_v32, %v12456_v15  ;;  %v14267_v15 = vpack.c.bf16 %v2405_v14, %v2404_v13 }
 0x72e   : > { %11696 = vmatprep.subr.bf16.mxu1 %v11695_v34 }
 0x72f   : > { %11698 = vmatpush3.bf16.msra.mxu1 %v11695_v34  ;;  %10831 = vmatprep.mubr.msk.f32.mxu1 %vm2164_vm7, %v2185_v36 }
 0x730   : > { %v12462_v43 = vpop.eup %12461  ;;  %11700 = vmatprep.subr.bf16.mxu1 %v14235_v35  ;;  %11712 = vmatprep.subr.bf16.mxu0 %v14267_v15 }
 0x731   : > { %v2186_v44 = vmul.f32 %v12462_v43, %v12458_v20  ;;  %11714 = vmatpush3.bf16.msra.mxu0 %v14267_v15  ;;  %v2497_v20 = vld [vmem:[%s15446_s17 + $0x8] sm:$0xff] }
 0x732   : > { %v14274_v23 = vpack.c.bf16 %v2497_v20, %v2496_v18  ;;  %v14289_v43 = vld [vmem:[#allocation19] sm:$0xf] }
 0x733   : > { %10832 = vmatmul.mubr.msk.f32.vlgmr.msra.gmra.mrb[4].mxu1 %vm2164_vm7, %v2186_v44  ;;  %v14292_v44 = vsub.s32 1, %v14213_v56 }
 0x734   : > { %11702 = vmatpush3.bf16.msra.mxu1 %v14235_v35 }
 0x735   : > { %11704 = vmatprep.subr.bf16.mxu1 %v14241_v45 }
 0x738   : > { %11706 = vmatpush3.bf16.msra.mxu1 %v14241_v45 }
 0x739   : > { %11716 = vmatprep.subr.bf16.mxu1 %v14274_v23 }
 0x806   : > { %v10833_v47 = vpop.f32.mrb[4].mxu1 }
 0x807   : > { %v2265_v48 = vpop.f32.mrb[5].mxu1 }
 0x808   : > { %10842 = vmatprep.mubr.msk.f32.mxu1 %vm1903_vm3, %v2265_v48 }
 0x809   : > { %10843 = vmatmul.mubr.msk.f32.vlgmr.msra.gmra.mrb[6].mxu1 %vm1903_vm3, %v10833_v47  ;;  %v14296_v47 = vrot.slane %v14289_v43, %v14216_v57 }
 0x80a   : > { %11718 = vmatpush3.bf16.msra.mxu1 %v14274_v23 }
 0x80b   : > { %11720 = vmatprep.subr.bf16.mxu1 %v14277_v25 }
 0x80e   : > { %11722 = vmatpush3.bf16.msra.mxu1 %v14277_v25 }
 0x80f   : > { %11724 = vmatprep.subr.bf16.mxu1 %v14284_v29 }
 0x812   : > { %11726 = vmatpush3.bf16.msra.mxu1 %v14284_v29 }
 0x8dc   : > { %v10844_v50 = vpop.f32.mrb[6].mxu1 }
 0x8dd   : > { %v2358_v52 = vadd.f32 %v10844_v50, %v14249_v49  ;;  %v2352_v53 = vpop.f32.mrb[7].mxu1 }
 0x8de   : > { %v2353_v54 = vadd.f32 %v14249_v49, %v2352_v53 }
 0x8df   : > { %v2362_v55 = vadd.f32 %v2358_v52, %v14176_v40  ;;  %v14300_v52 = vrot.slane %v14289_v43, %v14292_v44 }
 0x8e0   : > { %v2361_v58 = vadd.f32 %v2353_v54, %v14174_v39 }
 0x8e1   : > { %v2366_v59 = vsel %vm1903_vm3, %v2362_v55, 0.0 }
 0x8e2   : > { %2367 = vadd.xlane.f32.xlu0 %v2366_v59  ;;  %v2363_v60 = vsel %vm1903_vm3, %v2361_v58, 0.0 }
 0x8e3   : > { %2364 = vadd.xlane.f32.xlu1 %v2363_v60 }
 0x96f   : > { %v2368_v61 = vpop.xlane.xlu0 %2367 }
 0x970   : > { %v2371_v63 = vmul.f32 0.03125, %v2368_v61  ;;  %v2365_v1 = vpop.xlane.xlu1 %2364  ;;  %v2502_v61 = vld [vmem:[%s15446_s17 + $0x30] sm:$0xff] }
 0x971   : > { %v2370_v2 = vmul.f32 0.03125, %v2365_v1 }
 0x972   : > { %v2373_v3 = vsub.f32 %v2362_v55, %v2371_v63  ;;  %v2503_v63 = vld [vmem:[%s15446_s17 + $0x38] sm:$0xff] }
 0x973   : > { %v2372_v4 = vsub.f32 %v2361_v58, %v2370_v2  ;;  %v14310_v1 = vpack.c.bf16 %v2503_v63, %v2502_v61  ;;  %v14314_v2 = vld [vmem:[#allocation16] ss:$0 sm:$0xff] }
 0x974   : > { %v2375_v40 = vmul.f32 %v2373_v3, %v2373_v3  ;;  %v10100_v63 = vld [vmem:[%s15439_s16 + $0x20] sm:$0xff] }
 0x975   : > { %v2374_v5 = vmul.f32 %v2372_v4, %v2372_v4  ;;  %11728 = vmatprep.subr.bf16.mxu1 %v14310_v1 }
 0x976   : > { %v2379_v6 = vsel %vm1903_vm3, %v2375_v40, 0.0  ;;  %11730 = vmatpush3.bf16.msra.mxu1 %v14310_v1 }
 0x977   : > { %v2376_v39 = vsel %vm1903_vm3, %v2374_v5, 0.0 }
 0x978   : > { %2377 = vadd.xlane.f32.xlu0 %v2376_v39 }
 0x97c   : > { %2380 = vadd.xlane.f32.xlu0 %v2379_v6 }
 0xa05   : > { %v2378_v31 = vpop.xlane.xlu0 %2377 }
 0xa06   : > { %v2382_v32 = vmul.f32 0.03125, %v2378_v31 }
 0xa08   : > { %v2384_v34 = vadd.f32 1e-06, %v2382_v32 }
 0xa09   : > { %v2381_v36 = vpop.xlane.xlu0 %2380 }
 0xa0a   : > { %12463 = vrsqrt.f32 %v2384_v34  ;;  %v2383_v37 = vmul.f32 0.03125, %v2381_v36 }
 0xa0c   : > { %v2385_v38 = vadd.f32 1e-06, %v2383_v37 }
 0xa0e   : > { %12465 = vrsqrt.f32 %v2385_v38 }
 0xa14   : > { %v12464_v48 = vpop.eup %12463 }
 0xa15   : > { %v2388_v50 = vmul.f32 %v12464_v48, %v2372_v4 }
 0xa17   : > { %v2394_v53 = vmul.f32 %v14296_v47, %v2388_v50 }
 0xa18   : > { %v12466_v54 = vpop.eup %12465 }
 0xa19   : > { %v2389_v55 = vmul.f32 %v12466_v54, %v2373_v3  ;;  %v2400_v58 = vadd.f32 %v14300_v52, %v2394_v53  ;;  %v10096_v54 = vld [vmem:[%s15438_s4 + $0x20] sm:$0xff] }
 0xa1b   : > { %10853 = vmatprep.mubr.msk.f32.mxu0 %vm1903_vm3, %v2400_v58  ;;  %v2395_v59 = vmul.f32 %v14296_v47, %v2389_v55  ;;  %v10097_v55 = vld [vmem:[%s15438_s4 + $0x28] sm:$0xff] }
 0xa1d   : > { %v2401_v60 = vadd.f32 %v14300_v52, %v2395_v59  ;;  %v10098_v59 = vld [vmem:[%s15438_s4 + $0x30] sm:$0xff] }
 0xa1f   : > { %10854 = vmatmul.mubr.msk.f32.vlgmr.msra.gmra.mrb[4].mxu0 %vm1903_vm3, %v2401_v60 }
 0xaf2   : > { %v10855_v3 = vpop.f32.mrb[4].mxu0 }
 0xaf3   : > { %v2491_v4 = vadd.f32 %v10855_v3, %v14314_v2  ;;  %v2485_v5 = vpop.f32.mrb[5].mxu0  ;;  %v10101_v3 = vld [vmem:[%s15439_s16 + $0x28] sm:$0xff] }
 0xaf4   : > { %v2486_v39 = vadd.f32 %v14314_v2, %v2485_v5 }
 0xaf5   : > { %v2495_v6 = vmax.f32 %v2491_v4, 0.0  ;;  %v11739_v4 = vpack.c.bf16 %v10101_v3, %v10100_v63 }
 0xaf6   : > { %v2494_v40 = vmax.f32 %v2486_v39, 0.0 }
 0xaf8   : > { %10872 = vmatprep.mubr.msk.f32.mxu1 %vm1795_vm0, %v2494_v40 }
 0xaf9   : > { %10873 = vmatmul.mubr.msk.f32.vlgmr.msra.gmra.mrb[8].mxu1 %vm1795_vm0, %v2495_v6 }
 0xbcc   : > { %v10874_v10 = vpop.f32.mrb[8].mxu1 }
 0xbcd   : > { %v2583_v13 = vpop.f32.mrb[9].mxu1  ;;  %v2589_v14 = vadd.f32 %v10874_v10, %v14320_v9 }
 0xbce   : > { %v2584_v18 = vadd.f32 %v14320_v9, %v2583_v13 }
 0xbcf   : > { %v2593_v24 = vadd.f32 %v2589_v14, %v2401_v60  ;;  %v10099_v60 = vld [vmem:[%s15438_s4 + $0x38] sm:$0xff]  ;;  %v14335_v14 = vsub.s32 2, %v14213_v56 }
 0xbd0   : > { %v2592_v20 = vadd.f32 %v2584_v18, %v2400_v58  ;;  %v11731_v58 = vpack.c.bf16 %v10097_v55, %v10096_v54  ;;  %v11735_v61 = vpack.c.bf16 %v10099_v60, %v10098_v59  ;;  %v14338_v18 = vsub.s32 3, %v14213_v56 }
 0xbd1   : > { %v2597_v26 = vsel %vm1903_vm3, %v2593_v24, 0.0 }
 0xbd2   : > { %v2594_v22 = vsel %vm1903_vm3, %v2592_v20, 0.0  ;;  %11732 = vmatprep.subr.bf16.mxu0 %v11731_v58 }
 0xbd3   : > { %2595 = vadd.xlane.f32.xlu0 %v2594_v22  ;;  %11734 = vmatpush3.bf16.msra.mxu0 %v11731_v58  ;;  %v10111_v58 = vld [vmem:[#allocation13 + $0x1] ss:$0 sm:$0xff] }
 0xbd4   : > { %11736 = vmatprep.subr.bf16.mxu0 %v11735_v61 }
 0xbd7   : > { %2598 = vadd.xlane.f32.xlu0 %v2597_v26  ;;  %11738 = vmatpush3.bf16.msra.mxu0 %v11735_v61  ;;  %v14346_v26 = vrot.slane %v14289_v43, %v14338_v18 }
 0xbd8   : > { %11740 = vmatprep.subr.bf16.mxu0 %v11739_v4 }
 0xc60   : > { %v2596_v28 = vpop.xlane.xlu0 %2595 }
 0xc61   : > { %v2600_v31 = vmul.f32 0.03125, %v2596_v28 }
 0xc63   : > { %v2602_v32 = vsub.f32 %v2592_v20, %v2600_v31  ;;  %v14342_v20 = vrot.slane %v14289_v43, %v14335_v14  ;;  %v10108_v43 = vld [vmem:[#allocation11 + $0x1] ss:$0 sm:$0xff] }
 0xc64   : > { %v2599_v34 = vpop.xlane.xlu0 %2598 }
 0xc65   : > { %v2601_v36 = vmul.f32 0.03125, %v2599_v34  ;;  %v2604_v37 = vmul.f32 %v2602_v32, %v2602_v32 }
 0xc67   : > { %v2603_v38 = vsub.f32 %v2593_v24, %v2601_v36  ;;  %v2606_v48 = vsel %vm1903_vm3, %v2604_v37, 0.0  ;;  %v10102_v37 = vld [vmem:[%s15439_s16 + $0x30] sm:$0xff] }
 0xc68   : > { %2607 = vadd.xlane.f32.xlu0 %v2606_v48  ;;  %v10103_v48 = vld [vmem:[%s15439_s16 + $0x38] sm:$0xff] }
 0xc69   : > { %v2605_v50 = vmul.f32 %v2603_v38, %v2603_v38 }
 0xc6b   : > { %v2609_v53 = vsel %vm1903_vm3, %v2605_v50, 0.0 }
 0xc6c   : > { %2610 = vadd.xlane.f32.xlu0 %v2609_v53  ;;  %v11743_v53 = vpack.c.bf16 %v10103_v48, %v10102_v37 }
 0xcf5   : > { %v2608_v5 = vpop.xlane.xlu0 %2607 }
 0xcf6   : > { %v2612_v39 = vmul.f32 0.03125, %v2608_v5 }
 0xcf8   : > { %v2614_v40 = vadd.f32 1e-06, %v2612_v39 }
 0xcf9   : > { %v2611_v6 = vpop.xlane.xlu0 %2610 }
 0xcfa   : > { %12467 = vrsqrt.f32 %v2614_v40  ;;  %v2613_v10 = vmul.f32 0.03125, %v2611_v6 }
 0xcfc   : > { %v2615_v13 = vadd.f32 1e-06, %v2613_v10 }
 0xcfe   : > { %12469 = vrsqrt.f32 %v2615_v13 }
 0xd04   : > { %v12468_v22 = vpop.eup %12467 }
 0xd05   : > { %v2618_v24 = vmul.f32 %v12468_v22, %v2602_v32 }
 0xd07   : > { %v2624_v28 = vmul.f32 %v14342_v20, %v2618_v24 }
 0xd08   : > { %v12470_v31 = vpop.eup %12469 }
 0xd09   : > { %v2619_v34 = vmul.f32 %v12470_v31, %v2603_v38  ;;  %v14350_v36 = vadd.f32 %v14346_v26, %v2624_v28 }
 0xd0b   : > { %10883 = vmatprep.mubr.msk.f32.mxu0 %vm1903_vm3, %v14350_v36  ;;  %v2625_v50 = vmul.f32 %v14342_v20, %v2619_v34 }
 0xd0d   : > { %v14358_v32 = vadd.f32 %v14346_v26, %v2625_v50 }
 0xd0f   : > { %10884 = vmatmul.mubr.msk.f32.vlgmr.msra.gmra.mrb[6].mxu0 %vm1903_vm3, %v14358_v32 }
 0xd10   : > { %11742 = vmatpush3.bf16.msra.mxu0 %v11739_v4  ;;  %10894 = vmatprep.mubr.msk.f32.mxu0 %vm1903_vm3, %v14350_v36 }
 0xd11   : > { %11744 = vmatprep.subr.bf16.mxu0 %v11743_v53 }
 0xd14   : > { %11746 = vmatpush3.bf16.msra.mxu0 %v11743_v53 }
 0xd17   : > { %10895 = vmatmul.mubr.msk.f32.vlgmr.msra.gmra.mrb[8].mxu0 %vm1903_vm3, %v14358_v32 }
 0xde2   : > { %v10885_v38 = vpop.f32.mrb[6].mxu0 }
 0xde3   : > { %v2733_v54 = vpop.f32.mrb[7].mxu0  ;;  %v2739_v5 = vadd.f32 %v10885_v38, %v10108_v43 }
 0xde4   : > { %v2734_v55 = vadd.f32 %v10108_v43, %v2733_v54 }
 0xde6   : > { %10901 = vmatprep.mubr.msk.f32.mxu1 %vm1903_vm3, %v2734_v55 }
 0xdea   : > { %v10896_v59 = vpop.f32.mrb[8].mxu0 }
 0xdeb   : > { %v2820_v60 = vadd.f32 %v10896_v59, %v10111_v58  ;;  %v2814_v61 = vpop.f32.mrb[9].mxu0 }
 0xdec   : > { %v2815_v63 = vadd.f32 %v10111_v58, %v2814_v61  ;;  %v10104_v61 = vld [vmem:[%s15444_s15 + $0x20] sm:$0xff] }
 0xdee   : > { %v12441_v3 = vpack.i.bf16 %v2820_v60, %v2815_v63  ;;  %v11747_v4 = vpack.c.bf16 %v2820_v60, %v2815_v63  ;;  %v10105_v63 = vld [vmem:[%s15444_s15 + $0x28] sm:$0xff] }
 0xdf0   : > { %11749 = vmatprep.subr.msk.bf16.mxu1 %vm14201_vm4, %v11747_v4 }
 0xdf1   : > { %11752 = vmatpush3.bf16.xpose.msk.msra.mxu1 %vm14201_vm4, %v11747_v4 }
 0xdf8   : > { %10902 = vmatmul.mubr.msk.f32.vlgmr.msra.gmra.mrb[10].mxu1 %vm1903_vm3, %v2739_v5 }
 0xecb   : > { %v10903_v39 = vpop.f32.mrb[10].mxu1 }
 0xecc   : > { %v2911_v40 = vmul.f32 0.17677669, %v10903_v39  ;;  %v2901_v6 = vpop.f32.mrb[11].mxu1 }
 0xecd   : > { %v2910_v10 = vmul.f32 0.17677669, %v2901_v6 }
 0xece   : > { %v2913_v13 = vsel %vm14220_vm6, %v2911_v40, -1e+09  ;;  %v11757_v40 = vpack.c.bf16 %v10105_v63, %v10104_v61 }
 0xecf   : > { %v2917_v22 = vsel %vm2164_vm7, %v2913_v13, -inf  ;;  %v2912_v24 = vsel %vm14220_vm6, %v2910_v10, -1e+09  ;;  %v10106_v10 = vld [vmem:[%s15444_s15 + $0x30] sm:$0xff] }
 0xed0   : > { %2918 = vmax.xlane.f32.xlu0 %v2917_v22  ;;  %v2914_v28 = vsel %vm2164_vm7, %v2912_v24, -inf }
 0xed1   : > { %2915 = vmax.xlane.f32.xlu1 %v2914_v28 }
 0xf5d   : > { %v2919_v31 = vpop.xlane.xlu0 %2918 }
 0xf5e   : > { %v2921_v34 = vsub.f32 %v2913_v13, %v2919_v31  ;;  %v2916_v37 = vpop.xlane.xlu1 %2915  ;;  %v10107_v13 = vld [vmem:[%s15444_s15 + $0x38] sm:$0xff] }
 0xf5f   : > { %v2920_v48 = vsub.f32 %v2912_v24, %v2916_v37  ;;  %v11761_v28 = vpack.c.bf16 %v10107_v13, %v10106_v10  ;;  %v10120_v37 = vld [vmem:[#allocation14 + $0x1] ss:$0 sm:$0xff]  ;;  %v10124_v13 = vld [vmem:[%s15445_s6 + $0x28] sm:$0xff] }
 0xf60   : > { %v2924_v50 = vmul.f32 1.442695, %v2921_v34  ;;  %v10123_v10 = vld [vmem:[%s15445_s6 + $0x20] sm:$0xff] }
 0xf61   : > { %v2922_v53 = vmul.f32 1.442695, %v2920_v48 }
 0xf62   : > { %12471 = vpow2.f32 %v2924_v50 }
 0xf63   : > { %12473 = vpow2.f32 %v2922_v53 }
 0xf6c   : > { %v12472_v43 = vpop.eup %12471 }
 0xf6d   : > { %v12474_v38 = vpop.eup %12473  ;;  %v2929_v54 = vsel %vm2164_vm7, %v12472_v43, 0.0 }
 0xf6e   : > { %2930 = vadd.xlane.f32.xlu0 %v2929_v54  ;;  %v2926_v55 = vsel %vm2164_vm7, %v12474_v38, 0.0 }
 0xf6f   : > { %2927 = vadd.xlane.f32.xlu1 %v2926_v55 }
 0xf80   : > { %12442 = vrot.lane.b32.xlu1 %v12441_v3, %s13389_s18 }
 0xffb   : > { %v2931_v58 = vpop.xlane.xlu0 %2930 }
 0xffc   : > { %12475 = vrcp.f32 %v2931_v58  ;;  %v2928_v59 = vpop.xlane.xlu1 %2927 }
 0xffd   : > { %12477 = vrcp.f32 %v2928_v59  ;;  %v3384_v59 = vld [vmem:[%s1747_s1] sm:$0xff]  ;;  %s15455_s1 = sld [smem:[#allocation72_spill]] }
 0xffe   : > { %3386 = vperm.xlu1 %12446, %v3384_v59  }
0x1000   : > { %v12443_v60 = vpop.permute.xlu1 %12442 }
0x1001   : > { %v12445_v4 = vunpack.i.h.bf16 %v12443_v60  ;;  %v12444_v5 = vunpack.i.l.bf16 %v12443_v60 }
0x1003   : > { %v11753_v39 = vpack.c.bf16 %v12445_v4, %v12444_v5 }
0x1005   : > { %11754 = vmatprep.subr.bf16.mxu0 %v11753_v39 }
0x1006   : > { %v12476_v6 = vpop.eup %12475  ;;  %11756 = vmatpush3.bf16.msra.mxu0 %v11753_v39 }
0x1007   : > { %v12478_v22 = vpop.eup %12477  ;;  %11758 = vmatprep.subr.bf16.mxu0 %v11757_v40  ;;  %v2935_v24 = vmul.f32 %v12476_v6, %v12472_v43 }
0x1008   : > { %v2934_v3 = vmul.f32 %v12478_v22, %v12474_v38  ;;  %v11765_v22 = vpack.c.bf16 %v10124_v13, %v10123_v10 }
0x100a   : > { %10908 = vmatprep.mubr.msk.f32.mxu0 %vm2164_vm7, %v2934_v3  ;;  %11766 = vmatprep.subr.bf16.mxu1 %v11765_v22  ;;  %v10125_v3 = vld [vmem:[%s15445_s6 + $0x30] sm:$0xff] }
0x100b   : > { %10909 = vmatmul.mubr.msk.f32.vlgmr.msra.gmra.mrb[10].mxu0 %vm2164_vm7, %v2935_v24  ;;  %11768 = vmatpush3.bf16.msra.mxu1 %v11765_v22  ;;  %v10126_v24 = vld [vmem:[%s15445_s6 + $0x38] sm:$0xff] }
0x100c   : > { %11760 = vmatpush3.bf16.msra.mxu0 %v11757_v40 }
0x100d   : > { %11762 = vmatprep.subr.bf16.mxu0 %v11761_v28 }
0x1010   : > { %11764 = vmatpush3.bf16.msra.mxu0 %v11761_v28  ;;  %v11769_v28 = vpack.c.bf16 %v10126_v24, %v10125_v3 }
0x1012   : > { %11770 = vmatprep.subr.bf16.mxu1 %v11769_v28 }
0x1013   : > { %11772 = vmatpush3.bf16.msra.mxu1 %v11769_v28 }
0x10de   : > { %v10910_v31 = vpop.f32.mrb[10].mxu0 }
0x10df   : > { %v3014_v34 = vpop.f32.mrb[11].mxu0 }
0x10e0   : > { %10919 = vmatprep.mubr.msk.f32.mxu0 %vm1903_vm3, %v3014_v34  ;;  %v10130_v34 = vld [vmem:[%s15446_s17 + $0x40] sm:$0xff] }
0x10e1   : > { %10920 = vmatmul.mubr.msk.f32.vlgmr.msra.gmra.mrb[12].mxu0 %vm1903_vm3, %v10910_v31  ;;  %v13390_v31 = vmov 0.0|0.0  }
0x10e2   : > { %11789 = vmatprep.subr.bf16.mxu1 %v13390_v31 }
0x11b4   : > { %v10921_v48 = vpop.f32.mrb[12].mxu0 }
0x11b5   : > { %v3101_v50 = vpop.f32.mrb[13].mxu0  ;;  %v3107_v53 = vadd.f32 %v10921_v48, %v10120_v37  ;;  %v10132_v48 = vld [vmem:[%s15446_s17 + $0x50] sm:$0xff] }
0x11b6   : > { %v3102_v43 = vadd.f32 %v10120_v37, %v3101_v50  ;;  %v10131_v37 = vld [vmem:[%s15446_s17 + $0x48] sm:$0xff] }
0x11b7   : > { %v3111_v55 = vadd.f32 %v3107_v53, %v14358_v32  ;;  %v11773_v50 = vpack.c.bf16 %v10131_v37, %v10130_v34  ;;  %v10133_v53 = vld [vmem:[%s15446_s17 + $0x58] sm:$0xff]  ;;  %v10136_v37 = vld [vmem:[%s15446_s17 + $0x70] sm:$0xff] }
0x11b8   : > { %v3110_v38 = vadd.f32 %v3102_v43, %v14350_v36  ;;  %v11777_v43 = vpack.c.bf16 %v10133_v53, %v10132_v48  ;;  %v10137_v48 = vld [vmem:[%s15446_s17 + $0x78] sm:$0xff]  ;;  %v10127_v53 = vld [vmem:[#allocation16 + $0x1] ss:$0 sm:$0xff] }
0x11b9   : > { %v3115_v58 = vsel %vm1903_vm3, %v3111_v55, 0.0  ;;  %11774 = vmatprep.subr.bf16.mxu0 %v11773_v50 }
0x11ba   : > { %v3112_v54 = vsel %vm1903_vm3, %v3110_v38, 0.0  ;;  %11776 = vmatpush3.bf16.msra.mxu0 %v11773_v50  ;;  %v11785_v50 = vpack.c.bf16 %v10137_v48, %v10136_v37 }
0x11bb   : > { %3113 = vadd.xlane.f32.xlu0 %v3112_v54  ;;  %v10135_v54 = vld [vmem:[%s15446_s17 + $0x68] sm:$0xff]  ;;  %11778 = vmatprep.subr.bf16.mxu0 %v11777_v43 }
0x11be   : > { %11780 = vmatpush3.bf16.msra.mxu0 %v11777_v43 }
0x11bf   : > { %3116 = vadd.xlane.f32.xlu0 %v3115_v58 }
0x1248   : > { %v3114_v60 = vpop.xlane.xlu0 %3113 }
0x1249   : > { %v3118_v61 = vmul.f32 0.03125, %v3114_v60 }
0x124b   : > { %v3120_v36 = vsub.f32 %v3110_v38, %v3118_v61  ;;  %v10134_v38 = vld [vmem:[%s15446_s17 + $0x60] sm:$0xff] }
0x124c   : > { %v3117_v63 = vpop.xlane.xlu0 %3116 }
0x124d   : > { %v3119_v4 = vmul.f32 0.03125, %v3117_v63  ;;  %v3122_v32 = vmul.f32 %v3120_v36, %v3120_v36 }
0x124f   : > { %v3121_v5 = vsub.f32 %v3111_v55, %v3119_v4  ;;  %v3124_v39 = vsel %vm1903_vm3, %v3122_v32, 0.0  ;;  %v11781_v55 = vpack.c.bf16 %v10135_v54, %v10134_v38  ;;  %v2633_v32 = vld [vmem:[#allocation19 + $0x4] sm:$0xf] }
0x1250   : > { %3125 = vadd.xlane.f32.xlu0 %v3124_v39  ;;  %v3141_v39 = vrot.slane %v2633_v32, %v14216_v57  ;;  %v3147_v10 = vrot.slane %v2633_v32, %v14292_v44  ;;  %v10138_v32 = vld [vmem:[#allocation17 + $0x1] ss:$0 sm:$0xff] }
0x1251   : > { %v3123_v40 = vmul.f32 %v3121_v5, %v3121_v5  ;;  %11782 = vmatprep.subr.bf16.mxu0 %v11781_v55 }
0x1252   : > { %11784 = vmatpush3.bf16.msra.mxu0 %v11781_v55 }
0x1253   : > { %v3127_v6 = vsel %vm1903_vm3, %v3123_v40, 0.0  ;;  %11786 = vmatprep.subr.bf16.mxu0 %v11785_v50 }
0x1254   : > { %3128 = vadd.xlane.f32.xlu0 %v3127_v6 }
0x1256   : > { %11788 = vmatpush3.bf16.msra.mxu0 %v11785_v50 }
0x1257   : > { %11801 = vmatprep.subr.bf16.mxu0 %v13390_v31 }
0x12dd   : > { %v3126_v58 = vpop.xlane.xlu0 %3125 }
0x12de   : > { %v3130_v59 = vmul.f32 0.03125, %v3126_v58 }
0x12e0   : > { %v3132_v60 = vadd.f32 1e-06, %v3130_v59 }
0x12e1   : > { %v3129_v61 = vpop.xlane.xlu0 %3128 }
0x12e2   : > { %12479 = vrsqrt.f32 %v3132_v60  ;;  %v3131_v63 = vmul.f32 0.03125, %v3129_v61 }
0x12e4   : > { %v3133_v4 = vadd.f32 1e-06, %v3131_v63 }
0x12e6   : > { %12481 = vrsqrt.f32 %v3133_v4 }
0x12ec   : > { %v12480_v40 = vpop.eup %12479 }
0x12ed   : > { %v3136_v6 = vmul.f32 %v12480_v40, %v3120_v36  ;;  %v3387_v36 = vpop.permute.xlu1 %3386 }
0x12ee   : > { %vm3388_vm9 = vcmp.eq.s32.totalorder %v14150_v19, %v3387_v36 }
0x12ef   : > { %v3142_v13 = vmul.f32 %v3141_v39, %v3136_v6 }
0x12f0   : > { %v12482_v22 = vpop.eup %12481 }
0x12f1   : > { %v3137_v3 = vmul.f32 %v12482_v22, %v3121_v5  ;;  %v14413_v24 = vadd.f32 %v3147_v10, %v3142_v13  ;;  %v10141_v5 = vsel %vm3388_vm9, 1.0, %v13388_v21 }
0x12f3   : > { %v3143_v28 = vmul.f32 %v3141_v39, %v3137_v3  ;;  %10930 = vmatprep.mubr.msk.f32.mxu1 %vm1903_vm3, %v14413_v24 }
0x12f5   : > { %v14417_v34 = vadd.f32 %v3147_v10, %v3143_v28 }
0x12f7   : > { %10931 = vmatmul.mubr.msk.f32.vlgmr.msra.gmra.mrb[12].mxu1 %vm1903_vm3, %v14417_v34 }
0x12f8   : > { %11791 = vmatpush3.bf16.msra.mxu1 %v14124_v7  ;;  %10968 = vmatprep.mubr.msk.f32.mxu1 %vm13391_vm8, %v13388_v21 }
0x12f9   : > { %11792 = vmatprep.subr.bf16.mxu1 %v13390_v31 }
0x12fc   : > { %11794 = vmatpush3.bf16.msra.mxu1 %v14126_v8 }
0x12fd   : > { %11795 = vmatprep.subr.bf16.mxu1 %v13390_v31 }
0x1300   : > { %11797 = vmatpush3.bf16.msra.mxu1 %v14133_v11 }
0x1301   : > { %11798 = vmatprep.subr.bf16.mxu1 %v13390_v31 }
0x1304   : > { %11800 = vmatpush3.bf16.msra.mxu1 %v14143_v17 }
0x1305   : > { %11807 = vmatprep.subr.bf16.mxu1 %v13390_v31 }
0x1307   : > { %10969 = vmatmul.mubr.msk.f32.vlgmr.msra.gmra.mrb[14].mxu1 %vm1795_vm0, %v10141_v5 }
0x1308   : > { %11809 = vmatpush3.bf16.msra.mxu1 %v14166_v30  ;;  %10990 = vmatprep.mubr.msk.f32.mxu1 %vm13391_vm8, %v13388_v21 }
0x1309   : > { %11810 = vmatprep.subr.bf16.mxu1 %v13390_v31 }
0x130c   : > { %11812 = vmatpush3.bf16.msra.mxu1 %v14178_v41 }
0x130d   : > { %10998 = vmatprep.subr.mxu1 %v13388_v21 }
0x13ca   : > { %v10932_v43 = vpop.f32.mrb[12].mxu1 }
0x13cb   : > { %v3241_v38 = vadd.f32 %v10932_v43, %v10127_v53  ;;  %v3235_v54 = vpop.f32.mrb[13].mxu1 }
0x13cc   : > { %v3236_v55 = vadd.f32 %v10127_v53, %v3235_v54 }
0x13cd   : > { %v3245_v59 = vmax.f32 %v3241_v38, 0.0 }
0x13ce   : > { %v3244_v58 = vmax.f32 %v3236_v55, 0.0 }
0x13d0   : > { %10949 = vmatprep.mubr.msk.f32.mxu0 %vm1795_vm0, %v3244_v58 }
0x13d1   : > { %10950 = vmatmul.mubr.msk.f32.vlgmr.msra.gmra.mrb[14].mxu0 %vm1795_vm0, %v3245_v59 }
0x13d2   : > { %11803 = vmatpush3.bf16.msra.mxu0 %v14139_v16  ;;  %10979 = vmatprep.mubr.msk.f32.mxu0 %vm13391_vm8, %v13388_v21 }
0x13d3   : > { %11804 = vmatprep.subr.bf16.mxu0 %v13390_v31 }
0x13d6   : > { %11806 = vmatpush3.bf16.msra.mxu0 %v14160_v27 }
0x13d7   : > { %10993 = vmatprep.subr.mxu0 %v13388_v21 }
0x13da   : > { %v3460_v60 = vpop.f32.mrb[14].mxu1 }
0x13db   : > { %v3464_v61 = vmul.f32 5.656854, %v3460_v60  ;;  %v10970_v63 = vpop.f32.mrb[15].mxu1 }
0x13dd   : > { %v14452_v4 = vadd.f32 %v3464_v61, %v14169_v33 }
0x13df   : > { %10980 = vmatmul.mubr.msk.f32.vlgmr.msra.gmra.mrb[16].mxu0 %vm1903_vm3, %v14452_v4  ;;  %10991 = vmatmul.mubr.msk.f32.vlgmr.msra.gmra.mrb[16].mxu1 %vm1903_vm3, %v14452_v4 }
0x13e0   : > { %10995 = vmatprep.mubr.msk.f32.mxu0 %vm13391_vm8, %v13388_v21  ;;  %11000 = vmatprep.mubr.msk.f32.mxu1 %vm13391_vm8, %v13388_v21 }
0x14a4   : > { %v14462_v39 = vpop.f32.mrb[14].mxu0 }
0x14a5   : > { %v3335_v40 = vpop.f32.mrb[15].mxu0 }
0x14a6   : > { %v14464_v6 = vadd.f32 %v10138_v32, %v3335_v40 }
0x14b2   : > { %v3535_v33 = vpop.f32.mrb[16].mxu0  ;;  %v3605_v10 = vpop.f32.mrb[16].mxu1 }
0x14b3   : > { %v3606_v13 = vadd.f32 %v14195_v46, %v3605_v10  ;;  %v10981_v22 = vpop.f32.mrb[17].mxu0  ;;  %v10992_v3 = vpop.f32.mrb[17].mxu1  ;;  %v3536_v28 = vadd.f32 %v14191_v42, %v3535_v33  ;;  %v1776_v46 = vld [vmem:[%s1511_s7] sm:$0x1]  ;;  %s15450_s7 = sld [smem:[#allocation54_spill]] }
0x14b4   : > { %vm3686_vm10 = vcmp.gt.f32.partialorder %v1776_v46, 0.0 }
0x14b5   : > { %10994 = vmatpush3.xpose.msk.msra.mxu0 %vm1903_vm3, %v3606_v13  ;;  %v3687_v42 = vsel %vm3686_vm10, 1, %v13387_v0 }
0x14b6   : > { %11813 = vmatprep.subr.bf16.mxu0 %v13390_v31  ;;  %v3691_v36 = vrot.slane %v3687_v42, %v14216_v57 }
0x14b8   : > { %10996 = vmatmul.mubr.msk.f32.vlgmr.msra.gmra.mrb[18].mxu0 %vm1903_vm3, %v3536_v28  ;;  %vm14481_vm11 = vcmp.eq.s32.totalorder %v3691_v36, 1 }
0x14b9   : > { %11815 = vmatpush3.bf16.msra.mxu0 %v14235_v35  ;;  %11011 = vmatprep.mubr.msk.f32.mxu0 %vm13391_vm8, %v13388_v21  ;;  %s1751_s8 = scalar_lea.vmem %s15450_s7, %s14394_s23  ;;  %s15458_s7 = sld [smem:[#allocation81_spill]] }
0x14ba   : > { %11816 = vmatprep.subr.bf16.mxu0 %v13390_v31 }
0x14bd   : > { %11818 = vmatpush3.bf16.msra.mxu0 %v14241_v45 }
0x14be   : > { %11825 = vmatprep.subr.bf16.mxu0 %v13390_v31 }
0x158b   : > { %v3681_v5 = vpop.f32.mrb[18].mxu0 }
0x158c   : > { %v3685_v48 = vmul.f32 0.17677669, %v3681_v5  ;;  %v10997_v50 = vpop.f32.mrb[19].mxu0 }
0x158e   : > { %v3693_v53 = vsel %vm14481_vm11, %v3685_v48, -1e+09 }
0x158f   : > { %v3695_v43 = vsel %vm3694_vm12, %v3693_v53, -inf }
0x1590   : > { %3696 = vmax.xlane.f32.xlu0 %v3695_v43 }
0x15a6   : > { %3706 = vrot.lane.b32.xlu0 %v3606_v13, %s13389_s18 }
0x161d   : > { %v3697_v38 = vpop.xlane.xlu0 %3696 }
0x161e   : > { %v3698_v54 = vsub.f32 %v3693_v53, %v3697_v38 }
0x1620   : > { %v3699_v55 = vmul.f32 1.442695, %v3698_v54 }
0x1621   : > { %v3707_v58 = vpop.permute.xlu0 %3706 }
0x1622   : > { %12483 = vpow2.f32 %v3699_v55  ;;  %10999 = vmatpush3.msra.mxu1 %v3707_v58 }
0x1623   : > { %11819 = vmatprep.subr.bf16.mxu1 %v13390_v31 }
0x162c   : > { %v12484_v59 = vpop.eup %12483 }
0x162d   : > { %v3701_v60 = vsel %vm3694_vm12, %v12484_v59, 0.0 }
0x162e   : > { %3702 = vadd.xlane.f32.xlu1 %v3701_v60 }
0x16bb   : > { %v3703_v61 = vpop.xlane.xlu1 %3702 }
0x16bc   : > { %12485 = vrcp.f32 %v3703_v61 }
0x16c6   : > { %v12486_v63 = vpop.eup %12485 }
0x16c7   : > { %v3705_v32 = vmul.f32 %v12486_v63, %v12484_v59 }
0x16c9   : > { %11001 = vmatmul.mubr.msk.f32.vlgmr.msra.gmra.mrb[18].mxu1 %vm3694_vm12, %v3705_v32 }
0x16ca   : > { %11821 = vmatpush3.bf16.msra.mxu1 %v14261_v12  ;;  %11022 = vmatprep.mubr.msk.f32.mxu1 %vm13391_vm8, %v13388_v21 }
0x16cb   : > { %11822 = vmatprep.subr.bf16.mxu1 %v13390_v31 }
0x16ce   : > { %11824 = vmatpush3.bf16.msra.mxu1 %v14267_v15 }
0x16cf   : > { %11837 = vmatprep.subr.bf16.mxu1 %v13390_v31 }
0x179c   : > { %v3778_v40 = vpop.f32.mrb[18].mxu1 }
0x179d   : > { %v11002_v33 = vpop.f32.mrb[19].mxu1  ;;  %11012 = vmatmul.mubr.msk.f32.vlgmr.msra.gmra.mrb[20].mxu0 %vm1903_vm3, %v3778_v40 }
0x179e   : > { %11827 = vmatpush3.bf16.msra.mxu0 %v14274_v23  ;;  %11041 = vmatprep.mubr.msk.f32.mxu0 %vm13391_vm8, %v13388_v21 }
0x179f   : > { %11828 = vmatprep.subr.bf16.mxu0 %v13390_v31 }
0x17a2   : > { %11830 = vmatpush3.bf16.msra.mxu0 %v14277_v25 }
0x17a3   : > { %11831 = vmatprep.subr.bf16.mxu0 %v13390_v31 }
0x17a6   : > { %11833 = vmatpush3.bf16.msra.mxu0 %v14284_v29 }
0x17a7   : > { %11834 = vmatprep.subr.bf16.mxu0 %v13390_v31 }
0x17aa   : > { %11836 = vmatpush3.bf16.msra.mxu0 %v14310_v1 }
0x17ab   : > { %11066 = vmatprep.subr.mxu0 %v13388_v21 }
0x1870   : > { %v3851_v10 = vpop.f32.mrb[20].mxu0 }
0x1871   : > { %v3852_v13 = vadd.f32 %v14249_v49, %v3851_v10  ;;  %v11013_v22 = vpop.f32.mrb[21].mxu0 }
0x1873   : > { %v3855_v3 = vadd.f32 %v3852_v13, %v14452_v4 }
0x1875   : > { %v3856_v28 = vsel %vm1903_vm3, %v3855_v3, 0.0 }
0x1876   : > { %3857 = vadd.xlane.f32.xlu0 %v3856_v28  ;;  %v10151_v28 = vld [vmem:[%s15438_s4 + $0x40] sm:$0xff] }
0x1903   : > { %v3858_v46 = vpop.xlane.xlu0 %3857 }
0x1904   : > { %v3859_v42 = vmul.f32 0.03125, %v3858_v46  ;;  %v10152_v46 = vld [vmem:[%s15438_s4 + $0x48] sm:$0xff] }
0x1906   : > { %v3860_v36 = vsub.f32 %v3855_v3, %v3859_v42  ;;  %v11838_v42 = vpack.c.bf16 %v10152_v46, %v10151_v28 }
0x1908   : > { %v3861_v5 = vmul.f32 %v3860_v36, %v3860_v36 }
0x190a   : > { %v3862_v48 = vsel %vm1903_vm3, %v3861_v5, 0.0 }
0x190b   : > { %3863 = vadd.xlane.f32.xlu1 %v3862_v48 }
0x1998   : > { %v3864_v50 = vpop.xlane.xlu1 %3863 }
0x1999   : > { %v3865_v53 = vmul.f32 0.03125, %v3864_v50 }
0x199b   : > { %v3866_v43 = vadd.f32 1e-06, %v3865_v53 }
0x199d   : > { %12487 = vrsqrt.f32 %v3866_v43 }
0x19a7   : > { %v12488_v38 = vpop.eup %12487 }
0x19a8   : > { %v3868_v54 = vmul.f32 %v12488_v38, %v3860_v36  ;;  %v10154_v36 = vld [vmem:[%s15438_s4 + $0x58] sm:$0xff] }
0x19aa   : > { %v3869_v49 = vmul.f32 %v3868_v54, %v14296_v47  ;;  %v10155_v54 = vld [vmem:[%s15439_s16 + $0x40] sm:$0xff] }
0x19ac   : > { %v3870_v4 = vadd.f32 %v3869_v49, %v14300_v52  ;;  %v10156_v49 = vld [vmem:[%s15439_s16 + $0x48] sm:$0xff] }
0x19ae   : > { %11023 = vmatmul.mubr.msk.f32.vlgmr.msra.gmra.mrb[20].mxu1 %vm1903_vm3, %v3870_v4 }
0x19af   : > { %11052 = vmatprep.mubr.msk.f32.mxu1 %vm13391_vm8, %v13388_v21  ;;  %11839 = vmatpush3.bf16.msra.mxu1 %v11838_v42 }
0x19b0   : > { %11840 = vmatprep.subr.bf16.mxu1 %v13390_v31 }
0x1a81   : > { %v3940_v55 = vpop.f32.mrb[20].mxu1 }
0x1a82   : > { %v3941_v58 = vadd.f32 %v14314_v2, %v3940_v55  ;;  %v11024_v59 = vpop.f32.mrb[21].mxu1  ;;  %v11844_v55 = vpack.c.bf16 %v10156_v49, %v10155_v54  ;;  %v10160_v54 = vld [vmem:[%s15444_s15 + $0x48] sm:$0xff]  ;;  %v10161_v49 = vld [vmem:[%s15444_s15 + $0x50] sm:$0xff] }
0x1a83   : > { %v10157_v59 = vld [vmem:[%s15439_s16 + $0x50] sm:$0xff] }
0x1a84   : > { %v3944_v60 = vmax.f32 %v3941_v58, 0.0 }
0x1a86   : > { %11042 = vmatmul.mubr.msk.f32.vlgmr.msra.gmra.mrb[22].mxu0 %vm1795_vm0, %v3944_v60  ;;  %v10158_v60 = vld [vmem:[%s15439_s16 + $0x58] sm:$0xff] }
0x1a87   : > { %11068 = vmatprep.mubr.msk.f32.mxu0 %vm13391_vm8, %v13388_v21 }
0x1b59   : > { %v4014_v61 = vpop.f32.mrb[22].mxu0 }
0x1b5a   : > { %v4015_v63 = vadd.f32 %v14320_v9, %v4014_v61  ;;  %v11043_v32 = vpop.f32.mrb[23].mxu0  ;;  %v10153_v9 = vld [vmem:[%s15438_s4 + $0x50] sm:$0xff]  ;;  %v11847_v61 = vpack.c.bf16 %v10158_v60, %v10157_v59 }
0x1b5b   : > { %v11841_v5 = vpack.c.bf16 %v10154_v36, %v10153_v9 }
0x1b5c   : > { %v4018_v40 = vadd.f32 %v4015_v63, %v3870_v4 }
0x1b5d   : > { %11842 = vmatpush3.bf16.msra.mxu1 %v11841_v5 }
0x1b5e   : > { %v4019_v33 = vsel %vm1903_vm3, %v4018_v40, 0.0  ;;  %11843 = vmatprep.subr.bf16.mxu1 %v13390_v31 }
0x1b5f   : > { %4020 = vadd.xlane.f32.xlu1 %v4019_v33 }
0x1bec   : > { %v4021_v2 = vpop.xlane.xlu1 %4020 }
0x1bed   : > { %v4022_v10 = vmul.f32 0.03125, %v4021_v2  ;;  %v10163_v2 = vld [vmem:[#allocation11 + $0x2] ss:$0 sm:$0xff] }
0x1bef   : > { %v4023_v13 = vsub.f32 %v4018_v40, %v4022_v10  ;;  %v10165_v40 = vld [vmem:[#allocation13 + $0x2] ss:$0 sm:$0xff] }
0x1bf1   : > { %v4024_v22 = vmul.f32 %v4023_v13, %v4023_v13 }
0x1bf3   : > { %v4025_v3 = vsel %vm1903_vm3, %v4024_v22, 0.0 }
0x1bf4   : > { %4026 = vadd.xlane.f32.xlu1 %v4025_v3 }
0x1c81   : > { %v4027_v48 = vpop.xlane.xlu1 %4026 }
0x1c82   : > { %v4028_v50 = vmul.f32 0.03125, %v4027_v48 }
0x1c84   : > { %v4029_v53 = vadd.f32 1e-06, %v4028_v50 }
0x1c86   : > { %12489 = vrsqrt.f32 %v4029_v53 }
0x1c90   : > { %v12490_v43 = vpop.eup %12489 }
0x1c91   : > { %v4031_v38 = vmul.f32 %v12490_v43, %v4023_v13 }
0x1c93   : > { %v4032_v4 = vmul.f32 %v4031_v38, %v14342_v20  ;;  %v10159_v38 = vld [vmem:[%s15444_s15 + $0x40] sm:$0xff] }
0x1c95   : > { %v14535_v58 = vadd.f32 %v4032_v4, %v14346_v26  ;;  %v11850_v4 = vpack.c.bf16 %v10160_v54, %v10159_v38  ;;  %v10178_v54 = vld [vmem:[%s15446_s17 + $0x80] sm:$0xff] }
0x1c97   : > { %11053 = vmatmul.mubr.msk.f32.vlgmr.msra.gmra.mrb[22].mxu1 %vm1903_vm3, %v14535_v58 }
0x1c98   : > { %11845 = vmatpush3.bf16.msra.mxu1 %v11844_v55  ;;  %11063 = vmatprep.mubr.msk.f32.mxu1 %vm13391_vm8, %v13388_v21  ;;  %v10162_v55 = vld [vmem:[%s15444_s15 + $0x58] sm:$0xff] }
0x1c99   : > { %11846 = vmatprep.subr.bf16.mxu1 %v13390_v31  ;;  %v11853_v59 = vpack.c.bf16 %v10162_v55, %v10161_v49  ;;  %v10179_v49 = vld [vmem:[%s15446_s17 + $0x88] sm:$0xff] }
0x1c9a   : > { %v11862_v55 = vpack.c.bf16 %v10179_v49, %v10178_v54 }
0x1c9c   : > { %11848 = vmatpush3.bf16.msra.mxu1 %v11847_v61 }
0x1c9d   : > { %11071 = vmatprep.subr.mxu1 %v13388_v21 }
0x1c9f   : > { %11064 = vmatmul.mubr.msk.f32.vlgmr.msra.gmra.mrb[24].mxu1 %vm1903_vm3, %v14535_v58 }
0x1ca0   : > { %11073 = vmatprep.mubr.msk.f32.mxu1 %vm13391_vm8, %v13388_v21 }
0x1d6a   : > { %v4132_v63 = vpop.f32.mrb[22].mxu1 }
0x1d6b   : > { %v11054_v32 = vpop.f32.mrb[23].mxu1  ;;  %v4133_v22 = vadd.f32 %v10163_v2, %v4132_v63 }
0x1d72   : > { %v4208_v33 = vpop.f32.mrb[24].mxu1 }
0x1d73   : > { %v4209_v10 = vadd.f32 %v10165_v40, %v4208_v33  ;;  %v11065_v13 = vpop.f32.mrb[25].mxu1  ;;  %v10170_v33 = vld [vmem:[#allocation14 + $0x2] ss:$0 sm:$0xff] }
0x1d75   : > { %4301 = vrot.lane.b32.xlu0 %v4209_v10, %s13389_s18  ;;  %11067 = vmatpush3.xpose.msk.msra.mxu0 %vm1903_vm3, %v4209_v10 }
0x1d76   : > { %11849 = vmatprep.subr.bf16.mxu0 %v13390_v31 }
0x1d78   : > { %11069 = vmatmul.mubr.msk.f32.vlgmr.msra.gmra.mrb[24].mxu0 %vm1903_vm3, %v4133_v22 }
0x1d79   : > { %11084 = vmatprep.mubr.msk.f32.mxu0 %vm13391_vm8, %v13388_v21  ;;  %11851 = vmatpush3.bf16.msra.mxu0 %v11850_v4  ;;  %v10180_v4 = vld [vmem:[%s15446_s17 + $0x90] sm:$0xff] }
0x1d7a   : > { %11852 = vmatprep.subr.bf16.mxu0 %v13390_v31 }
0x1d7d   : > { %11854 = vmatpush3.bf16.msra.mxu0 %v11853_v59  ;;  %v10181_v59 = vld [vmem:[%s15446_s17 + $0x98] sm:$0xff] }
0x1d7e   : > { %11861 = vmatprep.subr.bf16.mxu0 %v13390_v31 }
0x1de7   : > { %v4302_v3 = vpop.permute.xlu0 %4301 }
0x1de8   : > { %11072 = vmatpush3.msra.mxu1 %v4302_v3 }
0x1de9   : > { %11855 = vmatprep.subr.bf16.mxu1 %v13390_v31 }
0x1e4b   : > { %v4284_v28 = vpop.f32.mrb[24].mxu0 }
0x1e4c   : > { %v4288_v46 = vmul.f32 0.17677669, %v4284_v28  ;;  %v11070_v42 = vpop.f32.mrb[25].mxu0 }
0x1e4e   : > { %v4289_v9 = vsel %vm14481_vm11, %v4288_v46, -1e+09 }
0x1e4f   : > { %v4290_v36 = vsel %vm3694_vm12, %v4289_v9, -inf }
0x1e50   : > { %4291 = vmax.xlane.f32.xlu1 %v4290_v36 }
0x1edd   : > { %v4292_v5 = vpop.xlane.xlu1 %4291 }
0x1ede   : > { %v4293_v48 = vsub.f32 %v4289_v9, %v4292_v5  ;;  %v4681_v5 = vld [vmem:[%s1751_s8] sm:$0xff]  ;;  %s15459_s8 = sld [smem:[#allocation83_spill]] }
0x1ee0   : > { %v4294_v50 = vmul.f32 1.442695, %v4293_v48  ;;  %v10173_v48 = vld [vmem:[%s15445_s6 + $0x48] sm:$0xff] }
0x1ee2   : > { %12491 = vpow2.f32 %v4294_v50 }
0x1eec   : > { %v12492_v53 = vpop.eup %12491 }
0x1eed   : > { %v4296_v43 = vsel %vm3694_vm12, %v12492_v53, 0.0 }
0x1eee   : > { %4297 = vadd.xlane.f32.xlu1 %v4296_v43  ;;  %v10175_v43 = vld [vmem:[%s15445_s6 + $0x58] sm:$0xff] }
0x1f7b   : > { %v4298_v60 = vpop.xlane.xlu1 %4297 }
0x1f7c   : > { %12493 = vrcp.f32 %v4298_v60  ;;  %v11865_v60 = vpack.c.bf16 %v10181_v59, %v10180_v4  ;;  %v14627_v4 = vld [vmem:[#allocation10] sm:$0xff] }
0x1f86   : > { %v12494_v61 = vpop.eup %12493 }
0x1f87   : > { %v4300_v63 = vmul.f32 %v12494_v61, %v12492_v53  ;;  %v10174_v53 = vld [vmem:[%s15445_s6 + $0x50] sm:$0xff]  ;;  %v10182_v61 = vld [vmem:[%s15446_s17 + $0xa0] sm:$0xff] }
0x1f88   : > { %v11859_v38 = vpack.c.bf16 %v10175_v43, %v10174_v53 }
0x1f89   : > { %11074 = vmatmul.mubr.msk.f32.vlgmr.msra.gmra.mrb[26].mxu1 %vm3694_vm12, %v4300_v63  ;;  %v10183_v63 = vld [vmem:[%s15446_s17 + $0xa8] sm:$0xff] }
0x1f8a   : > { %11095 = vmatprep.mubr.msk.f32.mxu1 %vm13391_vm8, %v13388_v21 }
0x205c   : > { %v4373_v32 = vpop.f32.mrb[26].mxu1 }
0x205d   : > { %v11075_v40 = vpop.f32.mrb[27].mxu1  ;;  %11085 = vmatmul.mubr.msk.f32.vlgmr.msra.gmra.mrb[26].mxu0 %vm1903_vm3, %v4373_v32  ;;  %v11868_v32 = vpack.c.bf16 %v10183_v63, %v10182_v61  ;;  %v12566_v61 = vld [vmem:[#allocation13] ss:$0 sm:$0xff] }
0x205e   : > { %11114 = vmatprep.mubr.msk.f32.mxu0 %vm13391_vm8, %v13388_v21  ;;  %11863 = vmatpush3.bf16.msra.mxu0 %v11862_v55 }
0x205f   : > { %11864 = vmatprep.subr.bf16.mxu0 %v13390_v31 }
0x2062   : > { %11866 = vmatpush3.bf16.msra.mxu0 %v11865_v60 }
0x2063   : > { %11867 = vmatprep.subr.bf16.mxu0 %v13390_v31 }
0x2066   : > { %11869 = vmatpush3.bf16.msra.mxu0 %v11868_v32 }
0x2067   : > { %11870 = vmatprep.subr.bf16.mxu0 %v13390_v31 }
0x2130   : > { %v4452_v2 = vpop.f32.mrb[26].mxu0 }
0x2131   : > { %v4453_v10 = vadd.f32 %v10170_v33, %v4452_v2  ;;  %v11086_v13 = vpop.f32.mrb[27].mxu0 }
0x2133   : > { %v4456_v22 = vadd.f32 %v4453_v10, %v14535_v58  ;;  %v10172_v58 = vld [vmem:[%s15445_s6 + $0x40] sm:$0xff]  ;;  %v4035_v10 = vld [vmem:[#allocation19 + $0x8] sm:$0xf] }
0x2134   : > { %v11856_v50 = vpack.c.bf16 %v10173_v48, %v10172_v58  ;;  %v4473_v13 = vrot.slane %v4035_v10, %v14216_v57  ;;  %v10185_v58 = vld [vmem:[%s15446_s17 + $0xb8] sm:$0xff] }
0x2135   : > { %v4457_v3 = vsel %vm1903_vm3, %v4456_v22, 0.0 }
0x2136   : > { %4458 = vadd.xlane.f32.xlu1 %v4457_v3  ;;  %11857 = vmatpush3.bf16.msra.mxu1 %v11856_v50  ;;  %v10176_v50 = vld [vmem:[#allocation16 + $0x2] ss:$0 sm:$0xff] }
0x2137   : > { %11858 = vmatprep.subr.bf16.mxu1 %v13390_v31 }
0x213a   : > { %11860 = vmatpush3.bf16.msra.mxu1 %v11859_v38 }
0x213b   : > { %11873 = vmatprep.subr.bf16.mxu1 %v13390_v31 }
0x21c3   : > { %v4459_v28 = vpop.xlane.xlu1 %4458 }
0x21c4   : > { %v4460_v46 = vmul.f32 0.03125, %v4459_v28  ;;  %v4478_v28 = vrot.slane %v4035_v10, %v14292_v44  ;;  %v1777_v10 = vld [vmem:[%s1519_s22] sm:$0x1]  ;;  %s15453_s22 = sld [smem:[#allocation55_spill]] }
0x21c5   : > { %vm4983_vm14 = vcmp.gt.f32.partialorder %v1777_v10, 0.0 }
0x21c6   : > { %v4461_v42 = vsub.f32 %v4456_v22, %v4460_v46 }
0x21c8   : > { %v4462_v9 = vmul.f32 %v4461_v42, %v4461_v42 }
0x21ca   : > { %v4463_v36 = vsel %vm1903_vm3, %v4462_v9, 0.0  ;;  %s1755_s13 = scalar_lea.vmem %s15453_s22, %s14394_s23  ;;  %s15460_s22 = sld [smem:[#allocation56_spill]] }
0x21cb   : > { %4464 = vadd.xlane.f32.xlu1 %v4463_v36 }
0x21dc   : > { %4683 = vperm.xlu1 %12446, %v4681_v5   ;;  %v10184_v5 = vld [vmem:[%s15446_s17 + $0xb0] sm:$0xff] }
0x21dd   : > { %v11871_v48 = vpack.c.bf16 %v10185_v58, %v10184_v5 }
0x21df   : > { %11872 = vmatpush3.bf16.msra.mxu0 %v11871_v48 }
0x21e0   : > { %11885 = vmatprep.subr.bf16.mxu0 %v13390_v31 }
0x2258   : > { %v4465_v40 = vpop.xlane.xlu1 %4464 }
0x2259   : > { %v4466_v33 = vmul.f32 0.03125, %v4465_v40 }
0x225b   : > { %v4467_v2 = vadd.f32 1e-06, %v4466_v33  ;;  %v12567_v33 = vld [vmem:[#allocation11] ss:$0 sm:$0xff] }
0x225d   : > { %12495 = vrsqrt.f32 %v4467_v2 }
0x2267   : > { %v12496_v22 = vpop.eup %12495 }
0x2268   : > { %v4469_v3 = vmul.f32 %v12496_v22, %v4461_v42  ;;  %v4684_v42 = vpop.permute.xlu1 %4683 }
0x2269   : > { %vm4685_vm13 = vcmp.eq.s32.totalorder %v14150_v19, %v4684_v42 }
0x226a   : > { %v4474_v46 = vmul.f32 %v4473_v13, %v4469_v3  ;;  %v10188_v36 = vsel %vm4685_vm13, 1.0, %v13388_v21  ;;  %v4984_v13 = vsel %vm4983_vm14, 1, %v13387_v0 }
0x226b   : > { %v4988_v22 = vrot.slane %v4984_v13, %v14216_v57 }
0x226c   : > { %v14594_v9 = vadd.f32 %v4478_v28, %v4474_v46 }
0x226d   : > { %vm14655_vm15 = vcmp.eq.s32.totalorder %v4988_v22, 1  ;;  %v12569_v22 = vld [vmem:[#allocation16] ss:$0 sm:$0xff] }
0x226e   : > { %11096 = vmatmul.mubr.msk.f32.vlgmr.msra.gmra.mrb[28].mxu1 %vm1903_vm3, %v14594_v9 }
0x226f   : > { %11875 = vmatpush3.bf16.msra.mxu1 %v14124_v7  ;;  %11133 = vmatprep.mubr.msk.f32.mxu1 %vm13391_vm8, %v13388_v21 }
0x2270   : > { %11876 = vmatprep.subr.bf16.mxu1 %v13390_v31 }
0x2273   : > { %11878 = vmatpush3.bf16.msra.mxu1 %v14126_v8 }
0x2274   : > { %11879 = vmatprep.subr.bf16.mxu1 %v13390_v31 }
0x2277   : > { %11881 = vmatpush3.bf16.msra.mxu1 %v14133_v11 }
0x2278   : > { %11882 = vmatprep.subr.bf16.mxu1 %v13390_v31 }
0x227b   : > { %11884 = vmatpush3.bf16.msra.mxu1 %v14143_v17 }
0x227c   : > { %11891 = vmatprep.subr.bf16.mxu1 %v13390_v31 }
0x227e   : > { %11134 = vmatmul.mubr.msk.f32.vlgmr.msra.gmra.mrb[30].mxu1 %vm1795_vm0, %v10188_v36 }
0x227f   : > { %11893 = vmatpush3.bf16.msra.mxu1 %v14166_v30  ;;  %11155 = vmatprep.mubr.msk.f32.mxu1 %vm13391_vm8, %v13388_v21 }
0x2280   : > { %11894 = vmatprep.subr.bf16.mxu1 %v13390_v31 }
0x2283   : > { %11896 = vmatpush3.bf16.msra.mxu1 %v14178_v41 }
0x2284   : > { %11163 = vmatprep.subr.mxu1 %v13388_v21 }
0x2341   : > { %v4562_v53 = vpop.f32.mrb[28].mxu1 }
0x2342   : > { %v4563_v43 = vadd.f32 %v10176_v50, %v4562_v53  ;;  %v11097_v38 = vpop.f32.mrb[29].mxu1 }
0x2344   : > { %v4566_v30 = vmax.f32 %v4563_v43, 0.0 }
0x2346   : > { %11115 = vmatmul.mubr.msk.f32.vlgmr.msra.gmra.mrb[28].mxu0 %vm1795_vm0, %v4566_v30 }
0x2347   : > { %11887 = vmatpush3.bf16.msra.mxu0 %v14139_v16  ;;  %11144 = vmatprep.mubr.msk.f32.mxu0 %vm13391_vm8, %v13388_v21 }
0x2348   : > { %11888 = vmatprep.subr.bf16.mxu0 %v13390_v31 }
0x234b   : > { %11890 = vmatpush3.bf16.msra.mxu0 %v14160_v27 }
0x234c   : > { %11158 = vmatprep.subr.mxu0 %v13388_v21 }
0x2351   : > { %v4757_v41 = vpop.f32.mrb[30].mxu1 }
0x2352   : > { %v4761_v54 = vmul.f32 5.656854, %v4757_v41  ;;  %v11135_v49 = vpop.f32.mrb[31].mxu1 }
0x2354   : > { %v14630_v55 = vadd.f32 %v14627_v4, %v4761_v54 }
0x2356   : > { %11145 = vmatmul.mubr.msk.f32.vlgmr.msra.gmra.mrb[30].mxu0 %vm1903_vm3, %v14630_v55  ;;  %11156 = vmatmul.mubr.msk.f32.vlgmr.msra.gmra.mrb[32].mxu1 %vm1903_vm3, %v14630_v55 }
0x2357   : > { %11160 = vmatprep.mubr.msk.f32.mxu0 %vm13391_vm8, %v13388_v21  ;;  %11165 = vmatprep.mubr.msk.f32.mxu1 %vm13391_vm8, %v13388_v21 }
0x2419   : > { %v14640_v16 = vpop.f32.mrb[28].mxu0 }
0x241a   : > { %v11116_v27 = vpop.f32.mrb[29].mxu0 }
0x2429   : > { %v4832_v59 = vpop.f32.mrb[30].mxu0  ;;  %v4902_v60 = vpop.f32.mrb[32].mxu1 }
0x242a   : > { %v4903_v63 = vadd.f32 %v12566_v61, %v4902_v60  ;;  %v11146_v32 = vpop.f32.mrb[31].mxu0  ;;  %v11157_v40 = vpop.f32.mrb[33].mxu1  ;;  %v4833_v2 = vadd.f32 %v12567_v33, %v4832_v59 }
0x242c   : > { %11159 = vmatpush3.xpose.msk.msra.mxu0 %vm1903_vm3, %v4903_v63 }
0x242d   : > { %11897 = vmatprep.subr.bf16.mxu0 %v13390_v31 }
0x242f   : > { %11161 = vmatmul.mubr.msk.f32.vlgmr.msra.gmra.mrb[32].mxu0 %vm1903_vm3, %v4833_v2 }
0x2430   : > { %11899 = vmatpush3.bf16.msra.mxu0 %v14235_v35  ;;  %11176 = vmatprep.mubr.msk.f32.mxu0 %vm13391_vm8, %v13388_v21 }
0x2431   : > { %11900 = vmatprep.subr.bf16.mxu0 %v13390_v31 }
0x2434   : > { %11902 = vmatpush3.bf16.msra.mxu0 %v14241_v45 }
0x2435   : > { %11909 = vmatprep.subr.bf16.mxu0 %v13390_v31 }
0x2502   : > { %v4978_v3 = vpop.f32.mrb[32].mxu0 }
0x2503   : > { %v4982_v35 = vmul.f32 0.17677669, %v4978_v3  ;;  %v11162_v46 = vpop.f32.mrb[33].mxu0 }
0x2505   : > { %v4990_v42 = vsel %vm14655_vm15, %v4982_v35, -1e+09 }
0x2506   : > { %v4991_v45 = vsel %vm3694_vm12, %v4990_v42, -inf }
0x2507   : > { %4992 = vmax.xlane.f32.xlu0 %v4991_v45 }
0x251d   : > { %5002 = vrot.lane.b32.xlu0 %v4903_v63, %s13389_s18 }
0x2594   : > { %v4993_v36 = vpop.xlane.xlu0 %4992 }
0x2595   : > { %v4994_v5 = vsub.f32 %v4990_v42, %v4993_v36  ;;  %v12570_v42 = vld [vmem:[#allocation17] ss:$0 sm:$0xff] }
0x2597   : > { %v4995_v58 = vmul.f32 1.442695, %v4994_v5 }
0x2598   : > { %v5003_v48 = vpop.permute.xlu0 %5002 }
0x2599   : > { %12497 = vpow2.f32 %v4995_v58  ;;  %11164 = vmatpush3.msra.mxu1 %v5003_v48 }
0x259a   : > { %11903 = vmatprep.subr.bf16.mxu1 %v13390_v31 }
0x25a3   : > { %v12498_v50 = vpop.eup %12497 }
0x25a4   : > { %v4997_v53 = vsel %vm3694_vm12, %v12498_v50, 0.0 }
0x25a5   : > { %4998 = vadd.xlane.f32.xlu1 %v4997_v53 }
0x2632   : > { %v4999_v43 = vpop.xlane.xlu1 %4998 }
0x2633   : > { %12499 = vrcp.f32 %v4999_v43 }
0x263d   : > { %v12500_v38 = vpop.eup %12499 }
0x263e   : > { %v5001_v30 = vmul.f32 %v12500_v38, %v12498_v50  ;;  %v10198_v38 = vld [vmem:[%s15438_s4 + $0x60] sm:$0xff] }
0x2640   : > { %11166 = vmatmul.mubr.msk.f32.vlgmr.msra.gmra.mrb[34].mxu1 %vm3694_vm12, %v5001_v30  ;;  %v10199_v30 = vld [vmem:[%s15438_s4 + $0x68] sm:$0xff] }
0x2641   : > { %11905 = vmatpush3.bf16.msra.mxu1 %v14261_v12  ;;  %11187 = vmatprep.mubr.msk.f32.mxu1 %vm13391_vm8, %v13388_v21 }
0x2642   : > { %11906 = vmatprep.subr.bf16.mxu1 %v13390_v31 }
0x2645   : > { %11908 = vmatpush3.bf16.msra.mxu1 %v14267_v15  ;;  %v12568_v15 = vld [vmem:[#allocation14] ss:$0 sm:$0xff] }
0x2646   : > { %11921 = vmatprep.subr.bf16.mxu1 %v13390_v31 }
0x2713   : > { %v5074_v41 = vpop.f32.mrb[34].mxu1 }
0x2714   : > { %v11167_v54 = vpop.f32.mrb[35].mxu1  ;;  %11177 = vmatmul.mubr.msk.f32.vlgmr.msra.gmra.mrb[34].mxu0 %vm1903_vm3, %v5074_v41  ;;  %v11922_v41 = vpack.c.bf16 %v10199_v30, %v10198_v38  ;;  %v10209_v30 = vld [vmem:[%s15444_s15 + $0x78] sm:$0xff] }
0x2715   : > { %11911 = vmatpush3.bf16.msra.mxu0 %v14274_v23  ;;  %11206 = vmatprep.mubr.msk.f32.mxu0 %vm13391_vm8, %v13388_v21  ;;  %v10200_v54 = vld [vmem:[%s15438_s4 + $0x70] sm:$0xff] }
0x2716   : > { %11912 = vmatprep.subr.bf16.mxu0 %v13390_v31 }
0x2719   : > { %11914 = vmatpush3.bf16.msra.mxu0 %v14277_v25 }
0x271a   : > { %11915 = vmatprep.subr.bf16.mxu0 %v13390_v31 }
0x271d   : > { %11917 = vmatpush3.bf16.msra.mxu0 %v14284_v29 }
0x271e   : > { %11918 = vmatprep.subr.bf16.mxu0 %v13390_v31 }
0x2721   : > { %11920 = vmatpush3.bf16.msra.mxu0 %v14310_v1 }
0x2722   : > { %11231 = vmatprep.subr.mxu0 %v13388_v21 }
0x27e7   : > { %v5147_v12 = vpop.f32.mrb[34].mxu0 }
0x27e8   : > { %v5148_v23 = vadd.f32 %v12568_v15, %v5147_v12  ;;  %v11178_v49 = vpop.f32.mrb[35].mxu0  ;;  %v10201_v12 = vld [vmem:[%s15438_s4 + $0x78] sm:$0xff]  ;;  %s9576_s4 = scalar_lea.sflag [#allocation4], %s14052_s9 }
0x27e9   : > { %v11925_v15 = vpack.c.bf16 %v10201_v12, %v10200_v54 }
0x27ea   : > { %v5151_v27 = vadd.f32 %v5148_v23, %v14630_v55 }
0x27ec   : > { %v5152_v59 = vsel %vm1903_vm3, %v5151_v27, 0.0 }
0x27ed   : > { %5153 = vadd.xlane.f32.xlu1 %v5152_v59 }
0x287a   : > { %v5154_v25 = vpop.xlane.xlu1 %5153 }
0x287b   : > { %v5155_v60 = vmul.f32 0.03125, %v5154_v25 }
0x287d   : > { %v5156_v61 = vsub.f32 %v5151_v27, %v5155_v60  ;;  %v10202_v60 = vld [vmem:[%s15439_s16 + $0x60] sm:$0xff] }
0x287f   : > { %v5157_v63 = vmul.f32 %v5156_v61, %v5156_v61 }
0x2881   : > { %v5158_v29 = vsel %vm1903_vm3, %v5157_v63, 0.0 }
0x2882   : > { %5159 = vadd.xlane.f32.xlu1 %v5158_v29 }
0x290f   : > { %v5160_v32 = vpop.xlane.xlu1 %5159 }
0x2910   : > { %v5161_v1 = vmul.f32 0.03125, %v5160_v32 }
0x2912   : > { %v5162_v40 = vadd.f32 1e-06, %v5161_v1  ;;  %v10204_v1 = vld [vmem:[%s15439_s16 + $0x70] sm:$0xff] }
0x2914   : > { %12501 = vrsqrt.f32 %v5162_v40  ;;  %v10205_v40 = vld [vmem:[%s15439_s16 + $0x78] sm:$0xff] }
0x291e   : > { %v12502_v33 = vpop.eup %12501 }
0x291f   : > { %v5164_v2 = vmul.f32 %v12502_v33, %v5156_v61  ;;  %v10203_v61 = vld [vmem:[%s15439_s16 + $0x68] sm:$0xff]  ;;  %v11931_v33 = vpack.c.bf16 %v10205_v40, %v10204_v1 }
0x2920   : > { %v11928_v29 = vpack.c.bf16 %v10203_v61, %v10202_v60 }
0x2921   : > { %v5165_v10 = vmul.f32 %v5164_v2, %v14296_v47  ;;  %v10212_v2 = vld [vmem:[#allocation13 + $0x3] ss:$0 sm:$0xff] }
0x2923   : > { %v5166_v55 = vadd.f32 %v5165_v10, %v14300_v52 }
0x2925   : > { %11188 = vmatmul.mubr.msk.f32.vlgmr.msra.gmra.mrb[36].mxu1 %vm1903_vm3, %v5166_v55 }
0x2926   : > { %11217 = vmatprep.mubr.msk.f32.mxu1 %vm13391_vm8, %v13388_v21  ;;  %11923 = vmatpush3.bf16.msra.mxu1 %v11922_v41 }
0x2927   : > { %11924 = vmatprep.subr.bf16.mxu1 %v13390_v31 }
0x292a   : > { %11926 = vmatpush3.bf16.msra.mxu1 %v11925_v15 }
0x292b   : > { %11927 = vmatprep.subr.bf16.mxu1 %v13390_v31 }
0x29f8   : > { %v5236_v13 = vpop.f32.mrb[36].mxu1 }
0x29f9   : > { %v5237_v3 = vadd.f32 %v12569_v22, %v5236_v13  ;;  %v11189_v35 = vpop.f32.mrb[37].mxu1 }
0x29fb   : > { %v5240_v46 = vmax.f32 %v5237_v3, 0.0 }
0x29fd   : > { %11207 = vmatmul.mubr.msk.f32.vlgmr.msra.gmra.mrb[36].mxu0 %vm1795_vm0, %v5240_v46 }
0x29fe   : > { %11233 = vmatprep.mubr.msk.f32.mxu0 %vm13391_vm8, %v13388_v21 }
0x2ad0   : > { %v5310_v47 = vpop.f32.mrb[36].mxu0 }
0x2ad1   : > { %v5311_v52 = vadd.f32 %v12570_v42, %v5310_v47  ;;  %v11208_v45 = vpop.f32.mrb[37].mxu0 }
0x2ad3   : > { %v5314_v36 = vadd.f32 %v5311_v52, %v5166_v55  ;;  %v10210_v55 = vld [vmem:[#allocation11 + $0x3] ss:$0 sm:$0xff] }
0x2ad5   : > { %v5315_v5 = vsel %vm1903_vm3, %v5314_v36, 0.0 }
0x2ad6   : > { %5316 = vadd.xlane.f32.xlu1 %v5315_v5 }
0x2b63   : > { %v5317_v58 = vpop.xlane.xlu1 %5316 }
0x2b64   : > { %v5318_v48 = vmul.f32 0.03125, %v5317_v58 }
0x2b66   : > { %v5319_v50 = vsub.f32 %v5314_v36, %v5318_v48 }
0x2b68   : > { %v5320_v53 = vmul.f32 %v5319_v50, %v5319_v50 }
0x2b6a   : > { %v5321_v43 = vsel %vm1903_vm3, %v5320_v53, 0.0  ;;  %v10207_v53 = vld [vmem:[%s15444_s15 + $0x68] sm:$0xff] }
0x2b6b   : > { %5322 = vadd.xlane.f32.xlu0 %v5321_v43  ;;  %v10208_v43 = vld [vmem:[%s15444_s15 + $0x70] sm:$0xff] }
0x2b6c   : > { %v11937_v41 = vpack.c.bf16 %v10209_v30, %v10208_v43  ;;  %v14763_v43 = vld [vmem:[#allocation19 + $0xc] sm:$0xf] }
0x2bf8   : > { %v5323_v23 = vpop.xlane.xlu0 %5322 }
0x2bf9   : > { %v5324_v49 = vmul.f32 0.03125, %v5323_v23 }
0x2bfb   : > { %v5325_v27 = vadd.f32 1e-06, %v5324_v49 }
0x2bfd   : > { %12503 = vrsqrt.f32 %v5325_v27 }
0x2c07   : > { %v12504_v59 = vpop.eup %12503 }
0x2c08   : > { %v5327_v25 = vmul.f32 %v12504_v59, %v5319_v50  ;;  %v10206_v50 = vld [vmem:[%s15444_s15 + $0x60] sm:$0xff] }
0x2c09   : > { %v11934_v38 = vpack.c.bf16 %v10207_v53, %v10206_v50  ;;  %v10217_v59 = vld [vmem:[#allocation14 + $0x3] ss:$0 sm:$0xff] }
0x2c0a   : > { %v5328_v63 = vmul.f32 %v5327_v25, %v14342_v20 }
0x2c0c   : > { %v14706_v32 = vadd.f32 %v5328_v63, %v14346_v26 }
0x2c0e   : > { %11218 = vmatmul.mubr.msk.f32.vlgmr.msra.gmra.mrb[38].mxu1 %vm1903_vm3, %v14706_v32 }
0x2c0f   : > { %11929 = vmatpush3.bf16.msra.mxu1 %v11928_v29  ;;  %11228 = vmatprep.mubr.msk.f32.mxu1 %vm13391_vm8, %v13388_v21 }
0x2c10   : > { %11930 = vmatprep.subr.bf16.mxu1 %v13390_v31 }
0x2c13   : > { %11932 = vmatpush3.bf16.msra.mxu1 %v11931_v33 }
0x2c14   : > { %11236 = vmatprep.subr.mxu1 %v13388_v21 }
0x2c16   : > { %11229 = vmatmul.mubr.msk.f32.vlgmr.msra.gmra.mrb[40].mxu1 %vm1903_vm3, %v14706_v32 }
0x2c17   : > { %11238 = vmatprep.mubr.msk.f32.mxu1 %vm13391_vm8, %v13388_v21 }
0x2ce1   : > { %v5428_v20 = vpop.f32.mrb[38].mxu1 }
0x2ce2   : > { %v11219_v26 = vpop.f32.mrb[39].mxu1  ;;  %v5429_v3 = vadd.f32 %v10210_v55, %v5428_v20 }
0x2ce9   : > { %v5504_v10 = vpop.f32.mrb[40].mxu1 }
0x2cea   : > { %v5505_v13 = vadd.f32 %v10212_v2, %v5504_v10  ;;  %v11230_v22 = vpop.f32.mrb[41].mxu1  ;;  %v5977_v2 = vld [vmem:[%s1755_s13] sm:$0xff]  ;;  %v10220_v10 = vld [vmem:[%s15445_s6 + $0x68] sm:$0xff]  ;;  %s15461_s13 = sld [smem:[#allocation89_spill]] }
0x2ceb   : > { %v10222_v22 = vld [vmem:[%s15445_s6 + $0x78] sm:$0xff] }
0x2cec   : > { %11232 = vmatpush3.xpose.msk.msra.mxu0 %vm1903_vm3, %v5505_v13 }
0x2ced   : > { %11933 = vmatprep.subr.bf16.mxu0 %v13390_v31 }
0x2cef   : > { %11234 = vmatmul.mubr.msk.f32.vlgmr.msra.gmra.mrb[38].mxu0 %vm1903_vm3, %v5429_v3 }
0x2cf0   : > { %11249 = vmatprep.mubr.msk.f32.mxu0 %vm13391_vm8, %v13388_v21  ;;  %11935 = vmatpush3.bf16.msra.mxu0 %v11934_v38  ;;  %v5769_v38 = vrot.slane %v14763_v43, %v14216_v57 }
0x2cf1   : > { %11936 = vmatprep.subr.bf16.mxu0 %v13390_v31 }
0x2cf4   : > { %11938 = vmatpush3.bf16.msra.mxu0 %v11937_v41 }
0x2cf5   : > { %11945 = vmatprep.subr.bf16.mxu0 %v13390_v31 }
0x2dc2   : > { %v5580_v35 = vpop.f32.mrb[38].mxu0 }
0x2dc3   : > { %v5584_v46 = vmul.f32 0.17677669, %v5580_v35  ;;  %v11235_v47 = vpop.f32.mrb[39].mxu0  ;;  %v10225_v35 = vld [vmem:[%s15446_s17 + $0xc0] sm:$0xff] }
0x2dc4   : > { %v10227_v47 = vld [vmem:[%s15446_s17 + $0xd0] sm:$0xff] }
0x2dc5   : > { %v5585_v42 = vsel %vm14655_vm15, %v5584_v46, -1e+09  ;;  %v10226_v46 = vld [vmem:[%s15446_s17 + $0xc8] sm:$0xff] }
0x2dc6   : > { %v5586_v52 = vsel %vm3694_vm12, %v5585_v42, -inf }
0x2dc7   : > { %5587 = vmax.xlane.f32.xlu1 %v5586_v52  ;;  %v10228_v52 = vld [vmem:[%s15446_s17 + $0xd8] sm:$0xff] }
0x2e54   : > { %v5588_v45 = vpop.xlane.xlu1 %5587 }
0x2e55   : > { %v5589_v36 = vsub.f32 %v5585_v42, %v5588_v45  ;;  %v11946_v42 = vpack.c.bf16 %v10226_v46, %v10225_v35  ;;  %v11949_v45 = vpack.c.bf16 %v10228_v52, %v10227_v47 }
0x2e57   : > { %v5590_v5 = vmul.f32 1.442695, %v5589_v36  ;;  %v10229_v36 = vld [vmem:[%s15446_s17 + $0xe0] sm:$0xff] }
0x2e59   : > { %12505 = vpow2.f32 %v5590_v5  ;;  %v10230_v5 = vld [vmem:[%s15446_s17 + $0xe8] sm:$0xff] }
0x2e63   : > { %v12506_v58 = vpop.eup %12505 }
0x2e64   : > { %v5592_v48 = vsel %vm3694_vm12, %v12506_v58, 0.0 }
0x2e65   : > { %5593 = vadd.xlane.f32.xlu1 %v5592_v48 }
0x2e76   : > { %5597 = vrot.lane.b32.xlu1 %v5505_v13, %s13389_s18  ;;  %v10221_v13 = vld [vmem:[%s15445_s6 + $0x70] sm:$0xff] }
0x2e77   : > { %v11943_v3 = vpack.c.bf16 %v10222_v22, %v10221_v13 }
0x2ef2   : > { %v5594_v54 = vpop.xlane.xlu1 %5593 }
0x2ef3   : > { %12507 = vrcp.f32 %v5594_v54  ;;  %v5774_v54 = vrot.slane %v14763_v43, %v14292_v44 }
0x2ef6   : > { %v5598_v12 = vpop.permute.xlu1 %5597 }
0x2ef7   : > { %11237 = vmatpush3.msra.mxu1 %v5598_v12 }
0x2ef8   : > { %11939 = vmatprep.subr.bf16.mxu1 %v13390_v31 }
0x2efd   : > { %v12508_v15 = vpop.eup %12507 }
0x2efe   : > { %v5596_v23 = vmul.f32 %v12508_v15, %v12506_v58  ;;  %v11952_v58 = vpack.c.bf16 %v10230_v5, %v10229_v36 }
0x2f00   : > { %11239 = vmatmul.mubr.msk.f32.vlgmr.msra.gmra.mrb[42].mxu1 %vm3694_vm12, %v5596_v23 }
0x2f01   : > { %11260 = vmatprep.mubr.msk.f32.mxu1 %vm13391_vm8, %v13388_v21 }
0x2fd3   : > { %v5669_v49 = vpop.f32.mrb[42].mxu1 }
0x2fd4   : > { %v11240_v27 = vpop.f32.mrb[43].mxu1  ;;  %11250 = vmatmul.mubr.msk.f32.vlgmr.msra.gmra.mrb[40].mxu0 %vm1903_vm3, %v5669_v49 }
0x2fd5   : > { %11279 = vmatprep.mubr.msk.f32.mxu0 %vm13391_vm8, %v13388_v21  ;;  %11947 = vmatpush3.bf16.msra.mxu0 %v11946_v42  ;;  %v6076_v27 = vld [vmem:[%s15454_s5] sm:$0xff] }
0x2fd6   : > { %11948 = vmatprep.subr.bf16.mxu0 %v13390_v31  ;;  %v10241_v42 = vld [vmem:[#allocation22] ss:$0 sm:$0xff] }
0x2fd9   : > { %11950 = vmatpush3.bf16.msra.mxu0 %v11949_v45  ;;  %v10239_v45 = vld [vmem:[#allocation20] ss:$0 sm:$0xff] }
0x2fda   : > { %11951 = vmatprep.subr.bf16.mxu0 %v13390_v31 }
0x2fdd   : > { %11953 = vmatpush3.bf16.msra.mxu0 %v11952_v58 }
0x2fde   : > { %11954 = vmatprep.subr.bf16.mxu0 %v13390_v31 }
0x30a7   : > { %v5748_v25 = vpop.f32.mrb[40].mxu0 }
0x30a8   : > { %v5749_v60 = vadd.f32 %v10217_v59, %v5748_v25  ;;  %v11251_v61 = vpop.f32.mrb[41].mxu0  ;;  %v6078_v25 = vld [vmem:[%s15454_s5 + $0x10] sm:$0xff] }
0x30aa   : > { %v5752_v63 = vadd.f32 %v5749_v60, %v14706_v32  ;;  %v10219_v32 = vld [vmem:[%s15445_s6 + $0x60] sm:$0xff]  ;;  %v6079_v60 = vld [vmem:[%s15454_s5 + $0x18] sm:$0xff] }
0x30ab   : > { %v11940_v55 = vpack.c.bf16 %v10220_v10, %v10219_v32  ;;  %v11979_v61 = vpack.c.bf16 %v6079_v60, %v6078_v25  ;;  %v6073_v32 = vld [vmem:[%s15455_s1 + $0x10] sm:$0xff]  ;;  %v6074_v10 = vld [vmem:[%s15455_s1 + $0x18] sm:$0xff]  ;;  %v10186_v25 = vld [vmem:[#allocation17 + $0x2] ss:$0 sm:$0xff] }
0x30ac   : > { %v5753_v29 = vsel %vm1903_vm3, %v5752_v63, 0.0  ;;  %v4654_v60 = vadd.f32 %v10186_v25, %v14640_v16 }
0x30ad   : > { %5754 = vadd.xlane.f32.xlu1 %v5753_v29  ;;  %11941 = vmatpush3.bf16.msra.mxu1 %v11940_v55  ;;  %v6071_v29 = vld [vmem:[%s15455_s1] sm:$0xff]  ;;  %v11973_v55 = vpack.c.bf16 %v6074_v10, %v6073_v32 }
0x30ae   : > { %11942 = vmatprep.subr.bf16.mxu1 %v13390_v31 }
0x30b1   : > { %11944 = vmatpush3.bf16.msra.mxu1 %v11943_v3 }
0x30b2   : > { %11957 = vmatprep.subr.bf16.mxu1 %v13390_v31 }
0x313a   : > { %v5755_v1 = vpop.xlane.xlu1 %5754 }
0x313b   : > { %v5756_v40 = vmul.f32 0.03125, %v5755_v1  ;;  %v6072_v1 = vld [vmem:[%s15455_s1 + $0x8] sm:$0xff] }
0x313d   : > { %v5757_v33 = vsub.f32 %v5752_v63, %v5756_v40  ;;  %v10223_v63 = vld [vmem:[#allocation16 + $0x3] ss:$0 sm:$0xff] }
0x313f   : > { %v5758_v20 = vmul.f32 %v5757_v33, %v5757_v33 }
0x3141   : > { %v5759_v26 = vsel %vm1903_vm3, %v5758_v20, 0.0 }
0x3142   : > { %5760 = vadd.xlane.f32.xlu0 %v5759_v26  ;;  %v11970_v26 = vpack.c.bf16 %v6072_v1, %v6071_v29  ;;  %v6081_v1 = vld [vmem:[#allocation23] sm:$0xff] }
0x3158   : > { %5979 = vperm.xlu0 %12435, %v5977_v2  }
0x31cf   : > { %v5761_v48 = vpop.xlane.xlu0 %5760 }
0x31d0   : > { %v5762_v50 = vmul.f32 0.03125, %v5761_v48 }
0x31d2   : > { %v5763_v53 = vadd.f32 1e-06, %v5762_v50  ;;  %v10238_v50 = vld [vmem:[%s1527_s3] ss:$0 sm:$0xff]  ;;  %s15456_s3 = sld [smem:[#allocation80_spill]] }
0x31d4   : > { %12509 = vrsqrt.f32 %v5763_v53  ;;  %v10237_v53 = vsel %vm6061_vm2, 1.0, %v13388_v21 }
0x31d7   : > { %v5980_v23 = vpop.permute.xlu0 %5979 }
0x31d8   : > { %vm5981_vm1 = vcmp.eq.s32.totalorder %v14150_v19, %v5980_v23 }
0x31de   : > { %v12510_v30 = vpop.eup %12509 }
0x31df   : > { %v5765_v41 = vmul.f32 %v12510_v30, %v5757_v33  ;;  %v12571_v30 = vld [vmem:[#allocation17 + $0x1] ss:$0 sm:$0xff] }
0x31e1   : > { %v5770_v12 = vmul.f32 %v5769_v38, %v5765_v41  ;;  %v6070_v38 = vmul.f32 %v10238_v50, %v10237_v53  ;;  %v3341_v41 = vadd.f32 %v12571_v30, %v14462_v39  ;;  %v10252_v30 = vld [vmem:[%s15454_s5 + $0x20] sm:$0xff] }
0x31e3   : > { %v14769_v15 = vadd.f32 %v5774_v54, %v5770_v12  ;;  %vm6318_vm5 = vcmp.gt.f32.partialorder %v6070_v38, 0.0 }
0x31e5   : > { %11261 = vmatmul.mubr.msk.f32.vlgmr.msra.gmra.mrb[44].mxu1 %vm1903_vm3, %v14769_v15 }
0x31e6   : > { %11959 = vmatpush3.bf16.msra.mxu1 %v14124_v7  ;;  %11298 = vmatprep.mubr.msk.f32.mxu1 %vm13391_vm8, %v13388_v21  ;;  %v10235_v7 = vsel %vm5981_vm1, 1.0, %v13388_v21 }
0x31e7   : > { %11960 = vmatprep.subr.bf16.mxu1 %v13390_v31 }
0x31ea   : > { %11962 = vmatpush3.bf16.msra.mxu1 %v14126_v8  ;;  %v10231_v8 = vld [vmem:[%s15446_s17 + $0xf0] sm:$0xff] }
0x31eb   : > { %11963 = vmatprep.subr.bf16.mxu1 %v13390_v31 }
0x31ee   : > { %11965 = vmatpush3.bf16.msra.mxu1 %v14133_v11  ;;  %v10232_v11 = vld [vmem:[%s15446_s17 + $0xf8] sm:$0xff] }
0x31ef   : > { %11966 = vmatprep.subr.bf16.mxu1 %v13390_v31  ;;  %v11955_v49 = vpack.c.bf16 %v10232_v11, %v10231_v8  ;;  %v3345_v11 = vadd.f32 %v3341_v41, %v14417_v34  ;;  %v3344_v34 = vadd.f32 %v14464_v6, %v14413_v24  ;;  %v10253_v41 = vld [vmem:[%s15454_s5 + $0x28] sm:$0xff] }
0x31f1   : > { %11956 = vmatpush3.bf16.msra.mxu0 %v11955_v49  ;;  %v3349_v56 = vsel %vm1903_vm3, %v3345_v11, 0.0 }
0x31f2   : > { %11968 = vmatpush3.bf16.msra.mxu1 %v14143_v17  ;;  %11969 = vmatprep.subr.bf16.mxu0 %v13390_v31  ;;  %v6077_v17 = vld [vmem:[%s15454_s5 + $0x8] sm:$0xff] }
0x31f3   : > { %11975 = vmatprep.subr.bf16.mxu1 %v13390_v31  ;;  %v11976_v59 = vpack.c.bf16 %v6077_v17, %v6076_v27 }
0x31f5   : > { %11299 = vmatmul.mubr.msk.f32.vlgmr.msra.gmra.mrb[46].mxu1 %vm1795_vm0, %v10235_v7 }
0x31f6   : > { %11320 = vmatprep.mubr.msk.f32.mxu1 %vm13391_vm8, %v13388_v21  ;;  %11977 = vmatpush3.bf16.msra.mxu1 %v11976_v59 }
0x31f7   : > { %11978 = vmatprep.subr.bf16.mxu1 %v13390_v31 }
0x31fa   : > { %11980 = vmatpush3.bf16.msra.mxu1 %v11979_v61  ;;  %v3346_v61 = vsel %vm1903_vm3, %v3344_v34, 0.0 }
0x31fb   : > { %11328 = vmatprep.subr.mxu1 %v13388_v21 }
0x32b8   : > { %v5858_v40 = vpop.f32.mrb[44].mxu1 }
0x32b9   : > { %v5859_v33 = vadd.f32 %v10223_v63, %v5858_v40  ;;  %v11262_v20 = vpop.f32.mrb[45].mxu1  ;;  %v14840_v63 = vadd.f32 %v4654_v60, %v14594_v9  ;;  %v6082_v40 = vld [vmem:[#allocation23 + $0x8] sm:$0xff] }
0x32ba   : > { %v11982_v20 = vpack.c.bf16 %v6082_v40, %v6081_v1 }
0x32bb   : > { %v5862_v2 = vmax.f32 %v5859_v33, 0.0  ;;  %v4658_v29 = vsel %vm1903_vm3, %v14840_v63, 0.0  ;;  %v6083_v33 = vld [vmem:[#allocation23 + $0x10] sm:$0xff] }
0x32bd   : > { %11280 = vmatmul.mubr.msk.f32.vlgmr.msra.gmra.mrb[42].mxu0 %vm1795_vm0, %v5862_v2 }
0x32be   : > { %11971 = vmatpush3.bf16.msra.mxu0 %v11970_v26  ;;  %11309 = vmatprep.mubr.msk.f32.mxu0 %vm13391_vm8, %v13388_v21  ;;  %v6084_v26 = vld [vmem:[#allocation23 + $0x18] sm:$0xff] }
0x32bf   : > { %11972 = vmatprep.subr.bf16.mxu0 %v13390_v31  ;;  %v11985_v16 = vpack.c.bf16 %v6084_v26, %v6083_v33 }
0x32c2   : > { %11974 = vmatpush3.bf16.msra.mxu0 %v11973_v55 }
0x32c3   : > { %11323 = vmatprep.subr.mxu0 %v13388_v21 }
0x32c8   : > { %v6053_v13 = vpop.f32.mrb[46].mxu1 }
0x32c9   : > { %v6057_v22 = vmul.f32 5.656854, %v6053_v13  ;;  %v11300_v3 = vpop.f32.mrb[47].mxu1 }
0x32ca   : > { %v10246_v3 = vld [vmem:[#allocation25] ss:$0 sm:$0xff] }
0x32cb   : > { %v14807_v35 = vadd.f32 %v14627_v4, %v6057_v22 }
0x32cd   : > { %11310 = vmatmul.mubr.msk.f32.vlgmr.msra.gmra.mrb[44].mxu0 %vm1903_vm3, %v14807_v35  ;;  %11321 = vmatmul.mubr.msk.f32.vlgmr.msra.gmra.mrb[48].mxu1 %vm1903_vm3, %v14807_v35 }
0x32ce   : > { %11325 = vmatprep.mubr.msk.f32.mxu0 %vm13391_vm8, %v13388_v21  ;;  %11330 = vmatprep.mubr.msk.f32.mxu1 %vm13391_vm8, %v13388_v21 }
0x3390   : > { %v14817_v46 = vpop.f32.mrb[42].mxu0 }
0x3391   : > { %v11281_v47 = vpop.f32.mrb[43].mxu0 }
0x33a0   : > { %v6161_v52 = vpop.f32.mrb[44].mxu0  ;;  %v6237_v4 = vpop.f32.mrb[48].mxu1 }
0x33a1   : > { %v6238_v36 = vadd.f32 %v10241_v42, %v6237_v4  ;;  %v11311_v5 = vpop.f32.mrb[45].mxu0  ;;  %v11322_v58 = vpop.f32.mrb[49].mxu1  ;;  %v6162_v48 = vadd.f32 %v10239_v45, %v6161_v52 }
0x33a3   : > { %11324 = vmatpush3.xpose.msk.msra.mxu0 %vm1903_vm3, %v6238_v36 }
0x33a4   : > { %11981 = vmatprep.subr.bf16.mxu0 %v13390_v31 }
0x33a6   : > { %11326 = vmatmul.mubr.msk.f32.vlgmr.msra.gmra.mrb[46].mxu0 %vm1903_vm3, %v6162_v48 }
0x33a7   : > { %11341 = vmatprep.mubr.msk.f32.mxu0 %vm13391_vm8, %v13388_v21  ;;  %11983 = vmatpush3.bf16.msra.mxu0 %v11982_v20 }
0x33a8   : > { %11984 = vmatprep.subr.bf16.mxu0 %v13390_v31 }
0x33ab   : > { %11986 = vmatpush3.bf16.msra.mxu0 %v11985_v16 }
0x3479   : > { %v6313_v54 = vpop.f32.mrb[46].mxu0 }
0x347a   : > { %v6317_v12 = vmul.f32 0.17677669, %v6313_v54  ;;  %v11327_v23 = vpop.f32.mrb[47].mxu0  ;;  %v11993_v54 = vpack.c.bf16 %v10253_v41, %v10252_v30 }
0x347c   : > { %v6319_v7 = vsel %vm6318_vm5, %v6317_v12, -1e+09  ;;  %11994 = vmatprep.subr.bf16.mxu0 %v11993_v54  ;;  %v10254_v12 = vld [vmem:[%s15454_s5 + $0x30] sm:$0xff] }
0x347d   : > { %v6320_v8 = vsel %vm3694_vm12, %v6319_v7, -inf }
0x347e   : > { %6321 = vmax.xlane.f32.xlu0 %v6320_v8 }
0x3482   : > { %3350 = vadd.xlane.f32.xlu0 %v3349_v56 }
0x350b   : > { %v6322_v49 = vpop.xlane.xlu0 %6321 }
0x350c   : > { %v6323_v27 = vsub.f32 %v6319_v7, %v6322_v49 }
0x350e   : > { %v6324_v17 = vmul.f32 1.442695, %v6323_v27 }
0x350f   : > { %v3351_v22 = vpop.xlane.xlu0 %3350 }
0x3510   : > { %12511 = vpow2.f32 %v6324_v17  ;;  %v3353_v42 = vmul.f32 0.03125, %v3351_v22 }
0x3512   : > { %v3355_v5 = vsub.f32 %v3345_v11, %v3353_v42 }
0x3514   : > { %v3357_v53 = vmul.f32 %v3355_v5, %v3355_v5 }
0x3516   : > { %v3361_v38 = vsel %vm1903_vm3, %v3357_v53, 0.0 }
0x351a   : > { %v12512_v59 = vpop.eup %12511 }
0x351b   : > { %v6326_v39 = vsel %vm3694_vm12, %v12512_v59, 0.0 }
0x351c   : > { %6327 = vadd.xlane.f32.xlu1 %v6326_v39 }
0x352d   : > { %6331 = vrot.lane.b32.xlu1 %v6238_v36, %s13389_s18 }
0x3551   : > { %3347 = vadd.xlane.f32.xlu1 %v3346_v61 }
0x3555   : > { %4659 = vadd.xlane.f32.xlu1 %v4658_v29 }
0x35a9   : > { %v6328_v24 = vpop.xlane.xlu1 %6327 }
0x35aa   : > { %12513 = vrcp.f32 %v6328_v24 }
0x35ad   : > { %v6332_v6 = vpop.permute.xlu1 %6331 }
0x35ae   : > { %11329 = vmatpush3.msra.mxu1 %v6332_v6 }
0x35af   : > { %11987 = vmatprep.subr.bf16.mxu1 %v13390_v31 }
0x35b4   : > { %v12514_v9 = vpop.eup %12513 }
0x35b5   : > { %v6330_v2 = vmul.f32 %v12514_v9, %v12512_v59 }
0x35b7   : > { %11331 = vmatmul.mubr.msk.f32.vlgmr.msra.gmra.mrb[50].mxu1 %vm3694_vm12, %v6330_v2  ;;  %v10248_v2 = vld [vmem:[%s15455_s1 + $0x20] sm:$0xff] }
0x35b8   : > { %11352 = vmatprep.mubr.msk.f32.mxu1 %vm13391_vm8, %v13388_v21 }
0x35de   : > { %v3348_v55 = vpop.xlane.xlu1 %3347 }
0x35df   : > { %v3352_v13 = vmul.f32 0.03125, %v3348_v55  ;;  %v10250_v55 = vld [vmem:[%s15455_s1 + $0x30] sm:$0xff] }
0x35e1   : > { %v3354_v52 = vsub.f32 %v3344_v34, %v3352_v13  ;;  %v12572_v34 = vld [vmem:[#allocation19 + $0x4] sm:$0xf]  ;;  %v10251_v13 = vld [vmem:[%s15455_s1 + $0x38] sm:$0xff] }
0x35e2   : > { %v3375_v61 = vrot.slane %v12572_v34, %v14335_v14  ;;  %v3381_v40 = vrot.slane %v12572_v34, %v14338_v18  ;;  %v11991_v22 = vpack.c.bf16 %v10251_v13, %v10250_v55 }
0x35e3   : > { %v3356_v48 = vmul.f32 %v3354_v52, %v3354_v52 }
0x35e5   : > { %v3358_v50 = vsel %vm1903_vm3, %v3356_v48, 0.0 }
0x368a   : > { %v6403_v32 = vpop.f32.mrb[50].mxu1 }
0x368b   : > { %v11332_v10 = vpop.f32.mrb[51].mxu1  ;;  %11342 = vmatmul.mubr.msk.f32.vlgmr.msra.gmra.mrb[48].mxu0 %vm1903_vm3, %v6403_v32  ;;  %v10249_v32 = vld [vmem:[%s15455_s1 + $0x28] sm:$0xff] }
0x368c   : > { %11996 = vmatpush3.bf16.msra.mxu0 %v11993_v54  ;;  %v11988_v10 = vpack.c.bf16 %v10249_v32, %v10248_v2 }
0x368e   : > { %11989 = vmatpush3.bf16.msra.mxu1 %v11988_v10 }
0x368f   : > { %11990 = vmatprep.subr.bf16.mxu1 %v13390_v31 }
0x3692   : > { %11992 = vmatpush3.bf16.msra.mxu1 %v11991_v22  ;;  %v4660_v22 = vpop.xlane.xlu1 %4659 }
0x3693   : > { %12001 = vmatprep.subr.bf16.mxu1 %v13390_v31 }
0x375e   : > { %v6482_v47 = vpop.f32.mrb[48].mxu0 }
0x375f   : > { %v6483_v4 = vadd.f32 %v10246_v3, %v6482_v47  ;;  %v11343_v45 = vpop.f32.mrb[49].mxu0 }
0x3761   : > { %v6486_v36 = vadd.f32 %v6483_v4, %v14807_v35  ;;  %v10255_v35 = vld [vmem:[%s15454_s5 + $0x38] sm:$0xff] }
0x3762   : > { %v11997_v23 = vpack.c.bf16 %v10255_v35, %v10254_v12  ;;  %v10256_v35 = vld [vmem:[#allocation20 + $0x1] ss:$0 sm:$0xff] }
0x3763   : > { %v6488_v58 = vsel %vm1903_vm3, %v6486_v36, 0.0 }
0x3764   : > { %6489 = vadd.xlane.f32.xlu0 %v6488_v58  ;;  %11998 = vmatprep.subr.bf16.mxu0 %v11997_v23 }
0x3765   : > { %12000 = vmatpush3.bf16.msra.mxu0 %v11997_v23 }
0x3766   : > { %12005 = vmatprep.subr.bf16.mxu0 %v13390_v31 }
0x3768   : > { %3359 = vadd.xlane.f32.xlu0 %v3358_v50  ;;  %v10258_v50 = vld [vmem:[#allocation22 + $0x1] ss:$0 sm:$0xff] }
0x376c   : > { %3362 = vadd.xlane.f32.xlu0 %v3361_v38 }
0x37f1   : > { %v6490_v7 = vpop.xlane.xlu0 %6489 }
0x37f2   : > { %v6491_v8 = vmul.f32 0.03125, %v6490_v7 }
0x37f4   : > { %v6492_v11 = vsub.f32 %v6486_v36, %v6491_v8 }
0x37f5   : > { %v3360_v56 = vpop.xlane.xlu0 %3359 }
0x37f6   : > { %v3364_v49 = vmul.f32 0.03125, %v3360_v56  ;;  %v6493_v27 = vmul.f32 %v6492_v11, %v6492_v11 }
0x37f8   : > { %v3366_v17 = vadd.f32 1e-06, %v3364_v49  ;;  %v6494_v59 = vsel %vm1903_vm3, %v6493_v27, 0.0 }
0x37f9   : > { %6495 = vadd.xlane.f32.xlu0 %v6494_v59  ;;  %v3363_v39 = vpop.xlane.xlu0 %3362 }
0x37fa   : > { %12515 = vrsqrt.f32 %v3366_v17  ;;  %v3365_v25 = vmul.f32 0.03125, %v3363_v39 }
0x37fc   : > { %v3367_v60 = vadd.f32 1e-06, %v3365_v25 }
0x37fe   : > { %12517 = vrsqrt.f32 %v3367_v60 }
0x3804   : > { %v12516_v29 = vpop.eup %12515 }
0x3805   : > { %v3370_v1 = vmul.f32 %v12516_v29, %v3354_v52  ;;  %v6487_v52 = vld [vmem:[#allocation28] sm:$0x3]  ;;  %v6527_v29 = vld [vmem:[#allocation23 + $0x28] sm:$0xff] }
0x3806   : > { %v6504_v4 = vrot.slane %v6487_v52, %v14216_v57 }
0x3807   : > { %v3376_v33 = vmul.f32 %v3375_v61, %v3370_v1  ;;  %v6528_v1 = vld [vmem:[#allocation23 + $0x30] sm:$0xff] }
0x3808   : > { %v12518_v20 = vpop.eup %12517 }
0x3809   : > { %v3371_v26 = vmul.f32 %v12518_v20, %v3355_v5  ;;  %v3382_v16 = vadd.f32 %v3381_v40, %v3376_v33  ;;  %v6509_v5 = vrot.slane %v6487_v52, %v14292_v44  ;;  %v6529_v33 = vld [vmem:[#allocation23 + $0x38] sm:$0xff] }
0x380a   : > { %v12012_v20 = vpack.c.bf16 %v6529_v33, %v6528_v1  ;;  %v10269_v1 = vld [vmem:[%s15455_s1 + $0x50] sm:$0xff] }
0x380b   : > { %v3377_v24 = vmul.f32 %v3375_v61, %v3371_v26  ;;  %11363 = vmatprep.mubr.msk.f32.mxu0 %vm1903_vm3, %v3382_v16  ;;  %v6526_v61 = vld [vmem:[#allocation23 + $0x20] sm:$0xff] }
0x380d   : > { %v3383_v6 = vadd.f32 %v3381_v40, %v3377_v24  ;;  %v12009_v40 = vpack.c.bf16 %v6527_v29, %v6526_v61  ;;  %v10268_v61 = vld [vmem:[%s15455_s1 + $0x48] sm:$0xff] }
0x380f   : > { %11364 = vmatmul.mubr.msk.f32.vlgmr.msra.gmra.mrb[50].mxu0 %vm1903_vm3, %v3383_v6  ;;  %v14864_v9 = vpack.c.bf16 %v3383_v6, %v3382_v16 }
0x3810   : > { %11377 = vmatprep.mubr.msk.f32.mxu0 %vm13391_vm8, %v13388_v21 }
0x3886   : > { %v6496_v3 = vpop.xlane.xlu0 %6495 }
0x3887   : > { %v6497_v47 = vmul.f32 0.03125, %v6496_v3  ;;  %v4661_v3 = vmul.f32 0.03125, %v4660_v22  ;;  %v10277_v22 = vld [vmem:[#allocation22 + $0x2] ss:$0 sm:$0xff] }
0x3889   : > { %v6498_v42 = vadd.f32 1e-06, %v6497_v47  ;;  %v10265_v47 = vld [vmem:[#allocation25 + $0x1] ss:$0 sm:$0xff]  ;;  %v4662_v52 = vsub.f32 %v14840_v63, %v4661_v3 }
0x388b   : > { %12519 = vrsqrt.f32 %v6498_v42 }
0x3895   : > { %v12520_v45 = vpop.eup %12519 }
0x3896   : > { %v6500_v36 = vmul.f32 %v12520_v45, %v6492_v11 }
0x3898   : > { %v6505_v58 = vmul.f32 %v6504_v4, %v6500_v36 }
0x389a   : > { %v14876_v48 = vadd.f32 %v6509_v5, %v6505_v58  ;;  %v4663_v58 = vmul.f32 %v4662_v52, %v4662_v52 }
0x389c   : > { %11353 = vmatmul.mubr.msk.f32.vlgmr.msra.gmra.mrb[52].mxu1 %vm1903_vm3, %v14876_v48 }
0x389d   : > { %11370 = vmatprep.mubr.msk.f32.mxu1 %vm13391_vm8, %v13388_v21 }
0x38e2   : > { %v11365_v53 = vpop.f32.mrb[50].mxu0 }
0x38e3   : > { %v6695_v38 = vadd.f32 %v11365_v53, %v10258_v50  ;;  %v6689_v30 = vpop.f32.mrb[51].mxu0  ;;  %v10271_v53 = vld [vmem:[%s15454_s5 + $0x40] sm:$0xff] }
0x38e4   : > { %v6690_v41 = vadd.f32 %v10258_v50, %v6689_v30  ;;  %v4664_v50 = vsel %vm1903_vm3, %v4663_v58, 0.0 }
0x38e6   : > { %v12447_v54 = vpack.i.bf16 %v6695_v38, %v6690_v41  ;;  %v12002_v12 = vpack.c.bf16 %v6695_v38, %v6690_v41  ;;  %v10272_v38 = vld [vmem:[%s15454_s5 + $0x48] sm:$0xff]  ;;  %v10273_v41 = vld [vmem:[%s15454_s5 + $0x50] sm:$0xff] }
0x38e7   : > { %v12021_v30 = vpack.c.bf16 %v10272_v38, %v10271_v53 }
0x38e8   : > { %12004 = vmatpush3.bf16.xpose.msk.msra.mxu1 %vm14201_vm4, %v12002_v12 }
0x38e9   : > { %12008 = vmatprep.subr.bf16.mxu1 %v13390_v31 }
0x396f   : > { %v6607_v23 = vpop.f32.mrb[52].mxu1 }
0x3970   : > { %v6608_v7 = vadd.f32 %v10256_v35, %v6607_v23  ;;  %v11354_v8 = vpop.f32.mrb[53].mxu1 }
0x3972   : > { %11371 = vmatmul.mubr.msk.f32.vlgmr.msra.gmra.mrb[54].mxu1 %vm1903_vm3, %v6608_v7 }
0x3973   : > { %11388 = vmatprep.mubr.msk.f32.mxu1 %vm13391_vm8, %v13388_v21  ;;  %12010 = vmatpush3.bf16.msra.mxu1 %v12009_v40  ;;  %v10270_v40 = vld [vmem:[%s15455_s1 + $0x58] sm:$0xff] }
0x3974   : > { %12011 = vmatprep.subr.bf16.mxu1 %v13390_v31  ;;  %v12018_v33 = vpack.c.bf16 %v10270_v40, %v10269_v1  ;;  %v10282_v1 = vld [vmem:[#allocation25 + $0x2] ss:$0 sm:$0xff] }
0x3977   : > { %12013 = vmatpush3.bf16.msra.mxu1 %v12012_v20 }
0x3978   : > { %12020 = vmatprep.subr.bf16.mxu1 %v13390_v31 }
0x3a45   : > { %v6773_v11 = vpop.f32.mrb[54].mxu1 }
0x3a46   : > { %v6777_v56 = vmul.f32 0.17677669, %v6773_v11  ;;  %v11372_v49 = vpop.f32.mrb[55].mxu1 }
0x3a47   : > { %v12573_v49 = vld [vmem:[#allocation19 + $0x8] sm:$0xf] }
0x3a48   : > { %v6778_v27 = vsel %vm14220_vm6, %v6777_v56, -1e+09 }
0x3a49   : > { %v6779_v17 = vsel %vm2164_vm7, %v6778_v27, -inf }
0x3a4a   : > { %6780 = vmax.xlane.f32.xlu0 %v6779_v17 }
0x3ad7   : > { %v6781_v59 = vpop.xlane.xlu0 %6780 }
0x3ad8   : > { %v6782_v39 = vsub.f32 %v6778_v27, %v6781_v59  ;;  %v4674_v27 = vrot.slane %v12573_v49, %v14335_v14 }
0x3ada   : > { %v6783_v25 = vmul.f32 1.442695, %v6782_v39  ;;  %v4679_v39 = vrot.slane %v12573_v49, %v14338_v18 }
0x3adc   : > { %12521 = vpow2.f32 %v6783_v25 }
0x3ae6   : > { %v12522_v60 = vpop.eup %12521 }
0x3ae7   : > { %v6785_v34 = vsel %vm2164_vm7, %v12522_v60, 0.0 }
0x3ae8   : > { %6786 = vadd.xlane.f32.xlu0 %v6785_v34  ;;  %v10267_v34 = vld [vmem:[%s15455_s1 + $0x40] sm:$0xff] }
0x3ae9   : > { %v12015_v29 = vpack.c.bf16 %v10268_v61, %v10267_v34 }
0x3afe   : > { %12448 = vrot.lane.b32.xlu0 %v12447_v54, %s13389_s18  ;;  %v10274_v54 = vld [vmem:[%s15454_s5 + $0x58] sm:$0xff] }
0x3aff   : > { %v12024_v63 = vpack.c.bf16 %v10274_v54, %v10273_v41 }
0x3b75   : > { %v6787_v26 = vpop.xlane.xlu0 %6786 }
0x3b76   : > { %12523 = vrcp.f32 %v6787_v26 }
0x3b79   : > { %v12449_v16 = vpop.permute.xlu0 %12448 }
0x3b7a   : > { %v12451_v24 = vunpack.i.h.bf16 %v12449_v16  ;;  %v12450_v6 = vunpack.i.l.bf16 %v12449_v16 }
0x3b7c   : > { %v12006_v2 = vpack.c.bf16 %v12451_v24, %v12450_v6  ;;  %v6950_v24 = vld [vmem:[#allocation28 + $0x2] sm:$0x3] }
0x3b7d   : > { %v6967_v6 = vrot.slane %v6950_v24, %v14216_v57 }
0x3b7e   : > { %12007 = vmatpush3.bf16.msra.mxu0 %v12006_v2 }
0x3b7f   : > { %12014 = vmatprep.subr.bf16.mxu0 %v13390_v31 }
0x3b80   : > { %v12524_v32 = vpop.eup %12523 }
0x3b81   : > { %v6789_v10 = vmul.f32 %v12524_v32, %v12522_v60 }
0x3b83   : > { %11378 = vmatmul.mubr.msk.f32.vlgmr.msra.gmra.mrb[52].mxu0 %vm2164_vm7, %v6789_v10  ;;  %v6972_v10 = vrot.slane %v6950_v24, %v14292_v44 }
0x3b84   : > { %11399 = vmatprep.mubr.msk.f32.mxu0 %vm13391_vm8, %v13388_v21  ;;  %12016 = vmatpush3.bf16.msra.mxu0 %v12015_v29 }
0x3b85   : > { %12017 = vmatprep.subr.bf16.mxu0 %v13390_v31 }
0x3b88   : > { %12019 = vmatpush3.bf16.msra.mxu0 %v12018_v33 }
0x3b89   : > { %11413 = vmatprep.subr.mxu0 %v13388_v21 }
0x3c56   : > { %v6865_v55 = vpop.f32.mrb[52].mxu0 }
0x3c57   : > { %v11379_v13 = vpop.f32.mrb[53].mxu0  ;;  %11389 = vmatmul.mubr.msk.f32.vlgmr.msra.gmra.mrb[56].mxu1 %vm1903_vm3, %v6865_v55 }
0x3c58   : > { %11410 = vmatprep.mubr.msk.f32.mxu1 %vm13391_vm8, %v13388_v21  ;;  %12022 = vmatpush3.bf16.msra.mxu1 %v12021_v30  ;;  %v10233_v30 = vld [vmem:[#allocation17 + $0x3] ss:$0 sm:$0xff] }
0x3c59   : > { %12023 = vmatprep.subr.bf16.mxu1 %v13390_v31  ;;  %v5950_v41 = vadd.f32 %v10233_v30, %v14817_v46  ;;  %v6991_v46 = vld [vmem:[#allocation23 + $0x50] sm:$0xff]  ;;  %v5975_v30 = vrot.slane %v14763_v43, %v14338_v18 }
0x3c5b   : > { %v5953_v54 = vadd.f32 %v5950_v41, %v14769_v15  ;;  %v6992_v15 = vld [vmem:[#allocation23 + $0x58] sm:$0xff] }
0x3c5c   : > { %12025 = vmatpush3.bf16.msra.mxu1 %v12024_v63 }
0x3c5d   : > { %12026 = vmatprep.subr.bf16.mxu1 %v13390_v31  ;;  %v5954_v63 = vsel %vm1903_vm3, %v5953_v54, 0.0 }
0x3d2a   : > { %v6944_v42 = vpop.f32.mrb[56].mxu1 }
0x3d2b   : > { %v6945_v4 = vadd.f32 %v10265_v47, %v6944_v42  ;;  %v11390_v45 = vpop.f32.mrb[57].mxu1 }
0x3d2d   : > { %v6948_v36 = vadd.f32 %v6945_v4, %v14876_v48 }
0x3d2f   : > { %v6951_v5 = vsel %vm1903_vm3, %v6948_v36, 0.0 }
0x3d30   : > { %6952 = vadd.xlane.f32.xlu1 %v6951_v5 }
0x3d34   : > { %4665 = vadd.xlane.f32.xlu1 %v4664_v50 }
0x3dbd   : > { %v6953_v48 = vpop.xlane.xlu1 %6952 }
0x3dbe   : > { %v6954_v12 = vmul.f32 0.03125, %v6953_v48 }
0x3dc0   : > { %v6955_v35 = vsub.f32 %v6948_v36, %v6954_v12 }
0x3dc1   : > { %v4666_v23 = vpop.xlane.xlu1 %4665 }
0x3dc2   : > { %v4667_v7 = vmul.f32 0.03125, %v4666_v23  ;;  %v6956_v8 = vmul.f32 %v6955_v35, %v6955_v35 }
0x3dc4   : > { %v4668_v11 = vadd.f32 1e-06, %v4667_v7  ;;  %v6957_v56 = vsel %vm1903_vm3, %v6956_v8, 0.0 }
0x3dc5   : > { %6958 = vadd.xlane.f32.xlu1 %v6957_v56  ;;  %v6990_v56 = vld [vmem:[#allocation23 + $0x48] sm:$0xff] }
0x3dc6   : > { %12525 = vrsqrt.f32 %v4668_v11  ;;  %v6989_v11 = vld [vmem:[#allocation23 + $0x40] sm:$0xff] }
0x3dc7   : > { %v12027_v49 = vpack.c.bf16 %v6990_v56, %v6989_v11 }
0x3dd0   : > { %v12526_v17 = vpop.eup %12525 }
0x3dd1   : > { %v4670_v59 = vmul.f32 %v12526_v17, %v4662_v52  ;;  %v10275_v52 = vld [vmem:[#allocation20 + $0x2] ss:$0 sm:$0xff] }
0x3dd3   : > { %v4675_v25 = vmul.f32 %v4674_v27, %v4670_v59  ;;  %v12030_v27 = vpack.c.bf16 %v6992_v15, %v6991_v46 }
0x3dd5   : > { %v14915_v60 = vadd.f32 %v4679_v39, %v4675_v25 }
0x3dd7   : > { %11411 = vmatmul.mubr.msk.f32.vlgmr.msra.gmra.mrb[58].mxu1 %vm1903_vm3, %v14915_v60 }
0x3dd8   : > { %11431 = vmatprep.mubr.msk.f32.mxu1 %vm13391_vm8, %v13388_v21  ;;  %12028 = vmatpush3.bf16.msra.mxu1 %v12027_v49 }
0x3dd9   : > { %12029 = vmatprep.subr.bf16.mxu1 %v13390_v31 }
0x3ddc   : > { %12031 = vmatpush3.bf16.msra.mxu1 %v12030_v27 }
0x3ddd   : > { %12038 = vmatprep.subr.bf16.mxu1 %v13390_v31 }
0x3e52   : > { %v6959_v20 = vpop.xlane.xlu1 %6958 }
0x3e53   : > { %v6960_v26 = vmul.f32 0.03125, %v6959_v20 }
0x3e55   : > { %v6961_v16 = vadd.f32 1e-06, %v6960_v26 }
0x3e57   : > { %12527 = vrsqrt.f32 %v6961_v16 }
0x3e61   : > { %v12528_v2 = vpop.eup %12527 }
0x3e62   : > { %v6963_v32 = vmul.f32 %v12528_v2, %v6955_v35 }
0x3e64   : > { %v6968_v55 = vmul.f32 %v6967_v6, %v6963_v32  ;;  %v10288_v32 = vld [vmem:[%s15454_s5 + $0x60] sm:$0xff] }
0x3e66   : > { %v14929_v13 = vadd.f32 %v6972_v10, %v6968_v55  ;;  %v10289_v10 = vld [vmem:[%s15454_s5 + $0x68] sm:$0xff] }
0x3e67   : > { %v12039_v55 = vpack.c.bf16 %v10289_v10, %v10288_v32 }
0x3e68   : > { %11400 = vmatmul.mubr.msk.f32.vlgmr.msra.gmra.mrb[54].mxu0 %vm1903_vm3, %v14929_v13 }
0x3e69   : > { %11415 = vmatprep.mubr.msk.f32.mxu0 %vm13391_vm8, %v13388_v21 }
0x3eaa   : > { %v7149_v3 = vpop.f32.mrb[58].mxu1 }
0x3eab   : > { %v7150_v47 = vadd.f32 %v10277_v22, %v7149_v3  ;;  %v11412_v42 = vpop.f32.mrb[59].mxu1  ;;  %v10290_v22 = vld [vmem:[%s15454_s5 + $0x70] sm:$0xff]  ;;  %v10291_v3 = vld [vmem:[%s15454_s5 + $0x78] sm:$0xff] }
0x3ead   : > { %11414 = vmatpush3.xpose.msk.msra.mxu0 %vm1903_vm3, %v7150_v47 }
0x3eae   : > { %11418 = vmatprep.subr.mxu0 %v13388_v21 }
0x3f3b   : > { %v7070_v4 = vpop.f32.mrb[54].mxu0 }
0x3f3c   : > { %v7071_v45 = vadd.f32 %v10275_v52, %v7070_v4  ;;  %v11401_v36 = vpop.f32.mrb[55].mxu0 }
0x3f3e   : > { %11416 = vmatmul.mubr.msk.f32.vlgmr.msra.gmra.mrb[56].mxu0 %vm1903_vm3, %v7071_v45 }
0x3f3f   : > { %11420 = vmatprep.mubr.msk.f32.mxu0 %vm13391_vm8, %v13388_v21 }
0x4011   : > { %v7225_v5 = vpop.f32.mrb[56].mxu0 }
0x4012   : > { %v7229_v58 = vmul.f32 0.17677669, %v7225_v5  ;;  %v11417_v50 = vpop.f32.mrb[57].mxu0 }
0x4013   : > { %v5970_v50 = vrot.slane %v14763_v43, %v14335_v14  ;;  %v10286_v14 = vld [vmem:[%s15455_s1 + $0x70] sm:$0xff] }
0x4014   : > { %v7230_v53 = vsel %vm14481_vm11, %v7229_v58, -1e+09 }
0x4015   : > { %v7231_v38 = vsel %vm3694_vm12, %v7230_v53, -inf }
0x4016   : > { %7232 = vmax.xlane.f32.xlu1 %v7231_v38 }
0x4027   : > { %7242 = vrot.lane.b32.xlu1 %v7150_v47, %s13389_s18  ;;  %v12042_v47 = vpack.c.bf16 %v10291_v3, %v10290_v22  ;;  %v7439_v22 = vld [vmem:[#allocation23 + $0x68] sm:$0xff]  ;;  %v7440_v3 = vld [vmem:[#allocation23 + $0x70] sm:$0xff] }
0x404b   : > { %5955 = vadd.xlane.f32.xlu1 %v5954_v63  ;;  %v10284_v63 = vld [vmem:[%s15455_s1 + $0x60] sm:$0xff] }
0x40a3   : > { %v7233_v48 = vpop.xlane.xlu1 %7232 }
0x40a4   : > { %v7234_v12 = vsub.f32 %v7230_v53, %v7233_v48  ;;  %v10285_v48 = vld [vmem:[%s15455_s1 + $0x68] sm:$0xff] }
0x40a6   : > { %v7235_v35 = vmul.f32 1.442695, %v7234_v12  ;;  %v12033_v12 = vpack.c.bf16 %v10285_v48, %v10284_v63 }
0x40a7   : > { %v7243_v23 = vpop.permute.xlu1 %7242 }
0x40a8   : > { %12529 = vpow2.f32 %v7235_v35  ;;  %11419 = vmatpush3.msra.mxu0 %v7243_v23  ;;  %v10287_v35 = vld [vmem:[%s15455_s1 + $0x78] sm:$0xff] }
0x40a9   : > { %12032 = vmatprep.subr.bf16.mxu0 %v13390_v31  ;;  %v12036_v23 = vpack.c.bf16 %v10287_v35, %v10286_v14 }
0x40b2   : > { %v12530_v7 = vpop.eup %12529 }
0x40b3   : > { %v7237_v8 = vsel %vm3694_vm12, %v12530_v7, 0.0 }
0x40b4   : > { %7238 = vadd.xlane.f32.xlu0 %v7237_v8  ;;  %v7399_v8 = vld [vmem:[#allocation28 + $0x4] sm:$0x3] }
0x40b5   : > { %v7416_v11 = vrot.slane %v7399_v8, %v14216_v57  ;;  %v7421_v49 = vrot.slane %v7399_v8, %v14292_v44  ;;  %v7874_v8 = vld [vmem:[#allocation26 + $0x10] sm:$0xff] }
0x40d8   : > { %v5956_v61 = vpop.xlane.xlu1 %5955 }
0x40d9   : > { %v5957_v29 = vmul.f32 0.03125, %v5956_v61 }
0x40db   : > { %v5958_v33 = vsub.f32 %v5953_v54, %v5957_v29 }
0x40dd   : > { %v5959_v6 = vmul.f32 %v5958_v33, %v5958_v33 }
0x40df   : > { %v5960_v2 = vsel %vm1903_vm3, %v5959_v6, 0.0 }
0x4141   : > { %v7239_v17 = vpop.xlane.xlu0 %7238 }
0x4142   : > { %12531 = vrcp.f32 %v7239_v17  ;;  %v10294_v17 = vld [vmem:[#allocation22 + $0x3] ss:$0 sm:$0xff] }
0x414c   : > { %v12532_v59 = vpop.eup %12531 }
0x414d   : > { %v7241_v39 = vmul.f32 %v12532_v59, %v12530_v7 }
0x414f   : > { %11421 = vmatmul.mubr.msk.f32.vlgmr.msra.gmra.mrb[58].mxu0 %vm3694_vm12, %v7241_v39 }
0x4150   : > { %11442 = vmatprep.mubr.msk.f32.mxu0 %vm13391_vm8, %v13388_v21  ;;  %12034 = vmatpush3.bf16.msra.mxu0 %v12033_v12 }
0x4151   : > { %12035 = vmatprep.subr.bf16.mxu0 %v13390_v31 }
0x4154   : > { %12037 = vmatpush3.bf16.msra.mxu0 %v12036_v23 }
0x4155   : > { %11456 = vmatprep.subr.mxu0 %v13388_v21 }
0x4222   : > { %v7314_v25 = vpop.f32.mrb[58].mxu0 }
0x4223   : > { %v11422_v34 = vpop.f32.mrb[59].mxu0  ;;  %11432 = vmatmul.mubr.msk.f32.vlgmr.msra.gmra.mrb[60].mxu1 %vm1903_vm3, %v7314_v25 }
0x4224   : > { %11453 = vmatprep.mubr.msk.f32.mxu1 %vm13391_vm8, %v13388_v21  ;;  %12040 = vmatpush3.bf16.msra.mxu1 %v12039_v55  ;;  %v10292_v34 = vld [vmem:[#allocation20 + $0x3] ss:$0 sm:$0xff]  ;;  %v7438_v55 = vld [vmem:[#allocation23 + $0x60] sm:$0xff] }
0x4225   : > { %12041 = vmatprep.subr.bf16.mxu1 %v13390_v31 }
0x4228   : > { %12043 = vmatpush3.bf16.msra.mxu1 %v12042_v47  ;;  %v12045_v47 = vpack.c.bf16 %v7439_v22, %v7438_v55 }
0x4229   : > { %12044 = vmatprep.subr.bf16.mxu1 %v13390_v31 }
0x42f6   : > { %v7393_v40 = vpop.f32.mrb[60].mxu1 }
0x42f7   : > { %v7394_v20 = vadd.f32 %v10282_v1, %v7393_v40  ;;  %v11433_v26 = vpop.f32.mrb[61].mxu1 }
0x42f9   : > { %v7397_v16 = vadd.f32 %v7394_v20, %v14929_v13 }
0x42fb   : > { %v7400_v24 = vsel %vm1903_vm3, %v7397_v16, 0.0 }
0x42fc   : > { %7401 = vadd.xlane.f32.xlu0 %v7400_v24 }
0x4300   : > { %5961 = vadd.xlane.f32.xlu0 %v5960_v2 }
0x4389   : > { %v7402_v13 = vpop.xlane.xlu0 %7401 }
0x438a   : > { %v7403_v42 = vmul.f32 0.03125, %v7402_v13  ;;  %v7441_v13 = vld [vmem:[#allocation23 + $0x78] sm:$0xff] }
0x438c   : > { %v7404_v52 = vsub.f32 %v7397_v16, %v7403_v42  ;;  %v12048_v42 = vpack.c.bf16 %v7441_v13, %v7440_v3 }
0x438d   : > { %v5962_v4 = vpop.xlane.xlu0 %5961 }
0x438e   : > { %v5963_v45 = vmul.f32 0.03125, %v5962_v4  ;;  %v7405_v36 = vmul.f32 %v7404_v52, %v7404_v52 }
0x4390   : > { %v5964_v5 = vadd.f32 1e-06, %v5963_v45  ;;  %v7406_v58 = vsel %vm1903_vm3, %v7405_v36, 0.0 }
0x4391   : > { %7407 = vadd.xlane.f32.xlu0 %v7406_v58 }
0x4392   : > { %12533 = vrsqrt.f32 %v5964_v5 }
0x439c   : > { %v12534_v53 = vpop.eup %12533 }
0x439d   : > { %v5966_v38 = vmul.f32 %v12534_v53, %v5958_v33 }
0x439f   : > { %v5971_v41 = vmul.f32 %v5970_v50, %v5966_v38  ;;  %v10299_v50 = vld [vmem:[#allocation25 + $0x3] ss:$0 sm:$0xff] }
0x43a1   : > { %v14971_v54 = vadd.f32 %v5975_v30, %v5971_v41 }
0x43a3   : > { %11454 = vmatmul.mubr.msk.f32.vlgmr.msra.gmra.mrb[62].mxu1 %vm1903_vm3, %v14971_v54 }
0x43a4   : > { %11474 = vmatprep.mubr.msk.f32.mxu1 %vm13391_vm8, %v13388_v21  ;;  %12046 = vmatpush3.bf16.msra.mxu1 %v12045_v47 }
0x43a5   : > { %12047 = vmatprep.subr.bf16.mxu1 %v13390_v31 }
0x43a8   : > { %12049 = vmatpush3.bf16.msra.mxu1 %v12048_v42  ;;  %v10303_v42 = vld [vmem:[%s15458_s7] ss:$0 sm:$0xff] }
0x43a9   : > { %12056 = vmatprep.subr.bf16.mxu1 %v13390_v31 }
0x441e   : > { %v7408_v18 = vpop.xlane.xlu0 %7407 }
0x441f   : > { %v7409_v43 = vmul.f32 0.03125, %v7408_v18  ;;  %v7872_v18 = vld [vmem:[#allocation26] sm:$0xff] }
0x4421   : > { %v7410_v7 = vadd.f32 1e-06, %v7409_v43  ;;  %v7873_v43 = vld [vmem:[#allocation26 + $0x8] sm:$0xff] }
0x4423   : > { %12535 = vrsqrt.f32 %v7410_v7  ;;  %v12051_v7 = vpack.c.bf16 %v7873_v43, %v7872_v18 }
0x442d   : > { %v12536_v56 = vpop.eup %12535 }
0x442e   : > { %v7412_v46 = vmul.f32 %v12536_v56, %v7404_v52 }
0x4430   : > { %v7417_v15 = vmul.f32 %v7416_v11, %v7412_v46  ;;  %v7875_v11 = vld [vmem:[#allocation26 + $0x18] sm:$0xff] }
0x4431   : > { %v12054_v56 = vpack.c.bf16 %v7875_v11, %v7874_v8  ;;  %v7957_v46 = vld [vmem:[%s15456_s3] sm:$0xff] }
0x4432   : > { %v7422_v27 = vadd.f32 %v7421_v49, %v7417_v15  ;;  %v7958_v49 = vld [vmem:[%s15456_s3 + $0x8] sm:$0xff]  ;;  %v7959_v15 = vld [vmem:[%s15456_s3 + $0x10] sm:$0xff] }
0x4434   : > { %11443 = vmatmul.mubr.msk.f32.vlgmr.msra.gmra.mrb[60].mxu0 %vm1903_vm3, %v7422_v27 }
0x4435   : > { %11458 = vmatprep.mubr.msk.f32.mxu0 %vm13391_vm8, %v13388_v21 }
0x4476   : > { %v7598_v59 = vpop.f32.mrb[62].mxu1 }
0x4477   : > { %v7599_v39 = vadd.f32 %v10294_v17, %v7598_v59  ;;  %v11455_v25 = vpop.f32.mrb[63].mxu1  ;;  %v7960_v17 = vld [vmem:[%s15456_s3 + $0x18] sm:$0xff] }
0x4478   : > { %v12060_v59 = vpack.c.bf16 %v7960_v17, %v7959_v15  ;;  %v7962_v25 = vld [vmem:[%s15456_s3 + $0x28] sm:$0xff] }
0x4479   : > { %11457 = vmatpush3.xpose.msk.msra.mxu0 %vm1903_vm3, %v7599_v39  ;;  %v10312_v17 = vld [vmem:[%s15459_s8 + $0x28] sm:$0xff] }
0x447a   : > { %11461 = vmatprep.subr.mxu0 %v13388_v21 }
0x4507   : > { %v7519_v61 = vpop.f32.mrb[60].mxu0 }
0x4508   : > { %v7520_v29 = vadd.f32 %v10292_v34, %v7519_v61  ;;  %v11444_v1 = vpop.f32.mrb[61].mxu0 }
0x450a   : > { %11459 = vmatmul.mubr.msk.f32.vlgmr.msra.gmra.mrb[62].mxu0 %vm1903_vm3, %v7520_v29 }
0x450b   : > { %11463 = vmatprep.mubr.msk.f32.mxu0 %vm13391_vm8, %v13388_v21 }
0x45dd   : > { %v7674_v40 = vpop.f32.mrb[62].mxu0 }
0x45de   : > { %v7678_v33 = vmul.f32 0.17677669, %v7674_v40  ;;  %v11460_v20 = vpop.f32.mrb[63].mxu0  ;;  %v7848_v40 = vld [vmem:[#allocation28 + $0x6] sm:$0x3] }
0x45e0   : > { %v7679_v26 = vsel %vm14655_vm15, %v7678_v33, -1e+09  ;;  %v7865_v33 = vrot.slane %v7848_v40, %v14216_v57 }
0x45e1   : > { %v7680_v16 = vsel %vm3694_vm12, %v7679_v26, -inf }
0x45e2   : > { %7681 = vmax.xlane.f32.xlu0 %v7680_v16  ;;  %v7870_v16 = vrot.slane %v7848_v40, %v14292_v44 }
0x466f   : > { %v7682_v24 = vpop.xlane.xlu0 %7681 }
0x4670   : > { %v7683_v6 = vsub.f32 %v7679_v26, %v7682_v24 }
0x4672   : > { %v7684_v2 = vmul.f32 1.442695, %v7683_v6 }
0x4674   : > { %12537 = vpow2.f32 %v7684_v2  ;;  %v7963_v2 = vld [vmem:[%s15456_s3 + $0x30] sm:$0xff] }
0x467e   : > { %v12538_v32 = vpop.eup %12537 }
0x467f   : > { %v7686_v10 = vsel %vm3694_vm12, %v12538_v32, 0.0 }
0x4680   : > { %7687 = vadd.xlane.f32.xlu0 %v7686_v10 }
0x4696   : > { %7691 = vrot.lane.b32.xlu0 %v7599_v39, %s13389_s18  ;;  %v7961_v39 = vld [vmem:[%s15456_s3 + $0x20] sm:$0xff]  ;;  %s15457_s18 = sld [smem:[#allocation79_spill]] }
0x4697   : > { %v12063_v34 = vpack.c.bf16 %v7962_v25, %v7961_v39 }
0x469c   : > { %v10301_v55 = vld [vmem:[%s15457_s18] ss:$0 sm:$0xff]  ;;  %s10366_s18 = sshll.u32 %s14116_s11, 5  ;;  %s15462_s11 = sld [smem:[#allocation91_spill]] }
0x469d   : > { %s15094_s7 = scalar_lea.vmem %s15460_s22, %s10366_s18  ;;  %s15463_s18 = sld [smem:[#allocation90_spill]] }
0x46a2   : > { %s1764_s22 = scalar_lea.vmem %s15462_s11, %s14394_s23  ;;  %s10062_s23 = sshll.u32 %s14052_s9, 3 }
0x46a3   : > { %s10362_s11 = sshll.u32 %s13644_s2, 7  ;;  %s13397_s2 = smov [#allocation37]  }
0x470d   : > { %v7688_v52 = vpop.xlane.xlu0 %7687 }
0x470e   : > { %12539 = vrcp.f32 %v7688_v52 }
0x4711   : > { %v7692_v4 = vpop.permute.xlu0 %7691 }
0x4712   : > { %11462 = vmatpush3.msra.mxu0 %v7692_v4 }
0x4713   : > { %12050 = vmatprep.subr.bf16.mxu0 %v13390_v31 }
0x4718   : > { %v12540_v45 = vpop.eup %12539 }
0x4719   : > { %v7690_v36 = vmul.f32 %v12540_v45, %v12538_v32  ;;  %v7964_v32 = vld [vmem:[%s15456_s3 + $0x38] sm:$0xff]  ;;  %s15219_s3 = scalar_lea.hbm %s15463_s18, %s10362_s11 }
0x471a   : > { %v12066_v10 = vpack.c.bf16 %v7964_v32, %v7963_v2  ;;  %v8800_v2 = vld [vmem:[#allocation31 + $0x10] sm:$0xff]  ;;  %v8801_v32 = vld [vmem:[#allocation31 + $0x18] sm:$0xff] }
0x471b   : > { %11464 = vmatmul.mubr.msk.f32.vlgmr.msra.gmra.mrb[64].mxu0 %vm3694_vm12, %v7690_v36 }
0x471c   : > { %11485 = vmatprep.mubr.msk.f32.mxu0 %vm13391_vm8, %v13388_v21  ;;  %12052 = vmatpush3.bf16.msra.mxu0 %v12051_v7  ;;  %v8047_v7 = vld [vmem:[#allocation28 + $0x8] sm:$0x3] }
0x471d   : > { %12053 = vmatprep.subr.bf16.mxu0 %v13390_v31  ;;  %v8064_v8 = vrot.slane %v8047_v7, %v14216_v57 }
0x4720   : > { %12055 = vmatpush3.bf16.msra.mxu0 %v12054_v56 }
0x4721   : > { %12068 = vmatprep.subr.bf16.mxu0 %v13390_v31 }
0x47ee   : > { %v7763_v5 = vpop.f32.mrb[64].mxu0 }
0x47ef   : > { %v11465_v58 = vpop.f32.mrb[65].mxu0  ;;  %11475 = vmatmul.mubr.msk.f32.vlgmr.msra.gmra.mrb[64].mxu1 %vm1903_vm3, %v7763_v5 }
0x47f0   : > { %11504 = vmatprep.mubr.msk.f32.mxu1 %vm13391_vm8, %v13388_v21 }
0x48c2   : > { %v7842_v53 = vpop.f32.mrb[64].mxu1 }
0x48c3   : > { %v7843_v38 = vadd.f32 %v10299_v50, %v7842_v53  ;;  %v11476_v30 = vpop.f32.mrb[65].mxu1 }
0x48c5   : > { %v7846_v41 = vadd.f32 %v7843_v38, %v7422_v27  ;;  %v12057_v27 = vpack.c.bf16 %v7958_v49, %v7957_v46  ;;  %v8069_v46 = vrot.slane %v8047_v7, %v14292_v44  ;;  %v10305_v44 = vld [vmem:[#allocation29] ss:$0 sm:$0xff]  ;;  %v10315_v7 = vld [vmem:[#allocation29 + $0x1] ss:$0 sm:$0xff] }
0x48c7   : > { %v7849_v63 = vsel %vm1903_vm3, %v7846_v41, 0.0  ;;  %12058 = vmatpush3.bf16.msra.mxu1 %v12057_v27  ;;  %v10311_v27 = vld [vmem:[%s15459_s8 + $0x20] sm:$0xff] }
0x48c8   : > { %7850 = vadd.xlane.f32.xlu1 %v7849_v63  ;;  %12059 = vmatprep.subr.bf16.mxu1 %v13390_v31  ;;  %v8072_v63 = vld [vmem:[%s15459_s8 + $0x8] sm:$0xff]  ;;  %v12082_v39 = vpack.c.bf16 %v10312_v17, %v10311_v27 }
0x48cb   : > { %12061 = vmatpush3.bf16.msra.mxu1 %v12060_v59 }
0x48cc   : > { %12062 = vmatprep.subr.bf16.mxu1 %v13390_v31 }
0x48cf   : > { %12064 = vmatpush3.bf16.msra.mxu1 %v12063_v34 }
0x48d0   : > { %12065 = vmatprep.subr.bf16.mxu1 %v13390_v31 }
0x48d3   : > { %12067 = vmatpush3.bf16.msra.mxu1 %v12066_v10  ;;  %v12097_v10 = vpack.c.bf16 %v8801_v32, %v8800_v2 }
0x48d4   : > { %12078 = vmatprep.subr.bf16.mxu1 %v13390_v31 }
0x4955   : > { %v7851_v48 = vpop.xlane.xlu1 %7850 }
0x4956   : > { %v7852_v12 = vmul.f32 0.03125, %v7851_v48 }
0x4958   : > { %v7853_v14 = vsub.f32 %v7846_v41, %v7852_v12  ;;  %v8071_v41 = vld [vmem:[%s15459_s8] sm:$0xff]  ;;  %v8073_v12 = vld [vmem:[%s15459_s8 + $0x10] sm:$0xff] }
0x4959   : > { %v12069_v48 = vpack.c.bf16 %v8072_v63, %v8071_v41  ;;  %v10333_v41 = vld [vmem:[%s15461_s13 + $0x20] sm:$0xff]  ;;  %v10334_v63 = vld [vmem:[%s15461_s13 + $0x28] sm:$0xff] }
0x495a   : > { %v7854_v35 = vmul.f32 %v7853_v14, %v7853_v14 }
0x495c   : > { %v7855_v23 = vsel %vm1903_vm3, %v7854_v35, 0.0 }
0x495d   : > { %7856 = vadd.xlane.f32.xlu1 %v7855_v23 }
0x49ea   : > { %v7857_v61 = vpop.xlane.xlu1 %7856 }
0x49eb   : > { %v7858_v29 = vmul.f32 0.03125, %v7857_v61  ;;  %v10313_v61 = vld [vmem:[%s15459_s8 + $0x30] sm:$0xff] }
0x49ed   : > { %v7859_v1 = vadd.f32 1e-06, %v7858_v29  ;;  %v10314_v29 = vld [vmem:[%s15459_s8 + $0x38] sm:$0xff] }
0x49ee   : > { %v12085_v51 = vpack.c.bf16 %v10314_v29, %v10313_v61  ;;  %v10339_v61 = vld [vmem:[%s15461_s13 + $0x40] sm:$0xff]  ;;  %v10340_v29 = vld [vmem:[%s15461_s13 + $0x48] sm:$0xff] }
0x49ef   : > { %12541 = vrsqrt.f32 %v7859_v1  ;;  %v10321_v1 = vld [vmem:[%s15459_s8 + $0x48] sm:$0xff] }
0x49f9   : > { %v12542_v20 = vpop.eup %12541 }
0x49fa   : > { %v7861_v26 = vmul.f32 %v12542_v20, %v7853_v14  ;;  %v8074_v14 = vld [vmem:[%s15459_s8 + $0x18] sm:$0xff] }
0x49fb   : > { %v12072_v35 = vpack.c.bf16 %v8074_v14, %v8073_v12  ;;  %v10323_v20 = vld [vmem:[%s15459_s8 + $0x58] sm:$0xff]  ;;  %v12106_v12 = vpack.c.bf16 %v10334_v63, %v10333_v41 }
0x49fc   : > { %v7866_v24 = vmul.f32 %v7865_v33, %v7861_v26  ;;  %v10322_v33 = vld [vmem:[%s15459_s8 + $0x50] sm:$0xff]  ;;  %v10336_v14 = vld [vmem:[%s15461_s13 + $0x38] sm:$0xff] }
0x49fd   : > { %v12091_v26 = vpack.c.bf16 %v10323_v20, %v10322_v33  ;;  %v8879_v63 = vld [vmem:[#allocation34] sm:$0xff] }
0x49fe   : > { %v7871_v6 = vadd.f32 %v7870_v16, %v7866_v24  ;;  %v8798_v16 = vld [vmem:[#allocation31] sm:$0xff]  ;;  %v8799_v24 = vld [vmem:[#allocation31 + $0x8] sm:$0xff] }
0x4a00   : > { %11486 = vmatmul.mubr.msk.f32.vlgmr.msra.gmra.mrb[66].mxu0 %vm1903_vm3, %v7871_v6 }
0x4a01   : > { %11515 = vmatprep.mubr.msk.f32.mxu0 %vm13391_vm8, %v13388_v21  ;;  %12070 = vmatpush3.bf16.msra.mxu0 %v12069_v48  ;;  %v10335_v48 = vld [vmem:[%s15461_s13 + $0x30] sm:$0xff] }
0x4a02   : > { %12071 = vmatprep.subr.bf16.mxu0 %v13390_v31 }
0x4a05   : > { %12073 = vmatpush3.bf16.msra.mxu0 %v12072_v35  ;;  %v12109_v35 = vpack.c.bf16 %v10336_v14, %v10335_v48  ;;  %v8880_v48 = vld [vmem:[#allocation34 + $0x8] sm:$0xff] }
0x4a06   : > { %12074 = vmatprep.subr.bf16.mxu0 %v13390_v31  ;;  %v12100_v14 = vpack.c.bf16 %v8880_v48, %v8879_v63  ;;  %v13396_v63 = vmov 3  }
0x4ad3   : > { %v7952_v22 = vpop.f32.mrb[66].mxu0 }
0x4ad4   : > { %v7953_v3 = vadd.f32 %v10301_v55, %v7952_v22  ;;  %v11487_v47 = vpop.f32.mrb[67].mxu0 }
0x4ad6   : > { %v7956_v13 = vmax.f32 %v7953_v3, 0.0 }
0x4ad8   : > { %11505 = vmatmul.mubr.msk.f32.vlgmr.msra.gmra.mrb[66].mxu1 %vm1795_vm0, %v7956_v13 }
0x4ad9   : > { %12080 = vmatpush3.bf16.msra.mxu1 %v14864_v9  ;;  %11529 = vmatprep.mubr.msk.f32.mxu1 %vm13391_vm8, %v13388_v21 }
0x4ada   : > { %11543 = vmatprep.subr.mxu1 %v13388_v21 }
0x4bab   : > { %v8041_v52 = vpop.f32.mrb[66].mxu1 }
0x4bac   : > { %v8042_v4 = vadd.f32 %v10303_v42, %v8041_v52  ;;  %v11506_v45 = vpop.f32.mrb[67].mxu1 }
0x4bae   : > { %v8045_v36 = vadd.f32 %v8042_v4, %v7871_v6  ;;  %v12094_v6 = vpack.c.bf16 %v8799_v24, %v8798_v16  ;;  %v10324_v24 = vld [vmem:[#allocation29 + $0x2] ss:$0 sm:$0xff] }
0x4bb0   : > { %v8048_v5 = vsel %vm1903_vm3, %v8045_v36, 0.0 }
0x4bb1   : > { %8049 = vadd.xlane.f32.xlu1 %v8048_v5 }
0x4c3e   : > { %v8050_v58 = vpop.xlane.xlu1 %8049 }
0x4c3f   : > { %v8051_v50 = vmul.f32 0.03125, %v8050_v58 }
0x4c41   : > { %v8052_v53 = vsub.f32 %v8045_v36, %v8051_v50 }
0x4c43   : > { %v8053_v38 = vmul.f32 %v8052_v53, %v8052_v53 }
0x4c45   : > { %v8054_v30 = vsel %vm1903_vm3, %v8053_v38, 0.0 }
0x4c46   : > { %8055 = vadd.xlane.f32.xlu1 %v8054_v30  ;;  %v9312_v30 = vld [vmem:[%s15094_s7 + $0x8] sm:$0xff] }
0x4cd3   : > { %v8056_v23 = vpop.xlane.xlu1 %8055 }
0x4cd4   : > { %v8057_v18 = vmul.f32 0.03125, %v8056_v23 }
0x4cd6   : > { %v8058_v43 = vadd.f32 1e-06, %v8057_v18 }
0x4cd8   : > { %12543 = vrsqrt.f32 %v8058_v43 }
0x4ce2   : > { %v12544_v11 = vpop.eup %12543 }
0x4ce3   : > { %v8060_v56 = vmul.f32 %v12544_v11, %v8052_v53 }
0x4ce5   : > { %v8065_v49 = vmul.f32 %v8064_v8, %v8060_v56 }
0x4ce7   : > { %v15045_v15 = vadd.f32 %v8069_v46, %v8065_v49 }
0x4ce9   : > { %11516 = vmatmul.mubr.msk.f32.vlgmr.msra.gmra.mrb[68].mxu0 %vm1903_vm3, %v15045_v15 }
0x4cea   : > { %12077 = vmatpush3.bf16.xpose.msk.msra.mxu0 %vm14201_vm4, %v14864_v9  ;;  %11522 = vmatprep.mubr.msk.f32.mxu0 %vm13391_vm8, %v13388_v21  ;;  %v10320_v9 = vld [vmem:[%s15459_s8 + $0x40] sm:$0xff] }
0x4ceb   : > { %12081 = vmatprep.subr.bf16.mxu0 %v13390_v31  ;;  %v12088_v40 = vpack.c.bf16 %v10321_v1, %v10320_v9  ;;  %v12118_v9 = vpack.c.bf16 %v10340_v29, %v10339_v61  ;;  %v10342_v1 = vld [vmem:[%s15461_s13 + $0x58] sm:$0xff]  ;;  %v8963_v29 = vld [vmem:[%s13611_s14] sm:$0x1] }
0x4dbc   : > { %v8151_v59 = vpop.f32.mrb[68].mxu0 }
0x4dbd   : > { %v8152_v25 = vadd.f32 %v10305_v44, %v8151_v59  ;;  %v11517_v34 = vpop.f32.mrb[69].mxu0 }
0x4dbf   : > { %11523 = vmatmul.mubr.msk.f32.vlgmr.msra.gmra.mrb[70].mxu0 %vm1903_vm3, %v8152_v25 }
0x4dc0   : > { %12083 = vmatpush3.bf16.msra.mxu0 %v12082_v39  ;;  %11540 = vmatprep.mubr.msk.f32.mxu0 %vm13391_vm8, %v13388_v21 }
0x4dc1   : > { %12084 = vmatprep.subr.bf16.mxu0 %v13390_v31 }
0x4dc4   : > { %12086 = vmatpush3.bf16.msra.mxu0 %v12085_v51  ;;  %v10341_v51 = vld [vmem:[%s15461_s13 + $0x50] sm:$0xff] }
0x4dc5   : > { %12087 = vmatprep.subr.bf16.mxu0 %v13390_v31 }
0x4dc7   : > { %11541 = vmatmul.mubr.msk.f32.vlgmr.msra.gmra.mrb[72].mxu0 %vm1903_vm3, %v15045_v15 }
0x4dc8   : > { %12089 = vmatpush3.bf16.msra.mxu0 %v12088_v40  ;;  %11561 = vmatprep.mubr.msk.f32.mxu0 %vm13391_vm8, %v13388_v21  ;;  %v12121_v40 = vpack.c.bf16 %v10342_v1, %v10341_v51 }
0x4dc9   : > { %12090 = vmatprep.subr.bf16.mxu0 %v13390_v31 }
0x4dcc   : > { %12092 = vmatpush3.bf16.msra.mxu0 %v12091_v26 }
0x4dcd   : > { %12093 = vmatprep.subr.bf16.mxu0 %v13390_v31 }
0x4dcf   : > { %11562 = vmatmul.mubr.msk.f32.vlgmr.msra.gmra.mrb[74].mxu0 %vm1903_vm3, %v15045_v15 }
0x4dd0   : > { %12095 = vmatpush3.bf16.msra.mxu0 %v12094_v6  ;;  %11582 = vmatprep.mubr.msk.f32.mxu0 %vm13391_vm8, %v13388_v21 }
0x4dd1   : > { %12096 = vmatprep.subr.bf16.mxu0 %v13390_v31 }
0x4dd4   : > { %12098 = vmatpush3.bf16.msra.mxu0 %v12097_v10 }
0x4dd5   : > { %12105 = vmatprep.subr.bf16.mxu0 %v13390_v31 }
0x4dd7   : > { %11583 = vmatmul.mubr.msk.f32.vlgmr.msra.gmra.mrb[76].mxu0 %vm1903_vm3, %v15045_v15 }
0x4dd8   : > { %11604 = vmatprep.mubr.msk.f32.mxu0 %vm13391_vm8, %v13388_v21  ;;  %12107 = vmatpush3.bf16.msra.mxu0 %v12106_v12 }
0x4dd9   : > { %12108 = vmatprep.subr.bf16.mxu0 %v13390_v31 }
0x4ddc   : > { %12110 = vmatpush3.bf16.msra.mxu0 %v12109_v35 }
0x4ddd   : > { %12117 = vmatprep.subr.bf16.mxu0 %v13390_v31 }
0x4e92   : > { %v8224_v55 = vpop.f32.mrb[70].mxu0 }
0x4e93   : > { %v8228_v22 = vmul.f32 0.17677669, %v8224_v55  ;;  %v11524_v3 = vpop.f32.mrb[71].mxu0 }
0x4e95   : > { %v8229_v47 = vsel %vm14220_vm6, %v8228_v22, -1e+09 }
0x4e96   : > { %v8230_v13 = vsel %vm2164_vm7, %v8229_v47, -inf }
0x4e97   : > { %8231 = vmax.xlane.f32.xlu1 %v8230_v13 }
0x4e9a   : > { %v8393_v42 = vpop.f32.mrb[72].mxu0 }
0x4e9b   : > { %v11542_v52 = vpop.f32.mrb[73].mxu0  ;;  %v8394_v8 = vadd.f32 %v10315_v7, %v8393_v42  ;;  %v8882_v7 = vld [vmem:[#allocation34 + $0x18] sm:$0xff] }
0x4ea2   : > { %v15087_v4 = vpop.f32.mrb[74].mxu0 }
0x4ea3   : > { %v11563_v45 = vpop.f32.mrb[75].mxu0  ;;  %v8636_v6 = vadd.f32 %v10324_v24, %v15087_v4 }
0x4ea4   : > { %v9311_v45 = vld [vmem:[%s15094_s7] sm:$0xff] }
0x4eaa   : > { %v15089_v36 = vpop.f32.mrb[76].mxu0 }
0x4eab   : > { %v11584_v5 = vpop.f32.mrb[77].mxu0 }
0x4eac   : > { %v9313_v5 = vld [vmem:[%s15094_s7 + $0x10] sm:$0xff] }
0x4f24   : > { %v8232_v58 = vpop.xlane.xlu1 %8231 }
0x4f25   : > { %v8233_v62 = vsub.f32 %v8229_v47, %v8232_v58  ;;  %v9314_v58 = vld [vmem:[%s15094_s7 + $0x18] sm:$0xff]  ;;  %s15464_s7 = sld [smem:[#allocation96_spill]] }
0x4f27   : > { %v8234_v50 = vmul.f32 1.442695, %v8233_v62 }
0x4f29   : > { %12545 = vpow2.f32 %v8234_v50 }
0x4f2b   : > { %p15465_p9 = scmp.ne.s32.totalorder %s15464_s7, 0 }
0x4f33   : > { %v12546_v53 = vpop.eup %12545 }
0x4f34   : > { %v8236_v38 = vsel %vm2164_vm7, %v12546_v53, 0.0 }
0x4f35   : > { %8237 = vadd.xlane.f32.xlu0 %v8236_v38 }
0x4f4b   : > { %9319 = vperm.xlu0 %12435, %v9312_v30   ;;  %v13392_v30 = vmov 1.0|1.0  }
0x4fc2   : > { %v8238_v23 = vpop.xlane.xlu0 %8237 }
0x4fc3   : > { %12547 = vrcp.f32 %v8238_v23 }
0x4fcd   : > { %v12548_v18 = vpop.eup %12547 }
0x4fce   : > { %v15103_v43 = vmul.f32 %v12548_v18, %v12546_v53  ;;  %v9320_v53 = vpop.permute.xlu0 %9319  ;;  %v8881_v18 = vld [vmem:[#allocation34 + $0x10] sm:$0xff] }
0x4fcf   : > { %vm9328_vm0 = vcmp.eq.s32.totalorder %v14150_v19, %v9320_v53 }
0x4fd0   : > { %11530 = vmatmul.mubr.msk.f32.vlgmr.msra.gmra.mrb[68].mxu1 %vm2164_vm7, %v15103_v43 }
0x4fd1   : > { %11544 = vmatpush3.xpose.msk.msra.mxu1 %vm1903_vm3, %v14915_v60  ;;  %11545 = vmatprep.mubr.msk.f32.mxu1 %vm13391_vm8, %v13388_v21 }
0x4fd2   : > { %11548 = vmatprep.subr.mxu1 %v13388_v21 }
0x4fd4   : > { %11546 = vmatmul.mubr.msk.f32.vlgmr.msra.gmra.mrb[70].mxu1 %vm1903_vm3, %v8394_v8  ;;  %v13393_v8 = vmov 1.0  }
0x4fd5   : > { %11549 = vmatpush3.msra.mxu1 %v14915_v60  ;;  %11550 = vmatprep.mubr.msk.f32.mxu1 %vm13391_vm8, %v13388_v21 }
0x4fd6   : > { %11564 = vmatprep.subr.mxu1 %v13388_v21 }
0x50a3   : > { %v8310_v11 = vpop.f32.mrb[68].mxu1 }
0x50a4   : > { %v11531_v56 = vpop.f32.mrb[69].mxu1  ;;  %11605 = vmatmul.mubr.msk.f32.vlgmr.msra.gmra.mrb[78].mxu0 %vm1903_vm3, %v8310_v11  ;;  %v8981_v11 = vld [vmem:[%s15461_s13] sm:$0xff] }
0x50a5   : > { %11626 = vmatprep.mubr.msk.f32.mxu0 %vm13391_vm8, %v13388_v21  ;;  %12119 = vmatpush3.bf16.msra.mxu0 %v12118_v9  ;;  %v8982_v56 = vld [vmem:[%s15461_s13 + $0x8] sm:$0xff] }
0x50a6   : > { %12120 = vmatprep.subr.bf16.mxu0 %v13390_v31 }
0x50a7   : > { %v8466_v46 = vpop.f32.mrb[70].mxu1 }
0x50a8   : > { %v8470_v49 = vmul.f32 0.17677669, %v8466_v46  ;;  %v11547_v27 = vpop.f32.mrb[71].mxu1  ;;  %v10329_v46 = vld [vmem:[#allocation32] ss:$0 sm:$0xff] }
0x50a9   : > { %12122 = vmatpush3.bf16.msra.mxu0 %v12121_v40  ;;  %v8876_v27 = vadd.f32 %v10329_v46, %v15089_v36 }
0x50aa   : > { %v8471_v60 = vsel %vm14481_vm11, %v8470_v49, -1e+09  ;;  %12129 = vmatprep.subr.bf16.mxu0 %v13390_v31  ;;  %v12112_v49 = vpack.c.bf16 %v8982_v56, %v8981_v11 }
0x50ab   : > { %v8472_v17 = vsel %vm3694_vm12, %v8471_v60, -inf }
0x50ac   : > { %8473 = vmax.xlane.f32.xlu1 %v8472_v17  ;;  %v8984_v17 = vld [vmem:[%s15461_s13 + $0x18] sm:$0xff] }
0x5139   : > { %v8474_v44 = vpop.xlane.xlu1 %8473 }
0x513a   : > { %v8475_v59 = vsub.f32 %v8471_v60, %v8474_v44  ;;  %v8983_v60 = vld [vmem:[%s15461_s13 + $0x10] sm:$0xff] }
0x513b   : > { %v12115_v44 = vpack.c.bf16 %v8984_v17, %v8983_v60 }
0x513c   : > { %v8476_v39 = vmul.f32 1.442695, %v8475_v59  ;;  %v10344_v59 = vld [vmem:[%s15461_s13 + $0x60] sm:$0xff] }
0x513e   : > { %12549 = vpow2.f32 %v8476_v39  ;;  %v10345_v39 = vld [vmem:[%s15461_s13 + $0x68] sm:$0xff] }
0x513f   : > { %v12124_v36 = vpack.c.bf16 %v10345_v39, %v10344_v59 }
0x5148   : > { %v12550_v25 = vpop.eup %12549 }
0x5149   : > { %v8478_v34 = vsel %vm3694_vm12, %v12550_v25, 0.0 }
0x514a   : > { %8479 = vadd.xlane.f32.xlu1 %v8478_v34  ;;  %v10347_v34 = vld [vmem:[%s15461_s13 + $0x78] sm:$0xff] }
0x5177   : > { %v15130_v37 = vpop.f32.mrb[78].mxu0 }
0x5178   : > { %v11606_v33 = vpop.f32.mrb[79].mxu0 }
0x51d7   : > { %v8480_v20 = vpop.xlane.xlu1 %8479 }
0x51d8   : > { %12551 = vrcp.f32 %v8480_v20 }
0x51e2   : > { %v12552_v26 = vpop.eup %12551 }
0x51e3   : > { %v15132_v16 = vmul.f32 %v12552_v26, %v12550_v25  ;;  %v10346_v25 = vld [vmem:[%s15461_s13 + $0x70] sm:$0xff]  ;;  %v10331_v26 = vld [vmem:[#allocation35] ss:$0 sm:$0xff] }
0x51e4   : > { %v12127_v61 = vpack.c.bf16 %v10347_v34, %v10346_v25 }
0x51e5   : > { %11551 = vmatmul.mubr.msk.f32.vlgmr.msra.gmra.mrb[72].mxu1 %vm3694_vm12, %v15132_v16 }
0x51e6   : > { %11565 = vmatpush3.xpose.msk.msra.mxu1 %vm1903_vm3, %v14971_v54  ;;  %11566 = vmatprep.mubr.msk.f32.mxu1 %vm13391_vm8, %v13388_v21 }
0x51e7   : > { %11569 = vmatprep.subr.mxu1 %v13388_v21 }
0x51e9   : > { %11567 = vmatmul.mubr.msk.f32.vlgmr.msra.gmra.mrb[74].mxu1 %vm1903_vm3, %v8636_v6 }
0x51ea   : > { %11570 = vmatpush3.msra.mxu1 %v14971_v54  ;;  %11571 = vmatprep.mubr.msk.f32.mxu1 %vm13391_vm8, %v13388_v21 }
0x51eb   : > { %12099 = vmatprep.subr.bf16.mxu1 %v13390_v31 }
0x52b8   : > { %v8552_v2 = vpop.f32.mrb[72].mxu1 }
0x52b9   : > { %v11552_v32 = vpop.f32.mrb[73].mxu1  ;;  %11627 = vmatmul.mubr.msk.f32.vlgmr.msra.gmra.mrb[80].mxu0 %vm1903_vm3, %v8552_v2 }
0x52ba   : > { %11644 = vmatprep.mubr.msk.f32.mxu0 %vm13391_vm8, %v13388_v21 }
0x52bc   : > { %v8708_v10 = vpop.f32.mrb[74].mxu1 }
0x52bd   : > { %v8712_v55 = vmul.f32 0.17677669, %v8708_v10  ;;  %v11568_v22 = vpop.f32.mrb[75].mxu1 }
0x52bf   : > { %v8713_v54 = vsel %vm14655_vm15, %v8712_v55, -1e+09 }
0x52c0   : > { %v8714_v3 = vsel %vm3694_vm12, %v8713_v54, -inf }
0x52c1   : > { %8715 = vmax.xlane.f32.xlu1 %v8714_v3 }
0x534e   : > { %v8716_v47 = vpop.xlane.xlu1 %8715 }
0x534f   : > { %v8717_v13 = vsub.f32 %v8713_v54, %v8716_v47 }
0x5351   : > { %v8718_v42 = vmul.f32 1.442695, %v8717_v13 }
0x5353   : > { %12553 = vpow2.f32 %v8718_v42 }
0x535d   : > { %v12554_v52 = vpop.eup %12553 }
0x535e   : > { %v8720_v4 = vsel %vm3694_vm12, %v12554_v52, 0.0 }
0x535f   : > { %8721 = vadd.xlane.f32.xlu1 %v8720_v4 }
0x5370   : > { %9316 = vperm.xlu1 %12446, %v9311_v45  }
0x5374   : > { %9322 = vperm.xlu1 %12446, %v9313_v5  }
0x5378   : > { %9325 = vperm.xlu1 %12446, %v9314_v58  }
0x538c   : > { %v15157_v62 = vpop.f32.mrb[80].mxu0 }
0x538d   : > { %v11628_v28 = vpop.f32.mrb[81].mxu0 }
0x53ec   : > { %v8722_v50 = vpop.xlane.xlu1 %8721 }
0x53ed   : > { %12555 = vrcp.f32 %v8722_v50  ;;  %v13394_v50 = vmov 1  }
0x53ee   : > { %12452 = vset.pattern.permute.xlu1 %v13394_v50 }
0x53f0   : > { %v9317_v38 = vpop.permute.xlu1 %9316 }
0x53f1   : > { %vm9327_vm4 = vcmp.eq.s32.totalorder %v14150_v19, %v9317_v38 }
0x53f2   : > { %vm12130_vm6 = vmpackc.low %vm9328_vm0, %vm9327_vm4 }
0x53f3   : > { %12131 = vmatpush3.bf16.msk.msra.mxu0 %vm12130_vm6, %v13392_v30 }
0x53f4   : > { %v9323_v41 = vpop.permute.xlu1 %9322  ;;  %11652 = vmatprep.subr.mxu0 %v13388_v21 }
0x53f5   : > { %vm9329_vm10 = vcmp.eq.s32.totalorder %v14150_v19, %v9323_v41  ;;  %v13395_v41 = vmov 2  }
0x53f6   : > { %11645 = vmatmul.mubr.msk.f32.vlgmr.msra.gmra.mrb[82].mxu0 %vm2164_vm7, %v15103_v43  ;;  %v12103_v43 = vpack.c.bf16 %v8882_v7, %v8881_v18  ;;  %vm8964_vm7 = vcmp.gt.f32.partialorder %v8963_v29, 0.0 }
0x53f7   : > { %v12556_v12 = vpop.eup %12555  ;;  %11654 = vmatprep.mubr.msk.f32.mxu0 %vm13391_vm8, %v13388_v21 }
0x53f8   : > { %v8724_v35 = vmul.f32 %v12556_v12, %v12554_v52  ;;  %v9326_v23 = vpop.permute.xlu1 %9325 }
0x53f9   : > { %vm9330_vm9 = vcmp.eq.s32.totalorder %v14150_v19, %v9326_v23 }
0x53fa   : > { %11572 = vmatmul.mubr.msk.f32.vlgmr.msra.gmra.mrb[76].mxu1 %vm3694_vm12, %v8724_v35  ;;  %11653 = vmatpush3.msk.msra.mxu0 %vm9330_vm9, %v13393_v8 }
0x53fb   : > { %12101 = vmatpush3.bf16.msra.mxu1 %v12100_v14  ;;  %11655 = vmatmul.mubr.msk.f32.vlgmr.msra.gmra.mrb[84].mxu0 %vm3694_vm12, %v8724_v35 }
0x53fc   : > { %12102 = vmatprep.subr.bf16.mxu1 %v13390_v31  ;;  %11593 = vmatprep.mubr.msk.f32.mxu1 %vm13391_vm8, %v13388_v21 }
0x53ff   : > { %12104 = vmatpush3.bf16.msra.mxu1 %v12103_v43 }
0x5400   : > { %12111 = vmatprep.subr.bf16.mxu1 %v13390_v31 }
0x5402   : > { %11594 = vmatmul.mubr.msk.f32.vlgmr.msra.gmra.mrb[78].mxu1 %vm1903_vm3, %v8876_v27 }
0x5403   : > { %12113 = vmatpush3.bf16.msra.mxu1 %v12112_v49  ;;  %11615 = vmatprep.mubr.msk.f32.mxu1 %vm13391_vm8, %v13388_v21 }
0x5404   : > { %12114 = vmatprep.subr.bf16.mxu1 %v13390_v31 }
0x5407   : > { %12116 = vmatpush3.bf16.msra.mxu1 %v12115_v44 }
0x5408   : > { %12123 = vmatprep.subr.bf16.mxu1 %v13390_v31 }
0x540a   : > { %11616 = vmatmul.mubr.msk.f32.vlgmr.msra.gmra.mrb[80].mxu1 %vm1903_vm3, %v15045_v15 }
0x540b   : > { %12125 = vmatpush3.bf16.msra.mxu1 %v12124_v36  ;;  %11637 = vmatprep.mubr.msk.f32.mxu1 %vm13391_vm8, %v13388_v21 }
0x540c   : > { %12126 = vmatprep.subr.bf16.mxu1 %v13390_v31  ;;  %v8965_v31 = vsel %vm8964_vm7, 1, %v13387_v0 }
0x540d   : > { %v8969_v20 = vrot.slane %v8965_v31, %v14216_v57 }
0x540f   : > { %12128 = vmatpush3.bf16.msra.mxu1 %v12127_v61  ;;  %vm8970_vm11 = vcmp.eq.s32.totalorder %v8969_v20, 1 }
0x5410   : > { %11647 = vmatprep.subr.mxu1 %v13388_v21 }
0x54c9   : > { %v15194_v51 = vpop.f32.mrb[82].mxu0 }
0x54ca   : > { %v11646_v9 = vpop.f32.mrb[83].mxu0 }
0x54cd   : > { %v8794_v1 = vpop.f32.mrb[76].mxu1 }
0x54ce   : > { %v11573_v15 = vpop.f32.mrb[77].mxu1  ;;  %11638 = vmatmul.mubr.msk.f32.vlgmr.msra.gmra.mrb[82].mxu1 %vm1903_vm3, %v8794_v1  ;;  %v15198_v40 = vpop.f32.mrb[84].mxu0  ;;  %vm9299_vm3 = vcmask 31744  }
0x54cf   : > { %11648 = vmatpush3.msk.msra.mxu1 %vm9329_vm10, %v13393_v8  ;;  %v11656_v33 = vpop.f32.mrb[85].mxu0  ;;  %11649 = vmatprep.mubr.msk.f32.mxu1 %vm13391_vm8, %v13388_v21  ;;  %v10349_v21 = vld [vmem:[%s13606_s24] ss:$0 sm:$0xff] }
0x54d2   : > { %11650 = vmatmul.mubr.msk.f32.vlgmr.msra.gmra.mrb[84].mxu1 %vm3694_vm12, %v15132_v16 }
0x54d5   : > { %v8959_v19 = vpop.f32.mrb[78].mxu1 }
0x54d6   : > { %v8960_v24 = vadd.f32 %v10331_v26, %v8959_v19  ;;  %v11595_v6 = vpop.f32.mrb[79].mxu1 }
0x54d8   : > { %v8971_v2 = vsel %vm8970_vm11, %v8960_v24, -1e+09 }
0x54d9   : > { %8972 = vmax.xlane.f32.xlu0 %v8971_v2 }
0x54dd   : > { %v9129_v32 = vpop.f32.mrb[80].mxu1 }
0x54de   : > { %v9130_v0 = vadd.f32 %v9129_v32, %v15130_v37  ;;  %v11617_v10 = vpop.f32.mrb[81].mxu1 }
0x54e0   : > { %v9211_v55 = vadd.f32 %v15157_v62, %v9130_v0 }
0x5566   : > { %v8973_v42 = vpop.xlane.xlu0 %8972 }
0x5567   : > { %v8974_v37 = vsub.f32 %v8971_v2, %v8973_v42 }
0x5569   : > { %v8975_v5 = vmul.f32 1.442695, %v8974_v37 }
0x55a1   : > { %v9286_v22 = vpop.f32.mrb[82].mxu1 }
0x55a2   : > { %v9290_v54 = vadd.f32 %v9286_v22, %v9211_v55  ;;  %v11639_v57 = vpop.f32.mrb[83].mxu1 }
0x55a4   : > { %v9298_v3 = vadd.f32 %v10349_v21, %v9290_v54 }
0x55a5   : > { %v9475_v16 = vpop.f32.mrb[84].mxu1 }
0x55a6   : > { %v11651_v47 = vpop.f32.mrb[85].mxu1  ;;  %v9300_v13 = vsel %vm9299_vm3, %v9298_v3, -inf }
0x55a7   : > { %9301 = vmax.xlane.f32.xlu1 %v9300_v13 }
0x5634   : > { %v9302_v52 = vpop.xlane.xlu1 %9301 }
0x5635   : > { %v9303_v4 = vsub.f32 %v9298_v3, %v9302_v52 }
0x5637   : > { %v9304_v45 = vmul.f32 1.442695, %v9303_v4 }
0x5639   : > { %12557 = vpow2.f32 %v9304_v45 }
0x563a   : > { %12559 = vpow2.f32 %v8975_v5 }
0x5643   : > { %v12558_v58 = vpop.eup %12557 }
0x5644   : > { %v9306_v62 = vsel %vm9299_vm3, %v12558_v58, 0.0  ;;  %v12560_v28 = vpop.eup %12559 }
0x5645   : > { %9307 = vadd.xlane.f32.xlu1 %v9306_v62 }
0x5649   : > { %8977 = vadd.xlane.f32.xlu1 %v12560_v28 }
0x56d2   : > { %v9308_v53 = vpop.xlane.xlu1 %9307 }
0x56d3   : > { %12561 = vrcp.f32 %v9308_v53 }
0x56d6   : > { %v8978_v48 = vpop.xlane.xlu1 %8977 }
0x56d7   : > { %12563 = vrcp.f32 %v8978_v48 }
0x56dd   : > { %v12562_v38 = vpop.eup %12561 }
0x56de   : > { %v9310_v30 = vmul.f32 %v12562_v38, %v12558_v58 }
0x56e0   : > { %9574 = vst.msk [vmem:[%s1764_s22] sm:$0xff] %vm9299_vm3, %v9310_v30  ;;  %9556 = vperm.xlu1 %12452, %v9310_v30   ;;  %9551 = vperm.xlu0 %12435, %v9310_v30   ;;  %s1732_s22 = scalar_lea.vmem [#allocation37], %s10062_s23  ;;  %s13202_s23 = sshll.u32 %s13397_s2, 4  ;;  %s13203_s23 = int_to_ptr.vmem [resolvable:$false] %s13202_s23 }
0x56e1   : > { %v12564_v12 = vpop.eup %12563  ;;  %s9593_s1 = sshll.u32 %s1732_s22, 4  ;;  %s13204_s6 = scalar_lea.vmem %s13203_s23, 256  ;;  %s15221_s1 = int_to_ptr.vmem [resolvable:$true] %s9593_s1 }
0x56e2   : > { %v8980_v35 = vmul.f32 %v12564_v12, %v12560_v28  ;;  %s13198_s5 = scalar_lea.vmem %s15221_s1, 128  ;;  %p13205_p10 = scmp.lt.s32.totalorder %s15221_s1, %s13203_s23 }
0x56e3   : > { %p13199_p0 = scmp.ne.s32.totalorder %s15221_s1, %s13198_s5  ;;  %p13206_p7 = scmp.lt.s32.totalorder %s13204_s6, %s13198_s5 }
0x56e4   : > { %12453 = vset.pattern.permute.xlu1 %v13395_v41  ;;  %12454 = vset.pattern.permute.xlu0 %v13396_v63 }
0x56e5   : > { %9562 = vperm.xlu1 %12453, %v9310_v30   ;;  %9568 = vperm.xlu0 %12454, %v9310_v30   ;;  %p13200_p1 = pnand %p13199_p0, %p15465_p9  ;;  %p13207_p6 = por %p13206_p7, %p13205_p10 }
0x56e7   : > { %p13201_p3 = pneg %p13200_p1 }
0x56e9   : > { %p13208_p2 = pnand %p13207_p6, %p13201_p3 }
0x575f   : > { %v9552_v14 = vpop.permute.xlu0 %9551  ;;  %v9557_v23 = vpop.permute.xlu1 %9556 }
0x5760   : > { %v9554_v18 = vmul.f32 %v9552_v14, %v8980_v35  ;;  %v9559_v7 = vmul.f32 %v9557_v23, %v15194_v51 }
0x5762   : > { %v9560_v11 = vadd.f32 %v9559_v7, %v9554_v18 }
0x5764   : > { %v9569_v8 = vpop.permute.xlu0 %9568  ;;  %v9563_v43 = vpop.permute.xlu1 %9562 }
0x5765   : > { %v9565_v56 = vmul.f32 %v9563_v43, %v9475_v16  ;;  %v9571_v46 = vmul.f32 %v9569_v8, %v15198_v40 }
0x5767   : > { %v9566_v49 = vadd.f32 %v9565_v56, %v9560_v11 }
0x5769   : > { %v9572_v27 = vadd.f32 %v9571_v46, %v9566_v49 }
0x576b   : > { %9573 = vst [vmem:[%s1732_s22] sm:$0xff] %v9572_v27 }
0x576c   : > { %13211 = shalt.err (!%p13208_p2)
}
0x576d   : > { %s13212_s9 = scalar_lea.hbm %s15219_s3, 128  ;;  %s13216_s11 = scalar_lea.hbm %s15463_s18, 256 }
0x576e   : > { %p13213_p11 = scmp.ne.s32.totalorder %s15219_s3, %s13212_s9  ;;  %p13217_p5 = scmp.lt.u32.totalorder %s15219_s3, %s15463_s18 }
0x576f   : > { %p13218_p13 = scmp.lt.u32.totalorder %s13216_s11, %s13212_s9  ;;  %p13220_p0 = scmp.lt.u32.totalorder %s13212_s9, %s15219_s3 }
0x5770   : > { %p13214_p12 = pnand %p13213_p11, %p15465_p9 }
0x5771   : > { %p13219_p4 = por %p13218_p13, %p13217_p5 }
0x5772   : > { %p13215_p8 = pneg %p13214_p12 }
0x5773   : > { %p13221_p1 = por %p13220_p0, %p13219_p4 }
0x5775   : > { %p13222_p3 = pnand %p13221_p1, %p13215_p8 }
0x5777   : > { %13225 = shalt.err (!%p13222_p3)
}
0x5778   : > { %12212 = dma.vmem_to_hbm [thread:$0]  (%p15465_p9), %s15221_s1, 128, %s15219_s3, %s9576_s4  }
0x5779 PF: > { %s15466_s6 = sld [smem:[#allocation92_spill]]  ;;  %s15467_s5 = sld [smem:[#allocation97_spill]] }
0x577a   : > { %p15469_p7 = scmp.ge.s32.totalorder %s13312_s26, 2 }
0x577f   : > { %s9608_s22 = sand.u32 1, %s15466_s6   ;;  %p15468_p10 = scmp.ne.s32.totalorder %s15467_s5, 0 }
0x5780   : > { %s9609_s2 = scalar_lea.sflag [#allocation4], %s9608_s22 }
0x5781   : > { %p12283_p6 = pnand %p15469_p7, %p15468_p10 }
0x5783   : > { %13295 = dma.done.wait (!%p12283_p6), %s9609_s2, 128  }
0x5784   : > { %13297 = vsyncadd (!%p12283_p6), %s9609_s2, 4294967168  ;;  %s15470_s26 = sld [smem:[#allocation94_spill]]  ;;  %s15471_s23 = sld [smem:[#allocation93_spill]] }
0x5785   : > { %s15472_s9 = sld [smem:[#allocation95_spill]]  ;;  %s15473_s22 = smov %s13304_s0 }
0x578a   : > { %p116_p2 = scmp.ge.s32.totalorder %s15470_s26, 4   ;;  %s15474_s0 = smov %s15471_s23 }
0x578b   : > { %s15475_s23 = smov %s15472_s9 }
0x578c   :  { %118 = sbr.rel (!%p116_p2) target bundleno = 108 (0x6c), region = 474 }
0x5793   :  { %9621 = vsyncpa [#allocation3], 1 }
0x5794   :  { %9623 = vsyncpa [#allocation3 + $0x1], 1 }
0x5795   :  { %9624 = vsyncpa [#allocation6], 1 }
0x5796   :  { %9626 = vsyncpa [#allocation6 + $0x1], 1 }
0x5797   :  { %9627 = vsyncpa [#allocation9], 1 }
0x5798   :  { %9629 = vsyncpa [#allocation9 + $0x1], 1 }
0x5799   :  { %9630 = vsyncpa [#allocation12], 1 }
0x579a   :  { %9631 = vsyncpa [#allocation15], 1 }
0x579b   :  { %9632 = vsyncpa [#allocation18], 1 }
0x579c   :  { %9633 = vsyncpa [#allocation21], 1 }
0x579d   :  { %9634 = vsyncpa [#allocation24], 1 }
0x579e   :  { %9635 = vsyncpa [#allocation27], 1 }
0x579f   :  { %9636 = vsyncpa [#allocation30], 1 }
0x57a0   :  { %9637 = vsyncpa [#allocation33], 1 }
0x57a1   :  { %9638 = vsyncpa [#allocation36], 1 }
0x57a2   :  { %9639 = vsyncpa [#allocation4], 1 }
0x57a3   :  { %9641 = vsyncpa [#allocation4 + $0x1], 1 }

</bundles_post_ra>
